<compile_context>
chip_gen: v7x
topology: tpu7x:2x2x1
jax: 0.10.0
libtpu: 0.0.40
codegen_flags: <defaults>
</compile_context>

<pallas_src>
import functools

import jax
import jax.numpy as jnp
from jax.experimental import pallas as pl
from jax.experimental.pallas import tpu as pltpu


def _largest_tile(total, unit, cap_elems):
    """Largest t dividing `total` with t*unit a multiple of 128 and <= cap_elems.

    Falls back to `total` (a block equal to the full axis is always legal)."""
    cands = [t for t in range(1, total + 1)
             if total % t == 0 and (t * unit) % 128 == 0 and t * unit <= cap_elems]
    return max(cands) if cands else total


def _conv3d_kernel(x_ref, w_ref, b_ref, z_ref, s_ref, ss_ref, patch_ref):
    """3x3x3 'same' conv for one batch sample / one depth slab, fused BN partial stats.

    x_ref:     (D+2, H+2, W+2, Cin)  bf16  zero-padded input (whole sample)
    w_ref:     (Cout, 27*Cin)        bf16  taps flattened as (kd*3+kh)*3+kw, channel minor
    b_ref:     (Cout, 1)             f32   conv bias
    z_ref:     (Cout, Mt)            f32   conv output, Mt = TD*H*W (lane-dense)
    s_ref:     (Cout, 1)             f32   per-tile per-channel sum
    ss_ref:    (Cout, 1)             f32   per-tile per-channel sum of squares
    patch_ref: (Mt, 27*Cin)          bf16  VMEM im2col scratch
    """
    Dp, Hp, Wp, Cin = x_ref.shape
    H, W = Hp - 2, Wp - 2
    Cout, Mt = z_ref.shape
    TD = Mt // (H * W)

    dt = pl.program_id(1)
    d0 = pl.multiple_of(dt * TD, TD)
    xd = x_ref[pl.ds(d0, TD + 2)]                      # (TD+2, Hp, Wp, Cin)

    # Build the im2col patch once in VMEM: 27 shifted windows -> (Mt, 27*Cin).
    for kd in range(3):
        for kh in range(3):
            for kw in range(3):
                tap = (kd * 3 + kh) * 3 + kw
                xs = xd[kd:kd + TD, kh:kh + H, kw:kw + W, :]       # (TD, H, W, Cin)
                patch_ref[:, tap * Cin:(tap + 1) * Cin] = xs.reshape(Mt, Cin)

    # One K=27*Cin MXU matmul, NT form -> lane-dense (Cout, Mt) result.
    z = jax.lax.dot_general(
        w_ref[...], patch_ref[...],
        dimension_numbers=(((1,), (1,)), ((), ())),
        preferred_element_type=jnp.float32)            # (Cout, Mt) f32
    z = z + b_ref[...]
    z_ref[...] = z

    # Fused BatchNorm partial statistics (lane-axis reductions, XLU).
    s_ref[...] = jnp.sum(z, axis=1, keepdims=True)
    ss_ref[...] = jnp.sum(z * z, axis=1, keepdims=True)


def _bn_act_kernel(z_ref, scale_ref, shift_ref, alpha_ref, o_ref, *, act):
    """Normalize + activation on a lane-dense (Cout, TM) block.

    scale/shift are the pre-folded BN affine: y = z*scale + shift.
    """
    y = z_ref[...] * scale_ref[...] + shift_ref[...]
    if act == 'relu':
        y = jnp.maximum(y, 0.0)
    elif act == 'prelu':
        y = jnp.where(y >= 0.0, y, alpha_ref[...] * y)
    elif act == 'elu':
        y = jnp.where(y >= 0.0, y, jnp.expm1(y))
    else:
        raise ValueError(f"unsupported act: {act}")
    o_ref[...] = y.astype(o_ref.dtype)


def luconv_forward(x_ncdhw, weight_oidhw, conv_bias, gamma, beta, prelu_alpha,
                   act='relu', eps=1e-5):
    """Forward pass of _LUConv. Input/output are NCDHW (PyTorch convention)."""
    N, Cin, D, H, W = x_ncdhw.shape
    Cout = weight_oidhw.shape[0]
    M = D * H * W
    K27 = 27 * Cin

    # ---- layout glue (plain JAX): NCDHW -> NDHWC, zero pad, cast bf16 ----
    x = jnp.transpose(x_ncdhw, (0, 2, 3, 4, 1))
    xp = jnp.pad(x, ((0, 0), (1, 1), (1, 1), (1, 1), (0, 0))).astype(jnp.bfloat16)
    # (Cout, Cin, 3,3,3) -> (Cout, kd, kh, kw, Cin) -> (Cout, 27*Cin)
    w2 = jnp.transpose(weight_oidhw, (0, 2, 3, 4, 1)).reshape(Cout, K27).astype(jnp.bfloat16)
    b2 = conv_bias.reshape(Cout, 1).astype(jnp.float32)

    TD = _largest_tile(D, H * W, 16384)     # depth slab per grid step
    ND = D // TD
    Mt = TD * H * W

    # ---- Pallas kernel 1: conv (single K=27*Cin matmul) + fused BN partial stats ----
    z, s, ss = pl.pallas_call(
        _conv3d_kernel,
        out_shape=(
            jax.ShapeDtypeStruct((N, Cout, M), jnp.float32),
            jax.ShapeDtypeStruct((N, ND, Cout, 1), jnp.float32),
            jax.ShapeDtypeStruct((N, ND, Cout, 1), jnp.float32),
        ),
        grid=(N, ND),
        in_specs=[
            pl.BlockSpec((None, D + 2, H + 2, W + 2, Cin), lambda n, d: (n, 0, 0, 0, 0)),
            pl.BlockSpec((Cout, K27), lambda n, d: (0, 0)),
            pl.BlockSpec((Cout, 1), lambda n, d: (0, 0)),
        ],
        out_specs=(
            pl.BlockSpec((None, Cout, Mt), lambda n, d: (n, 0, d)),
            pl.BlockSpec((None, None, Cout, 1), lambda n, d: (n, d, 0, 0)),
            pl.BlockSpec((None, None, Cout, 1), lambda n, d: (n, d, 0, 0)),
        ),
        scratch_shapes=[pltpu.VMEM((Mt, K27), jnp.bfloat16)],
        compiler_params=pltpu.CompilerParams(
            dimension_semantics=("parallel", "parallel")),
    )(xp, w2, b2)

    # ---- tiny (Cout-sized) cross-tile stats reduction + affine folding (glue) ----
    cnt = jnp.float32(N * M)
    mean = jnp.sum(s, axis=(0, 1)) / cnt                               # (Cout, 1)
    var = jnp.maximum(jnp.sum(ss, axis=(0, 1)) / cnt - mean * mean, 0.0)  # biased, as PyTorch BN
    inv = jax.lax.rsqrt(var + eps)
    scale = gamma.reshape(Cout, 1).astype(jnp.float32) * inv
    shift = beta.reshape(Cout, 1).astype(jnp.float32) - mean * scale
    alpha = prelu_alpha.reshape(Cout, 1).astype(jnp.float32)

    # ---- Pallas kernel 2: normalize + activation (lane-dense, tiled, parallel) ----
    TM = _largest_tile(M, 1, 32768)
    NM = M // TM
    out = pl.pallas_call(
        functools.partial(_bn_act_kernel, act=act),
        out_shape=jax.ShapeDtypeStruct((N, Cout, M), jnp.float32),
        grid=(N, NM),
        in_specs=[
            pl.BlockSpec((None, Cout, TM), lambda n, m: (n, 0, m)),
            pl.BlockSpec((Cout, 1), lambda n, m: (0, 0)),
            pl.BlockSpec((Cout, 1), lambda n, m: (0, 0)),
            pl.BlockSpec((Cout, 1), lambda n, m: (0, 0)),
        ],
        out_specs=pl.BlockSpec((None, Cout, TM), lambda n, m: (n, 0, m)),
        compiler_params=pltpu.CompilerParams(
            dimension_semantics=("parallel", "parallel")),
    )(z, scale, shift, alpha)

    # (N, Cout, M) is already channel-major -> NCDHW by a pure reshape.
    return out.reshape(N, Cout, D, H, W)


def _reference_forward(x, weight, bias, gamma, beta, prelu_alpha, act='relu', eps=1e-5):
    """Pure-JAX reference (NCDHW), mirrors PyTorch training-mode forward.

    The conv operands are cast to bf16 (f32 accumulation), matching the kernel's
    MXU path; everything else is f32.
    """
    z = jax.lax.conv_general_dilated(
        x.astype(jnp.bfloat16), weight.astype(jnp.bfloat16),
        window_strides=(1, 1, 1), padding=((1, 1), (1, 1), (1, 1)),
        dimension_numbers=('NCDHW', 'OIDHW', 'NCDHW'),
        preferred_element_type=jnp.float32)
    z = z + bias.reshape(1, -1, 1, 1, 1).astype(jnp.float32)
    mean = z.mean(axis=(0, 2, 3, 4), keepdims=True)
    var = z.var(axis=(0, 2, 3, 4), keepdims=True)   # biased, as PyTorch BN uses
    y = (z - mean) / jnp.sqrt(var + eps) * gamma.reshape(1, -1, 1, 1, 1) \
        + beta.reshape(1, -1, 1, 1, 1)
    if act == 'relu':
        y = jnp.maximum(y, 0.0)
    elif act == 'prelu':
        y = jnp.where(y >= 0.0, y, prelu_alpha.reshape(1, -1, 1, 1, 1) * y)
    elif act == 'elu':
        y = jnp.where(y >= 0.0, y, jnp.expm1(y))
    return y


if __name__ == "__main__":
    key = jax.random.PRNGKey(0)
    kx, kw, kb, kg, kbe = jax.random.split(key, 5)

    N, Cin, Cout, D, H, W = 2, 4, 8, 8, 8, 8
    act = 'relu'

    x = jax.random.normal(kx, (N, Cin, D, H, W), dtype=jnp.float32)
    # Conv3d(in_chan=4, out_chan=8, kernel_size=3): weight (Cout, Cin, 3, 3, 3), bias (Cout,)
    w_scale = 1.0 / (Cin * 27) ** 0.5
    weight = jax.random.normal(kw, (Cout, Cin, 3, 3, 3), dtype=jnp.float32) * w_scale
    conv_bias = jax.random.normal(kb, (Cout,), dtype=jnp.float32) * 0.1
    # BatchNorm3d(out_chan): affine params (Cout,)
    gamma = 1.0 + 0.1 * jax.random.normal(kg, (Cout,), dtype=jnp.float32)
    beta = 0.1 * jax.random.normal(kbe, (Cout,), dtype=jnp.float32)
    # PReLU(out_chan) per-channel alpha (only used when act == 'prelu')
    prelu_alpha = 0.25 * jnp.ones((Cout,), dtype=jnp.float32)

    out = luconv_forward(x, weight, conv_bias, gamma, beta, prelu_alpha, act=act)
    out = jax.block_until_ready(out)

    ref = _reference_forward(x, weight, conv_bias, gamma, beta, prelu_alpha, act=act)
    max_err = float(jnp.max(jnp.abs(out - ref)))
    if not bool(jnp.allclose(out, ref, atol=2e-2, rtol=2e-2)):
        raise AssertionError(f"mismatch vs reference, max abs err = {max_err}")

    print("KERNEL_OK")
</pallas_src>

<mosaic_0001>
module attributes {stable_mosaic.version = 11 : i64} {
  func.func @_conv3d_kernel(%arg0: i32, %arg1: i32, %arg2: memref<1x10x10x10x4xbf16, #tpu.memory_space<vmem>>, %arg3: memref<8x108xbf16, #tpu.memory_space<vmem>>, %arg4: memref<8x1xf32, #tpu.memory_space<vmem>>, %arg5: memref<1x8x512xf32, #tpu.memory_space<vmem>>, %arg6: memref<1x1x8x1xf32, #tpu.memory_space<vmem>>, %arg7: memref<1x1x8x1xf32, #tpu.memory_space<vmem>>, %arg8: memref<512x108xbf16, #tpu.memory_space<vmem>>) attributes {dimension_semantics = [#tpu.dimension_semantics<parallel>, #tpu.dimension_semantics<parallel>], iteration_bounds = array<i64: 2, 1>, scalar_prefetch = 0 : i64, scratch_operands = 1 : i64, tpu.core_type = #tpu.core_type<tc>, window_params = [{transform_indices = @transform_0, window_bounds = array<i64: 1, 10, 10, 10, 4>}, {pipeline_mode = #tpu.pipeline_mode<synchronous>, transform_indices = @transform_1, window_bounds = array<i64: 8, 108>}, {pipeline_mode = #tpu.pipeline_mode<synchronous>, transform_indices = @transform_2, window_bounds = array<i64: 8, 1>}, {transform_indices = @transform_3, window_bounds = array<i64: 1, 8, 512>}, {transform_indices = @transform_4, window_bounds = array<i64: 1, 1, 8, 1>}, {transform_indices = @transform_5, window_bounds = array<i64: 1, 1, 8, 1>}]} {
    %c8_i32 = arith.constant 8 : i32
    %0 = arith.muli %arg1, %c8_i32 : i32
    %1 = tpu.assume_multiple %0, 8 : i32
    %c0 = arith.constant 0 : index
    %2 = arith.index_cast %1 : i32 to index
    %c0_0 = arith.constant 0 : index
    %c0_1 = arith.constant 0 : index
    %c0_2 = arith.constant 0 : index
    %3 = vector.load %arg2[%c0, %2, %c0_0, %c0_1, %c0_2] : memref<1x10x10x10x4xbf16, #tpu.memory_space<vmem>>, vector<1x10x10x10x4xbf16>
    %4 = vector.shape_cast %3 : vector<1x10x10x10x4xbf16> to vector<10x10x10x4xbf16>
    %5 = vector.extract_strided_slice %4 {offsets = [0, 0, 0, 0], sizes = [8, 8, 8, 4], strides = [1, 1, 1, 1]} : vector<10x10x10x4xbf16> to vector<8x8x8x4xbf16>
    %6 = vector.shape_cast %5 : vector<8x8x8x4xbf16> to vector<512x4xbf16>
    %c0_3 = arith.constant 0 : index
    %c0_4 = arith.constant 0 : index
    %7 = vector.load %arg8[%c0_3, %c0_4] : memref<512x108xbf16, #tpu.memory_space<vmem>>, vector<512x4xbf16>
    tpu.vector_store %arg8[%c0_3, %c0_4], %6 {strides = array<i32>} : memref<512x108xbf16, #tpu.memory_space<vmem>>, vector<512x4xbf16>,
    %8 = vector.extract_strided_slice %4 {offsets = [0, 0, 1, 0], sizes = [8, 8, 8, 4], strides = [1, 1, 1, 1]} : vector<10x10x10x4xbf16> to vector<8x8x8x4xbf16>
    %9 = vector.shape_cast %8 : vector<8x8x8x4xbf16> to vector<512x4xbf16>
    %c0_5 = arith.constant 0 : index
    %c4 = arith.constant 4 : index
    %10 = vector.load %arg8[%c0_5, %c4] : memref<512x108xbf16, #tpu.memory_space<vmem>>, vector<512x4xbf16>
    tpu.vector_store %arg8[%c0_5, %c4], %9 {strides = array<i32>} : memref<512x108xbf16, #tpu.memory_space<vmem>>, vector<512x4xbf16>,
    %11 = vector.extract_strided_slice %4 {offsets = [0, 0, 2, 0], sizes = [8, 8, 8, 4], strides = [1, 1, 1, 1]} : vector<10x10x10x4xbf16> to vector<8x8x8x4xbf16>
    %12 = vector.shape_cast %11 : vector<8x8x8x4xbf16> to vector<512x4xbf16>
    %c0_6 = arith.constant 0 : index
    %c8 = arith.constant 8 : index
    %13 = vector.load %arg8[%c0_6, %c8] : memref<512x108xbf16, #tpu.memory_space<vmem>>, vector<512x4xbf16>
    tpu.vector_store %arg8[%c0_6, %c8], %12 {strides = array<i32>} : memref<512x108xbf16, #tpu.memory_space<vmem>>, vector<512x4xbf16>,
    %14 = vector.extract_strided_slice %4 {offsets = [0, 1, 0, 0], sizes = [8, 8, 8, 4], strides = [1, 1, 1, 1]} : vector<10x10x10x4xbf16> to vector<8x8x8x4xbf16>
    %15 = vector.shape_cast %14 : vector<8x8x8x4xbf16> to vector<512x4xbf16>
    %c0_7 = arith.constant 0 : index
    %c12 = arith.constant 12 : index
    %16 = vector.load %arg8[%c0_7, %c12] : memref<512x108xbf16, #tpu.memory_space<vmem>>, vector<512x4xbf16>
    tpu.vector_store %arg8[%c0_7, %c12], %15 {strides = array<i32>} : memref<512x108xbf16, #tpu.memory_space<vmem>>, vector<512x4xbf16>,
    %17 = vector.extract_strided_slice %4 {offsets = [0, 1, 1, 0], sizes = [8, 8, 8, 4], strides = [1, 1, 1, 1]} : vector<10x10x10x4xbf16> to vector<8x8x8x4xbf16>
    %18 = vector.shape_cast %17 : vector<8x8x8x4xbf16> to vector<512x4xbf16>
    %c0_8 = arith.constant 0 : index
    %c16 = arith.constant 16 : index
    %19 = vector.load %arg8[%c0_8, %c16] : memref<512x108xbf16, #tpu.memory_space<vmem>>, vector<512x4xbf16>
    tpu.vector_store %arg8[%c0_8, %c16], %18 {strides = array<i32>} : memref<512x108xbf16, #tpu.memory_space<vmem>>, vector<512x4xbf16>,
    %20 = vector.extract_strided_slice %4 {offsets = [0, 1, 2, 0], sizes = [8, 8, 8, 4], strides = [1, 1, 1, 1]} : vector<10x10x10x4xbf16> to vector<8x8x8x4xbf16>
    %21 = vector.shape_cast %20 : vector<8x8x8x4xbf16> to vector<512x4xbf16>
    %c0_9 = arith.constant 0 : index
    %c20 = arith.constant 20 : index
    %22 = vector.load %arg8[%c0_9, %c20] : memref<512x108xbf16, #tpu.memory_space<vmem>>, vector<512x4xbf16>
    tpu.vector_store %arg8[%c0_9, %c20], %21 {strides = array<i32>} : memref<512x108xbf16, #tpu.memory_space<vmem>>, vector<512x4xbf16>,
    %23 = vector.extract_strided_slice %4 {offsets = [0, 2, 0, 0], sizes = [8, 8, 8, 4], strides = [1, 1, 1, 1]} : vector<10x10x10x4xbf16> to vector<8x8x8x4xbf16>
    %24 = vector.shape_cast %23 : vector<8x8x8x4xbf16> to vector<512x4xbf16>
    %c0_10 = arith.constant 0 : index
    %c24 = arith.constant 24 : index
    %25 = vector.load %arg8[%c0_10, %c24] : memref<512x108xbf16, #tpu.memory_space<vmem>>, vector<512x4xbf16>
    tpu.vector_store %arg8[%c0_10, %c24], %24 {strides = array<i32>} : memref<512x108xbf16, #tpu.memory_space<vmem>>, vector<512x4xbf16>,
    %26 = vector.extract_strided_slice %4 {offsets = [0, 2, 1, 0], sizes = [8, 8, 8, 4], strides = [1, 1, 1, 1]} : vector<10x10x10x4xbf16> to vector<8x8x8x4xbf16>
    %27 = vector.shape_cast %26 : vector<8x8x8x4xbf16> to vector<512x4xbf16>
    %c0_11 = arith.constant 0 : index
    %c28 = arith.constant 28 : index
    %28 = vector.load %arg8[%c0_11, %c28] : memref<512x108xbf16, #tpu.memory_space<vmem>>, vector<512x4xbf16>
    tpu.vector_store %arg8[%c0_11, %c28], %27 {strides = array<i32>} : memref<512x108xbf16, #tpu.memory_space<vmem>>, vector<512x4xbf16>,
    %29 = vector.extract_strided_slice %4 {offsets = [0, 2, 2, 0], sizes = [8, 8, 8, 4], strides = [1, 1, 1, 1]} : vector<10x10x10x4xbf16> to vector<8x8x8x4xbf16>
    %30 = vector.shape_cast %29 : vector<8x8x8x4xbf16> to vector<512x4xbf16>
    %c0_12 = arith.constant 0 : index
    %c32 = arith.constant 32 : index
    %31 = vector.load %arg8[%c0_12, %c32] : memref<512x108xbf16, #tpu.memory_space<vmem>>, vector<512x4xbf16>
    tpu.vector_store %arg8[%c0_12, %c32], %30 {strides = array<i32>} : memref<512x108xbf16, #tpu.memory_space<vmem>>, vector<512x4xbf16>,
    %32 = vector.extract_strided_slice %4 {offsets = [1, 0, 0, 0], sizes = [8, 8, 8, 4], strides = [1, 1, 1, 1]} : vector<10x10x10x4xbf16> to vector<8x8x8x4xbf16>
    %33 = vector.shape_cast %32 : vector<8x8x8x4xbf16> to vector<512x4xbf16>
    %c0_13 = arith.constant 0 : index
    %c36 = arith.constant 36 : index
    %34 = vector.load %arg8[%c0_13, %c36] : memref<512x108xbf16, #tpu.memory_space<vmem>>, vector<512x4xbf16>
    tpu.vector_store %arg8[%c0_13, %c36], %33 {strides = array<i32>} : memref<512x108xbf16, #tpu.memory_space<vmem>>, vector<512x4xbf16>,
    %35 = vector.extract_strided_slice %4 {offsets = [1, 0, 1, 0], sizes = [8, 8, 8, 4], strides = [1, 1, 1, 1]} : vector<10x10x10x4xbf16> to vector<8x8x8x4xbf16>
    %36 = vector.shape_cast %35 : vector<8x8x8x4xbf16> to vector<512x4xbf16>
    %c0_14 = arith.constant 0 : index
    %c40 = arith.constant 40 : index
    %37 = vector.load %arg8[%c0_14, %c40] : memref<512x108xbf16, #tpu.memory_space<vmem>>, vector<512x4xbf16>
    tpu.vector_store %arg8[%c0_14, %c40], %36 {strides = array<i32>} : memref<512x108xbf16, #tpu.memory_space<vmem>>, vector<512x4xbf16>,
    %38 = vector.extract_strided_slice %4 {offsets = [1, 0, 2, 0], sizes = [8, 8, 8, 4], strides = [1, 1, 1, 1]} : vector<10x10x10x4xbf16> to vector<8x8x8x4xbf16>
    %39 = vector.shape_cast %38 : vector<8x8x8x4xbf16> to vector<512x4xbf16>
    %c0_15 = arith.constant 0 : index
    %c44 = arith.constant 44 : index
    %40 = vector.load %arg8[%c0_15, %c44] : memref<512x108xbf16, #tpu.memory_space<vmem>>, vector<512x4xbf16>
    tpu.vector_store %arg8[%c0_15, %c44], %39 {strides = array<i32>} : memref<512x108xbf16, #tpu.memory_space<vmem>>, vector<512x4xbf16>,
    %41 = vector.extract_strided_slice %4 {offsets = [1, 1, 0, 0], sizes = [8, 8, 8, 4], strides = [1, 1, 1, 1]} : vector<10x10x10x4xbf16> to vector<8x8x8x4xbf16>
    %42 = vector.shape_cast %41 : vector<8x8x8x4xbf16> to vector<512x4xbf16>
    %c0_16 = arith.constant 0 : index
    %c48 = arith.constant 48 : index
    %43 = vector.load %arg8[%c0_16, %c48] : memref<512x108xbf16, #tpu.memory_space<vmem>>, vector<512x4xbf16>
    tpu.vector_store %arg8[%c0_16, %c48], %42 {strides = array<i32>} : memref<512x108xbf16, #tpu.memory_space<vmem>>, vector<512x4xbf16>,
    %44 = vector.extract_strided_slice %4 {offsets = [1, 1, 1, 0], sizes = [8, 8, 8, 4], strides = [1, 1, 1, 1]} : vector<10x10x10x4xbf16> to vector<8x8x8x4xbf16>
    %45 = vector.shape_cast %44 : vector<8x8x8x4xbf16> to vector<512x4xbf16>
    %c0_17 = arith.constant 0 : index
    %c52 = arith.constant 52 : index
    %46 = vector.load %arg8[%c0_17, %c52] : memref<512x108xbf16, #tpu.memory_space<vmem>>, vector<512x4xbf16>
    tpu.vector_store %arg8[%c0_17, %c52], %45 {strides = array<i32>} : memref<512x108xbf16, #tpu.memory_space<vmem>>, vector<512x4xbf16>,
    %47 = vector.extract_strided_slice %4 {offsets = [1, 1, 2, 0], sizes = [8, 8, 8, 4], strides = [1, 1, 1, 1]} : vector<10x10x10x4xbf16> to vector<8x8x8x4xbf16>
    %48 = vector.shape_cast %47 : vector<8x8x8x4xbf16> to vector<512x4xbf16>
    %c0_18 = arith.constant 0 : index
    %c56 = arith.constant 56 : index
    %49 = vector.load %arg8[%c0_18, %c56] : memref<512x108xbf16, #tpu.memory_space<vmem>>, vector<512x4xbf16>
    tpu.vector_store %arg8[%c0_18, %c56], %48 {strides = array<i32>} : memref<512x108xbf16, #tpu.memory_space<vmem>>, vector<512x4xbf16>,
    %50 = vector.extract_strided_slice %4 {offsets = [1, 2, 0, 0], sizes = [8, 8, 8, 4], strides = [1, 1, 1, 1]} : vector<10x10x10x4xbf16> to vector<8x8x8x4xbf16>
    %51 = vector.shape_cast %50 : vector<8x8x8x4xbf16> to vector<512x4xbf16>
    %c0_19 = arith.constant 0 : index
    %c60 = arith.constant 60 : index
    %52 = vector.load %arg8[%c0_19, %c60] : memref<512x108xbf16, #tpu.memory_space<vmem>>, vector<512x4xbf16>
    tpu.vector_store %arg8[%c0_19, %c60], %51 {strides = array<i32>} : memref<512x108xbf16, #tpu.memory_space<vmem>>, vector<512x4xbf16>,
    %53 = vector.extract_strided_slice %4 {offsets = [1, 2, 1, 0], sizes = [8, 8, 8, 4], strides = [1, 1, 1, 1]} : vector<10x10x10x4xbf16> to vector<8x8x8x4xbf16>
    %54 = vector.shape_cast %53 : vector<8x8x8x4xbf16> to vector<512x4xbf16>
    %c0_20 = arith.constant 0 : index
    %c64 = arith.constant 64 : index
    %55 = vector.load %arg8[%c0_20, %c64] : memref<512x108xbf16, #tpu.memory_space<vmem>>, vector<512x4xbf16>
    tpu.vector_store %arg8[%c0_20, %c64], %54 {strides = array<i32>} : memref<512x108xbf16, #tpu.memory_space<vmem>>, vector<512x4xbf16>,
    %56 = vector.extract_strided_slice %4 {offsets = [1, 2, 2, 0], sizes = [8, 8, 8, 4], strides = [1, 1, 1, 1]} : vector<10x10x10x4xbf16> to vector<8x8x8x4xbf16>
    %57 = vector.shape_cast %56 : vector<8x8x8x4xbf16> to vector<512x4xbf16>
    %c0_21 = arith.constant 0 : index
    %c68 = arith.constant 68 : index
    %58 = vector.load %arg8[%c0_21, %c68] : memref<512x108xbf16, #tpu.memory_space<vmem>>, vector<512x4xbf16>
    tpu.vector_store %arg8[%c0_21, %c68], %57 {strides = array<i32>} : memref<512x108xbf16, #tpu.memory_space<vmem>>, vector<512x4xbf16>,
    %59 = vector.extract_strided_slice %4 {offsets = [2, 0, 0, 0], sizes = [8, 8, 8, 4], strides = [1, 1, 1, 1]} : vector<10x10x10x4xbf16> to vector<8x8x8x4xbf16>
    %60 = vector.shape_cast %59 : vector<8x8x8x4xbf16> to vector<512x4xbf16>
    %c0_22 = arith.constant 0 : index
    %c72 = arith.constant 72 : index
    %61 = vector.load %arg8[%c0_22, %c72] : memref<512x108xbf16, #tpu.memory_space<vmem>>, vector<512x4xbf16>
    tpu.vector_store %arg8[%c0_22, %c72], %60 {strides = array<i32>} : memref<512x108xbf16, #tpu.memory_space<vmem>>, vector<512x4xbf16>,
    %62 = vector.extract_strided_slice %4 {offsets = [2, 0, 1, 0], sizes = [8, 8, 8, 4], strides = [1, 1, 1, 1]} : vector<10x10x10x4xbf16> to vector<8x8x8x4xbf16>
    %63 = vector.shape_cast %62 : vector<8x8x8x4xbf16> to vector<512x4xbf16>
    %c0_23 = arith.constant 0 : index
    %c76 = arith.constant 76 : index
    %64 = vector.load %arg8[%c0_23, %c76] : memref<512x108xbf16, #tpu.memory_space<vmem>>, vector<512x4xbf16>
    tpu.vector_store %arg8[%c0_23, %c76], %63 {strides = array<i32>} : memref<512x108xbf16, #tpu.memory_space<vmem>>, vector<512x4xbf16>,
    %65 = vector.extract_strided_slice %4 {offsets = [2, 0, 2, 0], sizes = [8, 8, 8, 4], strides = [1, 1, 1, 1]} : vector<10x10x10x4xbf16> to vector<8x8x8x4xbf16>
    %66 = vector.shape_cast %65 : vector<8x8x8x4xbf16> to vector<512x4xbf16>
    %c0_24 = arith.constant 0 : index
    %c80 = arith.constant 80 : index
    %67 = vector.load %arg8[%c0_24, %c80] : memref<512x108xbf16, #tpu.memory_space<vmem>>, vector<512x4xbf16>
    tpu.vector_store %arg8[%c0_24, %c80], %66 {strides = array<i32>} : memref<512x108xbf16, #tpu.memory_space<vmem>>, vector<512x4xbf16>,
    %68 = vector.extract_strided_slice %4 {offsets = [2, 1, 0, 0], sizes = [8, 8, 8, 4], strides = [1, 1, 1, 1]} : vector<10x10x10x4xbf16> to vector<8x8x8x4xbf16>
    %69 = vector.shape_cast %68 : vector<8x8x8x4xbf16> to vector<512x4xbf16>
    %c0_25 = arith.constant 0 : index
    %c84 = arith.constant 84 : index
    %70 = vector.load %arg8[%c0_25, %c84] : memref<512x108xbf16, #tpu.memory_space<vmem>>, vector<512x4xbf16>
    tpu.vector_store %arg8[%c0_25, %c84], %69 {strides = array<i32>} : memref<512x108xbf16, #tpu.memory_space<vmem>>, vector<512x4xbf16>,
    %71 = vector.extract_strided_slice %4 {offsets = [2, 1, 1, 0], sizes = [8, 8, 8, 4], strides = [1, 1, 1, 1]} : vector<10x10x10x4xbf16> to vector<8x8x8x4xbf16>
    %72 = vector.shape_cast %71 : vector<8x8x8x4xbf16> to vector<512x4xbf16>
    %c0_26 = arith.constant 0 : index
    %c88 = arith.constant 88 : index
    %73 = vector.load %arg8[%c0_26, %c88] : memref<512x108xbf16, #tpu.memory_space<vmem>>, vector<512x4xbf16>
    tpu.vector_store %arg8[%c0_26, %c88], %72 {strides = array<i32>} : memref<512x108xbf16, #tpu.memory_space<vmem>>, vector<512x4xbf16>,
    %74 = vector.extract_strided_slice %4 {offsets = [2, 1, 2, 0], sizes = [8, 8, 8, 4], strides = [1, 1, 1, 1]} : vector<10x10x10x4xbf16> to vector<8x8x8x4xbf16>
    %75 = vector.shape_cast %74 : vector<8x8x8x4xbf16> to vector<512x4xbf16>
    %c0_27 = arith.constant 0 : index
    %c92 = arith.constant 92 : index
    %76 = vector.load %arg8[%c0_27, %c92] : memref<512x108xbf16, #tpu.memory_space<vmem>>, vector<512x4xbf16>
    tpu.vector_store %arg8[%c0_27, %c92], %75 {strides = array<i32>} : memref<512x108xbf16, #tpu.memory_space<vmem>>, vector<512x4xbf16>,
    %77 = vector.extract_strided_slice %4 {offsets = [2, 2, 0, 0], sizes = [8, 8, 8, 4], strides = [1, 1, 1, 1]} : vector<10x10x10x4xbf16> to vector<8x8x8x4xbf16>
    %78 = vector.shape_cast %77 : vector<8x8x8x4xbf16> to vector<512x4xbf16>
    %c0_28 = arith.constant 0 : index
    %c96 = arith.constant 96 : index
    %79 = vector.load %arg8[%c0_28, %c96] : memref<512x108xbf16, #tpu.memory_space<vmem>>, vector<512x4xbf16>
    tpu.vector_store %arg8[%c0_28, %c96], %78 {strides = array<i32>} : memref<512x108xbf16, #tpu.memory_space<vmem>>, vector<512x4xbf16>,
    %80 = vector.extract_strided_slice %4 {offsets = [2, 2, 1, 0], sizes = [8, 8, 8, 4], strides = [1, 1, 1, 1]} : vector<10x10x10x4xbf16> to vector<8x8x8x4xbf16>
    %81 = vector.shape_cast %80 : vector<8x8x8x4xbf16> to vector<512x4xbf16>
    %c0_29 = arith.constant 0 : index
    %c100 = arith.constant 100 : index
    %82 = vector.load %arg8[%c0_29, %c100] : memref<512x108xbf16, #tpu.memory_space<vmem>>, vector<512x4xbf16>
    tpu.vector_store %arg8[%c0_29, %c100], %81 {strides = array<i32>} : memref<512x108xbf16, #tpu.memory_space<vmem>>, vector<512x4xbf16>,
    %83 = vector.extract_strided_slice %4 {offsets = [2, 2, 2, 0], sizes = [8, 8, 8, 4], strides = [1, 1, 1, 1]} : vector<10x10x10x4xbf16> to vector<8x8x8x4xbf16>
    %84 = vector.shape_cast %83 : vector<8x8x8x4xbf16> to vector<512x4xbf16>
    %c0_30 = arith.constant 0 : index
    %c104 = arith.constant 104 : index
    %85 = vector.load %arg8[%c0_30, %c104] : memref<512x108xbf16, #tpu.memory_space<vmem>>, vector<512x4xbf16>
    tpu.vector_store %arg8[%c0_30, %c104], %84 {strides = array<i32>} : memref<512x108xbf16, #tpu.memory_space<vmem>>, vector<512x4xbf16>,
    %c0_31 = arith.constant 0 : index
    %c0_32 = arith.constant 0 : index
    %86 = vector.load %arg3[%c0_31, %c0_32] : memref<8x108xbf16, #tpu.memory_space<vmem>>, vector<8x108xbf16>
    %c0_33 = arith.constant 0 : index
    %c0_34 = arith.constant 0 : index
    %87 = vector.load %arg8[%c0_33, %c0_34] : memref<512x108xbf16, #tpu.memory_space<vmem>>, vector<512x108xbf16>
    %cst = arith.constant dense<0.000000e+00> : vector<8x512xf32>
    %88 = tpu.matmul %86, %87, %cst {dimension_numbers = #tpu.dot_dimension_numbers<[1], [1], [0], [0], [0, 0, 1, 0], [], []>} : vector<8x108xbf16>, vector<512x108xbf16>, vector<8x512xf32> -> vector<8x512xf32>
    %c0_35 = arith.constant 0 : index
    %c0_36 = arith.constant 0 : index
    %89 = vector.load %arg4[%c0_35, %c0_36] : memref<8x1xf32, #tpu.memory_space<vmem>>, vector<8x1xf32>
    %90 = vector.broadcast %89 : vector<8x1xf32> to vector<8x512xf32>
    %91 = arith.addf %88, %90 : vector<8x512xf32>
    %c0_37 = arith.constant 0 : index
    %c0_38 = arith.constant 0 : index
    %c0_39 = arith.constant 0 : index
    %92 = vector.load %arg5[%c0_37, %c0_38, %c0_39] : memref<1x8x512xf32, #tpu.memory_space<vmem>>, vector<1x8x512xf32>
    %93 = vector.shape_cast %92 : vector<1x8x512xf32> to vector<8x512xf32>
    %94 = vector.shape_cast %91 : vector<8x512xf32> to vector<1x8x512xf32>
    tpu.vector_store %arg5[%c0_37, %c0_38, %c0_39], %94 {strides = array<i32>} : memref<1x8x512xf32, #tpu.memory_space<vmem>>, vector<1x8x512xf32>,
    %cst_40 = arith.constant dense<0.000000e+00> : vector<8xf32>
    %95 = vector.multi_reduction <add>, %91, %cst_40 [1] : vector<8x512xf32> to vector<8xf32>
    %96 = vector.shape_cast %95 : vector<8xf32> to vector<8x1xf32>
    %c0_41 = arith.constant 0 : index
    %c0_42 = arith.constant 0 : index
    %c0_43 = arith.constant 0 : index
    %c0_44 = arith.constant 0 : index
    %97 = vector.load %arg6[%c0_41, %c0_42, %c0_43, %c0_44] : memref<1x1x8x1xf32, #tpu.memory_space<vmem>>, vector<1x1x8x1xf32>
    %98 = vector.shape_cast %97 : vector<1x1x8x1xf32> to vector<8x1xf32>
    %99 = vector.shape_cast %96 : vector<8x1xf32> to vector<1x1x8x1xf32>
    tpu.vector_store %arg6[%c0_41, %c0_42, %c0_43, %c0_44], %99 {strides = array<i32>} : memref<1x1x8x1xf32, #tpu.memory_space<vmem>>, vector<1x1x8x1xf32>,
    %100 = arith.mulf %91, %91 : vector<8x512xf32>
    %cst_45 = arith.constant dense<0.000000e+00> : vector<8xf32>
    %101 = vector.multi_reduction <add>, %100, %cst_45 [1] : vector<8x512xf32> to vector<8xf32>
    %102 = vector.shape_cast %101 : vector<8xf32> to vector<8x1xf32>
    %c0_46 = arith.constant 0 : index
    %c0_47 = arith.constant 0 : index
    %c0_48 = arith.constant 0 : index
    %c0_49 = arith.constant 0 : index
    %103 = vector.load %arg7[%c0_46, %c0_47, %c0_48, %c0_49] : memref<1x1x8x1xf32, #tpu.memory_space<vmem>>, vector<1x1x8x1xf32>
    %104 = vector.shape_cast %103 : vector<1x1x8x1xf32> to vector<8x1xf32>
    %105 = vector.shape_cast %102 : vector<8x1xf32> to vector<1x1x8x1xf32>
    tpu.vector_store %arg7[%c0_46, %c0_47, %c0_48, %c0_49], %105 {strides = array<i32>} : memref<1x1x8x1xf32, #tpu.memory_space<vmem>>, vector<1x1x8x1xf32>,
    return
  }
  func.func @transform_0(%arg0: i32, %arg1: i32) -> (i32, i32, i32, i32, i32) {
    %c0_i32 = arith.constant 0 : i32
    %c0_i32_0 = arith.constant 0 : i32
    %c0_i32_1 = arith.constant 0 : i32
    %c0_i32_2 = arith.constant 0 : i32
    %c0_i32_3 = arith.constant 0 : i32
    return %arg0, %c0_i32, %c0_i32_0, %c0_i32_1, %c0_i32_2 : i32, i32, i32, i32, i32
  }
  func.func @transform_1(%arg0: i32, %arg1: i32) -> (i32, i32) {
    %c0_i32 = arith.constant 0 : i32
    %c0_i32_0 = arith.constant 0 : i32
    %c0_i32_1 = arith.constant 0 : i32
    return %c0_i32, %c0_i32_0 : i32, i32
  }
  func.func @transform_2(%arg0: i32, %arg1: i32) -> (i32, i32) {
    %c0_i32 = arith.constant 0 : i32
    %c0_i32_0 = arith.constant 0 : i32
    %c0_i32_1 = arith.constant 0 : i32
    return %c0_i32, %c0_i32_0 : i32, i32
  }
  func.func @transform_3(%arg0: i32, %arg1: i32) -> (i32, i32, i32) {
    %c0_i32 = arith.constant 0 : i32
    %c0_i32_0 = arith.constant 0 : i32
    return %arg0, %c0_i32, %arg1 : i32, i32, i32
  }
  func.func @transform_4(%arg0: i32, %arg1: i32) -> (i32, i32, i32, i32) {
    %c0_i32 = arith.constant 0 : i32
    %c0_i32_0 = arith.constant 0 : i32
    %c0_i32_1 = arith.constant 0 : i32
    return %arg0, %arg1, %c0_i32, %c0_i32_0 : i32, i32, i32, i32
  }
  func.func @transform_5(%arg0: i32, %arg1: i32) -> (i32, i32, i32, i32) {
    %c0_i32 = arith.constant 0 : i32
    %c0_i32_0 = arith.constant 0 : i32
    %c0_i32_1 = arith.constant 0 : i32
    return %arg0, %arg1, %c0_i32, %c0_i32_0 : i32, i32, i32, i32
  }
}

</mosaic_0001>

<bundles_post_ra>
// kernel: tpu_custom_call.1
= control target key start
LH: loop header
LB: loop body
LE: loop exit
PB: predicated region body
PF: predicated region fallthrough
CT: control target
= control target key end

     0   :  { %11 = vsyncpa [#allocation4], 0  ;;  %s12952_s0 = inlined_call_operand.vmem [shape: bf16[2,10,10,10,4], index: 0, kind: input, shape index: {}]   ;;  %s12953_s1 = inlined_call_operand.vmem [shape: bf16[8,108], index: 1, kind: input, shape index: {}]   ;;  %s12954_s2 = inlined_call_operand.vmem [shape: f32[8,1], index: 2, kind: input, shape index: {}]   ;;  %s12955_s3 = inlined_call_operand.hbm [shape: f32[2,8,512], index: 3, kind: output, shape index: {0}]   ;;  %s12956_s4 = inlined_call_operand.vmem [shape: f32[2,1,8,1], index: 4, kind: output, shape index: {1}]   ;;  %s12957_s5 = inlined_call_operand.vmem [shape: f32[2,1,8,1], index: 5, kind: output, shape index: {2}]  }
   0x1   :  { %13 = vsyncpa [#allocation4 + $0x1], 0  ;;  %s7672_s18 = smov 0   ;;  %s7674_s19 = smov 0  }
   0x2   :  { %s7676_s20 = smov 0   ;;  %s7678_s21 = smov 0  }
   0x3   :  { %s7680_s22 = smov 0   ;;  %s7682_s23 = smov 0  }
   0x4 LB: > { %s6888_s24 = sadd.s32 4294967295, %s7612_s23   ;;  %s6889_s25 = sadd.s32 4294967294, %s7612_s23   ;;  %s7612_s23 = sphi %s7682_s23, %s19_s23   ;;  %s7608_s22 = sphi %s7680_s22, %s14544_s22   ;;  %s7604_s21 = sphi %s7678_s21, %s14543_s21   ;;  %s7600_s20 = sphi %s7676_s20, %s14542_s20   ;;  %s7596_s19 = sphi %s7674_s19, %s14541_s19   ;;  %s7592_s18 = sphi %s7672_s18, %s14540_s18  }
   0x5   : > { %s31_s26 = sadd.s32 1, %s7608_s22  ;;  %s108_s27 = sadd.s32 1, %s7600_s20 }
   0x6   : > { %p33_p0 = scmp.ge.s32.totalorder %s31_s26, 2  ;;  %p118_p1 = scmp.ne.s32.totalorder %s7600_s20, %s7596_s19 }
   0x7   : > { %p119_p2 = scmp.eq.s32.totalorder %s6888_s24, 1  ;;  %p124_p3 = scmp.ne.s32.totalorder %s7596_s19, %s7592_s18 }
   0x8   : > { %s14546_s26 = smov (%p33_p0, %s31_s26), 0  ;;  %p125_p5 = scmp.eq.s32.totalorder %s6889_s25, 1 }
   0x9   : > { %p7712_p4 = por %p119_p2, %p118_p1  ;;  %s103_s29 = ssub.s32 %s7608_s22, %s14546_s26 }
   0xa   : > { %p6892_p6 = scmp.ge.s32.totalorder %s7612_s23, 1  ;;  %p106_p7 = scmp.eq.s32.totalorder %s103_s29, 0 }
   0xb   : > { %p7719_p8 = por %p125_p5, %p124_p3  ;;  %p213_p9 = scmp.lt.s32.totalorder %s7612_s23, 3 }
   0xc   : > { %s7725_s6 = scalar_select %p106_p7, %s7600_s20, %s108_s27  }
   0xd   : > { %p214_p10 = pnand %p6892_p6, %p213_p9 }
   0xf   : > { %217 = sbr.rel (%p214_p10) target bundleno = 2322 (0x912), region = 32 }
  0x16   : > { %p255_p11 = scmp.lt.s32.totalorder %s7604_s21, 1  ;;  %vm705_vm0 = vsmask.f32 3328  ;;  %vm706_vm1 = vsmask.f32 7440  ;;  %v13571_v29 = vmov 0 }
  0x17   : > { %vm7748_vm2 = vmor %vm705_vm0, %vm706_vm1  ;;  %s7614_s12 = smov 4   ;;  %vm1893_vm3 = vcmask 1042432   ;;  %vm1894_vm4 = vcmask 1046532   ;;  %s7615_s13 = smov 8   ;;  %vm672_vm6 = vcmask 31744   ;;  %vm1796_vm7 = vcmask 64544  }
  0x18   : > { %s7729_s7 = scalar_select %p255_p11, %s7604_s21, 1  ;;  %v13572_v29 = vsel %vm7748_vm2, 4294967295, %v13571_v29  ;;  %vm8431_vm5 = vmor %vm1893_vm3, %vm1894_vm4  ;;  %vm2344_vm8 = vcmask 97344   ;;  %vm2521_vm9 = vcmask 130144   ;;  %vm2802_vm10 = vcmask 162944  }
  0x19   : > { %13573 = vst [vmem:[#allocation6_spill] sm:$0xff] %v13572_v29  ;;  %s7616_s14 = smov 12   ;;  %s7617_s15 = smov 16   ;;  %vm3011_vm11 = vcmask 195744   ;;  %vm3164_vm12 = vcmask 228544   ;;  %vm3421_vm13 = vcmask 261344  }
  0x1a   : > { %s7327_s8 = smul.u32 800, %s7729_s7  ;;  %s7618_s16 = smov 20   ;;  %vm3606_vm14 = vcmask 294144   ;;  %vm3755_vm15 = vcmask 326944   ;;  %vm4008_vm0 = vcmask 359744   ;;  %vm4189_vm1 = vcmask 392544  }
  0x1b   : > { %s7619_s17 = smov 24   ;;  %s7620_s24 = smov 28   ;;  %vm4324_vm3 = vcmask 425344   ;;  %vm4472_vm4 = vcmask 458144  }
  0x1c   : > { %s7735_s11 = scalar_lea.vmem %s12952_s0, %s7327_s8  ;;  %s7621_s25 = smov 32  }
  0x1d   : > { %v288_v0 = vld [vmem:[%s7735_s11 + $0x20] sm:$0xf]  ;;  %v289_v1 = vld [vmem:[%s7735_s11 + $0x24] sm:$0x1]  ;;  %v290_v2 = vld [vmem:[%s7735_s11 + $0x28] sm:$0xf] }
  0x1e   : > { %v291_v3 = vld [vmem:[%s7735_s11 + $0x2c] sm:$0x1]  ;;  %v292_v4 = vld [vmem:[%s7735_s11 + $0x30] sm:$0xf]  ;;  %v293_v5 = vld [vmem:[%s7735_s11 + $0x34] sm:$0x1] }
  0x1f   : > { %v765_v6 = vshrl.u32 %v288_v0, 16  ;;  %v768_v7 = vshll.u32 %v288_v0, 16  ;;  %v774_v8 = vshll.u32 %v289_v1, 16  ;;  %v779_v9 = vshrl.u32 %v290_v2, 16  ;;  %v286_v10 = vld [vmem:[%s7735_s11 + $0x18] sm:$0xf] }
  0x20   : > { %v782_v11 = vshll.u32 %v290_v2, 16  ;;  %v788_v12 = vshll.u32 %v291_v3, 16  ;;  %v793_v13 = vshrl.u32 %v292_v4, 16  ;;  %v796_v14 = vshll.u32 %v292_v4, 16  ;;  %v287_v15 = vld [vmem:[%s7735_s11 + $0x1c] sm:$0x1] }
  0x21   : > { %v767_v16 = vrot.slane %v765_v6, 4  ;;  %v770_v17 = vrot.slane %v768_v7, 5  ;;  %v776_v18 = vrot.slane %v774_v8, 5  ;;  %v781_v19 = vrot.slane %v779_v9, 4  ;;  %v280_v20 = vld [vmem:[%s7735_s11] sm:$0xf] }
  0x22   : > { %v784_v21 = vrot.slane %v782_v11, 5  ;;  %v790_v22 = vrot.slane %v788_v12, 5  ;;  %v795_v23 = vrot.slane %v793_v13, 4  ;;  %v798_v24 = vrot.slane %v796_v14, 5  ;;  %v281_v33 = vld [vmem:[%s7735_s11 + $0x4] sm:$0x1] }
  0x23   : > { %v771_v25 = vor.u32 %v770_v17, %v767_v16  ;;  %v802_v26 = vshll.u32 %v293_v5, 16  ;;  %v751_v27 = vshrl.u32 %v286_v10, 16  ;;  %v754_v28 = vshll.u32 %v286_v10, 16  ;;  %v282_v39 = vld [vmem:[%s7735_s11 + $0x8] sm:$0xf]  ;;  %s7622_s27 = smov 36  }
  0x24   : > { %v785_v30 = vor.u32 %v784_v21, %v781_v19  ;;  %v799_v31 = vor.u32 %v798_v24, %v795_v23  ;;  %v760_v32 = vshll.u32 %v287_v15, 16  ;;  %v709_v34 = vshrl.u32 %v280_v20, 16  ;;  %v283_v46 = vld [vmem:[%s7735_s11 + $0xc] sm:$0x1]  ;;  %v284_v51 = vld [vmem:[%s7735_s11 + $0x10] sm:$0xf] }
  0x25   : > { %v772_v35 = vrot.slane %v771_v25, 4  ;;  %v804_v36 = vrot.slane %v802_v26, 5  ;;  %v753_v37 = vrot.slane %v751_v27, 4  ;;  %v756_v38 = vrot.slane %v754_v28, 5  ;;  %v285_v57 = vld [vmem:[%s7735_s11 + $0x14] sm:$0x1] }
  0x26   : > { %v786_v40 = vrot.slane %v785_v30, 4  ;;  %v800_v41 = vrot.slane %v799_v31, 4  ;;  %v762_v42 = vrot.slane %v760_v32, 5  ;;  %v711_v43 = vrot.slane %v709_v34, 4  ;;  %v294_v63 = vld [vmem:[%s7735_s11 + $0x38] sm:$0xf] }
  0x27   : > { %v7756_v44 = vsel %vm7748_vm2, %v772_v35, %v776_v18  ;;  %v757_v45 = vor.u32 %v756_v38, %v753_v37  ;;  %v712_v47 = vshll.u32 %v280_v20, 16  ;;  %v718_v48 = vshll.u32 %v281_v33, 16  ;;  %v295_v4 = vld [vmem:[%s7735_s11 + $0x3c] sm:$0x1]  ;;  %v304_v20 = vld [vmem:[%s7735_s11 + $0x60] sm:$0xf] }
  0x28   : > { %13574 = vst [vmem:[#allocation7_spill] sm:$0xff] %v7756_v44  ;;  %v7761_v49 = vsel %vm7748_vm2, %v786_v40, %v790_v22  ;;  %v7765_v50 = vsel %vm7748_vm2, %v800_v41, %v804_v36  ;;  %v723_v52 = vshrl.u32 %v282_v39, 16  ;;  %v726_v53 = vshll.u32 %v282_v39, 16  ;;  %v305_v23 = vld [vmem:[%s7735_s11 + $0x64] sm:$0x1]  ;;  %s7623_s29 = smov 40  }
  0x29   : > { %13575 = vst [vmem:[#allocation8_spill] sm:$0xff] %v7761_v49  ;;  %13576 = vst [vmem:[#allocation9_spill] sm:$0xff] %v7765_v50  ;;  %v7770_v54 = vcombine.low %v7756_v44, %v7761_v49  ;;  %v758_v56 = vrot.slane %v757_v45, 4  ;;  %v714_v58 = vrot.slane %v712_v47, 5  ;;  %v720_v59 = vrot.slane %v718_v48, 5  ;;  %s7624_s8 = smov 44  }
  0x2a   : > { %v725_v60 = vrot.slane %v723_v52, 4  ;;  %v728_v61 = vrot.slane %v726_v53, 5  ;;  %v732_v62 = vshll.u32 %v283_v46, 16  ;;  %v737_v2 = vshrl.u32 %v284_v51, 16  ;;  %v306_v24 = vld [vmem:[%s7735_s11 + $0x68] sm:$0xf] }
  0x2b   : > { %13577 = vst [vmem:[#allocation10_spill] sm:$0xff] %v7770_v54  ;;  %1704 = vrot.lane.b32.xlu1 %v7770_v54, %s7614_s12  ;;  %v7780_v0 = vsel %vm7748_vm2, %v758_v56, %v762_v42  ;;  %v715_v1 = vor.u32 %v714_v58, %v711_v43  ;;  %v740_v3 = vshll.u32 %v284_v51, 16  ;;  %v746_v8 = vshll.u32 %v285_v57, 16  ;;  %v307_v33 = vld [vmem:[%s7735_s11 + $0x6c] sm:$0x1]  ;;  %s7625_s9 = smov 48  }
  0x2c   : > { %13578 = vst [vmem:[#allocation11_spill] sm:$0xff] %v7780_v0  ;;  %v729_v6 = vor.u32 %v728_v61, %v725_v60  ;;  %v734_v7 = vrot.slane %v732_v62, 5  ;;  %v739_v10 = vrot.slane %v737_v2, 4  ;;  %v807_v12 = vshrl.u32 %v294_v63, 16  ;;  %v300_v39 = vld [vmem:[%s7735_s11 + $0x50] sm:$0xf] }
  0x2d   : > { %v716_v9 = vrot.slane %v715_v1, 4  ;;  %v742_v11 = vrot.slane %v740_v3, 5  ;;  %v810_v14 = vshll.u32 %v294_v63, 16  ;;  %v816_v15 = vshll.u32 %v295_v4, 16  ;;  %v301_v43 = vld [vmem:[%s7735_s11 + $0x54] sm:$0x1] }
  0x2e   : > { %v730_v13 = vrot.slane %v729_v6, 4  ;;  %v748_v18 = vrot.slane %v746_v8, 5  ;;  %v809_v19 = vrot.slane %v807_v12, 4  ;;  %v849_v30 = vshrl.u32 %v304_v20, 16  ;;  %v302_v53 = vld [vmem:[%s7735_s11 + $0x58] sm:$0xf] }
  0x2f   : > { %v721_v16 = vsel %vm7748_vm2, %v716_v9, %v720_v59  ;;  %v743_v17 = vor.u32 %v742_v11, %v739_v10  ;;  %v812_v22 = vrot.slane %v810_v14, 5  ;;  %v818_v28 = vrot.slane %v816_v15, 5  ;;  %v303_v59 = vld [vmem:[%s7735_s11 + $0x5c] sm:$0x1]  ;;  %v312_v61 = vld [vmem:[%s7735_s11 + $0x80] sm:$0xf] }
  0x30   : > { %v7790_v21 = vsel %vm7748_vm2, %v730_v13, %v734_v7  ;;  %v852_v31 = vshll.u32 %v304_v20, 16  ;;  %v858_v34 = vshll.u32 %v305_v23, 16  ;;  %v863_v35 = vshrl.u32 %v306_v24, 16  ;;  %v313_v8 = vld [vmem:[%s7735_s11 + $0x84] sm:$0x1]  ;;  %s7626_s10 = smov 52  }
  0x31   : > { %13579 = vst [vmem:[#allocation12_spill] sm:$0xff] %v7790_v21  ;;  %v744_v25 = vrot.slane %v743_v17, 4  ;;  %v6929_v26 = vcombine.low %v721_v16, %v7790_v21  ;;  %v813_v27 = vor.u32 %v812_v22, %v809_v19  ;;  %v851_v40 = vrot.slane %v849_v30, 4  ;;  %v314_v12 = vld [vmem:[%s7735_s11 + $0x88] sm:$0xf] }
  0x32   : > { %v854_v41 = vrot.slane %v852_v31, 5  ;;  %v860_v42 = vrot.slane %v858_v34, 5  ;;  %v865_v46 = vrot.slane %v863_v35, 4  ;;  %v866_v47 = vshll.u32 %v306_v24, 16  ;;  %v315_v20 = vld [vmem:[%s7735_s11 + $0x8c] sm:$0x1] }
  0x33   : > { %v7797_v32 = vsel %vm7748_vm2, %v744_v25, %v748_v18  ;;  %1700 = vrot.lane.b32.xlu0 %v6929_v26, %s7614_s12  ;;  %v814_v37 = vrot.slane %v813_v27, 4  ;;  %v872_v48 = vshll.u32 %v307_v33, 16  ;;  %v821_v56 = vshrl.u32 %v300_v39, 16  ;;  %v309_v30 = vld [vmem:[%s7735_s11 + $0x74] sm:$0x1] }
  0x34   : > { %13580 = vst [vmem:[#allocation13_spill] sm:$0xff] %v7797_v32  ;;  %v7805_v38 = vcombine.low %v7797_v32, %v7780_v0  ;;  %v855_v52 = vor.u32 %v854_v41, %v851_v40  ;;  %v824_v57 = vshll.u32 %v300_v39, 16  ;;  %v868_v58 = vrot.slane %v866_v47, 5  ;;  %v8555_v29 = vld [vmem:[%s7735_s11 + $0x50] sm:$0xf] }
  0x35   : > { %v7811_v45 = vsel %vm7748_vm2, %v814_v37, %v818_v28  ;;  %v830_v60 = vshll.u32 %v301_v43, 16  ;;  %v874_v63 = vrot.slane %v872_v48, 5  ;;  %v823_v1 = vrot.slane %v821_v56, 4  ;;  %v308_v28 = vld [vmem:[%s7735_s11 + $0x70] sm:$0xf]  ;;  %13688 = vst [vmem:[#allocation119_spill] sm:$0xff] %v8555_v29 }
  0x36   : > { %13581 = vst [vmem:[#allocation14_spill] sm:$0xff] %v7805_v38  ;;  %13582 = vst [vmem:[#allocation15_spill] sm:$0xff] %v7811_v45  ;;  %v7815_v51 = vcombine.low %v7765_v50, %v7811_v45  ;;  %v856_v62 = vrot.slane %v855_v52, 4  ;;  %v826_v2 = vrot.slane %v824_v57, 5  ;;  %v869_v3 = vor.u32 %v868_v58, %v865_v46  ;;  %v310_v37 = vld [vmem:[%s7735_s11 + $0x78] sm:$0xf] }
  0x37   : > { %1702 = vrot.lane.b32.xlu0 %v7805_v38, %s7614_s12  ;;  %v832_v4 = vrot.slane %v830_v60, 5  ;;  %v835_v6 = vshrl.u32 %v302_v53, 16  ;;  %v838_v7 = vshll.u32 %v302_v53, 16  ;;  %v844_v11 = vshll.u32 %v303_v59, 16  ;;  %v311_v46 = vld [vmem:[%s7735_s11 + $0x7c] sm:$0x1] }
  0x38   : > { %13583 = vst [vmem:[#allocation16_spill] sm:$0xff] %v7815_v51  ;;  %1706 = vrot.lane.b32.xlu1 %v7815_v51, %s7614_s12  ;;  %v861_v9 = vsel %vm7748_vm2, %v856_v62, %v860_v42  ;;  %v827_v10 = vor.u32 %v826_v2, %v823_v1  ;;  %v905_v13 = vshrl.u32 %v312_v61, 16  ;;  %v870_v14 = vrot.slane %v869_v3, 4  ;;  %v324_v59 = vld [vmem:[%s7735_s11 + $0xb0] sm:$0xf] }
  0x39   : > { %v837_v15 = vrot.slane %v835_v6, 4  ;;  %v840_v16 = vrot.slane %v838_v7, 5  ;;  %v908_v17 = vshll.u32 %v312_v61, 16  ;;  %v846_v19 = vrot.slane %v844_v11, 5  ;;  %v325_v1 = vld [vmem:[%s7735_s11 + $0xb4] sm:$0x1] }
  0x3a   : > { %v828_v18 = vrot.slane %v827_v10, 4  ;;  %v907_v22 = vrot.slane %v905_v13, 4  ;;  %v914_v23 = vshll.u32 %v313_v8, 16  ;;  %v7831_v24 = vsel %vm7748_vm2, %v870_v14, %v874_v63  ;;  %v326_v2 = vld [vmem:[%s7735_s11 + $0xb8] sm:$0xf] }
  0x3b   : > { %13584 = vst [vmem:[#allocation17_spill] sm:$0xff] %v7831_v24  ;;  %v841_v25 = vor.u32 %v840_v16, %v837_v15  ;;  %v910_v26 = vrot.slane %v908_v17, 5  ;;  %v919_v27 = vshrl.u32 %v314_v12, 16  ;;  %v7836_v31 = vcombine.low %v861_v9, %v7831_v24  ;;  %v327_v13 = vld [vmem:[%s7735_s11 + $0xbc] sm:$0x1] }
  0x3c   : > { %v833_v33 = vsel %vm7748_vm2, %v828_v18, %v832_v4  ;;  %v916_v34 = vrot.slane %v914_v23, 5  ;;  %v922_v35 = vshll.u32 %v314_v12, 16  ;;  %v928_v42 = vshll.u32 %v315_v20, 16  ;;  %v8275_v50 = vld [vmem:[%s7735_s11 + $0x204] sm:$0x1] }
  0x3d   : > { %13585 = vst [vmem:[#allocation18_spill] sm:$0xff] %v7836_v31  ;;  %v842_v39 = vrot.slane %v841_v25, 4  ;;  %v911_v40 = vor.u32 %v910_v26, %v907_v22  ;;  %v921_v41 = vrot.slane %v919_v27, 4  ;;  %1710 = vrot.lane.b32.xlu1 %v7836_v31, %s7614_s12  ;;  %v877_v47 = vshrl.u32 %v308_v28, 16  ;;  %v320_v22 = vld [vmem:[%s7735_s11 + $0xa0] sm:$0xf] }
  0x3e   : > { %v924_v43 = vrot.slane %v922_v35, 5  ;;  %v880_v48 = vshll.u32 %v308_v28, 16  ;;  %v886_v52 = vshll.u32 %v309_v30, 16  ;;  %v930_v57 = vrot.slane %v928_v42, 5  ;;  %v321_v28 = vld [vmem:[%s7735_s11 + $0xa4] sm:$0x1] }
  0x3f   : > { %v847_v53 = vsel %vm7748_vm2, %v842_v39, %v846_v19  ;;  %v912_v56 = vrot.slane %v911_v40, 4  ;;  %v891_v58 = vshrl.u32 %v310_v37, 16  ;;  %v879_v63 = vrot.slane %v877_v47, 4  ;;  %v8103_v31 = vld [vmem:[%s7735_s11 + $0x198] sm:$0xf] }
  0x40   : > { %v7847_v60 = vcombine.low %v833_v33, %v847_v53  ;;  %v7849_v61 = vcombine.low %v847_v53, %v861_v9  ;;  %v925_v62 = vor.u32 %v924_v43, %v921_v41  ;;  %v882_v4 = vrot.slane %v880_v48, 5  ;;  %v323_v48 = vld [vmem:[%s7735_s11 + $0xac] sm:$0x1]  ;;  %v8302_v24 = vld [vmem:[%s7735_s11 + $0x244] sm:$0x1] }
  0x41   : > { %v7855_v3 = vsel %vm7748_vm2, %v912_v56, %v916_v34  ;;  %v888_v6 = vrot.slane %v886_v52, 5  ;;  %v893_v7 = vrot.slane %v891_v58, 4  ;;  %v894_v10 = vshll.u32 %v310_v37, 16  ;;  %v322_v37 = vld [vmem:[%s7735_s11 + $0xa8] sm:$0xf]  ;;  %13637 = vst [vmem:[#allocation70_spill] sm:$0xff] %v8302_v24 }
  0x42   : > { %13586 = vst [vmem:[#allocation19_spill] sm:$0xff] %v7847_v60  ;;  %13587 = vst [vmem:[#allocation20_spill] sm:$0xff] %v7849_v61  ;;  %1708 = vrot.lane.b32.xlu0 %v7847_v60, %s7614_s12  ;;  %v926_v8 = vrot.slane %v925_v62, 4  ;;  %v900_v11 = vshll.u32 %v311_v46, 16  ;;  %v961_v9 = vshrl.u32 %v324_v59, 16  ;;  %v883_v12 = vor.u32 %v882_v4, %v879_v63 }
  0x43   : > { %13588 = vst [vmem:[#allocation21_spill] sm:$0xff] %v7855_v3  ;;  %v964_v14 = vshll.u32 %v324_v59, 16  ;;  %v970_v15 = vshll.u32 %v325_v1, 16  ;;  %v975_v16 = vshrl.u32 %v326_v2, 16  ;;  %v896_v18 = vrot.slane %v894_v10, 5 }
  0x44   : > { %v7862_v17 = vsel %vm7748_vm2, %v926_v8, %v930_v57  ;;  %v902_v19 = vrot.slane %v900_v11, 5  ;;  %v963_v20 = vrot.slane %v961_v9, 4  ;;  %v884_v25 = vrot.slane %v883_v12, 4  ;;  %v332_v59 = vld [vmem:[%s7735_s11 + $0xd0] sm:$0xf] }
  0x45   : > { %13589 = vst [vmem:[#allocation22_spill] sm:$0xff] %v7862_v17  ;;  %v7867_v23 = vcombine.low %v7855_v3, %v7862_v17  ;;  %v966_v26 = vrot.slane %v964_v14, 5  ;;  %v972_v27 = vrot.slane %v970_v15, 5  ;;  %v897_v30 = vor.u32 %v896_v18, %v893_v7  ;;  %v333_v4 = vld [vmem:[%s7735_s11 + $0xd4] sm:$0x1] }
  0x46   : > { %v977_v33 = vrot.slane %v975_v16, 4  ;;  %v978_v34 = vshll.u32 %v326_v2, 16  ;;  %v984_v35 = vshll.u32 %v327_v13, 16  ;;  %v7875_v39 = vsel %vm7748_vm2, %v884_v25, %v888_v6  ;;  %v334_v6 = vld [vmem:[%s7735_s11 + $0xd8] sm:$0xf] }
  0x47   : > { %13590 = vst [vmem:[#allocation23_spill] sm:$0xff] %v7867_v23  ;;  %1714 = vrot.lane.b32.xlu1 %v7867_v23, %s7614_s12  ;;  %13591 = vst [vmem:[#allocation24_spill] sm:$0xff] %v7875_v39  ;;  %v967_v40 = vor.u32 %v966_v26, %v963_v20  ;;  %v933_v41 = vshrl.u32 %v320_v22, 16  ;;  %v936_v42 = vshll.u32 %v320_v22, 16  ;;  %v898_v43 = vrot.slane %v897_v30, 4 }
  0x48   : > { %v980_v46 = vrot.slane %v978_v34, 5  ;;  %v986_v47 = vrot.slane %v984_v35, 5  ;;  %v942_v52 = vshll.u32 %v321_v28, 16  ;;  %v947_v58 = vshrl.u32 %v322_v37, 16  ;;  %v335_v16 = vld [vmem:[%s7735_s11 + $0xdc] sm:$0x1] }
  0x49   : > { %v968_v53 = vrot.slane %v967_v40, 4  ;;  %v935_v56 = vrot.slane %v933_v41, 4  ;;  %v938_v57 = vrot.slane %v936_v42, 5  ;;  %v7881_v62 = vsel %vm7748_vm2, %v898_v43, %v902_v19  ;;  %v328_v28 = vld [vmem:[%s7735_s11 + $0xc0] sm:$0xf] }
  0x4a   : > { %13592 = vst [vmem:[#allocation25_spill] sm:$0xff] %v7881_v62  ;;  %v981_v63 = vor.u32 %v980_v46, %v977_v33  ;;  %v944_v1 = vrot.slane %v942_v52, 5  ;;  %v950_v2 = vshll.u32 %v322_v37, 16  ;;  %v7887_v7 = vcombine.low %v7875_v39, %v7881_v62  ;;  %v329_v30 = vld [vmem:[%s7735_s11 + $0xc4] sm:$0x1] }
  0x4b   : > { %v973_v8 = vsel %vm7748_vm2, %v968_v53, %v972_v27  ;;  %v939_v10 = vor.u32 %v938_v57, %v935_v56  ;;  %v949_v11 = vrot.slane %v947_v58, 4  ;;  %v956_v13 = vshll.u32 %v323_v48, 16  ;;  %v330_v40 = vld [vmem:[%s7735_s11 + $0xc8] sm:$0xf]  ;;  %v331_v48 = vld [vmem:[%s7735_s11 + $0xcc] sm:$0x1] }
  0x4c   : > { %13593 = vst [vmem:[#allocation26_spill] sm:$0xff] %v7887_v7  ;;  %v982_v9 = vrot.slane %v981_v63, 4  ;;  %v952_v12 = vrot.slane %v950_v2, 5  ;;  %v1017_v14 = vshrl.u32 %v332_v59, 16  ;;  %1712 = vrot.lane.b32.xlu0 %v7887_v7, %s7614_s12  ;;  %v1020_v18 = vshll.u32 %v332_v59, 16 }
  0x4d   : > { %v940_v15 = vrot.slane %v939_v10, 4  ;;  %v1026_v19 = vshll.u32 %v333_v4, 16  ;;  %v1031_v20 = vshrl.u32 %v334_v6, 16  ;;  %v958_v26 = vrot.slane %v956_v13, 5  ;;  %v8248_v62 = vld [vmem:[%s7735_s11 + $0x218] sm:$0xf] }
  0x4e   : > { %v7896_v22 = vsel %vm7748_vm2, %v982_v9, %v986_v47  ;;  %v953_v25 = vor.u32 %v952_v12, %v949_v11  ;;  %v1019_v27 = vrot.slane %v1017_v14, 4  ;;  %v1022_v35 = vrot.slane %v1020_v18, 5  ;;  %v345_v11 = vld [vmem:[%s7735_s11 + $0x104] sm:$0x1]  ;;  %v8283_v17 = vld [vmem:[%s7735_s11 + $0x208] sm:$0xf] }
  0x4f   : > { %13594 = vst [vmem:[#allocation27_spill] sm:$0xff] %v7896_v22  ;;  %v7901_v33 = vcombine.low %v973_v8, %v7896_v22  ;;  %v945_v34 = vsel %vm7748_vm2, %v940_v15, %v944_v1  ;;  %v1028_v37 = vrot.slane %v1026_v19, 5  ;;  %v1033_v42 = vrot.slane %v1031_v20, 4  ;;  %v344_v1 = vld [vmem:[%s7735_s11 + $0x100] sm:$0xf] }
  0x50   : > { %v954_v41 = vrot.slane %v953_v25, 4  ;;  %v1034_v43 = vshll.u32 %v334_v6, 16  ;;  %v1040_v46 = vshll.u32 %v335_v16, 16  ;;  %v1023_v47 = vor.u32 %v1022_v35, %v1019_v27  ;;  %v346_v15 = vld [vmem:[%s7735_s11 + $0x108] sm:$0xf] }
  0x51   : > { %13595 = vst [vmem:[#allocation28_spill] sm:$0xff] %v7901_v33  ;;  %1718 = vrot.lane.b32.xlu1 %v7901_v33, %s7614_s12  ;;  %v989_v52 = vshrl.u32 %v328_v28, 16  ;;  %v992_v53 = vshll.u32 %v328_v28, 16  ;;  %v998_v56 = vshll.u32 %v329_v30, 16  ;;  %v1003_v63 = vshrl.u32 %v330_v40, 16 }
  0x52   : > { %v959_v57 = vsel %vm7748_vm2, %v954_v41, %v958_v26  ;;  %v1036_v58 = vrot.slane %v1034_v43, 5  ;;  %v1042_v59 = vrot.slane %v1040_v46, 5  ;;  %v1024_v6 = vrot.slane %v1023_v47, 4  ;;  %v347_v26 = vld [vmem:[%s7735_s11 + $0x10c] sm:$0x1] }
  0x53   : > { %v7912_v2 = vcombine.low %v945_v34, %v959_v57  ;;  %v7914_v4 = vcombine.low %v959_v57, %v973_v8  ;;  %v991_v10 = vrot.slane %v989_v52, 4  ;;  %v994_v12 = vrot.slane %v992_v53, 5  ;;  %v341_v47 = vld [vmem:[%s7735_s11 + $0xf4] sm:$0x1]  ;;  %v342_v57 = vld [vmem:[%s7735_s11 + $0xf8] sm:$0xf] }
  0x54   : > { %v1037_v9 = vor.u32 %v1036_v58, %v1033_v42  ;;  %v1000_v13 = vrot.slane %v998_v56, 5  ;;  %v1005_v14 = vrot.slane %v1003_v63, 4  ;;  %v7922_v16 = vsel %vm7748_vm2, %v1024_v6, %v1028_v37  ;;  %v340_v42 = vld [vmem:[%s7735_s11 + $0xf0] sm:$0xf]  ;;  %v8337_v45 = vld [vmem:[%s7735_s11 + $0x238] sm:$0xf] }
  0x55   : > { %13596 = vst [vmem:[#allocation29_spill] sm:$0xff] %v7912_v2  ;;  %13597 = vst [vmem:[#allocation30_spill] sm:$0xff] %v7914_v4  ;;  %1716 = vrot.lane.b32.xlu0 %v7912_v2, %s7614_s12  ;;  %v1006_v18 = vshll.u32 %v330_v40, 16  ;;  %v1012_v8 = vshll.u32 %v331_v48, 16  ;;  %v1073_v19 = vshrl.u32 %v344_v1, 16  ;;  %v995_v25 = vor.u32 %v994_v12, %v991_v10 }
  0x56   : > { %13598 = vst [vmem:[#allocation31_spill] sm:$0xff] %v7922_v16  ;;  %v1038_v20 = vrot.slane %v1037_v9, 4  ;;  %v1076_v27 = vshll.u32 %v344_v1, 16  ;;  %v1082_v28 = vshll.u32 %v345_v11, 16  ;;  %v1087_v41 = vshrl.u32 %v346_v15, 16  ;;  %13646 = vst [vmem:[#allocation79_spill] sm:$0xff] %v8337_v45 }
  0x57   : > { %v1008_v30 = vrot.slane %v1006_v18, 5  ;;  %v1014_v34 = vrot.slane %v1012_v8, 5  ;;  %v1075_v35 = vrot.slane %v1073_v19, 4  ;;  %v996_v37 = vrot.slane %v995_v25, 4  ;;  %v343_v11 = vld [vmem:[%s7735_s11 + $0xfc] sm:$0x1] }
  0x58   : > { %v7928_v43 = vsel %vm7748_vm2, %v1038_v20, %v1042_v59  ;;  %v1078_v40 = vrot.slane %v1076_v27, 5  ;;  %v1084_v46 = vrot.slane %v1082_v28, 5  ;;  %v1089_v53 = vrot.slane %v1087_v41, 4  ;;  %v352_v19 = vld [vmem:[%s7735_s11 + $0x120] sm:$0xf] }
  0x59   : > { %13599 = vst [vmem:[#allocation32_spill] sm:$0xff] %v7928_v43  ;;  %v7933_v48 = vcombine.low %v7922_v16, %v7928_v43  ;;  %v1009_v52 = vor.u32 %v1008_v30, %v1005_v14  ;;  %v1090_v56 = vshll.u32 %v346_v15, 16  ;;  %v7938_v58 = vsel %vm7748_vm2, %v996_v37, %v1000_v13  ;;  %v353_v27 = vld [vmem:[%s7735_s11 + $0x124] sm:$0x1]  ;;  %v354_v28 = vld [vmem:[%s7735_s11 + $0x128] sm:$0xf] }
  0x5a   : > { %13601 = vst [vmem:[#allocation34_spill] sm:$0xff] %v7938_v58  ;;  %v1079_v59 = vor.u32 %v1078_v40, %v1075_v35  ;;  %v1096_v63 = vshll.u32 %v347_v26, 16  ;;  %v1045_v1 = vshrl.u32 %v340_v42, 16  ;;  %v1048_v9 = vshll.u32 %v340_v42, 16  ;;  %v8216_v43 = vld [vmem:[%s7735_s11 + $0x1e8] sm:$0xf] }
  0x5b   : > { %13600 = vst [vmem:[#allocation33_spill] sm:$0xff] %v7933_v48  ;;  %1722 = vrot.lane.b32.xlu1 %v7933_v48, %s7614_s12  ;;  %v1010_v6 = vrot.slane %v1009_v52, 4  ;;  %v1092_v10 = vrot.slane %v1090_v56, 5  ;;  %v1054_v12 = vshll.u32 %v341_v47, 16  ;;  %v1059_v8 = vshrl.u32 %v342_v57, 16 }
  0x5c   : > { %v1080_v14 = vrot.slane %v1079_v59, 4  ;;  %v1098_v15 = vrot.slane %v1096_v63, 5  ;;  %v1047_v18 = vrot.slane %v1045_v1, 4  ;;  %v1050_v25 = vrot.slane %v1048_v9, 5 }
  0x5d   : > { %v7946_v13 = vsel %vm7748_vm2, %v1010_v6, %v1014_v34  ;;  %v1093_v20 = vor.u32 %v1092_v10, %v1089_v53  ;;  %v1056_v26 = vrot.slane %v1054_v12, 5  ;;  %v1061_v41 = vrot.slane %v1059_v8, 4  ;;  %v355_v53 = vld [vmem:[%s7735_s11 + $0x12c] sm:$0x1]  ;;  %v348_v10 = vld [vmem:[%s7735_s11 + $0x110] sm:$0xf] }
  0x5e   : > { %13602 = vst [vmem:[#allocation35_spill] sm:$0xff] %v7946_v13  ;;  %v7952_v30 = vcombine.low %v7938_v58, %v7946_v13  ;;  %v1085_v35 = vsel %vm7748_vm2, %v1080_v14, %v1084_v46  ;;  %v1062_v42 = vshll.u32 %v342_v57, 16  ;;  %v1051_v40 = vor.u32 %v1050_v25, %v1047_v18  ;;  %v349_v18 = vld [vmem:[%s7735_s11 + $0x114] sm:$0x1]  ;;  %v350_v8 = vld [vmem:[%s7735_s11 + $0x118] sm:$0xf] }
  0x5f   : > { %v1094_v37 = vrot.slane %v1093_v20, 4  ;;  %v1068_v34 = vshll.u32 %v343_v11, 16  ;;  %v1129_v47 = vshrl.u32 %v352_v19, 16  ;;  %v1132_v56 = vshll.u32 %v352_v19, 16  ;;  %v8245_v58 = vld [vmem:[%s7735_s11 + $0x214] sm:$0x1] }
  0x60   : > { %13603 = vst [vmem:[#allocation36_spill] sm:$0xff] %v7952_v30  ;;  %1720 = vrot.lane.b32.xlu0 %v7952_v30, %s7614_s12  ;;  %v1064_v52 = vrot.slane %v1062_v42, 5  ;;  %v1138_v59 = vshll.u32 %v353_v27, 16  ;;  %v1143_v63 = vshrl.u32 %v354_v28, 16  ;;  %v1052_v1 = vrot.slane %v1051_v40, 4 }
  0x61   : > { %v7961_v46 = vsel %vm7748_vm2, %v1094_v37, %v1098_v15  ;;  %v1070_v57 = vrot.slane %v1068_v34, 5  ;;  %v1131_v6 = vrot.slane %v1129_v47, 4  ;;  %v1134_v12 = vrot.slane %v1132_v56, 5  ;;  %v351_v47 = vld [vmem:[%s7735_s11 + $0x11c] sm:$0x1] }
  0x62   : > { %13604 = vst [vmem:[#allocation37_spill] sm:$0xff] %v7961_v46  ;;  %v7965_v11 = vcombine.low %v1085_v35, %v7961_v46  ;;  %v1065_v9 = vor.u32 %v1064_v52, %v1061_v41  ;;  %v1140_v14 = vrot.slane %v1138_v59, 5  ;;  %v1057_v19 = vsel %vm7748_vm2, %v1052_v1, %v1056_v26  ;;  %v8185_v46 = vld [vmem:[%s7735_s11 + $0x1f4] sm:$0x1] }
  0x63   : > { %v1145_v20 = vrot.slane %v1143_v63, 4  ;;  %v1146_v25 = vshll.u32 %v354_v28, 16  ;;  %v1152_v15 = vshll.u32 %v355_v53, 16  ;;  %v1135_v42 = vor.u32 %v1134_v12, %v1131_v6  ;;  %v364_v63 = vld [vmem:[%s7735_s11 + $0x150] sm:$0xf] }
  0x64   : > { %13605 = vst [vmem:[#allocation38_spill] sm:$0xff] %v7965_v11  ;;  %1726 = vrot.lane.b32.xlu1 %v7965_v11, %s7614_s12  ;;  %v1066_v27 = vrot.slane %v1065_v9, 4  ;;  %v1101_v37 = vshrl.u32 %v348_v10, 16  ;;  %v1104_v41 = vshll.u32 %v348_v10, 16  ;;  %v1110_v52 = vshll.u32 %v349_v18, 16 }
  0x65   : > { %v1148_v40 = vrot.slane %v1146_v25, 5  ;;  %v1154_v34 = vrot.slane %v1152_v15, 5  ;;  %v1115_v56 = vshrl.u32 %v350_v8, 16  ;;  %v1136_v28 = vrot.slane %v1135_v42, 4  ;;  %v365_v12 = vld [vmem:[%s7735_s11 + $0x154] sm:$0x1] }
  0x66   : > { %v1071_v26 = vsel %vm7748_vm2, %v1066_v27, %v1070_v57  ;;  %v1103_v59 = vrot.slane %v1101_v37, 4  ;;  %v1106_v53 = vrot.slane %v1104_v41, 5  ;;  %v1112_v10 = vrot.slane %v1110_v52, 5  ;;  %v366_v25 = vld [vmem:[%s7735_s11 + $0x158] sm:$0xf] }
  0x67   : > { %v7977_v1 = vcombine.low %v1057_v19, %v1071_v26  ;;  %v7979_v6 = vcombine.low %v1071_v26, %v1085_v35  ;;  %v1149_v9 = vor.u32 %v1148_v40, %v1145_v20  ;;  %v7985_v18 = vsel %vm7748_vm2, %v1136_v28, %v1140_v14  ;;  %v367_v35 = vld [vmem:[%s7735_s11 + $0x15c] sm:$0x1]  ;;  %v360_v14 = vld [vmem:[%s7735_s11 + $0x140] sm:$0xf] }
  0x68   : > { %13608 = vst [vmem:[#allocation41_spill] sm:$0xff] %v7985_v18  ;;  %v1107_v15 = vor.u32 %v1106_v53, %v1103_v59  ;;  %v1117_v57 = vrot.slane %v1115_v56, 4  ;;  %v1118_v27 = vshll.u32 %v350_v8, 16  ;;  %v1124_v42 = vshll.u32 %v351_v47, 16  ;;  %v361_v53 = vld [vmem:[%s7735_s11 + $0x144] sm:$0x1] }
  0x69   : > { %13606 = vst [vmem:[#allocation39_spill] sm:$0xff] %v7977_v1  ;;  %13607 = vst [vmem:[#allocation40_spill] sm:$0xff] %v7979_v6  ;;  %1724 = vrot.lane.b32.xlu0 %v7977_v1, %s7614_s12  ;;  %v1150_v19 = vrot.slane %v1149_v9, 4  ;;  %v1185_v37 = vshrl.u32 %v364_v63, 16  ;;  %v1188_v20 = vshll.u32 %v364_v63, 16  ;;  %v1194_v52 = vshll.u32 %v365_v12, 16 }
  0x6a   : > { %v1108_v41 = vrot.slane %v1107_v15, 4  ;;  %v1120_v40 = vrot.slane %v1118_v27, 5  ;;  %v1199_v26 = vshrl.u32 %v366_v25, 16  ;;  %v1126_v8 = vrot.slane %v1124_v42, 5  ;;  %v362_v15 = vld [vmem:[%s7735_s11 + $0x148] sm:$0xf] }
  0x6b   : > { %v7993_v56 = vsel %vm7748_vm2, %v1150_v19, %v1154_v34  ;;  %v1187_v28 = vrot.slane %v1185_v37, 4  ;;  %v1190_v59 = vrot.slane %v1188_v20, 5  ;;  %v1196_v12 = vrot.slane %v1194_v52, 5  ;;  %v363_v37 = vld [vmem:[%s7735_s11 + $0x14c] sm:$0x1] }
  0x6c   : > { %13609 = vst [vmem:[#allocation42_spill] sm:$0xff] %v7993_v56  ;;  %v7998_v47 = vcombine.low %v7985_v18, %v7993_v56  ;;  %v8002_v63 = vsel %vm7748_vm2, %v1108_v41, %v1112_v10  ;;  %v1121_v9 = vor.u32 %v1120_v40, %v1117_v57  ;;  %v1201_v34 = vrot.slane %v1199_v26, 4  ;;  %v372_v1 = vld [vmem:[%s7735_s11 + $0x170] sm:$0xf]  ;;  %v373_v52 = vld [vmem:[%s7735_s11 + $0x174] sm:$0x1] }
  0x6d   : > { %13611 = vst [vmem:[#allocation44_spill] sm:$0xff] %v8002_v63  ;;  %v1191_v27 = vor.u32 %v1190_v59, %v1187_v28  ;;  %v1202_v19 = vshll.u32 %v366_v25, 16  ;;  %v1208_v42 = vshll.u32 %v367_v35, 16  ;;  %v1157_v55 = vshrl.u32 %v360_v14, 16  ;;  %v374_v59 = vld [vmem:[%s7735_s11 + $0x178] sm:$0xf] }
  0x6e   : > { %13610 = vst [vmem:[#allocation43_spill] sm:$0xff] %v7998_v47  ;;  %1730 = vrot.lane.b32.xlu1 %v7998_v47, %s7614_s12  ;;  %v1122_v20 = vrot.slane %v1121_v9, 4  ;;  %v1160_v36 = vshll.u32 %v360_v14, 16  ;;  %v1166_v5 = vshll.u32 %v361_v53, 16  ;;  %v1171_v40 = vshrl.u32 %v362_v15, 16 }
  0x6f   : > { %v1192_v10 = vrot.slane %v1191_v27, 4  ;;  %v1204_v41 = vrot.slane %v1202_v19, 5  ;;  %v1210_v57 = vrot.slane %v1208_v42, 5  ;;  %v1159_v35 = vrot.slane %v1157_v55, 4  ;;  %v8027_v47 = vld [vmem:[%s7735_s11 + $0x160] sm:$0xf] }
  0x70   : > { %v8012_v25 = vsel %vm7748_vm2, %v1122_v20, %v1126_v8  ;;  %v1162_v26 = vrot.slane %v1160_v36, 5  ;;  %v1168_v28 = vrot.slane %v1166_v5, 5  ;;  %v1173_v27 = vrot.slane %v1171_v40, 4  ;;  %v8022_v8 = vld [vmem:[%s7735_s11 + $0x17c] sm:$0x1] }
  0x71   : > { %13612 = vst [vmem:[#allocation45_spill] sm:$0xff] %v8012_v25  ;;  %v8017_v14 = vcombine.low %v8002_v63, %v8012_v25  ;;  %v1197_v53 = vsel %vm7748_vm2, %v1192_v10, %v1196_v12  ;;  %v1205_v9 = vor.u32 %v1204_v41, %v1201_v34  ;;  %v1174_v42 = vshll.u32 %v362_v15, 16  ;;  %v8030_v40 = vld [vmem:[%s7735_s11 + $0x164] sm:$0x1]  ;;  %v8188_v63 = vld [vmem:[%s7735_s11 + $0x1f8] sm:$0xf] }
  0x72   : > { %v1163_v19 = vor.u32 %v1162_v26, %v1159_v35  ;;  %v1180_v2 = vshll.u32 %v363_v37, 16  ;;  %v1241_v55 = vshrl.u32 %v372_v1, 16  ;;  %v1244_v36 = vshll.u32 %v372_v1, 16 }
  0x73   : > { %13613 = vst [vmem:[#allocation46_spill] sm:$0xff] %v8017_v14  ;;  %1728 = vrot.lane.b32.xlu0 %v8017_v14, %s7614_s12  ;;  %v1206_v5 = vrot.slane %v1205_v9, 4  ;;  %v1250_v20 = vshll.u32 %v373_v52, 16  ;;  %v1255_v60 = vshrl.u32 %v374_v59, 16  ;;  %v1176_v34 = vrot.slane %v1174_v42, 5 }
  0x74   : > { %v1164_v12 = vrot.slane %v1163_v19, 4  ;;  %v1182_v10 = vrot.slane %v1180_v2, 5  ;;  %v1243_v41 = vrot.slane %v1241_v55, 4  ;;  %v1246_v37 = vrot.slane %v1244_v36, 5  ;;  %v8037_v9 = vld [vmem:[%s7735_s11 + $0x168] sm:$0xf] }
  0x75   : > { %v8034_v15 = vsel %vm7748_vm2, %v1206_v5, %v1210_v57  ;;  %v1252_v35 = vrot.slane %v1250_v20, 5  ;;  %v1257_v26 = vrot.slane %v1255_v60, 4  ;;  %v1177_v2 = vor.u32 %v1176_v34, %v1173_v27  ;;  %v8050_v20 = vld [vmem:[%s7735_s11 + $0x16c] sm:$0x1]  ;;  %v8063_v14 = vld [vmem:[%s7735_s11 + $0x1a8] sm:$0xf] }
  0x76   : > { %13614 = vst [vmem:[#allocation47_spill] sm:$0xff] %v8034_v15  ;;  %v8040_v1 = vcombine.low %v1197_v53, %v8034_v15  ;;  %v1169_v52 = vsel %vm7748_vm2, %v1164_v12, %v1168_v28  ;;  %v1258_v19 = vshll.u32 %v374_v59, 16  ;;  %v1247_v42 = vor.u32 %v1246_v37, %v1243_v41  ;;  %v8055_v37 = vld [vmem:[%s7735_s11 + $0x1a0] sm:$0xf]  ;;  %v8154_v15 = vld [vmem:[%s7735_s11 + $0x1b4] sm:$0x1] }
  0x77   : > { %v1264_v55 = vshll.u32 %v8022_v8, 16  ;;  %v1213_v57 = vshrl.u32 %v8027_v47, 16  ;;  %v1216_v5 = vshll.u32 %v8027_v47, 16  ;;  %v1178_v60 = vrot.slane %v1177_v2, 4 }
  0x78   : > { %13615 = vst [vmem:[#allocation48_spill] sm:$0xff] %v8040_v1  ;;  %1734 = vrot.lane.b32.xlu1 %v8040_v1, %s7614_s12  ;;  %v1260_v36 = vrot.slane %v1258_v19, 5  ;;  %v1222_v28 = vshll.u32 %v8030_v40, 16  ;;  %v1227_v59 = vshrl.u32 %v8037_v9, 16  ;;  %v1248_v27 = vrot.slane %v1247_v42, 4 }
  0x79   : > { %v1266_v12 = vrot.slane %v1264_v55, 5  ;;  %v1215_v34 = vrot.slane %v1213_v57, 4  ;;  %v1218_v41 = vrot.slane %v1216_v5, 5  ;;  %v1183_v11 = vsel %vm7748_vm2, %v1178_v60, %v1182_v10  ;;  %v8060_v19 = vld [vmem:[%s7735_s11 + $0x1a4] sm:$0x1] }
  0x7a   : > { %v1261_v1 = vor.u32 %v1260_v36, %v1257_v26  ;;  %v1224_v48 = vrot.slane %v1222_v28, 5  ;;  %v1229_v2 = vrot.slane %v1227_v59, 4  ;;  %v8065_v33 = vcombine.low %v1169_v52, %v1183_v11  ;;  %v8076_v60 = vld [vmem:[%s7735_s11 + $0x1ac] sm:$0x1] }
  0x7b   : > { %v8067_v42 = vcombine.low %v1183_v11, %v1197_v53  ;;  %v8071_v55 = vsel %vm7748_vm2, %v1248_v27, %v1252_v35  ;;  %v1219_v57 = vor.u32 %v1218_v41, %v1215_v34  ;;  %v1230_v10 = vshll.u32 %v8037_v9, 16  ;;  %v8092_v41 = vld [vmem:[%s7735_s11 + $0x194] sm:$0x1] }
  0x7c   : > { %13616 = vst [vmem:[#allocation49_spill] sm:$0xff] %v8065_v33  ;;  %13618 = vst [vmem:[#allocation51_spill] sm:$0xff] %v8071_v55  ;;  %v1262_v5 = vrot.slane %v1261_v1, 4  ;;  %v1236_v26 = vshll.u32 %v8050_v20, 16  ;;  %v1297_v36 = vshrl.u32 %v8055_v37, 16  ;;  %1732 = vrot.lane.b32.xlu0 %v8065_v33, %s7614_s12  ;;  %v1300_v53 = vshll.u32 %v8055_v37, 16 }
  0x7d   : > { %13617 = vst [vmem:[#allocation50_spill] sm:$0xff] %v8067_v42  ;;  %v1220_v11 = vrot.slane %v1219_v57, 4  ;;  %v1306_v35 = vshll.u32 %v8060_v19, 16  ;;  %v1311_v52 = vshrl.u32 %v8063_v14, 16  ;;  %v8085_v1 = vld [vmem:[%s7735_s11 + $0x190] sm:$0xf] }
  0x7e   : > { %v8089_v28 = vsel %vm7748_vm2, %v1262_v5, %v1266_v12  ;;  %v1232_v59 = vrot.slane %v1230_v10, 5  ;;  %v1238_v27 = vrot.slane %v1236_v26, 5  ;;  %v1299_v34 = vrot.slane %v1297_v36, 4 }
  0x7f   : > { %13619 = vst [vmem:[#allocation52_spill] sm:$0xff] %v8089_v28  ;;  %v8096_v57 = vcombine.low %v8071_v55, %v8089_v28  ;;  %v8100_v33 = vsel %vm7748_vm2, %v1220_v11, %v1224_v48  ;;  %v1302_v23 = vrot.slane %v1300_v53, 5  ;;  %v1308_v30 = vrot.slane %v1306_v35, 5 }
  0x80   : > { %13621 = vst [vmem:[#allocation54_spill] sm:$0xff] %v8100_v33  ;;  %v1233_v12 = vor.u32 %v1232_v59, %v1229_v2  ;;  %v1313_v5 = vrot.slane %v1311_v52, 4  ;;  %v1314_v10 = vshll.u32 %v8063_v14, 16  ;;  %v1320_v26 = vshll.u32 %v8076_v60, 16  ;;  %v8113_v52 = vld [vmem:[%s7735_s11 + $0x19c] sm:$0x1] }
  0x81   : > { %13620 = vst [vmem:[#allocation53_spill] sm:$0xff] %v8096_v57  ;;  %1738 = vrot.lane.b32.xlu1 %v8096_v57, %s7614_s12  ;;  %v1303_v36 = vor.u32 %v1302_v23, %v1299_v34  ;;  %v1269_v51 = vshrl.u32 %v8085_v1, 16  ;;  %v1272_v48 = vshll.u32 %v8085_v1, 16  ;;  %v1278_v11 = vshll.u32 %v8092_v41, 16  ;;  %v8117_v34 = vld [vmem:[%s7735_s11 + $0x1c0] sm:$0xf] }
  0x82   : > { %v1234_v53 = vrot.slane %v1233_v12, 4  ;;  %v1316_v2 = vrot.slane %v1314_v10, 5  ;;  %v1322_v35 = vrot.slane %v1320_v26, 5  ;;  %v1283_v59 = vshrl.u32 %v8103_v31, 16  ;;  %v8125_v10 = vld [vmem:[%s7735_s11 + $0x1c4] sm:$0x1] }
  0x83   : > { %v1304_v7 = vrot.slane %v1303_v36, 4  ;;  %v1271_v38 = vrot.slane %v1269_v51, 4  ;;  %v1274_v57 = vrot.slane %v1272_v48, 5  ;;  %v1280_v23 = vrot.slane %v1278_v11, 5  ;;  %v8128_v26 = vld [vmem:[%s7735_s11 + $0x1c8] sm:$0xf] }
  0x84   : > { %v8121_v54 = vsel %vm7748_vm2, %v1234_v53, %v1238_v27  ;;  %v1317_v42 = vor.u32 %v1316_v2, %v1313_v5  ;;  %v1285_v55 = vrot.slane %v1283_v59, 4  ;;  %v1286_v12 = vshll.u32 %v8103_v31, 16  ;;  %v8138_v53 = vld [vmem:[%s7735_s11 + $0x1cc] sm:$0x1] }
  0x85   : > { %13622 = vst [vmem:[#allocation55_spill] sm:$0xff] %v8121_v54  ;;  %v8132_v51 = vcombine.low %v8100_v33, %v8121_v54  ;;  %v1309_v36 = vsel %vm7748_vm2, %v1304_v7, %v1308_v30  ;;  %v1275_v48 = vor.u32 %v1274_v57, %v1271_v38  ;;  %v1292_v27 = vshll.u32 %v8113_v52, 16  ;;  %v8147_v30 = vld [vmem:[%s7735_s11 + $0x1b0] sm:$0xf]  ;;  %v8157_v33 = vld [vmem:[%s7735_s11 + $0x1b8] sm:$0xf] }
  0x86   : > { %v1318_v5 = vrot.slane %v1317_v42, 4  ;;  %v1288_v11 = vrot.slane %v1286_v12, 5  ;;  %v1353_v2 = vshrl.u32 %v8117_v34, 16  ;;  %v1356_v59 = vshll.u32 %v8117_v34, 16 }
  0x87   : > { %13623 = vst [vmem:[#allocation56_spill] sm:$0xff] %v8132_v51  ;;  %1736 = vrot.lane.b32.xlu0 %v8132_v51, %s7614_s12  ;;  %v1276_v54 = vrot.slane %v1275_v48, 4  ;;  %v1294_v28 = vrot.slane %v1292_v27, 5  ;;  %v1362_v7 = vshll.u32 %v8125_v10, 16  ;;  %v1367_v38 = vshrl.u32 %v8128_v26, 16 }
  0x88   : > { %v8151_v42 = vsel %vm7748_vm2, %v1318_v5, %v1322_v35  ;;  %v1289_v57 = vor.u32 %v1288_v11, %v1285_v55  ;;  %v1355_v12 = vrot.slane %v1353_v2, 4  ;;  %v1358_v6 = vrot.slane %v1356_v59, 5  ;;  %v8169_v5 = vld [vmem:[%s7735_s11 + $0x1bc] sm:$0x1] }
  0x89   : > { %13624 = vst [vmem:[#allocation57_spill] sm:$0xff] %v8151_v42  ;;  %v8160_v48 = vcombine.low %v1309_v36, %v8151_v42  ;;  %v1281_v27 = vsel %vm7748_vm2, %v1276_v54, %v1280_v23  ;;  %v1364_v51 = vrot.slane %v1362_v7, 5  ;;  %v1369_v25 = vrot.slane %v1367_v38, 4 }
  0x8a   : > { %v1290_v18 = vrot.slane %v1289_v57, 4  ;;  %v1359_v56 = vor.u32 %v1358_v6, %v1355_v12  ;;  %v1370_v35 = vshll.u32 %v8128_v26, 16  ;;  %v1376_v55 = vshll.u32 %v8138_v53, 16  ;;  %v8178_v57 = vld [vmem:[%s7735_s11 + $0x1f0] sm:$0xf] }
  0x8b   : > { %13625 = vst [vmem:[#allocation58_spill] sm:$0xff] %v8160_v48  ;;  %1742 = vrot.lane.b32.xlu1 %v8160_v48, %s7614_s12  ;;  %v1325_v11 = vshrl.u32 %v8147_v30, 16  ;;  %v1328_v54 = vshll.u32 %v8147_v30, 16  ;;  %v1334_v23 = vshll.u32 %v8154_v15, 16  ;;  %v1339_v2 = vshrl.u32 %v8157_v33, 16 }
  0x8c   : > { %v1295_v6 = vsel %vm7748_vm2, %v1290_v18, %v1294_v28  ;;  %v1360_v59 = vrot.slane %v1359_v56, 4  ;;  %v1372_v7 = vrot.slane %v1370_v35, 5  ;;  %v1378_v38 = vrot.slane %v1376_v55, 5 }
  0x8d   : > { %v8180_v12 = vcombine.low %v1281_v27, %v1295_v6  ;;  %v8182_v48 = vcombine.low %v1295_v6, %v1309_v36  ;;  %v1327_v42 = vrot.slane %v1325_v11, 4  ;;  %v1330_v4 = vrot.slane %v1328_v54, 5  ;;  %v8199_v11 = vld [vmem:[%s7735_s11 + $0x1fc] sm:$0x1] }
  0x8e   : > { %v8192_v18 = vsel %vm7748_vm2, %v1360_v59, %v1364_v51  ;;  %v1373_v56 = vor.u32 %v1372_v7, %v1369_v25  ;;  %v1336_v28 = vrot.slane %v1334_v23, 5  ;;  %v1341_v35 = vrot.slane %v1339_v2, 4  ;;  %v8206_v2 = vld [vmem:[%s7735_s11 + $0x1e0] sm:$0xf] }
  0x8f   : > { %13626 = vst [vmem:[#allocation59_spill] sm:$0xff] %v8180_v12  ;;  %13627 = vst [vmem:[#allocation60_spill] sm:$0xff] %v8182_v48  ;;  %1740 = vrot.lane.b32.xlu0 %v8180_v12, %s7614_s12  ;;  %v1331_v36 = vor.u32 %v1330_v4, %v1327_v42  ;;  %v1342_v27 = vshll.u32 %v8157_v33, 16  ;;  %v1348_v55 = vshll.u32 %v8169_v5, 16  ;;  %v1409_v54 = vshrl.u32 %v8178_v57, 16 }
  0x90   : > { %13628 = vst [vmem:[#allocation61_spill] sm:$0xff] %v8192_v18  ;;  %v1374_v6 = vrot.slane %v1373_v56, 4  ;;  %v1412_v51 = vshll.u32 %v8178_v57, 16  ;;  %v1418_v25 = vshll.u32 %v8185_v46, 16  ;;  %v1423_v23 = vshrl.u32 %v8188_v63, 16 }
  0x91   : > { %v1332_v59 = vrot.slane %v1331_v36, 4  ;;  %v1344_v4 = vrot.slane %v1342_v27, 5  ;;  %v1350_v42 = vrot.slane %v1348_v55, 5  ;;  %v1411_v7 = vrot.slane %v1409_v54, 4  ;;  %v8209_v12 = vld [vmem:[%s7735_s11 + $0x1e4] sm:$0x1] }
  0x92   : > { %v8213_v48 = vsel %vm7748_vm2, %v1374_v6, %v1378_v38  ;;  %v1414_v56 = vrot.slane %v1412_v51, 5  ;;  %v1420_v13 = vrot.slane %v1418_v25, 5  ;;  %v1425_v16 = vrot.slane %v1423_v23, 4 }
  0x93   : > { %13629 = vst [vmem:[#allocation62_spill] sm:$0xff] %v8213_v48  ;;  %v8220_v61 = vcombine.low %v8192_v18, %v8213_v48  ;;  %v8224_v36 = vsel %vm7748_vm2, %v1332_v59, %v1336_v28  ;;  %v1345_v27 = vor.u32 %v1344_v4, %v1341_v35  ;;  %v1426_v55 = vshll.u32 %v8188_v63, 16  ;;  %v8233_v28 = vld [vmem:[%s7735_s11 + $0x1ec] sm:$0x1]  ;;  %v8238_v48 = vld [vmem:[%s7735_s11 + $0x210] sm:$0xf] }
  0x94   : > { %13631 = vst [vmem:[#allocation64_spill] sm:$0xff] %v8224_v36  ;;  %v1415_v38 = vor.u32 %v1414_v56, %v1411_v7  ;;  %v1432_v54 = vshll.u32 %v8199_v11, 16  ;;  %v1381_v6 = vshrl.u32 %v8206_v2, 16  ;;  %v1384_v51 = vshll.u32 %v8206_v2, 16 }
  0x95   : > { %13630 = vst [vmem:[#allocation63_spill] sm:$0xff] %v8220_v61  ;;  %1746 = vrot.lane.b32.xlu1 %v8220_v61, %s7614_s12  ;;  %v1346_v25 = vrot.slane %v1345_v27, 4  ;;  %v1428_v23 = vrot.slane %v1426_v55, 5  ;;  %v1390_v35 = vshll.u32 %v8209_v12, 16  ;;  %v1395_v59 = vshrl.u32 %v8216_v43, 16 }
  0x96   : > { %v1416_v4 = vrot.slane %v1415_v38, 4  ;;  %v1434_v7 = vrot.slane %v1432_v54, 5  ;;  %v1383_v56 = vrot.slane %v1381_v6, 4  ;;  %v1386_v18 = vrot.slane %v1384_v51, 5 }
  0x97   : > { %v8242_v22 = vsel %vm7748_vm2, %v1346_v25, %v1350_v42  ;;  %v1429_v61 = vor.u32 %v1428_v23, %v1425_v16  ;;  %v1392_v27 = vrot.slane %v1390_v35, 5  ;;  %v1397_v55 = vrot.slane %v1395_v59, 4  ;;  %v8259_v25 = vld [vmem:[%s7735_s11 + $0x21c] sm:$0x1] }
  0x98   : > { %13632 = vst [vmem:[#allocation65_spill] sm:$0xff] %v8242_v22  ;;  %v8252_v38 = vcombine.low %v8224_v36, %v8242_v22  ;;  %v1421_v54 = vsel %vm7748_vm2, %v1416_v4, %v1420_v13  ;;  %v1387_v6 = vor.u32 %v1386_v18, %v1383_v56  ;;  %v1398_v51 = vshll.u32 %v8216_v43, 16  ;;  %v8268_v4 = vld [vmem:[%s7735_s11 + $0x200] sm:$0xf] }
  0x99   : > { %v1430_v42 = vrot.slane %v1429_v61, 4  ;;  %v1404_v16 = vshll.u32 %v8233_v28, 16  ;;  %v1465_v23 = vshrl.u32 %v8238_v48, 16  ;;  %v1468_v35 = vshll.u32 %v8238_v48, 16 }
  0x9a   : > { %13633 = vst [vmem:[#allocation66_spill] sm:$0xff] %v8252_v38  ;;  %1744 = vrot.lane.b32.xlu0 %v8252_v38, %s7614_s12  ;;  %v1388_v59 = vrot.slane %v1387_v6, 4  ;;  %v1400_v22 = vrot.slane %v1398_v51, 5  ;;  %v1474_v13 = vshll.u32 %v8245_v58, 16  ;;  %v1479_v18 = vshrl.u32 %v8248_v62, 16 }
  0x9b   : > { %v8272_v61 = vsel %vm7748_vm2, %v1430_v42, %v1434_v7  ;;  %v1406_v56 = vrot.slane %v1404_v16, 5  ;;  %v1467_v36 = vrot.slane %v1465_v23, 4  ;;  %v1470_v3 = vrot.slane %v1468_v35, 5  ;;  %v8290_v35 = vld [vmem:[%s7735_s11 + $0x20c] sm:$0x1] }
  0x9c   : > { %13634 = vst [vmem:[#allocation67_spill] sm:$0xff] %v8272_v61  ;;  %v8278_v38 = vcombine.low %v1421_v54, %v8272_v61  ;;  %v1393_v6 = vsel %vm7748_vm2, %v1388_v59, %v1392_v27  ;;  %v1401_v51 = vor.u32 %v1400_v22, %v1397_v55  ;;  %v1476_v49 = vrot.slane %v1474_v13, 5 }
  0x9d   : > { %v1471_v32 = vor.u32 %v1470_v3, %v1467_v36  ;;  %v1481_v7 = vrot.slane %v1479_v18, 4  ;;  %v1482_v42 = vshll.u32 %v8248_v62, 16  ;;  %v1488_v16 = vshll.u32 %v8259_v25, 16  ;;  %v8297_v18 = vld [vmem:[%s7735_s11 + $0x240] sm:$0xf] }
  0x9e   : > { %13635 = vst [vmem:[#allocation68_spill] sm:$0xff] %v8278_v38  ;;  %1750 = vrot.lane.b32.xlu1 %v8278_v38, %s7614_s12  ;;  %v1402_v23 = vrot.slane %v1401_v51, 4  ;;  %v1437_v27 = vshrl.u32 %v8268_v4, 16  ;;  %v1440_v22 = vshll.u32 %v8268_v4, 16  ;;  %v1446_v55 = vshll.u32 %v8275_v50, 16  ;;  %13636 = vst [vmem:[#allocation69_spill] sm:$0xff] %v8297_v18 }
  0x9f   : > { %v1472_v3 = vrot.slane %v1471_v32, 4  ;;  %v1484_v36 = vrot.slane %v1482_v42, 5  ;;  %v1490_v59 = vrot.slane %v1488_v16, 5  ;;  %v1451_v13 = vshrl.u32 %v8283_v17, 16  ;;  %v8313_v16 = vld [vmem:[%s7735_s11 + $0x248] sm:$0xf] }
  0xa0   : > { %v1407_v51 = vsel %vm7748_vm2, %v1402_v23, %v1406_v56  ;;  %v1439_v38 = vrot.slane %v1437_v27, 4  ;;  %v1442_v61 = vrot.slane %v1440_v22, 5  ;;  %v1448_v21 = vrot.slane %v1446_v55, 5  ;;  %13641 = vst [vmem:[#allocation74_spill] sm:$0xff] %v8313_v16  ;;  %v8318_v22 = vld [vmem:[%s7735_s11 + $0x24c] sm:$0x1] }
  0xa1   : > { %v8304_v39 = vcombine.low %v1393_v6, %v1407_v51  ;;  %v8306_v44 = vcombine.low %v1407_v51, %v1421_v54  ;;  %v8310_v32 = vsel %vm7748_vm2, %v1472_v3, %v1476_v49  ;;  %v1485_v42 = vor.u32 %v1484_v36, %v1481_v7  ;;  %13642 = vst [vmem:[#allocation75_spill] sm:$0xff] %v8318_v22  ;;  %v8326_v55 = vld [vmem:[%s7735_s11 + $0x230] sm:$0xf] }
  0xa2   : > { %13640 = vst [vmem:[#allocation73_spill] sm:$0xff] %v8310_v32  ;;  %v1443_v0 = vor.u32 %v1442_v61, %v1439_v38  ;;  %v1453_v56 = vrot.slane %v1451_v13, 4  ;;  %v1454_v23 = vshll.u32 %v8283_v17, 16  ;;  %v1460_v27 = vshll.u32 %v8290_v35, 16  ;;  %13643 = vst [vmem:[#allocation76_spill] sm:$0xff] %v8326_v55 }
  0xa3   : > { %13638 = vst [vmem:[#allocation71_spill] sm:$0xff] %v8304_v39  ;;  %13639 = vst [vmem:[#allocation72_spill] sm:$0xff] %v8306_v44  ;;  %1748 = vrot.lane.b32.xlu0 %v8304_v39, %s7614_s12  ;;  %v1486_v54 = vrot.slane %v1485_v42, 4  ;;  %v1521_v49 = vshrl.u32 %v8297_v18, 16  ;;  %v1524_v6 = vshll.u32 %v8297_v18, 16  ;;  %v1530_v7 = vshll.u32 %v8302_v24, 16 }
  0xa4   : > { %v1444_v38 = vrot.slane %v1443_v0, 4  ;;  %v1456_v61 = vrot.slane %v1454_v23, 5  ;;  %v1462_v3 = vrot.slane %v1460_v27, 5  ;;  %v1535_v36 = vshrl.u32 %v8313_v16, 16  ;;  %v8330_v13 = vld [vmem:[%s7735_s11 + $0x234] sm:$0x1] }
  0xa5   : > { %13644 = vst [vmem:[#allocation77_spill] sm:$0xff] %v8330_v13  ;;  %v8334_v51 = vsel %vm7748_vm2, %v1486_v54, %v1490_v59  ;;  %v1523_v42 = vrot.slane %v1521_v49, 4  ;;  %v1526_v39 = vrot.slane %v1524_v6, 5  ;;  %v1532_v44 = vrot.slane %v1530_v7, 5  ;;  %v8350_v49 = vld [vmem:[%s7735_s11 + $0x23c] sm:$0x1] }
  0xa6   : > { %13645 = vst [vmem:[#allocation78_spill] sm:$0xff] %v8334_v51  ;;  %v8341_v0 = vcombine.low %v8310_v32, %v8334_v51  ;;  %v8345_v23 = vsel %vm7748_vm2, %v1444_v38, %v1448_v21  ;;  %v1457_v27 = vor.u32 %v1456_v61, %v1453_v56  ;;  %v1537_v24 = vrot.slane %v1535_v36, 4  ;;  %13649 = vst [vmem:[#allocation82_spill] sm:$0xff] %v8350_v49  ;;  %v8362_v51 = vld [vmem:[%s7735_s11 + $0x264] sm:$0x1] }
  0xa7   : > { %13648 = vst [vmem:[#allocation81_spill] sm:$0xff] %v8345_v23  ;;  %v1527_v18 = vor.u32 %v1526_v39, %v1523_v42  ;;  %v1538_v59 = vshll.u32 %v8313_v16, 16  ;;  %v1544_v54 = vshll.u32 %v8318_v22, 16  ;;  %v1493_v6 = vshrl.u32 %v8326_v55, 16  ;;  %v8359_v39 = vld [vmem:[%s7735_s11 + $0x260] sm:$0xf] }
  0xa8   : > { %13647 = vst [vmem:[#allocation80_spill] sm:$0xff] %v8341_v0  ;;  %1754 = vrot.lane.b32.xlu1 %v8341_v0, %s7614_s12  ;;  %v1458_v7 = vrot.slane %v1457_v27, 4  ;;  %v1496_v21 = vshll.u32 %v8326_v55, 16  ;;  %v1502_v56 = vshll.u32 %v8330_v13, 16  ;;  %v1507_v38 = vshrl.u32 %v8337_v45, 16  ;;  %13650 = vst [vmem:[#allocation83_spill] sm:$0xff] %v8359_v39 }
  0xa9   : > { %v1528_v61 = vrot.slane %v1527_v18, 4  ;;  %v1540_v36 = vrot.slane %v1538_v59, 5  ;;  %v1546_v42 = vrot.slane %v1544_v54, 5  ;;  %v1495_v32 = vrot.slane %v1493_v6, 4  ;;  %13651 = vst [vmem:[#allocation84_spill] sm:$0xff] %v8362_v51 }
  0xaa   : > { %v8366_v22 = vsel %vm7748_vm2, %v1458_v7, %v1462_v3  ;;  %v1498_v27 = vrot.slane %v1496_v21, 5  ;;  %v1504_v0 = vrot.slane %v1502_v56, 5  ;;  %v1509_v55 = vrot.slane %v1507_v38, 4  ;;  %v8369_v16 = vld [vmem:[%s7735_s11 + $0x268] sm:$0xf] }
  0xab   : > { %13652 = vst [vmem:[#allocation85_spill] sm:$0xff] %v8366_v22  ;;  %13653 = vst [vmem:[#allocation86_spill] sm:$0xff] %v8369_v16  ;;  %v8373_v13 = vcombine.low %v8345_v23, %v8366_v22  ;;  %v1533_v18 = vsel %vm7748_vm2, %v1528_v61, %v1532_v44  ;;  %v1541_v59 = vor.u32 %v1540_v36, %v1537_v24  ;;  %v1510_v54 = vshll.u32 %v8337_v45, 16  ;;  %v8384_v22 = vld [vmem:[%s7735_s11 + $0x26c] sm:$0x1] }
  0xac   : > { %v1499_v6 = vor.u32 %v1498_v27, %v1495_v32  ;;  %v1516_v3 = vshll.u32 %v8350_v49, 16  ;;  %v1577_v7 = vshrl.u32 %v8359_v39, 16  ;;  %v1580_v21 = vshll.u32 %v8359_v39, 16  ;;  %13655 = vst [vmem:[#allocation88_spill] sm:$0xff] %v8384_v22  ;;  %v8389_v23 = vld [vmem:[%s7735_s11 + $0x250] sm:$0xf] }
  0xad   : > { %13654 = vst [vmem:[#allocation87_spill] sm:$0xff] %v8373_v13  ;;  %1752 = vrot.lane.b32.xlu0 %v8373_v13, %s7614_s12  ;;  %v1542_v56 = vrot.slane %v1541_v59, 4  ;;  %v1512_v38 = vrot.slane %v1510_v54, 5  ;;  %v1586_v44 = vshll.u32 %v8362_v51, 16  ;;  %v1591_v24 = vshrl.u32 %v8369_v16, 16  ;;  %13656 = vst [vmem:[#allocation89_spill] sm:$0xff] %v8389_v23 }
  0xae   : > { %v1500_v32 = vrot.slane %v1499_v6, 4  ;;  %v1518_v61 = vrot.slane %v1516_v3, 5  ;;  %v1579_v36 = vrot.slane %v1577_v7, 4  ;;  %v1582_v27 = vrot.slane %v1580_v21, 5  ;;  %v8396_v54 = vld [vmem:[%s7735_s11 + $0x254] sm:$0x1] }
  0xaf   : > { %v8393_v39 = vsel %vm7748_vm2, %v1542_v56, %v1546_v42  ;;  %v1513_v13 = vor.u32 %v1512_v38, %v1509_v55  ;;  %v1588_v49 = vrot.slane %v1586_v44, 5  ;;  %v1593_v59 = vrot.slane %v1591_v24, 4  ;;  %13658 = vst [vmem:[#allocation91_spill] sm:$0xff] %v8396_v54  ;;  %v8399_v45 = vld [vmem:[%s7735_s11 + $0x258] sm:$0xf] }
  0xb0   : > { %13657 = vst [vmem:[#allocation90_spill] sm:$0xff] %v8393_v39  ;;  %13659 = vst [vmem:[#allocation92_spill] sm:$0xff] %v8399_v45  ;;  %v8402_v51 = vcombine.low %v1533_v18, %v8393_v39  ;;  %v1505_v6 = vsel %vm7748_vm2, %v1500_v32, %v1504_v0  ;;  %v1583_v3 = vor.u32 %v1582_v27, %v1579_v36  ;;  %v1594_v7 = vshll.u32 %v8369_v16, 16 }
  0xb1   : > { %v1514_v21 = vrot.slane %v1513_v13, 4  ;;  %v1600_v42 = vshll.u32 %v8384_v22, 16  ;;  %v1549_v55 = vshrl.u32 %v8389_v23, 16  ;;  %v1552_v56 = vshll.u32 %v8389_v23, 16  ;;  %v8417_v13 = vld [vmem:[%s7735_s11 + $0x25c] sm:$0x1] }
  0xb2   : > { %13660 = vst [vmem:[#allocation93_spill] sm:$0xff] %v8402_v51  ;;  %1758 = vrot.lane.b32.xlu1 %v8402_v51, %s7614_s12  ;;  %v1584_v38 = vrot.slane %v1583_v3, 4  ;;  %v1596_v44 = vrot.slane %v1594_v7, 5  ;;  %v1558_v24 = vshll.u32 %v8396_v54, 16  ;;  %v1563_v39 = vshrl.u32 %v8399_v45, 16  ;;  %13661 = vst [vmem:[#allocation94_spill] sm:$0xff] %v8417_v13 }
  0xb3   : > { %v1519_v0 = vsel %vm7748_vm2, %v1514_v21, %v1518_v61  ;;  %v1602_v32 = vrot.slane %v1600_v42, 5  ;;  %v1551_v36 = vrot.slane %v1549_v55, 4  ;;  %v1554_v27 = vrot.slane %v1552_v56, 5  ;;  %v7421_v55 = vld [vmem:[%s7735_s11 + $0x14] sm:$0x1] }
  0xb4   : > { %v8419_v22 = vcombine.low %v1505_v6, %v1519_v0  ;;  %v8421_v23 = vcombine.low %v1519_v0, %v1533_v18  ;;  %v8425_v3 = vsel %vm7748_vm2, %v1584_v38, %v1588_v49  ;;  %v1597_v7 = vor.u32 %v1596_v44, %v1593_v59  ;;  %v7423_v0 = vld [vmem:[%s7735_s11 + $0x1c] sm:$0x1] }
  0xb5   : > { %13664 = vst [vmem:[#allocation97_spill] sm:$0xff] %v8425_v3  ;;  %v1555_v51 = vor.u32 %v1554_v27, %v1551_v36  ;;  %v1560_v54 = vrot.slane %v1558_v24, 5  ;;  %v1565_v16 = vrot.slane %v1563_v39, 4  ;;  %v1566_v61 = vshll.u32 %v8399_v45, 16  ;;  %v8436_v39 = vld [vmem:[%s7735_s11 + $0x10] sm:$0xf] }
  0xb6   : > { %13662 = vst [vmem:[#allocation95_spill] sm:$0xff] %v8419_v22  ;;  %13663 = vst [vmem:[#allocation96_spill] sm:$0xff] %v8421_v23  ;;  %1756 = vrot.lane.b32.xlu0 %v8419_v22, %s7614_s12  ;;  %v1598_v6 = vrot.slane %v1597_v7, 4  ;;  %v1572_v18 = vshll.u32 %v8417_v13, 16  ;;  %v13665_v42 = vmov 0  ;;  %v6963_v59 = vrot.slane %v8436_v39, 9 }
  0xb7   : > { %v1556_v21 = vrot.slane %v1555_v51, 4  ;;  %v1568_v49 = vrot.slane %v1566_v61, 5  ;;  %v13666_v42 = vsel %vm8431_vm5, 4294967295, %v13665_v42  ;;  %13668 = vst [vmem:[#allocation99_spill] sm:$0xff] %v8436_v39  ;;  %v1906_v56 = vrot.slane %v7421_v55, 5 }
  0xb8   : > { %13667 = vst [vmem:[#allocation98_spill] sm:$0xff] %v13666_v42  ;;  %v8442_v38 = vsel %vm7748_vm2, %v1598_v6, %v1602_v32  ;;  %v1574_v44 = vrot.slane %v1572_v18, 5  ;;  %v8445_v51 = vld [vmem:[%s7735_s11 + $0x18] sm:$0xf]  ;;  %v1910_v36 = vrot.slane %v7423_v0, 5 }
  0xb9   : > { %13669 = vst [vmem:[#allocation100_spill] sm:$0xff] %v8442_v38  ;;  %13670 = vst [vmem:[#allocation101_spill] sm:$0xff] %v8445_v51  ;;  %v6964_v24 = vrot.slane %v8445_v51, 9  ;;  %v8451_v27 = vcombine.low %v8425_v3, %v8442_v38  ;;  %v8455_v7 = vsel %vm7748_vm2, %v1556_v21, %v1560_v54  ;;  %v1569_v61 = vor.u32 %v1568_v49, %v1565_v16  ;;  %v8466_v18 = vld [vmem:[%s7735_s11] sm:$0xf] }
  0xba   : > { %13672 = vst [vmem:[#allocation103_spill] sm:$0xff] %v8455_v7  ;;  %v8459_v32 = vsel %vm8431_vm5, %v6963_v59, %v1906_v56  ;;  %v6961_v55 = vrot.slane %v8466_v18, 9  ;;  %v7425_v0 = vld [vmem:[%s7735_s11 + $0x4] sm:$0x1]  ;;  %v8471_v54 = vld [vmem:[%s7735_s11 + $0x8] sm:$0xf] }
  0xbb   : > { %13671 = vst [vmem:[#allocation102_spill] sm:$0xff] %v8451_v27  ;;  %13673 = vst [vmem:[#allocation104_spill] sm:$0xff] %v8459_v32  ;;  %v8463_v6 = vsel %vm8431_vm5, %v6964_v24, %v1910_v36  ;;  %v1898_v22 = vrot.slane %v7425_v0, 5  ;;  %v6962_v16 = vrot.slane %v8471_v54, 9  ;;  %1762 = vrot.lane.b32.xlu1 %v8451_v27, %s7614_s12  ;;  %v1570_v21 = vrot.slane %v1569_v61, 4 }
  0xbc   : > { %13674 = vst [vmem:[#allocation105_spill] sm:$0xff] %v8463_v6  ;;  %v8478_v49 = vcombine.low %v8459_v32, %v8463_v6  ;;  %v7427_v59 = vld [vmem:[%s7735_s11 + $0xc] sm:$0x1]  ;;  %v8482_v24 = vld [vmem:[%s7735_s11 + $0x30] sm:$0xf] }
  0xbd   : > { %v1902_v56 = vrot.slane %v7427_v59, 5  ;;  %13676 = vst [vmem:[#allocation107_spill] sm:$0xff] %v8482_v24  ;;  %v6967_v36 = vrot.slane %v8482_v24, 9  ;;  %v7429_v0 = vld [vmem:[%s7735_s11 + $0x34] sm:$0x1]  ;;  %v8493_v13 = vsel %vm7748_vm2, %v1570_v21, %v1574_v44  ;;  %v1899_v59 = vsel %vm8431_vm5, %v6961_v55, %v1898_v22 }
  0xbe   : > { %13675 = vst [vmem:[#allocation106_spill] sm:$0xff] %v8478_v49  ;;  %v1922_v3 = vrot.slane %v7429_v0, 5  ;;  %v8487_v23 = vld [vmem:[%s7735_s11 + $0x38] sm:$0xf]  ;;  %v7431_v27 = vld [vmem:[%s7735_s11 + $0x3c] sm:$0x1]  ;;  %v8503_v0 = vcombine.low %v8455_v7, %v8493_v13 }
  0xbf   : > { %13677 = vst [vmem:[#allocation108_spill] sm:$0xff] %v8487_v23  ;;  %v6968_v38 = vrot.slane %v8487_v23, 9  ;;  %v1926_v61 = vrot.slane %v7431_v27, 5  ;;  %13678 = vst [vmem:[#allocation109_spill] sm:$0xff] %v8493_v13  ;;  %v8499_v45 = vsel %vm8431_vm5, %v6962_v16, %v1902_v56  ;;  %2250 = vrot.lane.b32.xlu1 %v8478_v49, %s7615_s13  ;;  %v8518_v55 = vld [vmem:[%s7735_s11 + $0x20] sm:$0xf] }
  0xc0   : > { %13679 = vst [vmem:[#allocation110_spill] sm:$0xff] %v8499_v45  ;;  %13680 = vst [vmem:[#allocation111_spill] sm:$0xff] %v8503_v0  ;;  %v8509_v44 = vsel %vm8431_vm5, %v6967_v36, %v1922_v3  ;;  %v6965_v16 = vrot.slane %v8518_v55, 9  ;;  %v7433_v21 = vld [vmem:[%s7735_s11 + $0x24] sm:$0x1]  ;;  %1760 = vrot.lane.b32.xlu0 %v8503_v0, %s7614_s12  ;;  %v7025_v3 = vcombine.low %v1899_v59, %v8499_v45  ;;  %s7627_s12 = smov 56  }
  0xc1   : > { %13681 = vst [vmem:[#allocation112_spill] sm:$0xff] %v8509_v44  ;;  %v8515_v22 = vsel %vm8431_vm5, %v6968_v38, %v1926_v61  ;;  %v1914_v56 = vrot.slane %v7433_v21, 5  ;;  %v8530_v38 = vld [vmem:[%s7735_s11 + $0x28] sm:$0xf]  ;;  %v7435_v27 = vld [vmem:[%s7735_s11 + $0x2c] sm:$0x1] }
  0xc2   : > { %13682 = vst [vmem:[#allocation113_spill] sm:$0xff] %v8515_v22  ;;  %v8527_v36 = vcombine.low %v8509_v44, %v8515_v22  ;;  %v6966_v61 = vrot.slane %v8530_v38, 9  ;;  %v1918_v49 = vrot.slane %v7435_v27, 5  ;;  %v8539_v32 = vld [vmem:[%s7735_s11 + $0x60] sm:$0xf] }
  0xc3   : > { %v8536_v21 = vsel %vm8431_vm5, %v6965_v16, %v1914_v56  ;;  %13685 = vst [vmem:[#allocation116_spill] sm:$0xff] %v8539_v32  ;;  %v6971_v0 = vrot.slane %v8539_v32, 9  ;;  %v7437_v59 = vld [vmem:[%s7735_s11 + $0x64] sm:$0x1]  ;;  %v8544_v22 = vld [vmem:[%s7735_s11 + $0x68] sm:$0xf]  ;;  %v8558_v32 = vpop.permute.xlu1 %1704 }
  0xc4   : > { %13683 = vst [vmem:[#allocation114_spill] sm:$0xff] %v8527_v36  ;;  %13684 = vst [vmem:[#allocation115_spill] sm:$0xff] %v8536_v21  ;;  %v1938_v45 = vrot.slane %v7437_v59, 5  ;;  %v6972_v13 = vrot.slane %v8544_v22, 9  ;;  %v8549_v7 = vsel %vm8431_vm5, %v6966_v61, %v1918_v49  ;;  %v7439_v16 = vld [vmem:[%s7735_s11 + $0x6c] sm:$0x1]  ;;  %2254 = vrot.lane.b32.xlu1 %v8527_v36, %s7615_s13  ;;  %2248 = vrot.lane.b32.xlu0 %v7025_v3, %s7615_s13 }
  0xc5   : > { %13686 = vst [vmem:[#allocation117_spill] sm:$0xff] %v8544_v22  ;;  %13687 = vst [vmem:[#allocation118_spill] sm:$0xff] %v8549_v7  ;;  %v1942_v56 = vrot.slane %v7439_v16, 5  ;;  %v6969_v59 = vrot.slane %v8555_v29, 9  ;;  %v8564_v49 = vcombine.low %v8536_v21, %v8549_v7  ;;  %v7441_v27 = vld [vmem:[%s7735_s11 + $0x54] sm:$0x1] }
  0xc6   : > { %v1939_v16 = vsel %vm8431_vm5, %v6971_v0, %v1938_v45  ;;  %v1930_v6 = vrot.slane %v7441_v27, 5  ;;  %v8577_v29 = vld [vmem:[%s7735_s11 + $0x58] sm:$0xf]  ;;  %v7443_v22 = vld [vmem:[%s7735_s11 + $0x5c] sm:$0x1] }
  0xc7   : > { %13689 = vst [vmem:[#allocation120_spill] sm:$0xff] %v8564_v49  ;;  %v8574_v36 = vsel %vm8431_vm5, %v6972_v13, %v1942_v56  ;;  %13691 = vst [vmem:[#allocation122_spill] sm:$0xff] %v8577_v29  ;;  %v6970_v21 = vrot.slane %v8577_v29, 9  ;;  %v1934_v61 = vrot.slane %v7443_v22, 5  ;;  %v8582_v44 = vld [vmem:[%s7735_s11 + $0x80] sm:$0xf]  ;;  %v8595_v29 = vpop.permute.xlu0 %1700 }
  0xc8   : > { %13690 = vst [vmem:[#allocation121_spill] sm:$0xff] %v8574_v36  ;;  %13692 = vst [vmem:[#allocation123_spill] sm:$0xff] %v8582_v44  ;;  %v6975_v45 = vrot.slane %v8582_v44, 9  ;;  %v8586_v0 = vcombine.low %v1939_v16, %v8574_v36  ;;  %v1931_v3 = vsel %vm8431_vm5, %v6969_v59, %v1930_v6  ;;  %v7445_v13 = vld [vmem:[%s7735_s11 + $0x84] sm:$0x1]  ;;  %2252 = vrot.lane.b32.xlu0 %v8564_v49, %s7615_s13 }
  0xc9   : > { %v1954_v27 = vrot.slane %v7445_v13, 5  ;;  %v8592_v56 = vld [vmem:[%s7735_s11 + $0x88] sm:$0xf]  ;;  %v1935_v22 = vsel %vm8431_vm5, %v6970_v21, %v1934_v61  ;;  %v7447_v44 = vld [vmem:[%s7735_s11 + $0x8c] sm:$0x1] }
  0xca   : > { %13693 = vst [vmem:[#allocation124_spill] sm:$0xff] %v8586_v0  ;;  %13694 = vst [vmem:[#allocation125_spill] sm:$0xff] %v8592_v56  ;;  %v6976_v7 = vrot.slane %v8592_v56, 9  ;;  %v1958_v39 = vrot.slane %v7447_v44, 5  ;;  %v8601_v36 = vld [vmem:[%s7735_s11 + $0x70] sm:$0xf]  ;;  %2258 = vrot.lane.b32.xlu1 %v8586_v0, %s7615_s13  ;;  %v8607_v13 = vcombine.low %v1931_v3, %v1935_v22  ;;  %v8609_v56 = vcombine.low %v1935_v22, %v1939_v16  ;;  %v8634_v0 = vpop.permute.xlu1 %1706 }
  0xcb   : > { %13695 = vst [vmem:[#allocation126_spill] sm:$0xff] %v8601_v36  ;;  %v6973_v6 = vrot.slane %v8601_v36, 9  ;;  %v7449_v59 = vld [vmem:[%s7735_s11 + $0x74] sm:$0x1]  ;;  %v8613_v21 = vsel %vm8431_vm5, %v6975_v45, %v1954_v27  ;;  %v8616_v44 = vld [vmem:[%s7735_s11 + $0x78] sm:$0xf] }
  0xcc   : > { %v1946_v51 = vrot.slane %v7449_v59, 5  ;;  %13696 = vst [vmem:[#allocation127_spill] sm:$0xff] %v8607_v13  ;;  %13697 = vst [vmem:[#allocation128_spill] sm:$0xff] %v8609_v56  ;;  %v6974_v61 = vrot.slane %v8616_v44, 9  ;;  %v8623_v3 = vsel %vm8431_vm5, %v6976_v7, %v1958_v39  ;;  %v7451_v45 = vld [vmem:[%s7735_s11 + $0x7c] sm:$0x1]  ;;  %2256 = vrot.lane.b32.xlu0 %v8607_v13, %s7615_s13 }
  0xcd   : > { %13698 = vst [vmem:[#allocation129_spill] sm:$0xff] %v8613_v21  ;;  %13699 = vst [vmem:[#allocation130_spill] sm:$0xff] %v8616_v44  ;;  %v1950_v27 = vrot.slane %v7451_v45, 5  ;;  %v8631_v22 = vld [vmem:[%s7735_s11 + $0xb0] sm:$0xf]  ;;  %v8638_v49 = vcombine.low %v8613_v21, %v8623_v3 }
  0xce   : > { %13700 = vst [vmem:[#allocation131_spill] sm:$0xff] %v8623_v3  ;;  %v8627_v16 = vsel %vm8431_vm5, %v6973_v6, %v1946_v51  ;;  %13702 = vst [vmem:[#allocation133_spill] sm:$0xff] %v8631_v22  ;;  %v6979_v59 = vrot.slane %v8631_v22, 9  ;;  %v7453_v39 = vld [vmem:[%s7735_s11 + $0xb4] sm:$0x1] }
  0xcf   : > { %13701 = vst [vmem:[#allocation132_spill] sm:$0xff] %v8627_v16  ;;  %13703 = vst [vmem:[#allocation134_spill] sm:$0xff] %v8634_v0  ;;  %v1970_v7 = vrot.slane %v7453_v39, 5  ;;  %v8642_v56 = vld [vmem:[%s7735_s11 + $0xb8] sm:$0xf]  ;;  %v8648_v36 = vsel %vm8431_vm5, %v6974_v61, %v1950_v27  ;;  %2262 = vrot.lane.b32.xlu1 %v8638_v49, %s7615_s13 }
  0xd0   : > { %13704 = vst [vmem:[#allocation135_spill] sm:$0xff] %v8638_v49  ;;  %13705 = vst [vmem:[#allocation136_spill] sm:$0xff] %v8642_v56  ;;  %v6980_v51 = vrot.slane %v8642_v56, 9  ;;  %v7455_v6 = vld [vmem:[%s7735_s11 + $0xbc] sm:$0x1]  ;;  %v8663_v61 = vcombine.low %v8627_v16, %v8648_v36 }
  0xd1   : > { %v1974_v45 = vrot.slane %v7455_v6, 5  ;;  %13706 = vst [vmem:[#allocation137_spill] sm:$0xff] %v8648_v36  ;;  %v8651_v22 = vld [vmem:[%s7735_s11 + $0xa0] sm:$0xf]  ;;  %v7457_v21 = vld [vmem:[%s7735_s11 + $0xa4] sm:$0x1]  ;;  %v1971_v27 = vsel %vm8431_vm5, %v6979_v59, %v1970_v7 }
  0xd2   : > { %13707 = vst [vmem:[#allocation138_spill] sm:$0xff] %v8651_v22  ;;  %v6977_v44 = vrot.slane %v8651_v22, 9  ;;  %v1962_v3 = vrot.slane %v7457_v21, 5  ;;  %v8656_v39 = vld [vmem:[%s7735_s11 + $0xa8] sm:$0xf]  ;;  %13709 = vst [vmem:[#allocation140_spill] sm:$0xff] %v8663_v61  ;;  %2260 = vrot.lane.b32.xlu0 %v8663_v61, %s7615_s13 }
  0xd3   : > { %13708 = vst [vmem:[#allocation139_spill] sm:$0xff] %v8656_v39  ;;  %v6978_v0 = vrot.slane %v8656_v39, 9  ;;  %v8669_v6 = vsel %vm8431_vm5, %v6980_v51, %v1974_v45  ;;  %v7459_v21 = vld [vmem:[%s7735_s11 + $0xac] sm:$0x1]  ;;  %v8672_v39 = vpop.permute.xlu0 %1702  ;;  %v8682_v59 = vld [vmem:[%s7735_s11 + $0xd0] sm:$0xf] }
  0xd4   : > { %13710 = vst [vmem:[#allocation141_spill] sm:$0xff] %v8669_v6  ;;  %v1966_v22 = vrot.slane %v7459_v21, 5  ;;  %13711 = vst [vmem:[#allocation142_spill] sm:$0xff] %v8672_v39  ;;  %v8677_v49 = vcombine.low %v1971_v27, %v8669_v6  ;;  %v1963_v36 = vsel %vm8431_vm5, %v6977_v44, %v1962_v3  ;;  %v6983_v7 = vrot.slane %v8682_v59, 9  ;;  %v7461_v51 = vld [vmem:[%s7735_s11 + $0xd4] sm:$0x1] }
  0xd5   : > { %13713 = vst [vmem:[#allocation144_spill] sm:$0xff] %v8682_v59  ;;  %v1986_v45 = vrot.slane %v7461_v51, 5  ;;  %v8689_v16 = vld [vmem:[%s7735_s11 + $0xd8] sm:$0xf]  ;;  %v7463_v6 = vld [vmem:[%s7735_s11 + $0xdc] sm:$0x1] }
  0xd6   : > { %13712 = vst [vmem:[#allocation143_spill] sm:$0xff] %v8677_v49  ;;  %v1967_v21 = vsel %vm8431_vm5, %v6978_v0, %v1966_v22  ;;  %13714 = vst [vmem:[#allocation145_spill] sm:$0xff] %v8689_v16  ;;  %v6984_v13 = vrot.slane %v8689_v16, 9  ;;  %v1990_v56 = vrot.slane %v7463_v6, 5  ;;  %v8694_v39 = vld [vmem:[%s7735_s11 + $0xc0] sm:$0xf]  ;;  %v8706_v16 = vpop.permute.xlu1 %1710  ;;  %2266 = vrot.lane.b32.xlu1 %v8677_v49, %s7615_s13 }
  0xd7   : > { %13715 = vst [vmem:[#allocation146_spill] sm:$0xff] %v8694_v39  ;;  %v6981_v44 = vrot.slane %v8694_v39, 9  ;;  %v8697_v3 = vcombine.low %v1963_v36, %v1967_v21  ;;  %v8699_v59 = vcombine.low %v1967_v21, %v1971_v27  ;;  %v8703_v0 = vsel %vm8431_vm5, %v6983_v7, %v1986_v45  ;;  %v7465_v22 = vld [vmem:[%s7735_s11 + $0xc4] sm:$0x1]  ;;  %13719 = vst [vmem:[#allocation150_spill] sm:$0xff] %v8706_v16  ;;  %v8748_v16 = vpop.permute.xlu0 %1708 }
  0xd8   : > { %13718 = vst [vmem:[#allocation149_spill] sm:$0xff] %v8703_v0  ;;  %v1978_v51 = vrot.slane %v7465_v22, 5  ;;  %v8712_v36 = vsel %vm8431_vm5, %v6984_v13, %v1990_v56  ;;  %v8715_v27 = vld [vmem:[%s7735_s11 + $0xc8] sm:$0xf]  ;;  %v7467_v7 = vld [vmem:[%s7735_s11 + $0xcc] sm:$0x1] }
  0xd9   : > { %13716 = vst [vmem:[#allocation147_spill] sm:$0xff] %v8697_v3  ;;  %13717 = vst [vmem:[#allocation148_spill] sm:$0xff] %v8699_v59  ;;  %v6982_v6 = vrot.slane %v8715_v27, 9  ;;  %v1982_v45 = vrot.slane %v7467_v7, 5  ;;  %v8720_v21 = vld [vmem:[%s7735_s11 + $0x100] sm:$0xf]  ;;  %v8727_v49 = vcombine.low %v8703_v0, %v8712_v36  ;;  %2264 = vrot.lane.b32.xlu0 %v8697_v3, %s7615_s13 }
  0xda   : > { %13720 = vst [vmem:[#allocation151_spill] sm:$0xff] %v8712_v36  ;;  %13721 = vst [vmem:[#allocation152_spill] sm:$0xff] %v8715_v27  ;;  %v6987_v22 = vrot.slane %v8720_v21, 9  ;;  %v8731_v56 = vsel %vm8431_vm5, %v6981_v44, %v1978_v51  ;;  %v7469_v13 = vld [vmem:[%s7735_s11 + $0x104] sm:$0x1] }
  0xdb   : > { %13722 = vst [vmem:[#allocation153_spill] sm:$0xff] %v8720_v21  ;;  %13723 = vst [vmem:[#allocation154_spill] sm:$0xff] %v8727_v49  ;;  %v2002_v59 = vrot.slane %v7469_v13, 5  ;;  %v8735_v7 = vld [vmem:[%s7735_s11 + $0x108] sm:$0xf]  ;;  %v8740_v21 = vsel %vm8431_vm5, %v6982_v6, %v1982_v45  ;;  %2270 = vrot.lane.b32.xlu1 %v8727_v49, %s7615_s13 }
  0xdc   : > { %13724 = vst [vmem:[#allocation155_spill] sm:$0xff] %v8731_v56  ;;  %13725 = vst [vmem:[#allocation156_spill] sm:$0xff] %v8735_v7  ;;  %v6988_v39 = vrot.slane %v8735_v7, 9  ;;  %v7471_v61 = vld [vmem:[%s7735_s11 + $0x10c] sm:$0x1]  ;;  %v8752_v13 = vcombine.low %v8731_v56, %v8740_v21 }
  0xdd   : > { %13726 = vst [vmem:[#allocation157_spill] sm:$0xff] %v8740_v21  ;;  %v2006_v0 = vrot.slane %v7471_v61, 5  ;;  %v8744_v36 = vld [vmem:[%s7735_s11 + $0xf0] sm:$0xf]  ;;  %v7473_v51 = vld [vmem:[%s7735_s11 + $0xf4] sm:$0x1]  ;;  %v2003_v6 = vsel %vm8431_vm5, %v6987_v22, %v2002_v59 }
  0xde   : > { %13727 = vst [vmem:[#allocation158_spill] sm:$0xff] %v8744_v36  ;;  %v6985_v44 = vrot.slane %v8744_v36, 9  ;;  %v1994_v27 = vrot.slane %v7473_v51, 5  ;;  %13728 = vst [vmem:[#allocation159_spill] sm:$0xff] %v8748_v16  ;;  %v8757_v45 = vld [vmem:[%s7735_s11 + $0xf8] sm:$0xf]  ;;  %2268 = vrot.lane.b32.xlu0 %v8752_v13, %s7615_s13 }
  0xdf   : > { %13729 = vst [vmem:[#allocation160_spill] sm:$0xff] %v8752_v13  ;;  %13730 = vst [vmem:[#allocation161_spill] sm:$0xff] %v8757_v45  ;;  %v6986_v61 = vrot.slane %v8757_v45, 9  ;;  %v7475_v7 = vld [vmem:[%s7735_s11 + $0xfc] sm:$0x1]  ;;  %v8765_v51 = vsel %vm8431_vm5, %v6988_v39, %v2006_v0 }
  0xe0   : > { %v1998_v24 = vrot.slane %v7475_v7, 5  ;;  %13731 = vst [vmem:[#allocation162_spill] sm:$0xff] %v8765_v51  ;;  %v1995_v21 = vsel %vm8431_vm5, %v6985_v44, %v1994_v27  ;;  %v8770_v56 = vld [vmem:[%s7735_s11 + $0x120] sm:$0xf]  ;;  %v7477_v22 = vld [vmem:[%s7735_s11 + $0x124] sm:$0x1]  ;;  %v8777_v7 = vcombine.low %v2003_v6, %v8765_v51 }
  0xe1   : > { %13732 = vst [vmem:[#allocation163_spill] sm:$0xff] %v8770_v56  ;;  %v6991_v59 = vrot.slane %v8770_v56, 9  ;;  %v2018_v36 = vrot.slane %v7477_v22, 5  ;;  %v8782_v0 = vld [vmem:[%s7735_s11 + $0x128] sm:$0xf]  ;;  %v8786_v56 = vpop.permute.xlu1 %1714 }
  0xe2   : > { %13733 = vst [vmem:[#allocation164_spill] sm:$0xff] %v8777_v7  ;;  %v1999_v39 = vsel %vm8431_vm5, %v6986_v61, %v1998_v24  ;;  %13734 = vst [vmem:[#allocation165_spill] sm:$0xff] %v8782_v0  ;;  %v6992_v27 = vrot.slane %v8782_v0, 9  ;;  %v7479_v44 = vld [vmem:[%s7735_s11 + $0x12c] sm:$0x1]  ;;  %2274 = vrot.lane.b32.xlu1 %v8777_v7, %s7615_s13 }
  0xe3   : > { %v2022_v49 = vrot.slane %v7479_v44, 5  ;;  %13735 = vst [vmem:[#allocation166_spill] sm:$0xff] %v8786_v56  ;;  %v8788_v22 = vcombine.low %v1995_v21, %v1999_v39  ;;  %v8790_v3 = vcombine.low %v1999_v39, %v2003_v6  ;;  %v8794_v51 = vsel %vm8431_vm5, %v6991_v59, %v2018_v36  ;;  %v8797_v24 = vld [vmem:[%s7735_s11 + $0x110] sm:$0xf]  ;;  %v7481_v0 = vld [vmem:[%s7735_s11 + $0x114] sm:$0x1] }
  0xe4   : > { %13738 = vst [vmem:[#allocation169_spill] sm:$0xff] %v8794_v51  ;;  %13739 = vst [vmem:[#allocation170_spill] sm:$0xff] %v8797_v24  ;;  %v6989_v61 = vrot.slane %v8797_v24, 9  ;;  %v2010_v45 = vrot.slane %v7481_v0, 5  ;;  %v8806_v21 = vld [vmem:[%s7735_s11 + $0x118] sm:$0xf] }
  0xe5   : > { %13736 = vst [vmem:[#allocation167_spill] sm:$0xff] %v8788_v22  ;;  %13737 = vst [vmem:[#allocation168_spill] sm:$0xff] %v8790_v3  ;;  %v8802_v44 = vsel %vm8431_vm5, %v6992_v27, %v2022_v49  ;;  %v6990_v6 = vrot.slane %v8806_v21, 9  ;;  %v7483_v39 = vld [vmem:[%s7735_s11 + $0x11c] sm:$0x1]  ;;  %2272 = vrot.lane.b32.xlu0 %v8788_v22, %s7615_s13  ;;  %v6998_v22 = vrot.slane %v8037_v9, 9 }
  0xe6   : > { %13740 = vst [vmem:[#allocation171_spill] sm:$0xff] %v8802_v44  ;;  %13741 = vst [vmem:[#allocation172_spill] sm:$0xff] %v8806_v21  ;;  %v2014_v36 = vrot.slane %v7483_v39, 5  ;;  %v8814_v59 = vcombine.low %v8794_v51, %v8802_v44  ;;  %v8817_v3 = vld [vmem:[%s7735_s11 + $0x150] sm:$0xf]  ;;  %v8825_v39 = vpop.permute.xlu0 %1712  ;;  %v8831_v7 = vsel %vm8431_vm5, %v6989_v61, %v2010_v45  ;;  %v7004_v9 = vrot.slane %v8063_v14, 9 }
  0xe7   : > { %13743 = vst [vmem:[#allocation174_spill] sm:$0xff] %v8817_v3  ;;  %v6995_v49 = vrot.slane %v8817_v3, 9  ;;  %v7485_v0 = vld [vmem:[%s7735_s11 + $0x154] sm:$0x1]  ;;  %v8822_v24 = vld [vmem:[%s7735_s11 + $0x158] sm:$0xf] }
  0xe8   : > { %13742 = vst [vmem:[#allocation173_spill] sm:$0xff] %v8814_v59  ;;  %v2034_v27 = vrot.slane %v7485_v0, 5  ;;  %13744 = vst [vmem:[#allocation175_spill] sm:$0xff] %v8822_v24  ;;  %v6996_v21 = vrot.slane %v8822_v24, 9  ;;  %v8835_v51 = vsel %vm8431_vm5, %v6990_v6, %v2014_v36  ;;  %v7487_v0 = vld [vmem:[%s7735_s11 + $0x15c] sm:$0x1]  ;;  %2278 = vrot.lane.b32.xlu1 %v8814_v59, %s7615_s13 }
  0xe9   : > { %13745 = vst [vmem:[#allocation176_spill] sm:$0xff] %v8825_v39  ;;  %13746 = vst [vmem:[#allocation177_spill] sm:$0xff] %v8831_v7  ;;  %v2038_v44 = vrot.slane %v7487_v0, 5  ;;  %v8839_v3 = vld [vmem:[%s7735_s11 + $0x140] sm:$0xf]  ;;  %v8844_v39 = vcombine.low %v8831_v7, %v8835_v51 }
  0xea   : > { %13747 = vst [vmem:[#allocation178_spill] sm:$0xff] %v8835_v51  ;;  %13748 = vst [vmem:[#allocation179_spill] sm:$0xff] %v8839_v3  ;;  %v6993_v24 = vrot.slane %v8839_v3, 9  ;;  %v2035_v13 = vsel %vm8431_vm5, %v6995_v49, %v2034_v27  ;;  %v7489_v45 = vld [vmem:[%s7735_s11 + $0x144] sm:$0x1]  ;;  %v8863_v49 = vpop.permute.xlu1 %1718 }
  0xeb   : > { %13749 = vst [vmem:[#allocation180_spill] sm:$0xff] %v8844_v39  ;;  %v2026_v61 = vrot.slane %v7489_v45, 5  ;;  %v8850_v56 = vld [vmem:[%s7735_s11 + $0x148] sm:$0xf]  ;;  %v8855_v36 = vsel %vm8431_vm5, %v6996_v21, %v2038_v44  ;;  %v7491_v0 = vld [vmem:[%s7735_s11 + $0x14c] sm:$0x1]  ;;  %2276 = vrot.lane.b32.xlu0 %v8844_v39, %s7615_s13 }
  0xec   : > { %v6994_v6 = vrot.slane %v8850_v56, 9  ;;  %13750 = vst [vmem:[#allocation181_spill] sm:$0xff] %v8855_v36  ;;  %v2030_v3 = vrot.slane %v7491_v0, 5  ;;  %v8859_v16 = vld [vmem:[%s7735_s11 + $0x170] sm:$0xf]  ;;  %v8868_v27 = vcombine.low %v2035_v13, %v8855_v36  ;;  %v2054_v0 = vrot.slane %v8022_v8, 5 }
  0xed   : > { %13751 = vst [vmem:[#allocation182_spill] sm:$0xff] %v8859_v16  ;;  %v6999_v51 = vrot.slane %v8859_v16, 9  ;;  %v7493_v7 = vld [vmem:[%s7735_s11 + $0x174] sm:$0x1]  ;;  %v2027_v44 = vsel %vm8431_vm5, %v6993_v24, %v2026_v61  ;;  %v8873_v21 = vld [vmem:[%s7735_s11 + $0x178] sm:$0xf] }
  0xee   : > { %v2050_v23 = vrot.slane %v7493_v7, 5  ;;  %13752 = vst [vmem:[#allocation183_spill] sm:$0xff] %v8868_v27  ;;  %13753 = vst [vmem:[#allocation184_spill] sm:$0xff] %v8873_v21  ;;  %v7000_v45 = vrot.slane %v8873_v21, 9  ;;  %v2031_v7 = vsel %vm8431_vm5, %v6994_v6, %v2030_v3  ;;  %v6997_v36 = vrot.slane %v8027_v47, 9  ;;  %v8896_v21 = vpop.permute.xlu0 %1716  ;;  %2282 = vrot.lane.b32.xlu1 %v8868_v27, %s7615_s13 }
  0xef   : > { %v2042_v24 = vrot.slane %v8030_v40, 5  ;;  %v8887_v61 = vcombine.low %v2027_v44, %v2031_v7  ;;  %v8889_v16 = vcombine.low %v2031_v7, %v2035_v13  ;;  %v2046_v40 = vrot.slane %v8050_v20, 5 }
  0xf0   : > { %v8883_v59 = vsel %vm8431_vm5, %v6999_v51, %v2050_v23  ;;  %v8893_v8 = vsel %vm8431_vm5, %v7000_v45, %v2054_v0  ;;  %v7003_v3 = vrot.slane %v8055_v37, 9  ;;  %v2066_v13 = vrot.slane %v8060_v19, 5  ;;  %v8923_v19 = vpop.permute.xlu1 %1722 }
  0xf1   : > { %13754 = vst [vmem:[#allocation185_spill] sm:$0xff] %v8883_v59  ;;  %13755 = vst [vmem:[#allocation186_spill] sm:$0xff] %v8887_v61  ;;  %v8900_v23 = vcombine.low %v8883_v59, %v8893_v8  ;;  %v8904_v47 = vsel %vm8431_vm5, %v6997_v36, %v2042_v24  ;;  %v2070_v51 = vrot.slane %v8076_v60, 5  ;;  %v7001_v6 = vrot.slane %v8085_v1, 9  ;;  %2280 = vrot.lane.b32.xlu0 %v8887_v61, %s7615_s13  ;;  %v13853_v59 = vld [vmem:[#allocation170_spill] sm:$0xff] }
  0xf2   : > { %13756 = vst [vmem:[#allocation187_spill] sm:$0xff] %v8889_v16  ;;  %13757 = vst [vmem:[#allocation188_spill] sm:$0xff] %v8893_v8  ;;  %v8918_v36 = vsel %vm8431_vm5, %v6998_v22, %v2046_v40  ;;  %v2058_v20 = vrot.slane %v8092_v41, 5  ;;  %v7002_v37 = vrot.slane %v8103_v31, 9  ;;  %v2062_v44 = vrot.slane %v8113_v52, 5  ;;  %v8950_v24 = vpop.permute.xlu0 %1720 }
  0xf3   : > { %13758 = vst [vmem:[#allocation189_spill] sm:$0xff] %v8900_v23  ;;  %13759 = vst [vmem:[#allocation190_spill] sm:$0xff] %v8918_v36  ;;  %v2067_v14 = vsel %vm8431_vm5, %v7003_v3, %v2066_v13  ;;  %v8929_v60 = vsel %vm8431_vm5, %v7004_v9, %v2070_v51  ;;  %v7007_v1 = vrot.slane %v8117_v34, 9  ;;  %v8934_v22 = vcombine.low %v8904_v47, %v8918_v36 }
  0xf4   : > { %13760 = vst [vmem:[#allocation191_spill] sm:$0xff] %v8929_v60  ;;  %v8937_v41 = vcombine.low %v2067_v14, %v8929_v60  ;;  %v2063_v31 = vsel %vm8431_vm5, %v7002_v37, %v2062_v44  ;;  %v2082_v52 = vrot.slane %v8125_v10, 5  ;;  %2286 = vrot.lane.b32.xlu1 %v8900_v23, %s7615_s13  ;;  %v2059_v45 = vsel %vm8431_vm5, %v7001_v6, %v2058_v20  ;;  %v8978_v20 = vpop.permute.xlu1 %1726  ;;  %v9352_v60 = vld [vmem:[%s7735_s11 + $0x1f0] sm:$0xf] }
  0xf5   : > { %13761 = vst [vmem:[#allocation192_spill] sm:$0xff] %v8934_v22  ;;  %v8946_v0 = vcombine.low %v2063_v31, %v2067_v14  ;;  %v7008_v34 = vrot.slane %v8128_v26, 9  ;;  %v2086_v7 = vrot.slane %v8138_v53, 5  ;;  %v7005_v40 = vrot.slane %v8147_v30, 9  ;;  %2284 = vrot.lane.b32.xlu0 %v8934_v22, %s7615_s13  ;;  %v13807_v22 = vld [vmem:[#allocation84_spill] sm:$0xff] }
  0xf6   : > { %13762 = vst [vmem:[#allocation193_spill] sm:$0xff] %v8937_v41  ;;  %v8956_v10 = vsel %vm8431_vm5, %v7007_v1, %v2082_v52  ;;  %v2074_v3 = vrot.slane %v8154_v15, 5  ;;  %v7006_v13 = vrot.slane %v8157_v33, 9  ;;  %v2078_v53 = vrot.slane %v8169_v5, 5 }
  0xf7   : > { %13763 = vst [vmem:[#allocation194_spill] sm:$0xff] %v8946_v0  ;;  %13764 = vst [vmem:[#allocation195_spill] sm:$0xff] %v8956_v10  ;;  %v8963_v26 = vsel %vm8431_vm5, %v7008_v34, %v2086_v7  ;;  %v7011_v9 = vrot.slane %v8178_v57, 9  ;;  %v2098_v51 = vrot.slane %v8185_v46, 5  ;;  %v7012_v33 = vrot.slane %v8188_v63, 9 }
  0xf8   : > { %13765 = vst [vmem:[#allocation196_spill] sm:$0xff] %v8963_v26  ;;  %v8970_v6 = vcombine.low %v8956_v10, %v8963_v26  ;;  %v8974_v30 = vsel %vm8431_vm5, %v7005_v40, %v2074_v3  ;;  %v2102_v15 = vrot.slane %v8199_v11, 5  ;;  %2290 = vrot.lane.b32.xlu1 %v8937_v41, %s7615_s13  ;;  %v8984_v46 = vsel %vm8431_vm5, %v7006_v13, %v2078_v53  ;;  %v9035_v53 = vpop.permute.xlu1 %1730  ;;  %v13798_v41 = vld [vmem:[#allocation117_spill] sm:$0xff]  ;;  %v13831_v10 = vld [vmem:[#allocation138_spill] sm:$0xff] }
  0xf9   : > { %13767 = vst [vmem:[#allocation198_spill] sm:$0xff] %v8974_v30  ;;  %13768 = vst [vmem:[#allocation199_spill] sm:$0xff] %v8984_v46  ;;  %v2099_v5 = vsel %vm8431_vm5, %v7011_v9, %v2098_v51  ;;  %v7009_v57 = vrot.slane %v8206_v2, 9  ;;  %v2090_v37 = vrot.slane %v8209_v12, 5  ;;  %v8992_v63 = vcombine.low %v2059_v45, %v2063_v31  ;;  %v9007_v12 = vpop.permute.xlu0 %1724  ;;  %v13780_v51 = vld [vmem:[#allocation99_spill] sm:$0xff] }
  0xfa   : > { %13766 = vst [vmem:[#allocation197_spill] sm:$0xff] %v8970_v6  ;;  %v8996_v11 = vsel %vm8431_vm5, %v7012_v33, %v2102_v15  ;;  %v7010_v44 = vrot.slane %v8216_v43, 9  ;;  %v2094_v14 = vrot.slane %v8233_v28, 5  ;;  %v9002_v1 = vcombine.low %v8974_v30, %v8984_v46  ;;  %v13784_v15 = vld [vmem:[#allocation69_spill] sm:$0xff]  ;;  %v9363_v30 = vld [vmem:[%s7735_s11 + $0x1e8] sm:$0xf] }
  0xfb   : > { %13769 = vst [vmem:[#allocation200_spill] sm:$0xff] %v8992_v63  ;;  %13770 = vst [vmem:[#allocation201_spill] sm:$0xff] %v8996_v11  ;;  %v9005_v2 = vcombine.low %v2099_v5, %v8996_v11  ;;  %v9013_v52 = vcombine.low %v8518_v55, %v8530_v38  ;;  %v6897_v43 = vcombine.low %v8466_v18, %v8471_v54  ;;  %v7015_v28 = vrot.slane %v8238_v48, 9 }
  0xfc   : > { %13771 = vst [vmem:[#allocation202_spill] sm:$0xff] %v9002_v1  ;;  %v2095_v31 = vsel %vm8431_vm5, %v7010_v44, %v2094_v14  ;;  %2294 = vrot.lane.b32.xlu1 %v8970_v6, %s7615_s13  ;;  %v2091_v45 = vsel %vm8431_vm5, %v7009_v57, %v2090_v37  ;;  %v2114_v7 = vrot.slane %v8245_v58, 5  ;;  %v7016_v40 = vrot.slane %v8248_v62, 9  ;;  %2288 = vrot.lane.b32.xlu0 %v8992_v63, %s7615_s13  ;;  %v13785_v57 = vld [vmem:[#allocation70_spill] sm:$0xff]  ;;  %v13794_v63 = vld [vmem:[#allocation77_spill] sm:$0xff]  ;;  %v9116_v27 = vpop.permute.xlu1 %1734 }
  0xfd   : > { %13772 = vst [vmem:[#allocation203_spill] sm:$0xff] %v9005_v2  ;;  %13773 = vst [vmem:[#allocation204_spill] sm:$0xff] %v9013_v52  ;;  %v9022_v34 = vcombine.low %v2095_v31, %v2099_v5  ;;  %v2118_v48 = vrot.slane %v8259_v25, 5  ;;  %v7013_v18 = vrot.slane %v8268_v4, 9  ;;  %v2106_v3 = vrot.slane %v8275_v50, 5  ;;  %v13776_v25 = vld [vmem:[#allocation108_spill] sm:$0xff] }
  0xfe   : > { %675 = vst.msk [vmem:[#allocation2 + $0x10] sm:$0xff] %vm672_vm6, %v9013_v52  ;;  %673 = vst.msk [vmem:[#allocation2] sm:$0xff] %vm672_vm6, %v6897_v43  ;;  %v7014_v13 = vrot.slane %v8283_v17, 9  ;;  %v9043_v62 = vsel %vm8431_vm5, %v7015_v28, %v2114_v7  ;;  %v2110_v58 = vrot.slane %v8290_v35, 5  ;;  %v13777_v4 = vld [vmem:[#allocation107_spill] sm:$0xff]  ;;  %v13779_v50 = vld [vmem:[#allocation101_spill] sm:$0xff] }
  0xff   : > { %13774 = vst [vmem:[#allocation205_spill] sm:$0xff] %v9022_v34  ;;  %1799 = vst.msk [vmem:[#allocation2 + $0x10] sm:$0xff] %vm1796_vm7, %v8558_v32  ;;  %v9048_v9 = vcombine.low %v13777_v4, %v13776_v25  ;;  %v9052_v33 = vcombine.low %v13780_v51, %v13779_v50  ;;  %v9056_v32 = vsel %vm8431_vm5, %v7016_v40, %v2118_v48  ;;  %v7019_v5 = vrot.slane %v13784_v15, 9  ;;  %v13788_v14 = vld [vmem:[#allocation74_spill] sm:$0xff]  ;;  %v13789_v28 = vld [vmem:[#allocation75_spill] sm:$0xff]  ;;  %v9080_v40 = vpop.permute.xlu0 %1728 }
 0x100   : > { %1797 = vst.msk [vmem:[#allocation2] sm:$0xff] %vm1796_vm7, %v8595_v29  ;;  %13775 = vst [vmem:[#allocation206_spill] sm:$0xff] %v9043_v62  ;;  %v9060_v29 = vsel %vm8431_vm5, %v7013_v18, %v2106_v3  ;;  %v2130_v35 = vrot.slane %v13785_v57, 5  ;;  %2298 = vrot.lane.b32.xlu1 %v9005_v2, %s7615_s13  ;;  %v9068_v37 = vcombine.low %v9043_v62, %v9056_v32  ;;  %v7020_v43 = vrot.slane %v13788_v14, 9  ;;  %v13791_v18 = vld [vmem:[#allocation134_spill] sm:$0xff]  ;;  %v13796_v2 = vld [vmem:[#allocation79_spill] sm:$0xff] }
 0x101   : > { %13778 = vst [vmem:[#allocation108_spill] sm:$0xff] %v9048_v9  ;;  %13781 = vst [vmem:[#allocation107_spill] sm:$0xff] %v9052_v33  ;;  %v9072_v44 = vsel %vm8431_vm5, %v7014_v13, %v2110_v58  ;;  %v2134_v7 = vrot.slane %v13789_v28, 5  ;;  %2292 = vrot.lane.b32.xlu0 %v9002_v1, %s7615_s13  ;;  %v9084_v48 = vcombine.low %v2091_v45, %v2095_v31  ;;  %v13792_v3 = vld [vmem:[#allocation142_spill] sm:$0xff]  ;;  %v13793_v58 = vld [vmem:[#allocation76_spill] sm:$0xff]  ;;  %v2122_v28 = vrot.slane %v13794_v63, 5 }
 0x102   : > { %13782 = vst [vmem:[#allocation101_spill] sm:$0xff] %v9056_v32  ;;  %13783 = vst [vmem:[#allocation99_spill] sm:$0xff] %v9060_v29  ;;  %v2131_v13 = vsel %vm8431_vm5, %v7019_v5, %v2130_v35  ;;  %v7017_v57 = vrot.slane %v13793_v58, 9  ;;  %v7018_v31 = vrot.slane %v13796_v2, 9  ;;  %v13797_v45 = vld [vmem:[#allocation82_spill] sm:$0xff]  ;;  %v13804_v35 = vld [vmem:[#allocation119_spill] sm:$0xff]  ;;  %v7058_v26 = vcombine.low %v13779_v50, %v8518_v55 }
 0x103   : > { %13786 = vst [vmem:[#allocation69_spill] sm:$0xff] %v9068_v37  ;;  %13787 = vst [vmem:[#allocation70_spill] sm:$0xff] %v9072_v44  ;;  %v9096_v61 = vsel %vm8431_vm5, %v7020_v43, %v2134_v7  ;;  %v2126_v6 = vrot.slane %v13797_v45, 5  ;;  %v13803_v63 = vld [vmem:[#allocation122_spill] sm:$0xff]  ;;  %v13806_v43 = vld [vmem:[#allocation83_spill] sm:$0xff]  ;;  %v2146_v39 = vrot.slane %v13807_v22, 5 }
 0x104   : > { %676 = vst.msk [vmem:[#allocation2 + $0x18] sm:$0xff] %vm672_vm6, %v9048_v9  ;;  %674 = vst.msk [vmem:[#allocation2 + $0x8] sm:$0xff] %vm672_vm6, %v9052_v33  ;;  %v9109_v5 = vcombine.low %v2131_v13, %v9096_v61  ;;  %v9113_v1 = vcombine.low %v13804_v35, %v13803_v63  ;;  %v7023_v7 = vrot.slane %v13806_v43, 9  ;;  %2302 = vrot.lane.b32.xlu1 %v9068_v37, %s7615_s13  ;;  %v13808_v9 = vld [vmem:[#allocation86_spill] sm:$0xff]  ;;  %v13809_v52 = vld [vmem:[#allocation88_spill] sm:$0xff] }
 0x105   : > { %13790 = vst [vmem:[#allocation74_spill] sm:$0xff] %v9084_v48  ;;  %1800 = vst.msk [vmem:[#allocation2 + $0x18] sm:$0xff] %vm1796_vm7, %v13791_v18  ;;  %v13799_v18 = vld [vmem:[#allocation116_spill] sm:$0xff]  ;;  %v2127_v45 = vsel %vm8431_vm5, %v7018_v31, %v2126_v6  ;;  %v7024_v33 = vrot.slane %v13808_v9, 9  ;;  %v2150_v35 = vrot.slane %v13809_v52, 5  ;;  %2296 = vrot.lane.b32.xlu0 %v9084_v48, %s7615_s13  ;;  %v13811_v37 = vld [vmem:[#allocation150_spill] sm:$0xff] }
 0x106   : > { %1798 = vst.msk [vmem:[#allocation2 + $0x8] sm:$0xff] %vm1796_vm7, %v13792_v3  ;;  %13795 = vst [vmem:[#allocation75_spill] sm:$0xff] %v9096_v61  ;;  %v9102_v23 = vcombine.low %v13799_v18, %v13798_v41  ;;  %v9106_v3 = vcombine.low %v9060_v29, %v9072_v44  ;;  %v2123_v44 = vsel %vm8431_vm5, %v7017_v57, %v2122_v28  ;;  %v13812_v6 = vld [vmem:[#allocation89_spill] sm:$0xff]  ;;  %v13813_v31 = vld [vmem:[#allocation91_spill] sm:$0xff] }
 0x107   : > { %13802 = vst [vmem:[#allocation76_spill] sm:$0xff] %v9109_v5  ;;  %13805 = vst [vmem:[#allocation77_spill] sm:$0xff] %v9113_v1  ;;  %v9131_v62 = vcombine.low %v2127_v45, %v2131_v13  ;;  %v7021_v22 = vrot.slane %v13812_v6, 9  ;;  %v13814_v34 = vld [vmem:[#allocation159_spill] sm:$0xff]  ;;  %v9143_v52 = vsel %vm8431_vm5, %v7023_v7, %v2146_v39  ;;  %v9147_v13 = vsel %vm8431_vm5, %v7024_v33, %v2150_v35  ;;  %v13817_v57 = vld [vmem:[#allocation92_spill] sm:$0xff] }
 0x108   : > { %13800 = vst [vmem:[#allocation134_spill] sm:$0xff] %v9102_v23  ;;  %13801 = vst [vmem:[#allocation142_spill] sm:$0xff] %v9106_v3  ;;  %v13818_v28 = vld [vmem:[#allocation94_spill] sm:$0xff]  ;;  %v13820_v61 = vld [vmem:[#allocation123_spill] sm:$0xff]  ;;  %2306 = vrot.lane.b32.xlu1 %v9109_v5, %s7615_s13  ;;  %v9165_v39 = vcombine.low %v9143_v52, %v9147_v13 }
 0x109   : > { %678 = vst.msk [vmem:[#allocation2 + $0x28] sm:$0xff] %vm672_vm6, %v9102_v23  ;;  %13810 = vst [vmem:[#allocation79_spill] sm:$0xff] %v9131_v62  ;;  %v2138_v23 = vrot.slane %v13813_v31, 5  ;;  %v2142_v48 = vrot.slane %v13818_v28, 5  ;;  %v13819_v62 = vld [vmem:[#allocation125_spill] sm:$0xff]  ;;  %v13822_v32 = vld [vmem:[#allocation130_spill] sm:$0xff]  ;;  %2300 = vrot.lane.b32.xlu0 %v9106_v3, %s7615_s13  ;;  %v9173_v28 = vcombine.low %v2123_v44, %v2127_v45 }
 0x10a   : > { %1802 = vst.msk [vmem:[#allocation2 + $0x28] sm:$0xff] %vm1796_vm7, %v13811_v37  ;;  %13815 = vst [vmem:[#allocation82_spill] sm:$0xff] %v9143_v52  ;;  %v7022_v37 = vrot.slane %v13817_v57, 9  ;;  %v9155_v31 = vcombine.low %v13820_v61, %v13819_v62  ;;  %v13826_v33 = vld [vmem:[#allocation136_spill] sm:$0xff]  ;;  %v13827_v7 = vld [vmem:[#allocation133_spill] sm:$0xff]  ;;  %v9183_v52 = vpop.permute.xlu1 %1738 }
 0x10b   : > { %677 = vst.msk [vmem:[#allocation2 + $0x20] sm:$0xff] %vm672_vm6, %v9113_v1  ;;  %13816 = vst [vmem:[#allocation117_spill] sm:$0xff] %v9147_v13  ;;  %v9151_v1 = vpop.permute.xlu0 %1732  ;;  %v9169_v35 = vcombine.low %v13827_v7, %v13826_v33  ;;  %v13830_v5 = vld [vmem:[#allocation139_spill] sm:$0xff]  ;;  %v9187_v13 = vsel %vm8431_vm5, %v7021_v22, %v2138_v23  ;;  %v13835_v45 = vld [vmem:[#allocation166_spill] sm:$0xff] }
 0x10c   : > { %1801 = vst.msk [vmem:[#allocation2 + $0x20] sm:$0xff] %vm1796_vm7, %v13814_v34  ;;  %13821 = vst [vmem:[#allocation116_spill] sm:$0xff] %v9155_v31  ;;  %v13823_v34 = vld [vmem:[#allocation126_spill] sm:$0xff]  ;;  %v9181_v0 = vcombine.low %v13831_v10, %v13830_v5  ;;  %v9191_v44 = vsel %vm8431_vm5, %v7022_v37, %v2142_v48  ;;  %v13836_v3 = vld [vmem:[#allocation176_spill] sm:$0xff]  ;;  %2310 = vrot.lane.b32.xlu1 %v9165_v39, %s7615_s13 }
 0x10d   : > { %v9159_v46 = vcombine.low %v13823_v34, %v13822_v32  ;;  %13825 = vst [vmem:[#allocation119_spill] sm:$0xff] %v9165_v39  ;;  %13828 = vst [vmem:[#allocation83_spill] sm:$0xff] %v9169_v35  ;;  %v13837_v10 = vld [vmem:[#allocation145_spill] sm:$0xff]  ;;  %v13840_v23 = vld [vmem:[#allocation152_spill] sm:$0xff]  ;;  %2304 = vrot.lane.b32.xlu0 %v9173_v28, %s7615_s13 }
 0x10e   : > { %13829 = vst [vmem:[#allocation84_spill] sm:$0xff] %v9173_v28  ;;  %680 = vst.msk [vmem:[#allocation2 + $0x38] sm:$0xff] %vm672_vm6, %v9155_v31  ;;  %v13838_v31 = vld [vmem:[#allocation144_spill] sm:$0xff]  ;;  %v13841_v22 = vld [vmem:[#allocation146_spill] sm:$0xff] }
 0x10f   : > { %13824 = vst [vmem:[#allocation122_spill] sm:$0xff] %v9159_v46  ;;  %679 = vst.msk [vmem:[#allocation2 + $0x30] sm:$0xff] %vm672_vm6, %v9159_v46  ;;  %v9201_v46 = vcombine.low %v13838_v31, %v13837_v10  ;;  %v9205_v11 = vcombine.low %v13841_v22, %v13840_v23  ;;  %v13843_v48 = vld [vmem:[#allocation156_spill] sm:$0xff]  ;;  %v1737_v39 = vpop.permute.xlu0 %1736  ;;  %v9238_v55 = vld [vmem:[%s7735_s11 + $0x40] sm:$0xf] }
 0x110   : > { %13832 = vst [vmem:[#allocation86_spill] sm:$0xff] %v9181_v0  ;;  %13833 = vst [vmem:[#allocation88_spill] sm:$0xff] %v9187_v13  ;;  %v13856_v50 = vld [vmem:[#allocation175_spill] sm:$0xff]  ;;  %2427 = vrot.lane.b32.xlu1 %v7058_v26, %s7616_s14 }
 0x111   : > { %13834 = vst [vmem:[#allocation150_spill] sm:$0xff] %v9191_v44  ;;  %1804 = vst.msk [vmem:[#allocation2 + $0x38] sm:$0xff] %vm1796_vm7, %v13835_v45  ;;  %v13846_v45 = vld [vmem:[#allocation161_spill] sm:$0xff]  ;;  %v9324_v26 = vld [vmem:[%s7735_s11 + $0x1c8] sm:$0xf] }
 0x112   : > { %1803 = vst.msk [vmem:[#allocation2 + $0x30] sm:$0xff] %vm1796_vm7, %v13836_v3  ;;  %13839 = vst [vmem:[#allocation89_spill] sm:$0xff] %v9201_v46  ;;  %v13844_v3 = vld [vmem:[#allocation153_spill] sm:$0xff] }
 0x113   : > { %682 = vst.msk [vmem:[#allocation2 + $0x48] sm:$0xff] %vm672_vm6, %v9169_v35  ;;  %13842 = vst [vmem:[#allocation91_spill] sm:$0xff] %v9205_v11  ;;  %v9213_v37 = vcombine.low %v13844_v3, %v13843_v48  ;;  %v13847_v35 = vld [vmem:[#allocation158_spill] sm:$0xff] }
 0x114   : > { %1806 = vst.msk [vmem:[#allocation2 + $0x48] sm:$0xff] %vm1796_vm7, %v8863_v49  ;;  %v9217_v29 = vcombine.low %v13847_v35, %v13846_v45  ;;  %v13849_v49 = vld [vmem:[#allocation165_spill] sm:$0xff]  ;;  %v13852_v35 = vld [vmem:[#allocation172_spill] sm:$0xff] }
 0x115   : > { %681 = vst.msk [vmem:[#allocation2 + $0x40] sm:$0xff] %vm672_vm6, %v9181_v0  ;;  %13845 = vst [vmem:[#allocation159_spill] sm:$0xff] %v9213_v37  ;;  %v13850_v0 = vld [vmem:[#allocation163_spill] sm:$0xff]  ;;  %v9235_v16 = vcombine.low %v13853_v59, %v13852_v35 }
 0x116   : > { %13848 = vst [vmem:[#allocation92_spill] sm:$0xff] %v9217_v29  ;;  %1805 = vst.msk [vmem:[#allocation2 + $0x40] sm:$0xff] %vm1796_vm7, %v8896_v21  ;;  %v9231_v36 = vcombine.low %v13850_v0, %v13849_v49  ;;  %v9244_v21 = vcombine.low %v9187_v13, %v9191_v44  ;;  %v9304_v13 = vld [vmem:[%s7735_s11 + $0x198] sm:$0xf] }
 0x117   : > { %684 = vst.msk [vmem:[#allocation2 + $0x58] sm:$0xff] %vm672_vm6, %v9201_v46  ;;  %683 = vst.msk [vmem:[#allocation2 + $0x50] sm:$0xff] %vm672_vm6, %v9205_v11  ;;  %v13857_v46 = vld [vmem:[#allocation174_spill] sm:$0xff]  ;;  %v13859_v11 = vld [vmem:[#allocation179_spill] sm:$0xff] }
 0x118   : > { %13851 = vst [vmem:[#allocation94_spill] sm:$0xff] %v9231_v36  ;;  %13854 = vst [vmem:[#allocation125_spill] sm:$0xff] %v9235_v16  ;;  %v9256_v28 = vcombine.low %v13857_v46, %v13856_v50  ;;  %v9260_v44 = vcombine.low %v13859_v11, %v8850_v56  ;;  %v9275_v11 = vld [vmem:[%s7735_s11 + $0x160] sm:$0xf]  ;;  %2308 = vrot.lane.b32.xlu0 %v9244_v21, %s7615_s13  ;;  %s7628_s13 = smov 60  }
 0x119   : > { %13855 = vst [vmem:[#allocation123_spill] sm:$0xff] %v9244_v21  ;;  %1808 = vst.msk [vmem:[#allocation2 + $0x58] sm:$0xff] %vm1796_vm7, %v8923_v19  ;;  %v13861_v19 = vld [vmem:[#allocation184_spill] sm:$0xff]  ;;  %v9355_v21 = vld [vmem:[%s7735_s11 + $0x1f8] sm:$0xf] }
 0x11a   : > { %1807 = vst.msk [vmem:[#allocation2 + $0x50] sm:$0xff] %vm1796_vm7, %v8950_v24  ;;  %13858 = vst [vmem:[#allocation130_spill] sm:$0xff] %v9256_v28  ;;  %v13862_v24 = vld [vmem:[#allocation182_spill] sm:$0xff] }
 0x11b   : > { %686 = vst.msk [vmem:[#allocation2 + $0x68] sm:$0xff] %vm672_vm6, %v9213_v37  ;;  %685 = vst.msk [vmem:[#allocation2 + $0x60] sm:$0xff] %vm672_vm6, %v9217_v29  ;;  %v9272_v29 = vcombine.low %v13862_v24, %v13861_v19  ;;  %v9278_v37 = vld [vmem:[%s7735_s11 + $0x168] sm:$0xf] }
 0x11c   : > { %13860 = vst [vmem:[#allocation126_spill] sm:$0xff] %v9260_v44  ;;  %1810 = vst.msk [vmem:[#allocation2 + $0x68] sm:$0xff] %vm1796_vm7, %v8978_v20  ;;  %v9282_v20 = vcombine.low %v9275_v11, %v9278_v37 }
 0x11d   : > { %1809 = vst.msk [vmem:[#allocation2 + $0x60] sm:$0xff] %vm1796_vm7, %v9007_v12  ;;  %13863 = vst [vmem:[#allocation136_spill] sm:$0xff] %v9272_v29  ;;  %v9293_v12 = vld [vmem:[%s7735_s11 + $0x1a0] sm:$0xf] }
 0x11e   : > { %688 = vst.msk [vmem:[#allocation2 + $0x78] sm:$0xff] %vm672_vm6, %v9231_v36  ;;  %687 = vst.msk [vmem:[#allocation2 + $0x70] sm:$0xff] %vm672_vm6, %v9235_v16  ;;  %v9296_v36 = vld [vmem:[%s7735_s11 + $0x1a8] sm:$0xf] }
 0x11f   : > { %13864 = vst [vmem:[#allocation133_spill] sm:$0xff] %v9282_v20  ;;  %1812 = vst.msk [vmem:[#allocation2 + $0x78] sm:$0xff] %vm1796_vm7, %v9035_v53  ;;  %v9300_v16 = vcombine.low %v9293_v12, %v9296_v36  ;;  %v1743_v53 = vpop.permute.xlu1 %1742 }
 0x120   : > { %1811 = vst.msk [vmem:[#allocation2 + $0x70] sm:$0xff] %vm1796_vm7, %v9080_v40  ;;  %v7499_v40 = vld [vmem:[%s7735_s11 + $0x190] sm:$0xf] }
 0x121   : > { %690 = vst.msk [vmem:[#allocation2 + $0x88] sm:$0xff] %vm672_vm6, %v9256_v28  ;;  %689 = vst.msk [vmem:[#allocation2 + $0x80] sm:$0xff] %vm672_vm6, %v9260_v44  ;;  %v9307_v28 = vcombine.low %v7499_v40, %v9304_v13  ;;  %v7060_v44 = vcombine.low %v13776_v25, %v9238_v55  ;;  %v9321_v40 = vld [vmem:[%s7735_s11 + $0x1c0] sm:$0xf]  ;;  %v9331_v25 = vld [vmem:[%s7735_s11 + $0x1b0] sm:$0xf] }
 0x122   : > { %13865 = vst [vmem:[#allocation139_spill] sm:$0xff] %v9300_v16  ;;  %1814 = vst.msk [vmem:[#allocation2 + $0x88] sm:$0xff] %vm1796_vm7, %v9116_v27  ;;  %v9328_v27 = vcombine.low %v9321_v40, %v9324_v26 }
 0x123   : > { %13866 = vst [vmem:[#allocation138_spill] sm:$0xff] %v9307_v28  ;;  %1813 = vst.msk [vmem:[#allocation2 + $0x80] sm:$0xff] %vm1796_vm7, %v9151_v1  ;;  %v9334_v1 = vld [vmem:[%s7735_s11 + $0x1b8] sm:$0xf]  ;;  %2431 = vrot.lane.b32.xlu1 %v7060_v44, %s7616_s14  ;;  %v9514_v44 = vcombine.low %v13852_v35, %v13850_v0  ;;  %v9536_v0 = vcombine.low %v9296_v36, %v9331_v25  ;;  %v2558_v35 = vshll.u32 %v9238_v55, 16 }
 0x124   : > { %692 = vst.msk [vmem:[#allocation2 + $0x98] sm:$0xff] %vm672_vm6, %v9272_v29  ;;  %691 = vst.msk [vmem:[#allocation2 + $0x90] sm:$0xff] %vm672_vm6, %v9282_v20  ;;  %v9338_v29 = vcombine.low %v9331_v25, %v9334_v1  ;;  %v7057_v20 = vcombine.low %v8471_v54, %v13780_v51  ;;  %v9359_v54 = vcombine.low %v9352_v60, %v9355_v21  ;;  %v7507_v51 = vld [vmem:[%s7735_s11 + $0x1e0] sm:$0xf] }
 0x125   : > { %13867 = vst [vmem:[#allocation166_spill] sm:$0xff] %v9328_v27  ;;  %1816 = vst.msk [vmem:[#allocation2 + $0x98] sm:$0xff] %vm1796_vm7, %v9183_v52  ;;  %v9366_v52 = vcombine.low %v7507_v51, %v9363_v30  ;;  %v9384_v51 = vld [vmem:[%s7735_s11 + $0x200] sm:$0xf] }
 0x126   : > { %13868 = vst [vmem:[#allocation176_spill] sm:$0xff] %v9338_v29  ;;  %1815 = vst.msk [vmem:[#allocation2 + $0x90] sm:$0xff] %vm1796_vm7, %v1737_v39  ;;  %v1741_v39 = vpop.permute.xlu0 %1740  ;;  %2425 = vrot.lane.b32.xlu0 %v7057_v20, %s7616_s14  ;;  %v2560_v20 = vrot.slane %v2558_v35, 5  ;;  %v7517_v35 = vld [vmem:[%s7735_s11 + $0x238] sm:$0xf] }
 0x127   : > { %694 = vst.msk [vmem:[#allocation2 + $0xa8] sm:$0xff] %vm672_vm6, %v9300_v16  ;;  %693 = vst.msk [vmem:[#allocation2 + $0xa0] sm:$0xff] %vm672_vm6, %v9307_v28  ;;  %v9374_v28 = vld [vmem:[%s7735_s11 + $0x210] sm:$0xf]  ;;  %v9377_v16 = vld [vmem:[%s7735_s11 + $0x218] sm:$0xf] }
 0x128   : > { %13869 = vst [vmem:[#allocation145_spill] sm:$0xff] %v9359_v54  ;;  %13870 = vst [vmem:[#allocation144_spill] sm:$0xff] %v9366_v52  ;;  %v9381_v8 = vcombine.low %v9374_v28, %v9377_v16 }
 0x129   : > { %1818 = vst.msk [vmem:[#allocation2 + $0xa8] sm:$0xff] %vm1796_vm7, %v1743_v53  ;;  %v9388_v53 = vcombine.low %v9384_v51, %v8283_v17  ;;  %1817 = vst.msk [vmem:[#allocation2 + $0xa0] sm:$0xff] %vm1796_vm7, %v1741_v39  ;;  %v9406_v17 = vcombine.low %v13798_v41, %v13823_v34  ;;  %v7059_v41 = vcombine.low %v8530_v38, %v13777_v4  ;;  %v1747_v4 = vpop.permute.xlu1 %1746 }
 0x12a   : > { %696 = vst.msk [vmem:[#allocation2 + $0xb8] sm:$0xff] %vm672_vm6, %v9328_v27  ;;  %695 = vst.msk [vmem:[#allocation2 + $0xb0] sm:$0xff] %vm672_vm6, %v9338_v29  ;;  %v9397_v27 = vcombine.low %v13784_v15, %v13788_v14  ;;  %v9401_v29 = vcombine.low %v13793_v58, %v13796_v2  ;;  %v9414_v15 = vcombine.low %v13806_v43, %v13808_v9  ;;  %v9424_v14 = vld [vmem:[%s7735_s11 + $0x90] sm:$0xf]  ;;  %v9459_v43 = vld [vmem:[%s7735_s11 + $0xe0] sm:$0xf] }
 0x12b   : > { %13871 = vst [vmem:[#allocation152_spill] sm:$0xff] %v9381_v8  ;;  %13872 = vst [vmem:[#allocation146_spill] sm:$0xff] %v9388_v53  ;;  %v9418_v2 = vcombine.low %v13812_v6, %v13817_v57  ;;  %2435 = vrot.lane.b32.xlu1 %v9406_v17, %s7616_s14  ;;  %v9438_v38 = vcombine.low %v13819_v62, %v9424_v14  ;;  %2429 = vrot.lane.b32.xlu0 %v7059_v41, %s7616_s14 }
 0x12c   : > { %698 = vst.msk [vmem:[#allocation2 + $0xc8] sm:$0xff] %vm672_vm6, %v9359_v54  ;;  %697 = vst.msk [vmem:[#allocation2 + $0xc0] sm:$0xff] %vm672_vm6, %v9366_v52  ;;  %v9443_v9 = vcombine.low %v13803_v63, %v13799_v18  ;;  %v9450_v58 = vcombine.low %v13826_v33, %v13841_v22  ;;  %v9456_v62 = vcombine.low %v13822_v32, %v13820_v61  ;;  %v1745_v18 = vpop.permute.xlu0 %1744 }
 0x12d   : > { %13873 = vst [vmem:[#allocation156_spill] sm:$0xff] %v9397_v27  ;;  %13874 = vst [vmem:[#allocation153_spill] sm:$0xff] %v9401_v29  ;;  %v9466_v63 = vcombine.low %v13837_v10, %v9459_v43  ;;  %v9472_v6 = vcombine.low %v13830_v5, %v13827_v7  ;;  %v1751_v61 = vpop.permute.xlu1 %1750  ;;  %v9479_v32 = vcombine.low %v13843_v48, %v13853_v59  ;;  %v9488_v5 = vld [vmem:[%s7735_s11 + $0x130] sm:$0xf]  ;;  %v9517_v10 = vld [vmem:[%s7735_s11 + $0x180] sm:$0xf] }
 0x12e   : > { %13875 = vst [vmem:[#allocation161_spill] sm:$0xff] %v9406_v17  ;;  %700 = vst.msk [vmem:[#allocation2 + $0xd8] sm:$0xff] %vm672_vm6, %v9381_v8  ;;  %v9485_v57 = vcombine.low %v13840_v23, %v13838_v31  ;;  %v9495_v59 = vcombine.low %v13849_v49, %v9488_v5  ;;  %v9501_v33 = vcombine.low %v13846_v45, %v13844_v3  ;;  %v2555_v49 = vshrl.u32 %v9238_v55, 16  ;;  %v10284_v17 = vld [vmem:[%s7735_s11 + $0x9c] sm:$0x1] }
 0x12f   : > { %699 = vst.msk [vmem:[#allocation2 + $0xd0] sm:$0xff] %vm672_vm6, %v9388_v53  ;;  %13876 = vst [vmem:[#allocation158_spill] sm:$0xff] %v9414_v15  ;;  %2439 = vrot.lane.b32.xlu1 %v9438_v38, %s7616_s14  ;;  %2433 = vrot.lane.b32.xlu0 %v9443_v9, %s7616_s14  ;;  %v9507_v7 = vcombine.low %v13856_v50, %v9275_v11  ;;  %v9523_v23 = vcombine.low %v13861_v19, %v9517_v10  ;;  %v9576_v19 = vld [vmem:[%s7735_s11 + $0x220] sm:$0xf] }
 0x130   : > { %13877 = vst [vmem:[#allocation165_spill] sm:$0xff] %v9418_v2  ;;  %702 = vst.msk [vmem:[#allocation2 + $0xe8] sm:$0xff] %vm672_vm6, %v9397_v27  ;;  %v1749_v34 = vpop.permute.xlu0 %1748  ;;  %v9529_v48 = vcombine.low %v8850_v56, %v13857_v46  ;;  %v9542_v3 = vcombine.low %v9278_v37, %v13862_v24  ;;  %v9545_v56 = vld [vmem:[%s7735_s11 + $0x1d0] sm:$0xf]  ;;  %v9558_v46 = vcombine.low %v9304_v13, %v9293_v12  ;;  %v2557_v11 = vrot.slane %v2555_v49, 4 }
 0x131   : > { %701 = vst.msk [vmem:[#allocation2 + $0xe0] sm:$0xff] %vm672_vm6, %v9401_v29  ;;  %704 = vst.msk [vmem:[#allocation2 + $0xf8] sm:$0xff] %vm672_vm6, %v9414_v15  ;;  %v1755_v31 = vpop.permute.xlu1 %1754  ;;  %v9552_v36 = vcombine.low %v9324_v26, %v9545_v56  ;;  %v9567_v50 = vcombine.low %v9355_v21, %v9384_v51  ;;  %v9573_v13 = vcombine.low %v9334_v1, %v9321_v40  ;;  %v9586_v12 = vld [vmem:[%s7735_s11 + $0x44] sm:$0x1]  ;;  %v7513_v51 = vld [vmem:[%s7735_s11 + $0x250] sm:$0xf] }
 0x132   : > { %703 = vst.msk [vmem:[#allocation2 + $0xf0] sm:$0xff] %vm672_vm6, %v9418_v2  ;;  %13878 = vst [vmem:[#allocation163_spill] sm:$0xff] %v9438_v38  ;;  %v9583_v21 = vcombine.low %v9377_v16, %v9576_v19  ;;  %v9592_v40 = vcombine.low %v9363_v30, %v9352_v60  ;;  %v2561_v1 = vor.u32 %v2560_v20, %v2557_v11  ;;  %v2564_v39 = vshll.u32 %v9586_v12, 16  ;;  %v7512_v16 = vld [vmem:[%s7735_s11 + $0x248] sm:$0xf] }
 0x133   : > { %13879 = vst [vmem:[#allocation172_spill] sm:$0xff] %v9443_v9  ;;  %1820 = vst.msk [vmem:[#allocation2 + $0xb8] sm:$0xff] %vm1796_vm7, %v1747_v4  ;;  %2443 = vrot.lane.b32.xlu1 %v9450_v58, %s7616_s14  ;;  %2437 = vrot.lane.b32.xlu0 %v9456_v62, %s7616_s14  ;;  %v9601_v41 = vcombine.low %v7512_v16, %v7513_v51  ;;  %v7514_v60 = vld [vmem:[%s7735_s11 + $0x208] sm:$0xf]  ;;  %v9610_v4 = vld [vmem:[%s7735_s11 + $0x270] sm:$0xf] }
 0x134   : > { %13880 = vst [vmem:[#allocation170_spill] sm:$0xff] %v9450_v58  ;;  %13881 = vst [vmem:[#allocation175_spill] sm:$0xff] %v9456_v62  ;;  %v1753_v22 = vpop.permute.xlu0 %1752  ;;  %v9607_v30 = vcombine.low %v7514_v60, %v9374_v28  ;;  %v7515_v28 = vld [vmem:[%s7735_s11 + $0x268] sm:$0xf]  ;;  %v7516_v49 = vld [vmem:[%s7735_s11 + $0x240] sm:$0xf] }
 0x135   : > { %1819 = vst.msk [vmem:[#allocation2 + $0xb0] sm:$0xff] %vm1796_vm7, %v1745_v18  ;;  %13882 = vst [vmem:[#allocation174_spill] sm:$0xff] %v9466_v63  ;;  %v1759_v45 = vpop.permute.xlu1 %1758  ;;  %v2569_v18 = vshrl.u32 %v9424_v14, 16  ;;  %v7518_v51 = vld [vmem:[%s7735_s11 + $0x260] sm:$0xf]  ;;  %vm4611_vm6 = vcmask 490944  }
 0x136   : > { %13883 = vst [vmem:[#allocation179_spill] sm:$0xff] %v9472_v6  ;;  %1822 = vst.msk [vmem:[#allocation2 + $0xc8] sm:$0xff] %vm1796_vm7, %v1751_v61  ;;  %v2572_v61 = vshll.u32 %v9424_v14, 16  ;;  %v7519_v60 = vld [vmem:[%s7735_s11 + $0x258] sm:$0xf] }
 0x137   : > { %2447 = vrot.lane.b32.xlu1 %v9466_v63, %s7616_s14  ;;  %13884 = vst [vmem:[#allocation184_spill] sm:$0xff] %v9479_v32  ;;  %2441 = vrot.lane.b32.xlu0 %v9472_v6, %s7616_s14  ;;  %13885 = vst [vmem:[#allocation182_spill] sm:$0xff] %v9485_v57  ;;  %v2571_v11 = vrot.slane %v2569_v18, 4  ;;  %v10259_v63 = vld [vmem:[%s7735_s11 + $0x4c] sm:$0x1] }
 0x138   : > { %1821 = vst.msk [vmem:[#allocation2 + $0xc0] sm:$0xff] %vm1796_vm7, %v1749_v34  ;;  %13886 = vst [vmem:[#allocation207_spill] sm:$0xff] %v9495_v59  ;;  %v1757_v37 = vpop.permute.xlu0 %1756  ;;  %v2574_v20 = vrot.slane %v2572_v61, 5  ;;  %v3207_v62 = vshll.u32 %v10259_v63, 16  ;;  %v10305_v29 = vld [vmem:[%s7735_s11 + $0xec] sm:$0x1] }
 0x139   : > { %13887 = vst [vmem:[#allocation208_spill] sm:$0xff] %v9501_v33  ;;  %13888 = vst [vmem:[#allocation209_spill] sm:$0xff] %v9507_v7  ;;  %v1763_v24 = vpop.permute.xlu1 %1762 }
 0x13a   : > { %1824 = vst.msk [vmem:[#allocation2 + $0xd8] sm:$0xff] %vm1796_vm7, %v1755_v31  ;;  %13889 = vst [vmem:[#allocation210_spill] sm:$0xff] %v9514_v44  ;;  %v2575_v18 = vor.u32 %v2574_v20, %v2571_v11 }
 0x13b   : > { %2451 = vrot.lane.b32.xlu1 %v9479_v32, %s7616_s14  ;;  %2445 = vrot.lane.b32.xlu0 %v9485_v57, %s7616_s14  ;;  %13890 = vst [vmem:[#allocation211_spill] sm:$0xff] %v9523_v23  ;;  %13891 = vst [vmem:[#allocation212_spill] sm:$0xff] %v9529_v48 }
 0x13c   : > { %1823 = vst.msk [vmem:[#allocation2 + $0xd0] sm:$0xff] %vm1796_vm7, %v1753_v22  ;;  %13892 = vst [vmem:[#allocation213_spill] sm:$0xff] %v9536_v0  ;;  %v1761_v25 = vpop.permute.xlu0 %1760  ;;  %v2562_v22 = vrot.slane %v2561_v1, 4  ;;  %v2576_v20 = vrot.slane %v2575_v18, 4 }
 0x13d   : > { %13893 = vst [vmem:[#allocation214_spill] sm:$0xff] %v9542_v3  ;;  %1826 = vst.msk [vmem:[#allocation2 + $0xe8] sm:$0xff] %vm1796_vm7, %v1759_v45  ;;  %v2251_v26 = vpop.permute.xlu1 %2250  ;;  %v2566_v45 = vrot.slane %v2564_v39, 5 }
 0x13e   : > { %13894 = vst [vmem:[#allocation215_spill] sm:$0xff] %v9552_v36  ;;  %13895 = vst [vmem:[#allocation216_spill] sm:$0xff] %v9558_v46 }
 0x13f   : > { %2455 = vrot.lane.b32.xlu1 %v9495_v59, %s7616_s14  ;;  %2449 = vrot.lane.b32.xlu0 %v9501_v33, %s7616_s14  ;;  %1825 = vst.msk [vmem:[#allocation2 + $0xe0] sm:$0xff] %vm1796_vm7, %v1757_v37  ;;  %13896 = vst [vmem:[#allocation217_spill] sm:$0xff] %v9567_v50  ;;  %v9620_v37 = vcombine.low %v7515_v28, %v9610_v4  ;;  %v9634_v16 = vsel %vm7748_vm2, %v2562_v22, %v2566_v45  ;;  %v2586_v22 = vshll.u32 %v9459_v43, 16  ;;  %v10246_v33 = vld [vmem:[%s7735_s11 + $0x228] sm:$0xf] }
 0x140   : > { %13897 = vst [vmem:[#allocation218_spill] sm:$0xff] %v9573_v13  ;;  %1828 = vst.msk [vmem:[#allocation2 + $0xf8] sm:$0xff] %vm1796_vm7, %v1763_v24  ;;  %v2249_v31 = vpop.permute.xlu0 %2248  ;;  %v9626_v24 = vcombine.low %v7517_v35, %v7516_v49  ;;  %v13906_v49 = vld [vmem:[#allocation15_spill] sm:$0xff] }
 0x141   : > { %13898 = vst [vmem:[#allocation219_spill] sm:$0xff] %v9583_v21  ;;  %13899 = vst [vmem:[#allocation220_spill] sm:$0xff] %v9592_v40  ;;  %v2255_v34 = vpop.permute.xlu1 %2254  ;;  %v7092_v35 = vcombine.low %v13906_v49, %v9634_v16  ;;  %v13911_v49 = vld [vmem:[#allocation17_spill] sm:$0xff] }
 0x142   : > { %2346 = vst.msk [vmem:[#allocation2 + $0x8] sm:$0xff] %vm2344_vm8, %v2251_v26  ;;  %13900 = vst [vmem:[#allocation221_spill] sm:$0xff] %v9601_v41 }
 0x143   : > { %2459 = vrot.lane.b32.xlu1 %v9507_v7, %s7616_s14  ;;  %2453 = vrot.lane.b32.xlu0 %v9514_v44, %s7616_s14  ;;  %1827 = vst.msk [vmem:[#allocation2 + $0xf0] sm:$0xff] %vm1796_vm7, %v1761_v25  ;;  %13901 = vst [vmem:[#allocation222_spill] sm:$0xff] %v9607_v30  ;;  %v9629_v25 = vld [vmem:[%s7735_s11 + $0x94] sm:$0x1]  ;;  %vm4743_vm7 = vcmask 523744  }
 0x144   : > { %2348 = vst.msk [vmem:[#allocation2 + $0x18] sm:$0xff] %vm2344_vm8, %v2255_v34  ;;  %2345 = vst.msk [vmem:[#allocation2] sm:$0xff] %vm2344_vm8, %v2249_v31  ;;  %v2253_v1 = vpop.permute.xlu0 %2252  ;;  %v9641_v34 = vcombine.low %v7519_v60, %v7518_v51  ;;  %v2578_v61 = vshll.u32 %v9629_v25, 16  ;;  %v2583_v31 = vshrl.u32 %v9459_v43, 16  ;;  %v9659_v60 = vld [vmem:[%s7735_s11 + $0xe4] sm:$0x1] }
 0x145   : > { %13902 = vst [vmem:[#allocation223_spill] sm:$0xff] %v9620_v37  ;;  %13903 = vst [vmem:[#allocation224_spill] sm:$0xff] %v9626_v24  ;;  %v2259_v26 = vpop.permute.xlu1 %2258  ;;  %v2592_v18 = vshll.u32 %v9659_v60, 16  ;;  %v14069_v44 = vld [vmem:[#allocation176_spill] sm:$0xff] }
 0x146   : > { %2350 = vst.msk [vmem:[#allocation2 + $0x28] sm:$0xff] %vm2344_vm8, %v2259_v26  ;;  %2347 = vst.msk [vmem:[#allocation2 + $0x10] sm:$0xff] %vm2344_vm8, %v2253_v1  ;;  %v13907_v26 = vld [vmem:[#allocation11_spill] sm:$0xff]  ;;  %v2580_v51 = vrot.slane %v2578_v61, 5  ;;  %v13913_v61 = vld [vmem:[#allocation12_spill] sm:$0xff] }
 0x147   : > { %2463 = vrot.lane.b32.xlu1 %v9523_v23, %s7616_s14  ;;  %2457 = vrot.lane.b32.xlu0 %v9529_v48, %s7616_s14  ;;  %13905 = vst [vmem:[#allocation6_spill] sm:$0xff] %v9641_v34  ;;  %v13908_v1 = vld [vmem:[#allocation7_spill] sm:$0xff] }
 0x148   : > { %v2257_v28 = vpop.permute.xlu0 %2256  ;;  %v13909_v11 = vcombine.low %v13907_v26, %v13908_v1  ;;  %v13914_v1 = vld [vmem:[#allocation13_spill] sm:$0xff] }
 0x149   : > { %v2263_v45 = vpop.permute.xlu1 %2262  ;;  %2349 = vst.msk [vmem:[#allocation2 + $0x20] sm:$0xff] %vm2344_vm8, %v2257_v28  ;;  %v13910_v28 = vld [vmem:[#allocation24_spill] sm:$0xff] }
 0x14a   : > { %2352 = vst.msk [vmem:[#allocation2 + $0x38] sm:$0xff] %vm2344_vm8, %v2263_v45  ;;  %v2588_v45 = vrot.slane %v2586_v22, 5  ;;  %v9666_v26 = vcombine.low %v13911_v49, %v13910_v28  ;;  %v9675_v22 = vsel %vm7748_vm2, %v2576_v20, %v2580_v51  ;;  %v13916_v49 = vld [vmem:[#allocation22_spill] sm:$0xff]  ;;  %v13918_v20 = vld [vmem:[#allocation8_spill] sm:$0xff] }
 0x14b   : > { %2467 = vrot.lane.b32.xlu1 %v9536_v0, %s7616_s14  ;;  %2461 = vrot.lane.b32.xlu0 %v9542_v3, %s7616_s14  ;;  %v9828_v3 = vld [vmem:[%s7735_s11 + $0x274] sm:$0x1] }
 0x14c   : > { %13912 = vst [vmem:[#allocation15_spill] sm:$0xff] %v9666_v26 }
 0x14f   : > { %2471 = vrot.lane.b32.xlu1 %v9552_v36, %s7616_s14  ;;  %2465 = vrot.lane.b32.xlu0 %v9558_v46, %s7616_s14 }
 0x153   : > { %2475 = vrot.lane.b32.xlu1 %v9567_v50, %s7616_s14  ;;  %2469 = vrot.lane.b32.xlu0 %v9573_v13, %s7616_s14 }
 0x157   : > { %2479 = vrot.lane.b32.xlu1 %v9583_v21, %s7616_s14  ;;  %2473 = vrot.lane.b32.xlu0 %v9592_v40, %s7616_s14 }
 0x15b   : > { %2483 = vrot.lane.b32.xlu1 %v9601_v41, %s7616_s14  ;;  %2477 = vrot.lane.b32.xlu0 %v9607_v30, %s7616_s14  ;;  %v2261_v30 = vpop.permute.xlu0 %2260 }
 0x15c   : > { %2351 = vst.msk [vmem:[#allocation2 + $0x30] sm:$0xff] %vm2344_vm8, %v2261_v30  ;;  %v2597_v30 = vshrl.u32 %v9488_v5, 16 }
 0x15f   : > { %2487 = vrot.lane.b32.xlu1 %v9620_v37, %s7616_s14  ;;  %2481 = vrot.lane.b32.xlu0 %v9626_v24, %s7616_s14  ;;  %v2585_v24 = vrot.slane %v2583_v31, 4  ;;  %v2267_v37 = vpop.permute.xlu1 %2266  ;;  %v13915_v31 = vcombine.low %v13913_v61, %v13914_v1  ;;  %v2265_v28 = vpop.permute.xlu0 %2264  ;;  %v9685_v61 = vcombine.low %v13916_v49, %v9675_v22  ;;  %v2594_v1 = vrot.slane %v2592_v18, 5  ;;  %v13921_v49 = vld [vmem:[#allocation21_spill] sm:$0xff] }
 0x160   : > { %2354 = vst.msk [vmem:[#allocation2 + $0x48] sm:$0xff] %vm2344_vm8, %v2267_v37  ;;  %2353 = vst.msk [vmem:[#allocation2 + $0x40] sm:$0xff] %vm2344_vm8, %v2265_v28 }
 0x161   : > { %v2589_v37 = vor.u32 %v2588_v45, %v2585_v24  ;;  %13917 = vst [vmem:[#allocation11_spill] sm:$0xff] %v9685_v61  ;;  %v13919_v24 = vld [vmem:[#allocation9_spill] sm:$0xff] }
 0x162   : > { %v13920_v51 = vcombine.low %v13918_v20, %v13919_v24  ;;  %v13924_v20 = vld [vmem:[#allocation34_spill] sm:$0xff] }
 0x163   : > { %2708 = vrot.lane.b32.xlu1 %v13909_v11, %s7617_s15  ;;  %2485 = vrot.lane.b32.xlu0 %v9641_v34, %s7616_s14  ;;  %v2271_v11 = vpop.permute.xlu1 %2270  ;;  %v2590_v45 = vrot.slane %v2589_v37, 4  ;;  %v2599_v34 = vrot.slane %v2597_v30, 4  ;;  %v2269_v28 = vpop.permute.xlu0 %2268  ;;  %v13925_v37 = vld [vmem:[#allocation27_spill] sm:$0xff]  ;;  %s7629_s14 = smov 64  }
 0x164   : > { %2356 = vst.msk [vmem:[#allocation2 + $0x58] sm:$0xff] %vm2344_vm8, %v2271_v11  ;;  %2355 = vst.msk [vmem:[#allocation2 + $0x50] sm:$0xff] %vm2344_vm8, %v2269_v28  ;;  %v9704_v18 = vcombine.low %v13925_v37, %v13924_v20  ;;  %v13928_v20 = vld [vmem:[#allocation32_spill] sm:$0xff] }
 0x166   : > { %13926 = vst [vmem:[#allocation24_spill] sm:$0xff] %v9704_v18 }
 0x167   : > { %2712 = vrot.lane.b32.xlu1 %v7092_v35, %s7617_s15  ;;  %2706 = vrot.lane.b32.xlu0 %v13915_v31, %s7617_s15  ;;  %v2600_v35 = vshll.u32 %v9488_v5, 16  ;;  %v9692_v31 = vld [vmem:[%s7735_s11 + $0x134] sm:$0x1]  ;;  %v2275_v41 = vpop.permute.xlu1 %2274 }
 0x168   : > { %2358 = vst.msk [vmem:[#allocation2 + $0x68] sm:$0xff] %vm2344_vm8, %v2275_v41  ;;  %v2606_v30 = vshll.u32 %v9692_v31, 16  ;;  %v9711_v41 = vsel %vm7748_vm2, %v2590_v45, %v2594_v1  ;;  %v9726_v1 = vld [vmem:[%s7735_s11 + $0x184] sm:$0x1] }
 0x169   : > { %v2602_v11 = vrot.slane %v2600_v35, 5  ;;  %v13927_v35 = vld [vmem:[#allocation20_spill] sm:$0xff]  ;;  %v9721_v37 = vcombine.low %v13928_v20, %v9711_v41  ;;  %v13931_v20 = vld [vmem:[#allocation35_spill] sm:$0xff] }
 0x16a   : > { %v2608_v45 = vrot.slane %v2606_v30, 5 }
 0x16b   : > { %2716 = vrot.lane.b32.xlu1 %v9666_v26, %s7617_s15  ;;  %2710 = vrot.lane.b32.xlu0 %v13920_v51, %s7617_s15  ;;  %v13922_v26 = vld [vmem:[#allocation25_spill] sm:$0xff]  ;;  %v2603_v24 = vor.u32 %v2602_v11, %v2599_v34  ;;  %v2611_v51 = vshrl.u32 %v9517_v10, 16  ;;  %v2279_v28 = vpop.permute.xlu1 %2278  ;;  %13929 = vst [vmem:[#allocation17_spill] sm:$0xff] %v9721_v37 }
 0x16c   : > { %v9700_v40 = vcombine.low %v13922_v26, %v13921_v49  ;;  %v2614_v26 = vshll.u32 %v9517_v10, 16  ;;  %v2273_v49 = vpop.permute.xlu0 %2272  ;;  %2360 = vst.msk [vmem:[#allocation2 + $0x78] sm:$0xff] %vm2344_vm8, %v2279_v28 }
 0x16d   : > { %2357 = vst.msk [vmem:[#allocation2 + $0x60] sm:$0xff] %vm2344_vm8, %v2273_v49  ;;  %v2604_v34 = vrot.slane %v2603_v24, 4  ;;  %v2613_v11 = vrot.slane %v2611_v51, 4  ;;  %v13930_v49 = vld [vmem:[#allocation31_spill] sm:$0xff]  ;;  %v13934_v24 = vld [vmem:[#allocation37_spill] sm:$0xff]  ;;  %v2620_v51 = vshll.u32 %v9726_v1, 16 }
 0x16e   : > { %13923 = vst [vmem:[#allocation7_spill] sm:$0xff] %v9700_v40 }
 0x16f   : > { %2720 = vrot.lane.b32.xlu1 %v9685_v61, %s7617_s15  ;;  %2714 = vrot.lane.b32.xlu0 %v13927_v35, %s7617_s15  ;;  %v2616_v35 = vrot.slane %v2614_v26, 5  ;;  %v2283_v61 = vpop.permute.xlu1 %2282  ;;  %v13936_v26 = vld [vmem:[#allocation30_spill] sm:$0xff] }
 0x170   : > { %v2277_v28 = vpop.permute.xlu0 %2276  ;;  %2362 = vst.msk [vmem:[#allocation2 + $0x88] sm:$0xff] %vm2344_vm8, %v2283_v61  ;;  %v9745_v61 = vsel %vm7748_vm2, %v2604_v34, %v2608_v45  ;;  %v2622_v34 = vrot.slane %v2620_v51, 5  ;;  %v9760_v45 = vld [vmem:[%s7735_s11 + $0x1d4] sm:$0x1] }
 0x171   : > { %2359 = vst.msk [vmem:[#allocation2 + $0x70] sm:$0xff] %vm2344_vm8, %v2277_v28  ;;  %v2617_v28 = vor.u32 %v2616_v35, %v2613_v11 }
 0x173   : > { %2724 = vrot.lane.b32.xlu1 %v9704_v18, %s7617_s15  ;;  %2718 = vrot.lane.b32.xlu0 %v9700_v40, %s7617_s15  ;;  %v9734_v18 = vcombine.low %v13931_v20, %v13930_v49  ;;  %v13933_v40 = vld [vmem:[#allocation44_spill] sm:$0xff]  ;;  %v2628_v49 = vshll.u32 %v9545_v56, 16  ;;  %v2287_v20 = vpop.permute.xlu1 %2286  ;;  %v2618_v35 = vrot.slane %v2617_v28, 4  ;;  %v13943_v28 = vld [vmem:[#allocation47_spill] sm:$0xff] }
 0x174   : > { %v9738_v30 = vcombine.low %v13934_v24, %v13933_v40  ;;  %v2281_v21 = vpop.permute.xlu0 %2280  ;;  %2364 = vst.msk [vmem:[#allocation2 + $0x98] sm:$0xff] %vm2344_vm8, %v2287_v20  ;;  %v13937_v40 = vld [vmem:[#allocation42_spill] sm:$0xff] }
 0x175   : > { %13932 = vst [vmem:[#allocation12_spill] sm:$0xff] %v9734_v18  ;;  %2361 = vst.msk [vmem:[#allocation2 + $0x80] sm:$0xff] %vm2344_vm8, %v2281_v21  ;;  %v9755_v24 = vcombine.low %v13937_v40, %v9745_v61  ;;  %v13939_v21 = vld [vmem:[#allocation41_spill] sm:$0xff] }
 0x176   : > { %13935 = vst [vmem:[#allocation13_spill] sm:$0xff] %v9738_v30  ;;  %v13940_v40 = vld [vmem:[#allocation45_spill] sm:$0xff] }
 0x177   : > { %2728 = vrot.lane.b32.xlu1 %v9721_v37, %s7617_s15  ;;  %2722 = vrot.lane.b32.xlu0 %v13936_v26, %s7617_s15  ;;  %v2625_v37 = vshrl.u32 %v9545_v56, 16  ;;  %13938 = vst [vmem:[#allocation22_spill] sm:$0xff] %v9755_v24  ;;  %v2630_v26 = vrot.slane %v2628_v49, 5  ;;  %v2291_v13 = vpop.permute.xlu1 %2290  ;;  %v13945_v49 = vld [vmem:[#allocation40_spill] sm:$0xff] }
 0x178   : > { %v2285_v20 = vpop.permute.xlu0 %2284  ;;  %2366 = vst.msk [vmem:[#allocation2 + $0xa8] sm:$0xff] %vm2344_vm8, %v2291_v13  ;;  %v9779_v13 = vsel %vm7748_vm2, %v2618_v35, %v2622_v34  ;;  %v9794_v34 = vld [vmem:[%s7735_s11 + $0x224] sm:$0x1] }
 0x179   : > { %v2627_v11 = vrot.slane %v2625_v37, 4  ;;  %2363 = vst.msk [vmem:[#allocation2 + $0x90] sm:$0xff] %vm2344_vm8, %v2285_v20  ;;  %v2634_v37 = vshll.u32 %v9760_v45, 16 }
 0x17b   : > { %2732 = vrot.lane.b32.xlu1 %v9738_v30, %s7617_s15  ;;  %2726 = vrot.lane.b32.xlu0 %v9734_v18, %s7617_s15  ;;  %v9768_v30 = vcombine.low %v13940_v40, %v13939_v21  ;;  %v13942_v18 = vld [vmem:[#allocation54_spill] sm:$0xff]  ;;  %v2631_v20 = vor.u32 %v2630_v26, %v2627_v11  ;;  %v2642_v21 = vshll.u32 %v9576_v19, 16  ;;  %v2295_v40 = vpop.permute.xlu1 %2294  ;;  %v2636_v35 = vrot.slane %v2634_v37, 5 }
 0x17c   : > { %v9772_v51 = vcombine.low %v13943_v28, %v13942_v18  ;;  %v2289_v50 = vpop.permute.xlu0 %2288  ;;  %2368 = vst.msk [vmem:[#allocation2 + $0xb8] sm:$0xff] %vm2344_vm8, %v2295_v40  ;;  %v13946_v18 = vld [vmem:[#allocation52_spill] sm:$0xff] }
 0x17d   : > { %13941 = vst [vmem:[#allocation8_spill] sm:$0xff] %v9768_v30  ;;  %2365 = vst.msk [vmem:[#allocation2 + $0xa0] sm:$0xff] %vm2344_vm8, %v2289_v50  ;;  %v9789_v28 = vcombine.low %v13946_v18, %v9779_v13  ;;  %v2632_v26 = vrot.slane %v2631_v20, 4  ;;  %v13948_v50 = vld [vmem:[#allocation51_spill] sm:$0xff]  ;;  %v13952_v20 = vld [vmem:[#allocation57_spill] sm:$0xff] }
 0x17e   : > { %13944 = vst [vmem:[#allocation9_spill] sm:$0xff] %v9772_v51  ;;  %v13949_v18 = vld [vmem:[#allocation55_spill] sm:$0xff] }
 0x17f   : > { %2736 = vrot.lane.b32.xlu1 %v9755_v24, %s7617_s15  ;;  %2730 = vrot.lane.b32.xlu0 %v13945_v49, %s7617_s15  ;;  %v2639_v24 = vshrl.u32 %v9576_v19, 16  ;;  %13947 = vst [vmem:[#allocation21_spill] sm:$0xff] %v9789_v28  ;;  %v2644_v49 = vrot.slane %v2642_v21, 5  ;;  %v2299_v46 = vpop.permute.xlu1 %2298  ;;  %v13954_v21 = vld [vmem:[#allocation50_spill] sm:$0xff] }
 0x180   : > { %v2293_v40 = vpop.permute.xlu0 %2292  ;;  %2370 = vst.msk [vmem:[#allocation2 + $0xc8] sm:$0xff] %vm2344_vm8, %v2299_v46  ;;  %v9813_v46 = vsel %vm7748_vm2, %v2632_v26, %v2636_v35 }
 0x181   : > { %v2641_v11 = vrot.slane %v2639_v24, 4  ;;  %2367 = vst.msk [vmem:[#allocation2 + $0xb0] sm:$0xff] %vm2344_vm8, %v2293_v40  ;;  %v2648_v24 = vshll.u32 %v9794_v34, 16 }
 0x183   : > { %2740 = vrot.lane.b32.xlu1 %v9772_v51, %s7617_s15  ;;  %2734 = vrot.lane.b32.xlu0 %v9768_v30, %s7617_s15  ;;  %v9802_v51 = vcombine.low %v13949_v18, %v13948_v50  ;;  %v13951_v30 = vld [vmem:[#allocation64_spill] sm:$0xff]  ;;  %v2645_v40 = vor.u32 %v2644_v49, %v2641_v11  ;;  %v2656_v50 = vshll.u32 %v9610_v4, 16  ;;  %v2303_v18 = vpop.permute.xlu1 %2302  ;;  %v2650_v26 = vrot.slane %v2648_v24, 5  ;;  %v13962_v24 = vld [vmem:[#allocation65_spill] sm:$0xff] }
 0x184   : > { %v9806_v37 = vcombine.low %v13952_v20, %v13951_v30  ;;  %v2297_v36 = vpop.permute.xlu0 %2296  ;;  %2372 = vst.msk [vmem:[#allocation2 + $0xd8] sm:$0xff] %vm2344_vm8, %v2303_v18  ;;  %v13955_v30 = vld [vmem:[#allocation62_spill] sm:$0xff] }
 0x185   : > { %13950 = vst [vmem:[#allocation25_spill] sm:$0xff] %v9802_v51  ;;  %2369 = vst.msk [vmem:[#allocation2 + $0xc0] sm:$0xff] %vm2344_vm8, %v2297_v36  ;;  %v9823_v20 = vcombine.low %v13955_v30, %v9813_v46  ;;  %v2646_v49 = vrot.slane %v2645_v40, 4  ;;  %v2658_v11 = vrot.slane %v2656_v50, 5  ;;  %v13957_v36 = vld [vmem:[#allocation81_spill] sm:$0xff]  ;;  %v13958_v30 = vld [vmem:[#allocation67_spill] sm:$0xff] }
 0x186   : > { %13953 = vst [vmem:[#allocation34_spill] sm:$0xff] %v9806_v37  ;;  %v13960_v40 = vld [vmem:[#allocation60_spill] sm:$0xff] }
 0x187   : > { %2744 = vrot.lane.b32.xlu1 %v9789_v28, %s7617_s15  ;;  %2738 = vrot.lane.b32.xlu0 %v13954_v21, %s7617_s15  ;;  %v2653_v28 = vshrl.u32 %v9610_v4, 16  ;;  %13956 = vst [vmem:[#allocation27_spill] sm:$0xff] %v9823_v20  ;;  %v2307_v21 = vpop.permute.xlu1 %2306 }
 0x188   : > { %v2301_v18 = vpop.permute.xlu0 %2300  ;;  %2374 = vst.msk [vmem:[#allocation2 + $0xe8] sm:$0xff] %vm2344_vm8, %v2307_v21 }
 0x189   : > { %v2655_v35 = vrot.slane %v2653_v28, 4  ;;  %2371 = vst.msk [vmem:[#allocation2 + $0xd0] sm:$0xff] %vm2344_vm8, %v2301_v18  ;;  %v13961_v28 = vld [vmem:[#allocation61_spill] sm:$0xff]  ;;  %v2662_v18 = vshll.u32 %v9828_v3, 16 }
 0x18a   : > { %v9842_v50 = vcombine.low %v13962_v24, %v13961_v28  ;;  %v13969_v24 = vld [vmem:[#allocation72_spill] sm:$0xff] }
 0x18b   : > { %2748 = vrot.lane.b32.xlu1 %v9806_v37, %s7617_s15  ;;  %2742 = vrot.lane.b32.xlu0 %v9802_v51, %s7617_s15  ;;  %v9836_v37 = vcombine.low %v13958_v30, %v13957_v36  ;;  %v9846_v51 = vsel %vm7748_vm2, %v2646_v49, %v2650_v26  ;;  %v2659_v21 = vor.u32 %v2658_v11, %v2655_v35  ;;  %v2311_v0 = vpop.permute.xlu1 %2310  ;;  %v13964_v36 = vld [vmem:[#allocation78_spill] sm:$0xff]  ;;  %v2664_v26 = vrot.slane %v2662_v18, 5 }
 0x18c   : > { %13963 = vst [vmem:[#allocation31_spill] sm:$0xff] %v9842_v50  ;;  %2376 = vst.msk [vmem:[#allocation2 + $0xf8] sm:$0xff] %vm2344_vm8, %v2311_v0  ;;  %v9855_v30 = vcombine.low %v13964_v36, %v9846_v51  ;;  %v13966_v0 = vld [vmem:[#allocation103_spill] sm:$0xff]  ;;  %v13970_v36 = vld [vmem:[#allocation73_spill] sm:$0xff] }
 0x18d   : > { %13959 = vst [vmem:[#allocation32_spill] sm:$0xff] %v9836_v37  ;;  %v2660_v49 = vrot.slane %v2659_v21, 4 }
 0x18e   : > { %13965 = vst [vmem:[#allocation35_spill] sm:$0xff] %v9855_v30 }
 0x18f   : > { %2752 = vrot.lane.b32.xlu1 %v9823_v20, %s7617_s15  ;;  %2746 = vrot.lane.b32.xlu0 %v13960_v40, %s7617_s15  ;;  %v2305_v20 = vpop.permute.xlu0 %2304  ;;  %v2428_v35 = vpop.permute.xlu1 %2427  ;;  %v9875_v18 = vsel %vm7748_vm2, %v2660_v49, %v2664_v26  ;;  %v14065_v40 = vld [vmem:[#allocation133_spill] sm:$0xff] }
 0x190   : > { %2373 = vst.msk [vmem:[#allocation2 + $0xe0] sm:$0xff] %vm2344_vm8, %v2305_v20  ;;  %v13967_v20 = vld [vmem:[#allocation90_spill] sm:$0xff] }
 0x191   : > { %2523 = vst.msk [vmem:[#allocation2 + $0x8] sm:$0xff] %vm2521_vm9, %v2428_v35  ;;  %v9865_v28 = vcombine.low %v13967_v20, %v13966_v0  ;;  %v13973_v0 = vld [vmem:[#allocation100_spill] sm:$0xff] }
 0x192   : > { %v9883_v20 = vcombine.low %v13973_v0, %v9875_v18  ;;  %v13977_v0 = vld [vmem:[#allocation109_spill] sm:$0xff] }
 0x193   : > { %2756 = vrot.lane.b32.xlu1 %v9836_v37, %s7617_s15  ;;  %2750 = vrot.lane.b32.xlu0 %v9842_v50, %s7617_s15  ;;  %v2309_v11 = vpop.permute.xlu0 %2308  ;;  %13968 = vst [vmem:[#allocation44_spill] sm:$0xff] %v9865_v28  ;;  %v13971_v50 = vld [vmem:[#allocation85_spill] sm:$0xff] }
 0x194   : > { %2375 = vst.msk [vmem:[#allocation2 + $0xf0] sm:$0xff] %vm2344_vm8, %v2309_v11  ;;  %v9871_v21 = vcombine.low %v13971_v50, %v13970_v36  ;;  %13974 = vst [vmem:[#allocation42_spill] sm:$0xff] %v9883_v20  ;;  %v7121_v50 = vrot.slane %v9238_v55, 9  ;;  %v2845_v36 = vrot.slane %v9586_v12, 5  ;;  %v13976_v12 = vld [vmem:[#allocation97_spill] sm:$0xff]  ;;  %vm4888_vm8 = vcmask 556544  }
 0x195   : > { %v2432_v35 = vpop.permute.xlu1 %2431 }
 0x196   : > { %13972 = vst [vmem:[#allocation37_spill] sm:$0xff] %v9871_v21  ;;  %2525 = vst.msk [vmem:[#allocation2 + $0x18] sm:$0xff] %vm2521_vm9, %v2432_v35  ;;  %v9895_v35 = vsel %vm8431_vm5, %v7121_v50, %v2845_v36  ;;  %v13980_v50 = vld [vmem:[#allocation105_spill] sm:$0xff]  ;;  %v13981_v36 = vld [vmem:[#allocation115_spill] sm:$0xff] }
 0x197   : > { %2760 = vrot.lane.b32.xlu1 %v9855_v30, %s7617_s15  ;;  %2754 = vrot.lane.b32.xlu0 %v13969_v24, %s7617_s15 }
 0x198   : > { %v2426_v11 = vpop.permute.xlu0 %2425 }
 0x199   : > { %2522 = vst.msk [vmem:[#allocation2] sm:$0xff] %vm2521_vm9, %v2426_v11  ;;  %v13975_v11 = vld [vmem:[#allocation96_spill] sm:$0xff] }
 0x19b   : > { %2764 = vrot.lane.b32.xlu1 %v9865_v28, %s7617_s15  ;;  %2758 = vrot.lane.b32.xlu0 %v9871_v21, %s7617_s15  ;;  %v9901_v28 = vcombine.low %v13977_v0, %v13976_v12  ;;  %v7122_v12 = vrot.slane %v9424_v14, 9  ;;  %v2849_v0 = vrot.slane %v9629_v25, 5 }
 0x19d   : > { %v2436_v49 = vpop.permute.xlu1 %2435  ;;  %v2430_v26 = vpop.permute.xlu0 %2429  ;;  %13978 = vst [vmem:[#allocation41_spill] sm:$0xff] %v9901_v28  ;;  %v9928_v25 = vsel %vm8431_vm5, %v7122_v12, %v2849_v0  ;;  %v7123_v12 = vrot.slane %v9459_v43, 9  ;;  %v2853_v0 = vrot.slane %v9659_v60, 5 }
 0x19e   : > { %2527 = vst.msk [vmem:[#allocation2 + $0x28] sm:$0xff] %vm2521_vm9, %v2436_v49  ;;  %2524 = vst.msk [vmem:[#allocation2 + $0x10] sm:$0xff] %vm2521_vm9, %v2430_v26  ;;  %v13979_v49 = vld [vmem:[#allocation113_spill] sm:$0xff] }
 0x19f   : > { %2768 = vrot.lane.b32.xlu1 %v9883_v20, %s7617_s15  ;;  %2762 = vrot.lane.b32.xlu0 %v13975_v11, %s7617_s15  ;;  %v7132_v26 = vcombine.low %v13979_v49, %v9895_v35  ;;  %v13982_v20 = vcombine.low %v13980_v50, %v13981_v36  ;;  %v13984_v49 = vld [vmem:[#allocation121_spill] sm:$0xff]  ;;  %v13987_v50 = vld [vmem:[#allocation104_spill] sm:$0xff]  ;;  %v9960_v60 = vsel %vm8431_vm5, %v7123_v12, %v2853_v0  ;;  %v2857_v12 = vrot.slane %v9692_v31, 5 }
 0x1a1   : > { %v2440_v21 = vpop.permute.xlu1 %2439  ;;  %v2434_v24 = vpop.permute.xlu0 %2433 }
 0x1a2   : > { %2529 = vst.msk [vmem:[#allocation2 + $0x38] sm:$0xff] %vm2521_vm9, %v2440_v21  ;;  %2526 = vst.msk [vmem:[#allocation2 + $0x20] sm:$0xff] %vm2521_vm9, %v2434_v24  ;;  %v13983_v24 = vld [vmem:[#allocation132_spill] sm:$0xff] }
 0x1a3   : > { %2917 = vrot.lane.b32.xlu1 %v13982_v20, %s7618_s16  ;;  %2766 = vrot.lane.b32.xlu0 %v9901_v28, %s7617_s15  ;;  %v9920_v30 = vcombine.low %v13984_v49, %v13983_v24  ;;  %v13986_v20 = vld [vmem:[#allocation110_spill] sm:$0xff]  ;;  %v13992_v24 = vld [vmem:[#allocation112_spill] sm:$0xff]  ;;  %s7630_s15 = smov 68  }
 0x1a4   : > { %v13988_v36 = vcombine.low %v13986_v20, %v13987_v50  ;;  %v13995_v50 = vld [vmem:[#allocation141_spill] sm:$0xff] }
 0x1a5   : > { %v2444_v11 = vpop.permute.xlu1 %2443  ;;  %v2438_v21 = vpop.permute.xlu0 %2437  ;;  %13985 = vst [vmem:[#allocation45_spill] sm:$0xff] %v9920_v30 }
 0x1a6   : > { %2531 = vst.msk [vmem:[#allocation2 + $0x48] sm:$0xff] %vm2521_vm9, %v2444_v11  ;;  %2528 = vst.msk [vmem:[#allocation2 + $0x30] sm:$0xff] %vm2521_vm9, %v2438_v21  ;;  %v13989_v11 = vld [vmem:[#allocation131_spill] sm:$0xff]  ;;  %v13991_v21 = vld [vmem:[#allocation118_spill] sm:$0xff] }
 0x1a7   : > { %2921 = vrot.lane.b32.xlu1 %v7132_v26, %s7618_s16  ;;  %2915 = vrot.lane.b32.xlu0 %v13988_v36, %s7618_s16  ;;  %v9936_v26 = vcombine.low %v13989_v11, %v9928_v25  ;;  %v13993_v49 = vcombine.low %v13991_v21, %v13992_v24  ;;  %v13997_v11 = vld [vmem:[#allocation128_spill] sm:$0xff]  ;;  %v13998_v21 = vld [vmem:[#allocation129_spill] sm:$0xff] }
 0x1a8   : > { %v13999_v24 = vld [vmem:[#allocation137_spill] sm:$0xff] }
 0x1a9   : > { %v2448_v28 = vpop.permute.xlu1 %2447  ;;  %v2442_v37 = vpop.permute.xlu0 %2441  ;;  %13990 = vst [vmem:[#allocation54_spill] sm:$0xff] %v9936_v26 }
 0x1aa   : > { %2533 = vst.msk [vmem:[#allocation2 + $0x58] sm:$0xff] %vm2521_vm9, %v2448_v28  ;;  %2530 = vst.msk [vmem:[#allocation2 + $0x40] sm:$0xff] %vm2521_vm9, %v2442_v37  ;;  %v13994_v37 = vld [vmem:[#allocation155_spill] sm:$0xff] }
 0x1ab   : > { %2925 = vrot.lane.b32.xlu1 %v9920_v30, %s7618_s16  ;;  %2919 = vrot.lane.b32.xlu0 %v13993_v49, %s7618_s16  ;;  %v9950_v36 = vcombine.low %v13995_v50, %v13994_v37  ;;  %v9956_v49 = vcombine.low %v13999_v24, %v13998_v21  ;;  %v14001_v37 = vld [vmem:[#allocation151_spill] sm:$0xff]  ;;  %v7124_v21 = vrot.slane %v9488_v5, 9 }
 0x1ac   : > { %v9968_v50 = vcombine.low %v14001_v37, %v9960_v60 }
 0x1ad   : > { %v2452_v20 = vpop.permute.xlu1 %2451  ;;  %v2446_v28 = vpop.permute.xlu0 %2445  ;;  %13996 = vst [vmem:[#allocation47_spill] sm:$0xff] %v9950_v36  ;;  %14000 = vst [vmem:[#allocation52_spill] sm:$0xff] %v9956_v49  ;;  %v9990_v31 = vsel %vm8431_vm5, %v7124_v21, %v2857_v12 }
 0x1ae   : > { %2535 = vst.msk [vmem:[#allocation2 + $0x68] sm:$0xff] %vm2521_vm9, %v2452_v20  ;;  %2532 = vst.msk [vmem:[#allocation2 + $0x50] sm:$0xff] %vm2521_vm9, %v2446_v28 }
 0x1af   : > { %2929 = vrot.lane.b32.xlu1 %v9936_v26, %s7618_s16  ;;  %2923 = vrot.lane.b32.xlu0 %v13997_v11, %s7618_s16  ;;  %14002 = vst [vmem:[#allocation51_spill] sm:$0xff] %v9968_v50  ;;  %v14008_v11 = vld [vmem:[#allocation157_spill] sm:$0xff] }
 0x1b1   : > { %v2456_v20 = vpop.permute.xlu1 %2455  ;;  %v2450_v28 = vpop.permute.xlu0 %2449 }
 0x1b2   : > { %2537 = vst.msk [vmem:[#allocation2 + $0x78] sm:$0xff] %vm2521_vm9, %v2456_v20  ;;  %2534 = vst.msk [vmem:[#allocation2 + $0x60] sm:$0xff] %vm2521_vm9, %v2450_v28  ;;  %v14003_v20 = vld [vmem:[#allocation177_spill] sm:$0xff]  ;;  %v14004_v28 = vld [vmem:[#allocation162_spill] sm:$0xff] }
 0x1b3   : > { %2933 = vrot.lane.b32.xlu1 %v9950_v36, %s7618_s16  ;;  %2927 = vrot.lane.b32.xlu0 %v9956_v49, %s7618_s16  ;;  %v9980_v37 = vcombine.low %v14004_v28, %v14003_v20  ;;  %v14006_v36 = vld [vmem:[#allocation148_spill] sm:$0xff]  ;;  %v14007_v49 = vld [vmem:[#allocation149_spill] sm:$0xff]  ;;  %v14010_v20 = vld [vmem:[#allocation171_spill] sm:$0xff] }
 0x1b4   : > { %v9986_v26 = vcombine.low %v14008_v11, %v14007_v49  ;;  %v9998_v28 = vcombine.low %v14010_v20, %v9990_v31  ;;  %v7125_v11 = vrot.slane %v9517_v10, 9  ;;  %v2861_v49 = vrot.slane %v9726_v1, 5  ;;  %v14014_v20 = vld [vmem:[#allocation168_spill] sm:$0xff] }
 0x1b5   : > { %v2460_v0 = vpop.permute.xlu1 %2459  ;;  %v2454_v24 = vpop.permute.xlu0 %2453  ;;  %14005 = vst [vmem:[#allocation55_spill] sm:$0xff] %v9980_v37 }
 0x1b6   : > { %2539 = vst.msk [vmem:[#allocation2 + $0x88] sm:$0xff] %vm2521_vm9, %v2460_v0  ;;  %2536 = vst.msk [vmem:[#allocation2 + $0x70] sm:$0xff] %vm2521_vm9, %v2454_v24  ;;  %v10020_v1 = vsel %vm8431_vm5, %v7125_v11, %v2861_v49 }
 0x1b7   : > { %2937 = vrot.lane.b32.xlu1 %v9968_v50, %s7618_s16  ;;  %2931 = vrot.lane.b32.xlu0 %v14006_v36, %s7618_s16  ;;  %14009 = vst [vmem:[#allocation64_spill] sm:$0xff] %v9986_v26  ;;  %14011 = vst [vmem:[#allocation57_spill] sm:$0xff] %v9998_v28 }
 0x1b9   : > { %v2464_v0 = vpop.permute.xlu1 %2463  ;;  %v2458_v24 = vpop.permute.xlu0 %2457 }
 0x1ba   : > { %2541 = vst.msk [vmem:[#allocation2 + $0x98] sm:$0xff] %vm2521_vm9, %v2464_v0  ;;  %2538 = vst.msk [vmem:[#allocation2 + $0x80] sm:$0xff] %vm2521_vm9, %v2458_v24  ;;  %v14012_v0 = vld [vmem:[#allocation181_spill] sm:$0xff] }
 0x1bb   : > { %2941 = vrot.lane.b32.xlu1 %v9980_v37, %s7618_s16  ;;  %2935 = vrot.lane.b32.xlu0 %v9986_v26, %s7618_s16  ;;  %v10010_v24 = vcombine.low %v14012_v0, %v8904_v47  ;;  %v14015_v26 = vld [vmem:[#allocation169_spill] sm:$0xff]  ;;  %v14016_v37 = vld [vmem:[#allocation178_spill] sm:$0xff]  ;;  %v14018_v47 = vld [vmem:[#allocation188_spill] sm:$0xff] }
 0x1bc   : > { %v10016_v36 = vcombine.low %v14016_v37, %v14015_v26  ;;  %v10028_v0 = vcombine.low %v14018_v47, %v10020_v1  ;;  %v7126_v26 = vrot.slane %v9545_v56, 9  ;;  %v2865_v37 = vrot.slane %v9760_v45, 5 }
 0x1bd   : > { %v2468_v21 = vpop.permute.xlu1 %2467  ;;  %v2462_v12 = vpop.permute.xlu0 %2461  ;;  %14013 = vst [vmem:[#allocation62_spill] sm:$0xff] %v10010_v24 }
 0x1be   : > { %2543 = vst.msk [vmem:[#allocation2 + $0xa8] sm:$0xff] %vm2521_vm9, %v2468_v21  ;;  %2540 = vst.msk [vmem:[#allocation2 + $0x90] sm:$0xff] %vm2521_vm9, %v2462_v12  ;;  %v10050_v45 = vsel %vm8431_vm5, %v7126_v26, %v2865_v37 }
 0x1bf   : > { %2945 = vrot.lane.b32.xlu1 %v9998_v28, %s7618_s16  ;;  %2939 = vrot.lane.b32.xlu0 %v14014_v20, %s7618_s16  ;;  %14017 = vst [vmem:[#allocation81_spill] sm:$0xff] %v10016_v36  ;;  %14019 = vst [vmem:[#allocation67_spill] sm:$0xff] %v10028_v0  ;;  %v14025_v20 = vld [vmem:[#allocation190_spill] sm:$0xff] }
 0x1c1   : > { %v2472_v21 = vpop.permute.xlu1 %2471  ;;  %v2466_v12 = vpop.permute.xlu0 %2465 }
 0x1c2   : > { %2545 = vst.msk [vmem:[#allocation2 + $0xb8] sm:$0xff] %vm2521_vm9, %v2472_v21  ;;  %2542 = vst.msk [vmem:[#allocation2 + $0xa0] sm:$0xff] %vm2521_vm9, %v2466_v12  ;;  %v14020_v21 = vld [vmem:[#allocation198_spill] sm:$0xff]  ;;  %v14021_v12 = vld [vmem:[#allocation191_spill] sm:$0xff] }
 0x1c3   : > { %2949 = vrot.lane.b32.xlu1 %v10010_v24, %s7618_s16  ;;  %2943 = vrot.lane.b32.xlu0 %v10016_v36, %s7618_s16  ;;  %v10040_v47 = vcombine.low %v14021_v12, %v14020_v21  ;;  %v14023_v24 = vld [vmem:[#allocation187_spill] sm:$0xff]  ;;  %v14024_v36 = vld [vmem:[#allocation185_spill] sm:$0xff]  ;;  %v14027_v21 = vld [vmem:[#allocation196_spill] sm:$0xff] }
 0x1c4   : > { %v10046_v28 = vcombine.low %v14025_v20, %v14024_v36  ;;  %v10058_v12 = vcombine.low %v14027_v21, %v10050_v45  ;;  %v7127_v36 = vrot.slane %v9576_v19, 9  ;;  %v2869_v20 = vrot.slane %v9794_v34, 5 }
 0x1c5   : > { %v2476_v11 = vpop.permute.xlu1 %2475  ;;  %v2470_v49 = vpop.permute.xlu0 %2469  ;;  %14022 = vst [vmem:[#allocation61_spill] sm:$0xff] %v10040_v47 }
 0x1c6   : > { %2547 = vst.msk [vmem:[#allocation2 + $0xc8] sm:$0xff] %vm2521_vm9, %v2476_v11  ;;  %2544 = vst.msk [vmem:[#allocation2 + $0xb0] sm:$0xff] %vm2521_vm9, %v2470_v49  ;;  %v10080_v34 = vsel %vm8431_vm5, %v7127_v36, %v2869_v20 }
 0x1c7   : > { %2953 = vrot.lane.b32.xlu1 %v10028_v0, %s7618_s16  ;;  %2947 = vrot.lane.b32.xlu0 %v14023_v24, %s7618_s16  ;;  %14026 = vst [vmem:[#allocation65_spill] sm:$0xff] %v10046_v28  ;;  %14028 = vst [vmem:[#allocation78_spill] sm:$0xff] %v10058_v12  ;;  %v14034_v24 = vld [vmem:[#allocation199_spill] sm:$0xff] }
 0x1c9   : > { %v2480_v11 = vpop.permute.xlu1 %2479  ;;  %v2474_v49 = vpop.permute.xlu0 %2473 }
 0x1ca   : > { %2549 = vst.msk [vmem:[#allocation2 + $0xd8] sm:$0xff] %vm2521_vm9, %v2480_v11  ;;  %2546 = vst.msk [vmem:[#allocation2 + $0xc0] sm:$0xff] %vm2521_vm9, %v2474_v49  ;;  %v14029_v11 = vld [vmem:[#allocation99_spill] sm:$0xff]  ;;  %v14030_v49 = vld [vmem:[#allocation201_spill] sm:$0xff] }
 0x1cb   : > { %2957 = vrot.lane.b32.xlu1 %v10040_v47, %s7618_s16  ;;  %2951 = vrot.lane.b32.xlu0 %v10046_v28, %s7618_s16  ;;  %v10070_v21 = vcombine.low %v14030_v49, %v14029_v11  ;;  %v14032_v47 = vld [vmem:[#allocation194_spill] sm:$0xff]  ;;  %v14033_v28 = vld [vmem:[#allocation195_spill] sm:$0xff]  ;;  %v14036_v11 = vld [vmem:[#allocation101_spill] sm:$0xff] }
 0x1cc   : > { %v10076_v0 = vcombine.low %v14034_v24, %v14033_v28  ;;  %v10088_v49 = vcombine.low %v14036_v11, %v10080_v34  ;;  %v7128_v28 = vrot.slane %v9610_v4, 9  ;;  %v2873_v24 = vrot.slane %v9828_v3, 5 }
 0x1cd   : > { %v2484_v26 = vpop.permute.xlu1 %2483  ;;  %v2478_v37 = vpop.permute.xlu0 %2477  ;;  %14031 = vst [vmem:[#allocation103_spill] sm:$0xff] %v10070_v21 }
 0x1ce   : > { %2551 = vst.msk [vmem:[#allocation2 + $0xe8] sm:$0xff] %vm2521_vm9, %v2484_v26  ;;  %2548 = vst.msk [vmem:[#allocation2 + $0xd0] sm:$0xff] %vm2521_vm9, %v2478_v37  ;;  %v10110_v3 = vsel %vm8431_vm5, %v7128_v28, %v2873_v24  ;;  %v14047_v28 = vld [vmem:[#allocation79_spill] sm:$0xff]  ;;  %v14048_v24 = vld [vmem:[#allocation82_spill] sm:$0xff] }
 0x1cf   : > { %2961 = vrot.lane.b32.xlu1 %v10058_v12, %s7618_s16  ;;  %2955 = vrot.lane.b32.xlu0 %v14032_v47, %s7618_s16  ;;  %14035 = vst [vmem:[#allocation90_spill] sm:$0xff] %v10076_v0  ;;  %14037 = vst [vmem:[#allocation73_spill] sm:$0xff] %v10088_v49  ;;  %v14043_v47 = vld [vmem:[#allocation70_spill] sm:$0xff] }
 0x1d1   : > { %v2488_v26 = vpop.permute.xlu1 %2487  ;;  %v2482_v37 = vpop.permute.xlu0 %2481 }
 0x1d2   : > { %2553 = vst.msk [vmem:[#allocation2 + $0xf8] sm:$0xff] %vm2521_vm9, %v2488_v26  ;;  %2550 = vst.msk [vmem:[#allocation2 + $0xe0] sm:$0xff] %vm2521_vm9, %v2482_v37  ;;  %v14038_v26 = vld [vmem:[#allocation88_spill] sm:$0xff]  ;;  %v14039_v37 = vld [vmem:[#allocation75_spill] sm:$0xff] }
 0x1d3   : > { %2965 = vrot.lane.b32.xlu1 %v10070_v21, %s7618_s16  ;;  %2959 = vrot.lane.b32.xlu0 %v10076_v0, %s7618_s16  ;;  %v10100_v11 = vcombine.low %v14039_v37, %v14038_v26  ;;  %v14041_v21 = vld [vmem:[#allocation205_spill] sm:$0xff]  ;;  %v14042_v0 = vld [vmem:[#allocation206_spill] sm:$0xff] }
 0x1d4   : > { %v10106_v12 = vcombine.low %v14043_v47, %v14042_v0  ;;  %v14045_v26 = vld [vmem:[#allocation117_spill] sm:$0xff] }
 0x1d5   : > { %v2709_v36 = vpop.permute.xlu1 %2708  ;;  %v2486_v20 = vpop.permute.xlu0 %2485  ;;  %14040 = vst [vmem:[#allocation85_spill] sm:$0xff] %v10100_v11  ;;  %v10118_v37 = vcombine.low %v14045_v26, %v10110_v3  ;;  %v10133_v26 = vld [vmem:[%s7735_s11 + $0x48] sm:$0xf] }
 0x1d6   : > { %2804 = vst.msk [vmem:[#allocation2 + $0x8] sm:$0xff] %vm2802_vm10, %v2709_v36  ;;  %14044 = vst [vmem:[#allocation100_spill] sm:$0xff] %v10106_v12 }
 0x1d7   : > { %2552 = vst.msk [vmem:[#allocation2 + $0xf0] sm:$0xff] %vm2521_vm9, %v2486_v20  ;;  %2969 = vrot.lane.b32.xlu1 %v10088_v49, %s7618_s16  ;;  %2963 = vrot.lane.b32.xlu0 %v14041_v21, %s7618_s16  ;;  %14046 = vst [vmem:[#allocation97_spill] sm:$0xff] %v10118_v37  ;;  %v14061_v49 = vld [vmem:[#allocation125_spill] sm:$0xff]  ;;  %vm5024_vm9 = vcmask 589344  }
 0x1d9   : > { %v2713_v36 = vpop.permute.xlu1 %2712  ;;  %v2707_v20 = vpop.permute.xlu0 %2706 }
 0x1da   : > { %2806 = vst.msk [vmem:[#allocation2 + $0x18] sm:$0xff] %vm2802_vm10, %v2713_v36  ;;  %2803 = vst.msk [vmem:[#allocation2] sm:$0xff] %vm2802_vm10, %v2707_v20  ;;  %v14049_v36 = vld [vmem:[#allocation150_spill] sm:$0xff] }
 0x1db   : > { %2973 = vrot.lane.b32.xlu1 %v10100_v11, %s7618_s16  ;;  %2967 = vrot.lane.b32.xlu0 %v10106_v12, %s7618_s16  ;;  %v10130_v20 = vcombine.low %v14049_v36, %v14048_v24 }
 0x1dd   : > { %v2717_v0 = vpop.permute.xlu1 %2716  ;;  %v2711_v47 = vpop.permute.xlu0 %2710  ;;  %14050 = vst [vmem:[#allocation109_spill] sm:$0xff] %v10130_v20 }
 0x1de   : > { %2808 = vst.msk [vmem:[#allocation2 + $0x28] sm:$0xff] %vm2802_vm10, %v2717_v0  ;;  %2805 = vst.msk [vmem:[#allocation2 + $0x10] sm:$0xff] %vm2802_vm10, %v2711_v47  ;;  %v14051_v0 = vld [vmem:[#allocation204_spill] sm:$0xff]  ;;  %v7161_v47 = vcombine.low %v9238_v55, %v10133_v26  ;;  %v14053_v55 = vld [vmem:[#allocation122_spill] sm:$0xff] }
 0x1df   : > { %2977 = vrot.lane.b32.xlu1 %v10118_v37, %s7618_s16  ;;  %2971 = vrot.lane.b32.xlu0 %v14047_v28, %s7618_s16 }
 0x1e1   : > { %v2721_v12 = vpop.permute.xlu1 %2720  ;;  %v2715_v11 = vpop.permute.xlu0 %2714 }
 0x1e2   : > { %2810 = vst.msk [vmem:[#allocation2 + $0x38] sm:$0xff] %vm2802_vm10, %v2721_v12  ;;  %2807 = vst.msk [vmem:[#allocation2 + $0x20] sm:$0xff] %vm2802_vm10, %v2715_v11  ;;  %v14052_v12 = vld [vmem:[#allocation107_spill] sm:$0xff]  ;;  %v10149_v11 = vld [vmem:[%s7735_s11 + $0x98] sm:$0xf] }
 0x1e3   : > { %3070 = vrot.lane.b32.xlu1 %v14051_v0, %s7619_s17  ;;  %2975 = vrot.lane.b32.xlu0 %v10130_v20, %s7618_s16  ;;  %s7631_s16 = smov 72  }
 0x1e5   : > { %v2725_v24 = vpop.permute.xlu1 %2724  ;;  %v2719_v36 = vpop.permute.xlu0 %2718 }
 0x1e6   : > { %2812 = vst.msk [vmem:[#allocation2 + $0x48] sm:$0xff] %vm2802_vm10, %v2725_v24  ;;  %2809 = vst.msk [vmem:[#allocation2 + $0x30] sm:$0xff] %vm2802_vm10, %v2719_v36  ;;  %v10157_v24 = vcombine.low %v9424_v14, %v10149_v11 }
 0x1e7   : > { %3074 = vrot.lane.b32.xlu1 %v7161_v47, %s7619_s17  ;;  %3068 = vrot.lane.b32.xlu0 %v14052_v12, %s7619_s17  ;;  %v14055_v47 = vld [vmem:[#allocation108_spill] sm:$0xff] }
 0x1e8   : > { %14054 = vst [vmem:[#allocation113_spill] sm:$0xff] %v10157_v24 }
 0x1e9   : > { %v2729_v0 = vpop.permute.xlu1 %2728  ;;  %v2723_v28 = vpop.permute.xlu0 %2722 }
 0x1ea   : > { %2814 = vst.msk [vmem:[#allocation2 + $0x58] sm:$0xff] %vm2802_vm10, %v2729_v0  ;;  %2811 = vst.msk [vmem:[#allocation2 + $0x40] sm:$0xff] %vm2802_vm10, %v2723_v28  ;;  %v14056_v28 = vld [vmem:[#allocation134_spill] sm:$0xff]  ;;  %v10168_v0 = vld [vmem:[%s7735_s11 + $0xe8] sm:$0xf] }
 0x1eb   : > { %3078 = vrot.lane.b32.xlu1 %v14053_v55, %s7619_s17  ;;  %3072 = vrot.lane.b32.xlu0 %v14055_v47, %s7619_s17  ;;  %v14057_v47 = vld [vmem:[#allocation91_spill] sm:$0xff] }
 0x1ed   : > { %v2733_v36 = vpop.permute.xlu1 %2732  ;;  %v2727_v12 = vpop.permute.xlu0 %2726 }
 0x1ee   : > { %2816 = vst.msk [vmem:[#allocation2 + $0x68] sm:$0xff] %vm2802_vm10, %v2733_v36  ;;  %2813 = vst.msk [vmem:[#allocation2 + $0x50] sm:$0xff] %vm2802_vm10, %v2727_v12  ;;  %v10176_v36 = vcombine.low %v9459_v43, %v10168_v0  ;;  %v14059_v12 = vld [vmem:[#allocation116_spill] sm:$0xff] }
 0x1ef   : > { %3082 = vrot.lane.b32.xlu1 %v10157_v24, %s7619_s17  ;;  %3076 = vrot.lane.b32.xlu0 %v14056_v28, %s7619_s17 }
 0x1f0   : > { %14058 = vst [vmem:[#allocation105_spill] sm:$0xff] %v10176_v36 }
 0x1f1   : > { %v2737_v14 = vpop.permute.xlu1 %2736  ;;  %v2731_v20 = vpop.permute.xlu0 %2730 }
 0x1f2   : > { %2818 = vst.msk [vmem:[#allocation2 + $0x78] sm:$0xff] %vm2802_vm10, %v2737_v14  ;;  %2815 = vst.msk [vmem:[#allocation2 + $0x60] sm:$0xff] %vm2802_vm10, %v2731_v20  ;;  %v14060_v20 = vld [vmem:[#allocation83_spill] sm:$0xff]  ;;  %v10187_v14 = vld [vmem:[%s7735_s11 + $0x138] sm:$0xf] }
 0x1f3   : > { %3086 = vrot.lane.b32.xlu1 %v14057_v47, %s7619_s17  ;;  %3080 = vrot.lane.b32.xlu0 %v14059_v12, %s7619_s17 }
 0x1f5   : > { %v2741_v24 = vpop.permute.xlu1 %2740  ;;  %v2735_v37 = vpop.permute.xlu0 %2734 }
 0x1f6   : > { %2820 = vst.msk [vmem:[#allocation2 + $0x88] sm:$0xff] %vm2802_vm10, %v2741_v24  ;;  %2817 = vst.msk [vmem:[#allocation2 + $0x70] sm:$0xff] %vm2802_vm10, %v2735_v37  ;;  %v10195_v37 = vcombine.low %v9488_v5, %v10187_v14  ;;  %v14063_v24 = vld [vmem:[#allocation89_spill] sm:$0xff] }
 0x1f7   : > { %3090 = vrot.lane.b32.xlu1 %v10176_v36, %s7619_s17  ;;  %3084 = vrot.lane.b32.xlu0 %v14060_v20, %s7619_s17 }
 0x1f8   : > { %14062 = vst [vmem:[#allocation115_spill] sm:$0xff] %v10195_v37 }
 0x1f9   : > { %v2745_v43 = vpop.permute.xlu1 %2744  ;;  %v2739_v21 = vpop.permute.xlu0 %2738 }
 0x1fa   : > { %2822 = vst.msk [vmem:[#allocation2 + $0x98] sm:$0xff] %vm2802_vm10, %v2745_v43  ;;  %2819 = vst.msk [vmem:[#allocation2 + $0x80] sm:$0xff] %vm2802_vm10, %v2739_v21  ;;  %v14064_v21 = vld [vmem:[#allocation159_spill] sm:$0xff] }
 0x1fb   : > { %3094 = vrot.lane.b32.xlu1 %v14061_v49, %s7619_s17  ;;  %3088 = vrot.lane.b32.xlu0 %v14063_v24, %s7619_s17  ;;  %v10206_v43 = vld [vmem:[%s7735_s11 + $0x188] sm:$0xf] }
 0x1fd   : > { %v2749_v36 = vpop.permute.xlu1 %2748  ;;  %v2743_v50 = vpop.permute.xlu0 %2742 }
 0x1fe   : > { %2824 = vst.msk [vmem:[#allocation2 + $0xa8] sm:$0xff] %vm2802_vm10, %v2749_v36  ;;  %2821 = vst.msk [vmem:[#allocation2 + $0x90] sm:$0xff] %vm2802_vm10, %v2743_v50  ;;  %v10214_v50 = vcombine.low %v9517_v10, %v10206_v43  ;;  %v14067_v36 = vld [vmem:[#allocation94_spill] sm:$0xff] }
 0x1ff   : > { %3098 = vrot.lane.b32.xlu1 %v10195_v37, %s7619_s17  ;;  %3092 = vrot.lane.b32.xlu0 %v14064_v21, %s7619_s17 }
 0x200   : > { %14066 = vst [vmem:[#allocation132_spill] sm:$0xff] %v10214_v50 }
 0x201   : > { %v2753_v5 = vpop.permute.xlu1 %2752  ;;  %v2747_v30 = vpop.permute.xlu0 %2746 }
 0x202   : > { %2826 = vst.msk [vmem:[#allocation2 + $0xb8] sm:$0xff] %vm2802_vm10, %v2753_v5  ;;  %2823 = vst.msk [vmem:[#allocation2 + $0xa0] sm:$0xff] %vm2802_vm10, %v2747_v30  ;;  %v14068_v30 = vld [vmem:[#allocation130_spill] sm:$0xff]  ;;  %v10225_v5 = vld [vmem:[%s7735_s11 + $0x1d8] sm:$0xf] }
 0x203   : > { %3102 = vrot.lane.b32.xlu1 %v14065_v40, %s7619_s17  ;;  %3096 = vrot.lane.b32.xlu0 %v14067_v36, %s7619_s17 }
 0x205   : > { %v2757_v37 = vpop.permute.xlu1 %2756  ;;  %v2751_v48 = vpop.permute.xlu0 %2750 }
 0x206   : > { %2828 = vst.msk [vmem:[#allocation2 + $0xc8] sm:$0xff] %vm2802_vm10, %v2757_v37  ;;  %2825 = vst.msk [vmem:[#allocation2 + $0xb0] sm:$0xff] %vm2802_vm10, %v2751_v48  ;;  %v10233_v48 = vcombine.low %v9545_v56, %v10225_v5  ;;  %v14071_v37 = vld [vmem:[#allocation136_spill] sm:$0xff]  ;;  %v14072_v56 = vld [vmem:[#allocation139_spill] sm:$0xff] }
 0x207   : > { %3106 = vrot.lane.b32.xlu1 %v10214_v50, %s7619_s17  ;;  %3100 = vrot.lane.b32.xlu0 %v14068_v30, %s7619_s17 }
 0x208   : > { %14070 = vst [vmem:[#allocation121_spill] sm:$0xff] %v10233_v48 }
 0x209   : > { %v2761_v10 = vpop.permute.xlu1 %2760  ;;  %v2755_v23 = vpop.permute.xlu0 %2754 }
 0x20a   : > { %2830 = vst.msk [vmem:[#allocation2 + $0xd8] sm:$0xff] %vm2802_vm10, %v2761_v10  ;;  %2827 = vst.msk [vmem:[#allocation2 + $0xc0] sm:$0xff] %vm2802_vm10, %v2755_v23  ;;  %v3198_v23 = vshrl.u32 %v10133_v26, 16  ;;  %v3201_v10 = vshll.u32 %v10133_v26, 16 }
 0x20b   : > { %3110 = vrot.lane.b32.xlu1 %v14069_v44, %s7619_s17  ;;  %3104 = vrot.lane.b32.xlu0 %v14071_v37, %s7619_s17 }
 0x20c   : > { %v3203_v32 = vrot.slane %v3201_v10, 5 }
 0x20d   : > { %v2765_v50 = vpop.permute.xlu1 %2764  ;;  %v2759_v7 = vpop.permute.xlu0 %2758 }
 0x20e   : > { %2832 = vst.msk [vmem:[#allocation2 + $0xe8] sm:$0xff] %vm2802_vm10, %v2765_v50  ;;  %2829 = vst.msk [vmem:[#allocation2 + $0xd0] sm:$0xff] %vm2802_vm10, %v2759_v7  ;;  %v10254_v7 = vcombine.low %v9576_v19, %v10246_v33  ;;  %v14074_v50 = vld [vmem:[#allocation166_spill] sm:$0xff]  ;;  %v3215_v19 = vshll.u32 %v10149_v11, 16 }
 0x20f   : > { %3114 = vrot.lane.b32.xlu1 %v10233_v48, %s7619_s17  ;;  %3108 = vrot.lane.b32.xlu0 %v14072_v56, %s7619_s17  ;;  %v3200_v48 = vrot.slane %v3198_v23, 4  ;;  %v10270_v23 = vld [vmem:[%s7735_s11 + $0x278] sm:$0xf] }
 0x210   : > { %14073 = vst [vmem:[#allocation110_spill] sm:$0xff] %v10254_v7  ;;  %v3217_v9 = vrot.slane %v3215_v19, 5  ;;  %v3221_v19 = vshll.u32 %v10284_v17, 16 }
 0x211   : > { %v2769_v59 = vpop.permute.xlu1 %2768  ;;  %v2763_v57 = vpop.permute.xlu0 %2762  ;;  %v3204_v10 = vor.u32 %v3203_v32, %v3200_v48  ;;  %v3209_v32 = vrot.slane %v3207_v62, 5 }
 0x212   : > { %2834 = vst.msk [vmem:[#allocation2 + $0xf8] sm:$0xff] %vm2802_vm10, %v2769_v59  ;;  %2831 = vst.msk [vmem:[#allocation2 + $0xe0] sm:$0xff] %vm2802_vm10, %v2763_v57  ;;  %v3212_v57 = vshrl.u32 %v10149_v11, 16 }
 0x213   : > { %3118 = vrot.lane.b32.xlu1 %v9388_v53, %s7619_s17  ;;  %3112 = vrot.lane.b32.xlu0 %v14074_v50, %s7619_s17 }
 0x214   : > { %v3214_v48 = vrot.slane %v3212_v57, 4 }
 0x215   : > { %v2918_v6 = vpop.permute.xlu1 %2917  ;;  %v2767_v59 = vpop.permute.xlu0 %2766 }
 0x216   : > { %3013 = vst.msk [vmem:[#allocation2 + $0x8] sm:$0xff] %vm3011_vm11, %v2918_v6  ;;  %v3218_v57 = vor.u32 %v3217_v9, %v3214_v48 }
 0x217   : > { %2833 = vst.msk [vmem:[#allocation2 + $0xf0] sm:$0xff] %vm2802_vm10, %v2767_v59  ;;  %3122 = vrot.lane.b32.xlu1 %v10254_v7, %s7619_s17  ;;  %3116 = vrot.lane.b32.xlu0 %v9359_v54, %s7619_s17  ;;  %v10279_v59 = vcombine.low %v9610_v4, %v10270_v23  ;;  %v3205_v7 = vrot.slane %v3204_v10, 4  ;;  %v3229_v4 = vshll.u32 %v10168_v0, 16  ;;  %vm5173_vm10 = vcmask 622144  }
 0x219   : > { %v2922_v58 = vpop.permute.xlu1 %2921  ;;  %v2916_v6 = vpop.permute.xlu0 %2915  ;;  %14075 = vst [vmem:[#allocation104_spill] sm:$0xff] %v10279_v59  ;;  %v3210_v62 = vsel %vm7748_vm2, %v3205_v7, %v3209_v32  ;;  %v3219_v7 = vrot.slane %v3218_v57, 4  ;;  %v3223_v32 = vrot.slane %v3221_v19, 5  ;;  %v3231_v48 = vrot.slane %v3229_v4, 5 }
 0x21a   : > { %3015 = vst.msk [vmem:[#allocation2 + $0x18] sm:$0xff] %vm3011_vm11, %v2922_v58  ;;  %3012 = vst.msk [vmem:[#allocation2] sm:$0xff] %vm3011_vm11, %v2916_v6  ;;  %v3226_v6 = vshrl.u32 %v10168_v0, 16  ;;  %v3235_v57 = vshll.u32 %v10305_v29, 16 }
 0x21b   : > { %3126 = vrot.lane.b32.xlu1 %v9418_v2, %s7619_s17  ;;  %3120 = vrot.lane.b32.xlu0 %v9381_v8, %s7619_s17 }
 0x21c   : > { %v3228_v9 = vrot.slane %v3226_v6, 4  ;;  %v3224_v6 = vsel %vm7748_vm2, %v3219_v7, %v3223_v32  ;;  %v3237_v7 = vrot.slane %v3235_v57, 5 }
 0x21d   : > { %v2926_v38 = vpop.permute.xlu1 %2925  ;;  %v2920_v58 = vpop.permute.xlu0 %2919 }
 0x21e   : > { %3017 = vst.msk [vmem:[#allocation2 + $0x28] sm:$0xff] %vm3011_vm11, %v2926_v38  ;;  %3014 = vst.msk [vmem:[#allocation2 + $0x10] sm:$0xff] %vm3011_vm11, %v2920_v58  ;;  %v14076_v58 = vld [vmem:[#allocation10_spill] sm:$0xff]  ;;  %v3232_v4 = vor.u32 %v3231_v48, %v3228_v9 }
 0x21f   : > { %3130 = vrot.lane.b32.xlu1 %v10279_v59, %s7619_s17  ;;  %3124 = vrot.lane.b32.xlu0 %v9397_v27, %s7619_s17  ;;  %v7169_v59 = vcombine.low %v9634_v16, %v3210_v62  ;;  %v3243_v16 = vshll.u32 %v10187_v14, 16  ;;  %v14077_v62 = vld [vmem:[#allocation14_spill] sm:$0xff] }
 0x221   : > { %v2930_v38 = vpop.permute.xlu1 %2929  ;;  %v2924_v10 = vpop.permute.xlu0 %2923  ;;  %v3245_v9 = vrot.slane %v3243_v16, 5 }
 0x222   : > { %3019 = vst.msk [vmem:[#allocation2 + $0x38] sm:$0xff] %vm3011_vm11, %v2930_v38  ;;  %3016 = vst.msk [vmem:[#allocation2 + $0x20] sm:$0xff] %vm3011_vm11, %v2924_v10  ;;  %v3240_v38 = vshrl.u32 %v10187_v14, 16  ;;  %v14080_v10 = vld [vmem:[#allocation16_spill] sm:$0xff] }
 0x223   : > { %3327 = vrot.lane.b32.xlu1 %v14076_v58, %s7620_s24  ;;  %3128 = vrot.lane.b32.xlu0 %v9414_v15, %s7619_s17  ;;  %v3233_v58 = vrot.slane %v3232_v4, 4  ;;  %s7632_s17 = smov 76  }
 0x224   : > { %v3242_v32 = vrot.slane %v3240_v38, 4 }
 0x225   : > { %v2934_v2 = vpop.permute.xlu1 %2933  ;;  %v2928_v53 = vpop.permute.xlu0 %2927  ;;  %v3238_v38 = vsel %vm7748_vm2, %v3233_v58, %v3237_v7 }
 0x226   : > { %3021 = vst.msk [vmem:[#allocation2 + $0x48] sm:$0xff] %vm3011_vm11, %v2934_v2  ;;  %3018 = vst.msk [vmem:[#allocation2 + $0x30] sm:$0xff] %vm3011_vm11, %v2928_v53  ;;  %v14078_v53 = vld [vmem:[#allocation26_spill] sm:$0xff]  ;;  %v3246_v16 = vor.u32 %v3245_v9, %v3242_v32 }
 0x227   : > { %3331 = vrot.lane.b32.xlu1 %v7169_v59, %s7620_s24  ;;  %3325 = vrot.lane.b32.xlu0 %v14077_v62, %s7620_s24  ;;  %v10322_v59 = vcombine.low %v9675_v22, %v3224_v6  ;;  %v10327_v62 = vld [vmem:[%s7735_s11 + $0x13c] sm:$0x1]  ;;  %v3257_v22 = vshll.u32 %v10206_v43, 16  ;;  %v14081_v6 = vld [vmem:[#allocation18_spill] sm:$0xff] }
 0x228   : > { %v3249_v4 = vshll.u32 %v10327_v62, 16 }
 0x229   : > { %v2938_v19 = vpop.permute.xlu1 %2937  ;;  %v2932_v2 = vpop.permute.xlu0 %2931  ;;  %14079 = vst [vmem:[#allocation131_spill] sm:$0xff] %v10322_v59  ;;  %v3259_v32 = vrot.slane %v3257_v22, 5 }
 0x22a   : > { %3023 = vst.msk [vmem:[#allocation2 + $0x58] sm:$0xff] %vm3011_vm11, %v2938_v19  ;;  %3020 = vst.msk [vmem:[#allocation2 + $0x40] sm:$0xff] %vm3011_vm11, %v2932_v2  ;;  %v3254_v19 = vshrl.u32 %v10206_v43, 16  ;;  %v3251_v58 = vrot.slane %v3249_v4, 5 }
 0x22b   : > { %3335 = vrot.lane.b32.xlu1 %v14078_v53, %s7620_s24  ;;  %3329 = vrot.lane.b32.xlu0 %v14080_v10, %s7620_s24  ;;  %v10345_v10 = vcombine.low %v9711_v41, %v3238_v38  ;;  %v10350_v53 = vld [vmem:[%s7735_s11 + $0x18c] sm:$0x1]  ;;  %v3271_v41 = vshll.u32 %v10225_v5, 16  ;;  %v14085_v38 = vld [vmem:[#allocation28_spill] sm:$0xff] }
 0x22c   : > { %v3256_v7 = vrot.slane %v3254_v19, 4 }
 0x22d   : > { %v2942_v48 = vpop.permute.xlu1 %2941  ;;  %v2936_v15 = vpop.permute.xlu0 %2935  ;;  %14083 = vst [vmem:[#allocation118_spill] sm:$0xff] %v10345_v10 }
 0x22e   : > { %3025 = vst.msk [vmem:[#allocation2 + $0x68] sm:$0xff] %vm3011_vm11, %v2942_v48  ;;  %3022 = vst.msk [vmem:[#allocation2 + $0x50] sm:$0xff] %vm3011_vm11, %v2936_v15  ;;  %v14082_v15 = vld [vmem:[#allocation36_spill] sm:$0xff]  ;;  %v14084_v48 = vld [vmem:[#allocation23_spill] sm:$0xff]  ;;  %v3260_v22 = vor.u32 %v3259_v32, %v3256_v7  ;;  %v3273_v7 = vrot.slane %v3271_v41, 5 }
 0x22f   : > { %3339 = vrot.lane.b32.xlu1 %v10322_v59, %s7620_s24  ;;  %3333 = vrot.lane.b32.xlu0 %v14081_v6, %s7620_s24  ;;  %v3247_v59 = vrot.slane %v3246_v16, 4  ;;  %v3263_v16 = vshll.u32 %v10350_v53, 16 }
 0x231   : > { %v2946_v57 = vpop.permute.xlu1 %2945  ;;  %v2940_v2 = vpop.permute.xlu0 %2939  ;;  %v3252_v19 = vsel %vm7748_vm2, %v3247_v59, %v3251_v58  ;;  %v3265_v59 = vrot.slane %v3263_v16, 5 }
 0x232   : > { %3027 = vst.msk [vmem:[#allocation2 + $0x78] sm:$0xff] %vm3011_vm11, %v2946_v57  ;;  %3024 = vst.msk [vmem:[#allocation2 + $0x60] sm:$0xff] %vm3011_vm11, %v2940_v2  ;;  %v3268_v57 = vshrl.u32 %v10225_v5, 16 }
 0x233   : > { %3343 = vrot.lane.b32.xlu1 %v14082_v15, %s7620_s24  ;;  %3337 = vrot.lane.b32.xlu0 %v14084_v48, %s7620_s24  ;;  %v3261_v15 = vrot.slane %v3260_v22, 4 }
 0x234   : > { %v3270_v58 = vrot.slane %v3268_v57, 4 }
 0x235   : > { %v2950_v9 = vpop.permute.xlu1 %2949  ;;  %v2944_v6 = vpop.permute.xlu0 %2943  ;;  %v3266_v57 = vsel %vm7748_vm2, %v3261_v15, %v3265_v59 }
 0x236   : > { %3029 = vst.msk [vmem:[#allocation2 + $0x88] sm:$0xff] %vm3011_vm11, %v2950_v9  ;;  %3026 = vst.msk [vmem:[#allocation2 + $0x70] sm:$0xff] %vm3011_vm11, %v2944_v6  ;;  %v14086_v6 = vld [vmem:[#allocation46_spill] sm:$0xff]  ;;  %v10368_v9 = vcombine.low %v9745_v61, %v3252_v19  ;;  %v3285_v61 = vshll.u32 %v10246_v33, 16  ;;  %v3274_v41 = vor.u32 %v3273_v7, %v3270_v58 }
 0x237   : > { %3347 = vrot.lane.b32.xlu1 %v10345_v10, %s7620_s24  ;;  %3341 = vrot.lane.b32.xlu0 %v14085_v38, %s7620_s24  ;;  %v14088_v10 = vld [vmem:[#allocation33_spill] sm:$0xff]  ;;  %v14089_v19 = vld [vmem:[#allocation38_spill] sm:$0xff] }
 0x238   : > { %14087 = vst [vmem:[#allocation112_spill] sm:$0xff] %v10368_v9  ;;  %v10373_v38 = vld [vmem:[%s7735_s11 + $0x1dc] sm:$0x1]  ;;  %v3287_v58 = vrot.slane %v3285_v61, 5 }
 0x239   : > { %v2954_v4 = vpop.permute.xlu1 %2953  ;;  %v2948_v2 = vpop.permute.xlu0 %2947  ;;  %v3277_v22 = vshll.u32 %v10373_v38, 16 }
 0x23a   : > { %3031 = vst.msk [vmem:[#allocation2 + $0x98] sm:$0xff] %vm3011_vm11, %v2954_v4  ;;  %3028 = vst.msk [vmem:[#allocation2 + $0x80] sm:$0xff] %vm3011_vm11, %v2948_v2  ;;  %v3282_v4 = vshrl.u32 %v10246_v33, 16 }
 0x23b   : > { %3351 = vrot.lane.b32.xlu1 %v14086_v6, %s7620_s24  ;;  %3345 = vrot.lane.b32.xlu0 %v14088_v10, %s7620_s24  ;;  %v3275_v6 = vrot.slane %v3274_v41, 4  ;;  %v3279_v15 = vrot.slane %v3277_v22, 5 }
 0x23c   : > { %v3284_v59 = vrot.slane %v3282_v4, 4 }
 0x23d   : > { %v2958_v32 = vpop.permute.xlu1 %2957  ;;  %v2952_v48 = vpop.permute.xlu0 %2951  ;;  %v3280_v4 = vsel %vm7748_vm2, %v3275_v6, %v3279_v15 }
 0x23e   : > { %3033 = vst.msk [vmem:[#allocation2 + $0xa8] sm:$0xff] %vm3011_vm11, %v2958_v32  ;;  %3030 = vst.msk [vmem:[#allocation2 + $0x90] sm:$0xff] %vm3011_vm11, %v2952_v48  ;;  %v14090_v48 = vld [vmem:[#allocation56_spill] sm:$0xff]  ;;  %v10391_v32 = vcombine.low %v9779_v13, %v3266_v57  ;;  %v3299_v13 = vshll.u32 %v10270_v23, 16  ;;  %v3288_v61 = vor.u32 %v3287_v58, %v3284_v59 }
 0x23f   : > { %3355 = vrot.lane.b32.xlu1 %v10368_v9, %s7620_s24  ;;  %3349 = vrot.lane.b32.xlu0 %v14089_v19, %s7620_s24  ;;  %v14092_v9 = vld [vmem:[#allocation43_spill] sm:$0xff]  ;;  %v14093_v57 = vld [vmem:[#allocation48_spill] sm:$0xff] }
 0x240   : > { %14091 = vst [vmem:[#allocation155_spill] sm:$0xff] %v10391_v32  ;;  %v10396_v19 = vld [vmem:[%s7735_s11 + $0x22c] sm:$0x1]  ;;  %v3301_v59 = vrot.slane %v3299_v13, 5 }
 0x241   : > { %v2962_v16 = vpop.permute.xlu1 %2961  ;;  %v2956_v2 = vpop.permute.xlu0 %2955  ;;  %v3291_v41 = vshll.u32 %v10396_v19, 16 }
 0x242   : > { %3035 = vst.msk [vmem:[#allocation2 + $0xb8] sm:$0xff] %vm3011_vm11, %v2962_v16  ;;  %3032 = vst.msk [vmem:[#allocation2 + $0xa0] sm:$0xff] %vm3011_vm11, %v2956_v2  ;;  %v3296_v16 = vshrl.u32 %v10270_v23, 16 }
 0x243   : > { %3359 = vrot.lane.b32.xlu1 %v14090_v48, %s7620_s24  ;;  %3353 = vrot.lane.b32.xlu0 %v14092_v9, %s7620_s24  ;;  %v3289_v48 = vrot.slane %v3288_v61, 4  ;;  %v3293_v6 = vrot.slane %v3291_v41, 5 }
 0x244   : > { %v3298_v15 = vrot.slane %v3296_v16, 4 }
 0x245   : > { %v2966_v7 = vpop.permute.xlu1 %2965  ;;  %v2960_v10 = vpop.permute.xlu0 %2959 }
 0x246   : > { %3037 = vst.msk [vmem:[#allocation2 + $0xc8] sm:$0xff] %vm3011_vm11, %v2966_v7  ;;  %3034 = vst.msk [vmem:[#allocation2 + $0xb0] sm:$0xff] %vm3011_vm11, %v2960_v10  ;;  %v14094_v10 = vld [vmem:[#allocation66_spill] sm:$0xff]  ;;  %v10414_v7 = vcombine.low %v9813_v46, %v3280_v4  ;;  %v3294_v4 = vsel %vm7748_vm2, %v3289_v48, %v3293_v6  ;;  %v3302_v61 = vor.u32 %v3301_v59, %v3298_v15 }
 0x247   : > { %3363 = vrot.lane.b32.xlu1 %v10391_v32, %s7620_s24  ;;  %3357 = vrot.lane.b32.xlu0 %v14093_v57, %s7620_s24  ;;  %v14096_v32 = vld [vmem:[#allocation53_spill] sm:$0xff]  ;;  %v14097_v46 = vld [vmem:[#allocation58_spill] sm:$0xff] }
 0x248   : > { %14095 = vst [vmem:[#allocation141_spill] sm:$0xff] %v10414_v7  ;;  %v10419_v57 = vld [vmem:[%s7735_s11 + $0x27c] sm:$0x1]  ;;  %v3303_v48 = vrot.slane %v3302_v61, 4  ;;  %v14102_v61 = vld [vmem:[#allocation111_spill] sm:$0xff] }
 0x249   : > { %v2970_v22 = vpop.permute.xlu1 %2969  ;;  %v2964_v2 = vpop.permute.xlu0 %2963  ;;  %v3305_v16 = vshll.u32 %v10419_v57, 16 }
 0x24a   : > { %3039 = vst.msk [vmem:[#allocation2 + $0xd8] sm:$0xff] %vm3011_vm11, %v2970_v22  ;;  %3036 = vst.msk [vmem:[#allocation2 + $0xc0] sm:$0xff] %vm3011_vm11, %v2964_v2  ;;  %v10435_v22 = vcombine.low %v9846_v51, %v3294_v4  ;;  %v14100_v2 = vld [vmem:[#allocation63_spill] sm:$0xff] }
 0x24b   : > { %3367 = vrot.lane.b32.xlu1 %v14094_v10, %s7620_s24  ;;  %3361 = vrot.lane.b32.xlu0 %v14096_v32, %s7620_s24  ;;  %v3307_v6 = vrot.slane %v3305_v16, 5 }
 0x24c   : > { %14099 = vst [vmem:[#allocation129_spill] sm:$0xff] %v10435_v22 }
 0x24d   : > { %v2974_v58 = vpop.permute.xlu1 %2973  ;;  %v2968_v9 = vpop.permute.xlu0 %2967  ;;  %v3308_v51 = vsel %vm7748_vm2, %v3303_v48, %v3307_v6 }
 0x24e   : > { %3041 = vst.msk [vmem:[#allocation2 + $0xe8] sm:$0xff] %vm3011_vm11, %v2974_v58  ;;  %3038 = vst.msk [vmem:[#allocation2 + $0xd0] sm:$0xff] %vm3011_vm11, %v2968_v9  ;;  %v14098_v9 = vld [vmem:[#allocation87_spill] sm:$0xff]  ;;  %v14101_v58 = vld [vmem:[#allocation68_spill] sm:$0xff]  ;;  %v10452_v16 = vcombine.low %v9875_v18, %v3308_v51 }
 0x24f   : > { %3371 = vrot.lane.b32.xlu1 %v10414_v7, %s7620_s24  ;;  %3365 = vrot.lane.b32.xlu0 %v14097_v46, %s7620_s24  ;;  %v14150_v7 = vld [vmem:[#allocation165_spill] sm:$0xff] }
 0x250   : > { %14103 = vst [vmem:[#allocation137_spill] sm:$0xff] %v10452_v16 }
 0x251   : > { %v2978_v13 = vpop.permute.xlu1 %2977  ;;  %v2972_v41 = vpop.permute.xlu0 %2971 }
 0x252   : > { %3043 = vst.msk [vmem:[#allocation2 + $0xf8] sm:$0xff] %vm3011_vm11, %v2978_v13  ;;  %3040 = vst.msk [vmem:[#allocation2 + $0xe0] sm:$0xff] %vm3011_vm11, %v2972_v41  ;;  %v14104_v41 = vld [vmem:[#allocation80_spill] sm:$0xff] }
 0x253   : > { %3375 = vrot.lane.b32.xlu1 %v14098_v9, %s7620_s24  ;;  %3369 = vrot.lane.b32.xlu0 %v14100_v2, %s7620_s24 }
 0x255   : > { %v3071_v15 = vpop.permute.xlu1 %3070  ;;  %v2976_v59 = vpop.permute.xlu0 %2975 }
 0x256   : > { %3166 = vst.msk [vmem:[#allocation2 + $0x8] sm:$0xff] %vm3164_vm12, %v3071_v15  ;;  %v7177_v15 = vrot.slane %v10133_v26, 9 }
 0x257   : > { %3042 = vst.msk [vmem:[#allocation2 + $0xf0] sm:$0xff] %vm3011_vm11, %v2976_v59  ;;  %3379 = vrot.lane.b32.xlu1 %v10435_v22, %s7620_s24  ;;  %3373 = vrot.lane.b32.xlu0 %v14101_v58, %s7620_s24  ;;  %v3464_v59 = vrot.slane %v10259_v63, 5  ;;  %v14106_v63 = vld [vmem:[#allocation120_spill] sm:$0xff]  ;;  %vm5426_vm11 = vcmask 654944  }
 0x259   : > { %v3075_v4 = vpop.permute.xlu1 %3074  ;;  %v3069_v13 = vpop.permute.xlu0 %3068  ;;  %v3465_v18 = vsel %vm8431_vm5, %v7177_v15, %v3464_v59 }
 0x25a   : > { %3168 = vst.msk [vmem:[#allocation2 + $0x18] sm:$0xff] %vm3164_vm12, %v3075_v4  ;;  %3165 = vst.msk [vmem:[#allocation2] sm:$0xff] %vm3164_vm12, %v3069_v13  ;;  %v14105_v4 = vld [vmem:[#allocation93_spill] sm:$0xff]  ;;  %v7185_v26 = vcombine.low %v9895_v35, %v3465_v18 }
 0x25b   : > { %3383 = vrot.lane.b32.xlu1 %v14102_v61, %s7620_s24  ;;  %3377 = vrot.lane.b32.xlu0 %v14104_v41, %s7620_s24 }
 0x25d   : > { %v3079_v48 = vpop.permute.xlu1 %3078  ;;  %v3073_v6 = vpop.permute.xlu0 %3072 }
 0x25e   : > { %3170 = vst.msk [vmem:[#allocation2 + $0x28] sm:$0xff] %vm3164_vm12, %v3079_v48  ;;  %3167 = vst.msk [vmem:[#allocation2 + $0x10] sm:$0xff] %vm3164_vm12, %v3073_v6  ;;  %v14107_v48 = vld [vmem:[#allocation102_spill] sm:$0xff]  ;;  %v7178_v6 = vrot.slane %v10149_v11, 9 }
 0x25f   : > { %3387 = vrot.lane.b32.xlu1 %v10452_v16, %s7620_s24  ;;  %3381 = vrot.lane.b32.xlu0 %v14105_v4, %s7620_s24  ;;  %v3468_v16 = vrot.slane %v10284_v17, 5  ;;  %v14109_v17 = vld [vmem:[#allocation140_spill] sm:$0xff] }
 0x261   : > { %v3083_v51 = vpop.permute.xlu1 %3082  ;;  %v3077_v13 = vpop.permute.xlu0 %3076  ;;  %v3469_v35 = vsel %vm8431_vm5, %v7178_v6, %v3468_v16 }
 0x262   : > { %3172 = vst.msk [vmem:[#allocation2 + $0x38] sm:$0xff] %vm3164_vm12, %v3083_v51  ;;  %3169 = vst.msk [vmem:[#allocation2 + $0x20] sm:$0xff] %vm3164_vm12, %v3077_v13  ;;  %v14108_v51 = vld [vmem:[#allocation106_spill] sm:$0xff]  ;;  %v10487_v11 = vcombine.low %v9928_v25, %v3469_v35 }
 0x263   : > { %3512 = vrot.lane.b32.xlu1 %v14106_v63, %s7621_s25  ;;  %3385 = vrot.lane.b32.xlu0 %v14107_v48, %s7620_s24  ;;  %v14111_v63 = vld [vmem:[#allocation114_spill] sm:$0xff]  ;;  %s7633_s24 = smov 80  }
 0x264   : > { %14110 = vst [vmem:[#allocation151_spill] sm:$0xff] %v10487_v11 }
 0x265   : > { %v3087_v15 = vpop.permute.xlu1 %3086  ;;  %v3081_v59 = vpop.permute.xlu0 %3080 }
 0x266   : > { %3174 = vst.msk [vmem:[#allocation2 + $0x48] sm:$0xff] %vm3164_vm12, %v3087_v15  ;;  %3171 = vst.msk [vmem:[#allocation2 + $0x30] sm:$0xff] %vm3164_vm12, %v3081_v59  ;;  %v3472_v15 = vrot.slane %v10305_v29, 5  ;;  %v14112_v59 = vld [vmem:[#allocation124_spill] sm:$0xff] }
 0x267   : > { %3516 = vrot.lane.b32.xlu1 %v7185_v26, %s7621_s25  ;;  %3510 = vrot.lane.b32.xlu0 %v14108_v51, %s7621_s25  ;;  %v7179_v26 = vrot.slane %v10168_v0, 9  ;;  %v14113_v29 = vld [vmem:[#allocation160_spill] sm:$0xff] }
 0x269   : > { %v3091_v18 = vpop.permute.xlu1 %3090  ;;  %v3085_v13 = vpop.permute.xlu0 %3084  ;;  %v3473_v25 = vsel %vm8431_vm5, %v7179_v26, %v3472_v15 }
 0x26a   : > { %3176 = vst.msk [vmem:[#allocation2 + $0x58] sm:$0xff] %vm3164_vm12, %v3091_v18  ;;  %3173 = vst.msk [vmem:[#allocation2 + $0x40] sm:$0xff] %vm3164_vm12, %v3085_v13  ;;  %v10506_v0 = vcombine.low %v9960_v60, %v3473_v25  ;;  %v14115_v18 = vld [vmem:[#allocation135_spill] sm:$0xff]  ;;  %v7180_v13 = vrot.slane %v10187_v14, 9  ;;  %v14117_v14 = vld [vmem:[#allocation180_spill] sm:$0xff] }
 0x26b   : > { %3520 = vrot.lane.b32.xlu1 %v14109_v17, %s7621_s25  ;;  %3514 = vrot.lane.b32.xlu0 %v14111_v63, %s7621_s25  ;;  %v3476_v63 = vrot.slane %v10327_v62, 5 }
 0x26c   : > { %14114 = vst [vmem:[#allocation177_spill] sm:$0xff] %v10506_v0 }
 0x26d   : > { %v3095_v16 = vpop.permute.xlu1 %3094  ;;  %v3089_v6 = vpop.permute.xlu0 %3088  ;;  %v3477_v60 = vsel %vm8431_vm5, %v7180_v13, %v3476_v63 }
 0x26e   : > { %3178 = vst.msk [vmem:[#allocation2 + $0x68] sm:$0xff] %vm3164_vm12, %v3095_v16  ;;  %3175 = vst.msk [vmem:[#allocation2 + $0x50] sm:$0xff] %vm3164_vm12, %v3089_v6  ;;  %v14116_v16 = vld [vmem:[#allocation143_spill] sm:$0xff]  ;;  %v10525_v62 = vcombine.low %v9990_v31, %v3477_v60 }
 0x26f   : > { %3524 = vrot.lane.b32.xlu1 %v10487_v11, %s7621_s25  ;;  %3518 = vrot.lane.b32.xlu0 %v14112_v59, %s7621_s25 }
 0x270   : > { %14118 = vst [vmem:[#allocation162_spill] sm:$0xff] %v10525_v62 }
 0x271   : > { %v3099_v51 = vpop.permute.xlu1 %3098  ;;  %v3093_v35 = vpop.permute.xlu0 %3092 }
 0x272   : > { %3180 = vst.msk [vmem:[#allocation2 + $0x78] sm:$0xff] %vm3164_vm12, %v3099_v51  ;;  %3177 = vst.msk [vmem:[#allocation2 + $0x60] sm:$0xff] %vm3164_vm12, %v3093_v35  ;;  %v14119_v51 = vld [vmem:[#allocation154_spill] sm:$0xff]  ;;  %v7181_v35 = vrot.slane %v10206_v43, 9  ;;  %v14121_v43 = vld [vmem:[#allocation192_spill] sm:$0xff] }
 0x273   : > { %3528 = vrot.lane.b32.xlu1 %v14113_v29, %s7621_s25  ;;  %3522 = vrot.lane.b32.xlu0 %v14115_v18, %s7621_s25 }
 0x275   : > { %v3103_v26 = vpop.permute.xlu1 %3102  ;;  %v3097_v15 = vpop.permute.xlu0 %3096 }
 0x276   : > { %3182 = vst.msk [vmem:[#allocation2 + $0x88] sm:$0xff] %vm3164_vm12, %v3103_v26  ;;  %3179 = vst.msk [vmem:[#allocation2 + $0x70] sm:$0xff] %vm3164_vm12, %v3097_v15  ;;  %v3480_v26 = vrot.slane %v10350_v53, 5  ;;  %v14120_v15 = vld [vmem:[#allocation164_spill] sm:$0xff] }
 0x277   : > { %3532 = vrot.lane.b32.xlu1 %v10506_v0, %s7621_s25  ;;  %3526 = vrot.lane.b32.xlu0 %v14116_v16, %s7621_s25  ;;  %v10709_v0 = vld [vmem:[%s7735_s11 + $0x2b8] sm:$0xf] }
 0x278   : > { %v3481_v31 = vsel %vm8431_vm5, %v7181_v35, %v3480_v26  ;;  %14148 = vst [vmem:[#allocation188_spill] sm:$0xff] %v10709_v0 }
 0x279   : > { %v3107_v6 = vpop.permute.xlu1 %3106  ;;  %v3101_v25 = vpop.permute.xlu0 %3100  ;;  %v10544_v53 = vcombine.low %v10020_v1, %v3481_v31 }
 0x27a   : > { %3184 = vst.msk [vmem:[#allocation2 + $0x98] sm:$0xff] %vm3164_vm12, %v3107_v6  ;;  %3181 = vst.msk [vmem:[#allocation2 + $0x80] sm:$0xff] %vm3164_vm12, %v3101_v25  ;;  %v14123_v25 = vld [vmem:[#allocation173_spill] sm:$0xff] }
 0x27b   : > { %3536 = vrot.lane.b32.xlu1 %v14117_v14, %s7621_s25  ;;  %3530 = vrot.lane.b32.xlu0 %v14119_v51, %s7621_s25  ;;  %14122 = vst [vmem:[#allocation149_spill] sm:$0xff] %v10544_v53 }
 0x27d   : > { %v3111_v13 = vpop.permute.xlu1 %3110  ;;  %v3105_v63 = vpop.permute.xlu0 %3104 }
 0x27e   : > { %3186 = vst.msk [vmem:[#allocation2 + $0xa8] sm:$0xff] %vm3164_vm12, %v3111_v13  ;;  %3183 = vst.msk [vmem:[#allocation2 + $0x90] sm:$0xff] %vm3164_vm12, %v3105_v63  ;;  %v7182_v13 = vrot.slane %v10225_v5, 9  ;;  %v3484_v63 = vrot.slane %v10373_v38, 5  ;;  %v14125_v5 = vld [vmem:[#allocation202_spill] sm:$0xff] }
 0x27f   : > { %3540 = vrot.lane.b32.xlu1 %v10525_v62, %s7621_s25  ;;  %3534 = vrot.lane.b32.xlu0 %v14120_v15, %s7621_s25  ;;  %v10706_v62 = vld [vmem:[%s7735_s11 + $0x2b0] sm:$0xf] }
 0x280   : > { %v3485_v1 = vsel %vm8431_vm5, %v7182_v13, %v3484_v63  ;;  %14147 = vst [vmem:[#allocation178_spill] sm:$0xff] %v10706_v62 }
 0x281   : > { %v3115_v60 = vpop.permute.xlu1 %3114  ;;  %v3109_v6 = vpop.permute.xlu0 %3108  ;;  %v10563_v38 = vcombine.low %v10050_v45, %v3485_v1 }
 0x282   : > { %3188 = vst.msk [vmem:[#allocation2 + $0xb8] sm:$0xff] %vm3164_vm12, %v3115_v60  ;;  %3185 = vst.msk [vmem:[#allocation2 + $0xa0] sm:$0xff] %vm3164_vm12, %v3109_v6  ;;  %v14124_v60 = vld [vmem:[#allocation183_spill] sm:$0xff] }
 0x283   : > { %3544 = vrot.lane.b32.xlu1 %v14121_v43, %s7621_s25  ;;  %3538 = vrot.lane.b32.xlu0 %v14123_v25, %s7621_s25  ;;  %14126 = vst [vmem:[#allocation157_spill] sm:$0xff] %v10563_v38 }
 0x285   : > { %v3119_v35 = vpop.permute.xlu1 %3118  ;;  %v3113_v26 = vpop.permute.xlu0 %3112 }
 0x286   : > { %3190 = vst.msk [vmem:[#allocation2 + $0xc8] sm:$0xff] %vm3164_vm12, %v3119_v35  ;;  %3187 = vst.msk [vmem:[#allocation2 + $0xb0] sm:$0xff] %vm3164_vm12, %v3113_v26  ;;  %v14127_v35 = vld [vmem:[#allocation189_spill] sm:$0xff]  ;;  %v7183_v26 = vrot.slane %v10246_v33, 9  ;;  %v14129_v33 = vld [vmem:[#allocation142_spill] sm:$0xff] }
 0x287   : > { %3548 = vrot.lane.b32.xlu1 %v10544_v53, %s7621_s25  ;;  %3542 = vrot.lane.b32.xlu0 %v14124_v60, %s7621_s25  ;;  %v3488_v53 = vrot.slane %v10396_v19, 5 }
 0x289   : > { %v3123_v31 = vpop.permute.xlu1 %3122  ;;  %v3117_v6 = vpop.permute.xlu0 %3116  ;;  %v3489_v45 = vsel %vm8431_vm5, %v7183_v26, %v3488_v53  ;;  %v3492_v53 = vrot.slane %v10419_v57, 5 }
 0x28a   : > { %3192 = vst.msk [vmem:[#allocation2 + $0xd8] sm:$0xff] %vm3164_vm12, %v3123_v31  ;;  %3189 = vst.msk [vmem:[#allocation2 + $0xc0] sm:$0xff] %vm3164_vm12, %v3117_v6  ;;  %v14128_v31 = vld [vmem:[#allocation193_spill] sm:$0xff]  ;;  %v10582_v19 = vcombine.low %v10080_v34, %v3489_v45 }
 0x28b   : > { %3552 = vrot.lane.b32.xlu1 %v14125_v5, %s7621_s25  ;;  %3546 = vrot.lane.b32.xlu0 %v14127_v35, %s7621_s25 }
 0x28c   : > { %14130 = vst [vmem:[#allocation171_spill] sm:$0xff] %v10582_v19 }
 0x28d   : > { %v3127_v13 = vpop.permute.xlu1 %3126  ;;  %v3121_v63 = vpop.permute.xlu0 %3120 }
 0x28e   : > { %3194 = vst.msk [vmem:[#allocation2 + $0xe8] sm:$0xff] %vm3164_vm12, %v3127_v13  ;;  %3191 = vst.msk [vmem:[#allocation2 + $0xd0] sm:$0xff] %vm3164_vm12, %v3121_v63  ;;  %v14131_v13 = vld [vmem:[#allocation197_spill] sm:$0xff]  ;;  %v7184_v63 = vrot.slane %v10270_v23, 9  ;;  %v14133_v23 = vld [vmem:[#allocation123_spill] sm:$0xff] }
 0x28f   : > { %3556 = vrot.lane.b32.xlu1 %v10563_v38, %s7621_s25  ;;  %3550 = vrot.lane.b32.xlu0 %v14128_v31, %s7621_s25 }
 0x290   : > { %v3493_v34 = vsel %vm8431_vm5, %v7184_v63, %v3492_v53  ;;  %v14136_v63 = vld [vmem:[#allocation76_spill] sm:$0xff] }
 0x291   : > { %v3131_v1 = vpop.permute.xlu1 %3130  ;;  %v3125_v6 = vpop.permute.xlu0 %3124  ;;  %v10601_v57 = vcombine.low %v10110_v3, %v3493_v34  ;;  %v14137_v3 = vld [vmem:[#allocation119_spill] sm:$0xff] }
 0x292   : > { %3196 = vst.msk [vmem:[#allocation2 + $0xf8] sm:$0xff] %vm3164_vm12, %v3131_v1  ;;  %3193 = vst.msk [vmem:[#allocation2 + $0xe0] sm:$0xff] %vm3164_vm12, %v3125_v6  ;;  %v14132_v1 = vld [vmem:[#allocation203_spill] sm:$0xff] }
 0x293   : > { %3560 = vrot.lane.b32.xlu1 %v14129_v33, %s7621_s25  ;;  %3554 = vrot.lane.b32.xlu0 %v14131_v13, %s7621_s25  ;;  %14134 = vst [vmem:[#allocation181_spill] sm:$0xff] %v10601_v57 }
 0x295   : > { %v3328_v26 = vpop.permute.xlu1 %3327  ;;  %v3129_v38 = vpop.permute.xlu0 %3128 }
 0x296   : > { %3423 = vst.msk [vmem:[#allocation2 + $0x8] sm:$0xff] %vm3421_vm13, %v3328_v26 }
 0x297   : > { %3195 = vst.msk [vmem:[#allocation2 + $0xf0] sm:$0xff] %vm3164_vm12, %v3129_v38  ;;  %3564 = vrot.lane.b32.xlu1 %v10582_v19, %s7621_s25  ;;  %3558 = vrot.lane.b32.xlu0 %v14132_v1, %s7621_s25  ;;  %v14135_v38 = vld [vmem:[#allocation69_spill] sm:$0xff]  ;;  %vm5607_vm12 = vcmask 687744  }
 0x299   : > { %v3332_v45 = vpop.permute.xlu1 %3331  ;;  %v3326_v6 = vpop.permute.xlu0 %3325 }
 0x29a   : > { %3425 = vst.msk [vmem:[#allocation2 + $0x18] sm:$0xff] %vm3421_vm13, %v3332_v45  ;;  %3422 = vst.msk [vmem:[#allocation2] sm:$0xff] %vm3421_vm13, %v3326_v6  ;;  %v14138_v6 = vld [vmem:[#allocation77_spill] sm:$0xff] }
 0x29b   : > { %3568 = vrot.lane.b32.xlu1 %v14133_v23, %s7621_s25  ;;  %3562 = vrot.lane.b32.xlu0 %v14135_v38, %s7621_s25 }
 0x29d   : > { %v3336_v26 = vpop.permute.xlu1 %3335  ;;  %v3330_v19 = vpop.permute.xlu0 %3329 }
 0x29e   : > { %3427 = vst.msk [vmem:[#allocation2 + $0x28] sm:$0xff] %vm3421_vm13, %v3336_v26  ;;  %3424 = vst.msk [vmem:[#allocation2 + $0x10] sm:$0xff] %vm3421_vm13, %v3330_v19 }
 0x29f   : > { %3572 = vrot.lane.b32.xlu1 %v10601_v57, %s7621_s25  ;;  %3566 = vrot.lane.b32.xlu0 %v14136_v63, %s7621_s25  ;;  %v14146_v57 = vld [vmem:[#allocation153_spill] sm:$0xff] }
 0x2a1   : > { %v3340_v53 = vpop.permute.xlu1 %3339  ;;  %v3334_v45 = vpop.permute.xlu0 %3333 }
 0x2a2   : > { %3429 = vst.msk [vmem:[#allocation2 + $0x38] sm:$0xff] %vm3421_vm13, %v3340_v53  ;;  %3426 = vst.msk [vmem:[#allocation2 + $0x20] sm:$0xff] %vm3421_vm13, %v3334_v45 }
 0x2a3   : > { %3661 = vrot.lane.b32.xlu1 %v14056_v28, %s7622_s27  ;;  %3570 = vrot.lane.b32.xlu0 %v14137_v3, %s7621_s25  ;;  %s7634_s25 = smov 84  }
 0x2a5   : > { %v3344_v19 = vpop.permute.xlu1 %3343  ;;  %v3338_v34 = vpop.permute.xlu0 %3337 }
 0x2a6   : > { %3431 = vst.msk [vmem:[#allocation2 + $0x48] sm:$0xff] %vm3421_vm13, %v3344_v19  ;;  %3428 = vst.msk [vmem:[#allocation2 + $0x30] sm:$0xff] %vm3421_vm13, %v3338_v34  ;;  %v14139_v34 = vld [vmem:[#allocation86_spill] sm:$0xff] }
 0x2a7   : > { %3665 = vrot.lane.b32.xlu1 %v14059_v12, %s7622_s27  ;;  %3659 = vrot.lane.b32.xlu0 %v14138_v6, %s7622_s27  ;;  %v10835_v12 = vld [vmem:[%s7735_s11 + $0x28c] sm:$0x1] }
 0x2a9   : > { %v3348_v26 = vpop.permute.xlu1 %3347  ;;  %v3342_v53 = vpop.permute.xlu0 %3341 }
 0x2aa   : > { %3433 = vst.msk [vmem:[#allocation2 + $0x58] sm:$0xff] %vm3421_vm13, %v3348_v26  ;;  %3430 = vst.msk [vmem:[#allocation2 + $0x40] sm:$0xff] %vm3421_vm13, %v3342_v53 }
 0x2ab   : > { %3669 = vrot.lane.b32.xlu1 %v14060_v20, %s7622_s27  ;;  %3663 = vrot.lane.b32.xlu0 %v14053_v55, %s7622_s27  ;;  %v10843_v55 = vld [vmem:[%s7735_s11 + $0x2bc] sm:$0x1] }
 0x2ad   : > { %v3352_v45 = vpop.permute.xlu1 %3351  ;;  %v3346_v19 = vpop.permute.xlu0 %3345 }
 0x2ae   : > { %3435 = vst.msk [vmem:[#allocation2 + $0x68] sm:$0xff] %vm3421_vm13, %v3352_v45  ;;  %3432 = vst.msk [vmem:[#allocation2 + $0x50] sm:$0xff] %vm3421_vm13, %v3346_v19  ;;  %v14140_v19 = vld [vmem:[#allocation92_spill] sm:$0xff] }
 0x2af   : > { %3673 = vrot.lane.b32.xlu1 %v14063_v24, %s7622_s27  ;;  %3667 = vrot.lane.b32.xlu0 %v14139_v34, %s7622_s27  ;;  %v10828_v24 = vld [vmem:[%s7735_s11 + $0x284] sm:$0x1] }
 0x2b1   : > { %v3356_v6 = vpop.permute.xlu1 %3355  ;;  %v3350_v26 = vpop.permute.xlu0 %3349 }
 0x2b2   : > { %3437 = vst.msk [vmem:[#allocation2 + $0x78] sm:$0xff] %vm3421_vm13, %v3356_v6  ;;  %3434 = vst.msk [vmem:[#allocation2 + $0x60] sm:$0xff] %vm3421_vm13, %v3350_v26 }
 0x2b3   : > { %3677 = vrot.lane.b32.xlu1 %v14064_v21, %s7622_s27  ;;  %3671 = vrot.lane.b32.xlu0 %v14057_v47, %s7622_s27 }
 0x2b5   : > { %v3360_v53 = vpop.permute.xlu1 %3359  ;;  %v3354_v45 = vpop.permute.xlu0 %3353 }
 0x2b6   : > { %3439 = vst.msk [vmem:[#allocation2 + $0x88] sm:$0xff] %vm3421_vm13, %v3360_v53  ;;  %3436 = vst.msk [vmem:[#allocation2 + $0x70] sm:$0xff] %vm3421_vm13, %v3354_v45 }
 0x2b7   : > { %3681 = vrot.lane.b32.xlu1 %v14067_v36, %s7622_s27  ;;  %3675 = vrot.lane.b32.xlu0 %v14140_v19, %s7622_s27  ;;  %v14141_v19 = vld [vmem:[#allocation126_spill] sm:$0xff] }
 0x2b9   : > { %v3364_v6 = vpop.permute.xlu1 %3363  ;;  %v3358_v26 = vpop.permute.xlu0 %3357 }
 0x2ba   : > { %3441 = vst.msk [vmem:[#allocation2 + $0x98] sm:$0xff] %vm3421_vm13, %v3364_v6  ;;  %3438 = vst.msk [vmem:[#allocation2 + $0x80] sm:$0xff] %vm3421_vm13, %v3358_v26 }
 0x2bb   : > { %3685 = vrot.lane.b32.xlu1 %v14068_v30, %s7622_s27  ;;  %3679 = vrot.lane.b32.xlu0 %v14061_v49, %s7622_s27 }
 0x2bd   : > { %v3368_v53 = vpop.permute.xlu1 %3367  ;;  %v3362_v45 = vpop.permute.xlu0 %3361 }
 0x2be   : > { %3443 = vst.msk [vmem:[#allocation2 + $0xa8] sm:$0xff] %vm3421_vm13, %v3368_v53  ;;  %3440 = vst.msk [vmem:[#allocation2 + $0x90] sm:$0xff] %vm3421_vm13, %v3362_v45 }
 0x2bf   : > { %3689 = vrot.lane.b32.xlu1 %v14071_v37, %s7622_s27  ;;  %3683 = vrot.lane.b32.xlu0 %v14141_v19, %s7622_s27  ;;  %v14142_v19 = vld [vmem:[#allocation138_spill] sm:$0xff] }
 0x2c1   : > { %v3372_v6 = vpop.permute.xlu1 %3371  ;;  %v3366_v26 = vpop.permute.xlu0 %3365 }
 0x2c2   : > { %3445 = vst.msk [vmem:[#allocation2 + $0xb8] sm:$0xff] %vm3421_vm13, %v3372_v6  ;;  %3442 = vst.msk [vmem:[#allocation2 + $0xa0] sm:$0xff] %vm3421_vm13, %v3366_v26 }
 0x2c3   : > { %3693 = vrot.lane.b32.xlu1 %v14072_v56, %s7622_s27  ;;  %3687 = vrot.lane.b32.xlu0 %v14065_v40, %s7622_s27 }
 0x2c5   : > { %v3376_v53 = vpop.permute.xlu1 %3375  ;;  %v3370_v45 = vpop.permute.xlu0 %3369 }
 0x2c6   : > { %3447 = vst.msk [vmem:[#allocation2 + $0xc8] sm:$0xff] %vm3421_vm13, %v3376_v53  ;;  %3444 = vst.msk [vmem:[#allocation2 + $0xb0] sm:$0xff] %vm3421_vm13, %v3370_v45 }
 0x2c7   : > { %3697 = vrot.lane.b32.xlu1 %v14074_v50, %s7622_s27  ;;  %3691 = vrot.lane.b32.xlu0 %v14142_v19, %s7622_s27 }
 0x2c9   : > { %v3380_v6 = vpop.permute.xlu1 %3379  ;;  %v3374_v26 = vpop.permute.xlu0 %3373 }
 0x2ca   : > { %3449 = vst.msk [vmem:[#allocation2 + $0xd8] sm:$0xff] %vm3421_vm13, %v3380_v6  ;;  %3446 = vst.msk [vmem:[#allocation2 + $0xc0] sm:$0xff] %vm3421_vm13, %v3374_v26 }
 0x2cb   : > { %3701 = vrot.lane.b32.xlu1 %v9359_v54, %s7622_s27  ;;  %3695 = vrot.lane.b32.xlu0 %v14069_v44, %s7622_s27 }
 0x2cd   : > { %v3384_v53 = vpop.permute.xlu1 %3383  ;;  %v3378_v45 = vpop.permute.xlu0 %3377 }
 0x2ce   : > { %3451 = vst.msk [vmem:[#allocation2 + $0xe8] sm:$0xff] %vm3421_vm13, %v3384_v53  ;;  %3448 = vst.msk [vmem:[#allocation2 + $0xd0] sm:$0xff] %vm3421_vm13, %v3378_v45  ;;  %v14143_v53 = vld [vmem:[#allocation146_spill] sm:$0xff]  ;;  %v10690_v45 = vld [vmem:[%s7735_s11 + $0x290] sm:$0xf] }
 0x2cf   : > { %3705 = vrot.lane.b32.xlu1 %v9381_v8, %s7622_s27  ;;  %3699 = vrot.lane.b32.xlu0 %v9366_v52, %s7622_s27  ;;  %v10693_v52 = vld [vmem:[%s7735_s11 + $0x298] sm:$0xf]  ;;  %v10732_v8 = vld [vmem:[%s7735_s11 + $0x2a0] sm:$0xf] }
 0x2d0   : > { %14152 = vst [vmem:[#allocation185_spill] sm:$0xff] %v10732_v8  ;;  %v3848_v23 = vshll.u32 %v10732_v8, 16 }
 0x2d1   : > { %v3388_v6 = vpop.permute.xlu1 %3387  ;;  %v3382_v26 = vpop.permute.xlu0 %3381 }
 0x2d2   : > { %3453 = vst.msk [vmem:[#allocation2 + $0xf8] sm:$0xff] %vm3421_vm13, %v3388_v6  ;;  %3450 = vst.msk [vmem:[#allocation2 + $0xe0] sm:$0xff] %vm3421_vm13, %v3382_v26  ;;  %v14144_v6 = vld [vmem:[#allocation158_spill] sm:$0xff]  ;;  %v10701_v26 = vcombine.low %v10690_v45, %v10693_v52  ;;  %v3850_v33 = vrot.slane %v3848_v23, 5 }
 0x2d3   : > { %3709 = vrot.lane.b32.xlu1 %v9397_v27, %s7622_s27  ;;  %3703 = vrot.lane.b32.xlu0 %v14143_v53, %s7622_s27 }
 0x2d4   : > { %14145 = vst [vmem:[#allocation169_spill] sm:$0xff] %v10701_v26 }
 0x2d5   : > { %v3513_v19 = vpop.permute.xlu1 %3512  ;;  %v3386_v34 = vpop.permute.xlu0 %3385 }
 0x2d6   : > { %3608 = vst.msk [vmem:[#allocation2 + $0x8] sm:$0xff] %vm3606_vm14, %v3513_v19  ;;  %v10712_v19 = vld [vmem:[%s7735_s11 + $0x280] sm:$0xf] }
 0x2d7   : > { %3452 = vst.msk [vmem:[#allocation2 + $0xf0] sm:$0xff] %vm3421_vm13, %v3386_v34  ;;  %3713 = vrot.lane.b32.xlu1 %v14144_v6, %s7622_s27  ;;  %3707 = vrot.lane.b32.xlu0 %v14146_v57, %s7622_s27  ;;  %v10715_v34 = vld [vmem:[%s7735_s11 + $0x288] sm:$0xf]  ;;  %v10723_v57 = vcombine.low %v10706_v62, %v10709_v0  ;;  %v3792_v30 = vshll.u32 %v10712_v19, 16  ;;  %vm5742_vm13 = vcmask 720544  }
 0x2d8   : > { %v10729_v6 = vcombine.low %v10712_v19, %v10715_v34 }
 0x2d9   : > { %v3517_v11 = vpop.permute.xlu1 %3516  ;;  %v3511_v22 = vpop.permute.xlu0 %3510  ;;  %14149 = vst [vmem:[#allocation198_spill] sm:$0xff] %v10723_v57  ;;  %v3794_v47 = vrot.slane %v3792_v30, 5 }
 0x2da   : > { %3610 = vst.msk [vmem:[#allocation2 + $0x18] sm:$0xff] %vm3606_vm14, %v3517_v11  ;;  %3607 = vst.msk [vmem:[#allocation2] sm:$0xff] %vm3606_vm14, %v3511_v22  ;;  %v10735_v11 = vld [vmem:[%s7735_s11 + $0x2a8] sm:$0xf] }
 0x2db   : > { %3717 = vrot.lane.b32.xlu1 %v10701_v26, %s7622_s27  ;;  %3711 = vrot.lane.b32.xlu0 %v14150_v7, %s7622_s27  ;;  %14151 = vst [vmem:[#allocation191_spill] sm:$0xff] %v10729_v6  ;;  %14153 = vst [vmem:[#allocation190_spill] sm:$0xff] %v10735_v11  ;;  %v10745_v26 = vcombine.low %v10732_v8, %v10735_v11  ;;  %v3859_v30 = vshrl.u32 %v10735_v11, 16 }
 0x2dd   : > { %v3521_v27 = vpop.permute.xlu1 %3520  ;;  %v3515_v22 = vpop.permute.xlu0 %3514  ;;  %14154 = vst [vmem:[#allocation196_spill] sm:$0xff] %v10745_v26 }
 0x2de   : > { %3612 = vst.msk [vmem:[#allocation2 + $0x28] sm:$0xff] %vm3606_vm14, %v3521_v27  ;;  %3609 = vst.msk [vmem:[#allocation2 + $0x10] sm:$0xff] %vm3606_vm14, %v3515_v22  ;;  %v14155_v27 = vld [vmem:[#allocation18_spill] sm:$0xff] }
 0x2df   : > { %3721 = vrot.lane.b32.xlu1 %v10723_v57, %s7622_s27  ;;  %3715 = vrot.lane.b32.xlu0 %v10729_v6, %s7622_s27  ;;  %v14156_v6 = vld [vmem:[#allocation23_spill] sm:$0xff] }
 0x2e1   : > { %v3525_v7 = vpop.permute.xlu1 %3524  ;;  %v3519_v54 = vpop.permute.xlu0 %3518 }
 0x2e2   : > { %3614 = vst.msk [vmem:[#allocation2 + $0x38] sm:$0xff] %vm3606_vm14, %v3525_v7  ;;  %3611 = vst.msk [vmem:[#allocation2 + $0x20] sm:$0xff] %vm3606_vm14, %v3519_v54  ;;  %v14157_v7 = vld [vmem:[#allocation19_spill] sm:$0xff] }
 0x2e3   : > { %3914 = vrot.lane.b32.xlu1 %v14155_v27, %s7623_s29  ;;  %3719 = vrot.lane.b32.xlu0 %v10745_v26, %s7622_s27  ;;  %v14158_v27 = vld [vmem:[#allocation28_spill] sm:$0xff]  ;;  %v14159_v26 = vld [vmem:[#allocation26_spill] sm:$0xff]  ;;  %s7635_s27 = smov 88  }
 0x2e5   : > { %v3529_v22 = vpop.permute.xlu1 %3528  ;;  %v3523_v57 = vpop.permute.xlu0 %3522 }
 0x2e6   : > { %3616 = vst.msk [vmem:[#allocation2 + $0x48] sm:$0xff] %vm3606_vm14, %v3529_v22  ;;  %3613 = vst.msk [vmem:[#allocation2 + $0x30] sm:$0xff] %vm3606_vm14, %v3523_v57 }
 0x2e7   : > { %3918 = vrot.lane.b32.xlu1 %v14156_v6, %s7623_s29  ;;  %3912 = vrot.lane.b32.xlu0 %v14157_v7, %s7623_s29  ;;  %v14160_v7 = vld [vmem:[#allocation33_spill] sm:$0xff] }
 0x2e8   : > { %v14161_v6 = vld [vmem:[#allocation29_spill] sm:$0xff] }
 0x2e9   : > { %v3533_v54 = vpop.permute.xlu1 %3532  ;;  %v3527_v50 = vpop.permute.xlu0 %3526 }
 0x2ea   : > { %3618 = vst.msk [vmem:[#allocation2 + $0x58] sm:$0xff] %vm3606_vm14, %v3533_v54  ;;  %3615 = vst.msk [vmem:[#allocation2 + $0x40] sm:$0xff] %vm3606_vm14, %v3527_v50 }
 0x2eb   : > { %3922 = vrot.lane.b32.xlu1 %v14158_v27, %s7623_s29  ;;  %3916 = vrot.lane.b32.xlu0 %v14159_v26, %s7623_s29  ;;  %v14162_v27 = vld [vmem:[#allocation38_spill] sm:$0xff]  ;;  %v14163_v26 = vld [vmem:[#allocation36_spill] sm:$0xff] }
 0x2ed   : > { %v3537_v22 = vpop.permute.xlu1 %3536  ;;  %v3531_v57 = vpop.permute.xlu0 %3530 }
 0x2ee   : > { %3620 = vst.msk [vmem:[#allocation2 + $0x68] sm:$0xff] %vm3606_vm14, %v3537_v22  ;;  %3617 = vst.msk [vmem:[#allocation2 + $0x50] sm:$0xff] %vm3606_vm14, %v3531_v57 }
 0x2ef   : > { %3926 = vrot.lane.b32.xlu1 %v14160_v7, %s7623_s29  ;;  %3920 = vrot.lane.b32.xlu0 %v14161_v6, %s7623_s29  ;;  %v14164_v6 = vld [vmem:[#allocation43_spill] sm:$0xff] }
 0x2f0   : > { %v14165_v7 = vld [vmem:[#allocation39_spill] sm:$0xff] }
 0x2f1   : > { %v3541_v54 = vpop.permute.xlu1 %3540  ;;  %v3535_v50 = vpop.permute.xlu0 %3534 }
 0x2f2   : > { %3622 = vst.msk [vmem:[#allocation2 + $0x78] sm:$0xff] %vm3606_vm14, %v3541_v54  ;;  %3619 = vst.msk [vmem:[#allocation2 + $0x60] sm:$0xff] %vm3606_vm14, %v3535_v50 }
 0x2f3   : > { %3930 = vrot.lane.b32.xlu1 %v14162_v27, %s7623_s29  ;;  %3924 = vrot.lane.b32.xlu0 %v14163_v26, %s7623_s29  ;;  %v14166_v27 = vld [vmem:[#allocation48_spill] sm:$0xff]  ;;  %v14167_v26 = vld [vmem:[#allocation46_spill] sm:$0xff] }
 0x2f5   : > { %v3545_v22 = vpop.permute.xlu1 %3544  ;;  %v3539_v57 = vpop.permute.xlu0 %3538 }
 0x2f6   : > { %3624 = vst.msk [vmem:[#allocation2 + $0x88] sm:$0xff] %vm3606_vm14, %v3545_v22  ;;  %3621 = vst.msk [vmem:[#allocation2 + $0x70] sm:$0xff] %vm3606_vm14, %v3539_v57 }
 0x2f7   : > { %3934 = vrot.lane.b32.xlu1 %v14164_v6, %s7623_s29  ;;  %3928 = vrot.lane.b32.xlu0 %v14165_v7, %s7623_s29  ;;  %v14168_v7 = vld [vmem:[#allocation49_spill] sm:$0xff]  ;;  %v3820_v6 = vshll.u32 %v10690_v45, 16 }
 0x2f9   : > { %v3549_v54 = vpop.permute.xlu1 %3548  ;;  %v3543_v50 = vpop.permute.xlu0 %3542  ;;  %v3822_v56 = vrot.slane %v3820_v6, 5  ;;  %v10819_v6 = vld [vmem:[%s7735_s11 + $0x29c] sm:$0x1] }
 0x2fa   : > { %3626 = vst.msk [vmem:[#allocation2 + $0x98] sm:$0xff] %vm3606_vm14, %v3549_v54  ;;  %3623 = vst.msk [vmem:[#allocation2 + $0x80] sm:$0xff] %vm3606_vm14, %v3543_v50  ;;  %v3840_v20 = vshll.u32 %v10819_v6, 16 }
 0x2fb   : > { %3938 = vrot.lane.b32.xlu1 %v14166_v27, %s7623_s29  ;;  %3932 = vrot.lane.b32.xlu0 %v14167_v26, %s7623_s29  ;;  %v3817_v27 = vshrl.u32 %v10690_v45, 16  ;;  %v3831_v26 = vshrl.u32 %v10693_v52, 16 }
 0x2fd   : > { %v3553_v22 = vpop.permute.xlu1 %3552  ;;  %v3547_v57 = vpop.permute.xlu0 %3546  ;;  %v3819_v53 = vrot.slane %v3817_v27, 4  ;;  %v3833_v37 = vrot.slane %v3831_v26, 4  ;;  %v3873_v26 = vshrl.u32 %v10706_v62, 16  ;;  %v3887_v27 = vshrl.u32 %v10709_v0, 16 }
 0x2fe   : > { %3628 = vst.msk [vmem:[#allocation2 + $0xa8] sm:$0xff] %vm3606_vm14, %v3553_v22  ;;  %3625 = vst.msk [vmem:[#allocation2 + $0x90] sm:$0xff] %vm3606_vm14, %v3547_v57  ;;  %v3834_v22 = vshll.u32 %v10693_v52, 16  ;;  %v14169_v57 = vld [vmem:[#allocation56_spill] sm:$0xff] }
 0x2ff   : > { %3942 = vrot.lane.b32.xlu1 %v14096_v32, %s7623_s29  ;;  %3936 = vrot.lane.b32.xlu0 %v14168_v7, %s7623_s29  ;;  %v3823_v40 = vor.u32 %v3822_v56, %v3819_v53  ;;  %v3889_v53 = vrot.slane %v3887_v27, 4  ;;  %v3842_v27 = vrot.slane %v3840_v20, 5 }
 0x300   : > { %v3836_v44 = vrot.slane %v3834_v22, 5  ;;  %v3890_v22 = vshll.u32 %v10709_v0, 16  ;;  %v3812_v0 = vshll.u32 %v10835_v12, 16 }
 0x301   : > { %v3557_v54 = vpop.permute.xlu1 %3556  ;;  %v3551_v50 = vpop.permute.xlu0 %3550 }
 0x302   : > { %3630 = vst.msk [vmem:[#allocation2 + $0xb8] sm:$0xff] %vm3606_vm14, %v3557_v54  ;;  %3627 = vst.msk [vmem:[#allocation2 + $0xa0] sm:$0xff] %vm3606_vm14, %v3551_v50  ;;  %v3789_v54 = vshrl.u32 %v10712_v19, 16  ;;  %v10812_v50 = vld [vmem:[%s7735_s11 + $0x294] sm:$0x1] }
 0x303   : > { %3946 = vrot.lane.b32.xlu1 %v14097_v46, %s7623_s29  ;;  %3940 = vrot.lane.b32.xlu0 %v14169_v57, %s7623_s29  ;;  %v3803_v46 = vshrl.u32 %v10715_v34, 16  ;;  %v3806_v57 = vshll.u32 %v10715_v34, 16  ;;  %v3826_v21 = vshll.u32 %v10812_v50, 16 }
 0x304   : > { %v3791_v49 = vrot.slane %v3789_v54, 4  ;;  %v3892_v54 = vrot.slane %v3890_v22, 5 }
 0x305   : > { %v3561_v7 = vpop.permute.xlu1 %3560  ;;  %v3555_v32 = vpop.permute.xlu0 %3554  ;;  %v3805_v28 = vrot.slane %v3803_v46, 4  ;;  %v3862_v46 = vshll.u32 %v10735_v11, 16  ;;  %v3828_v3 = vrot.slane %v3826_v21, 5  ;;  %v14171_v11 = vld [vmem:[#allocation71_spill] sm:$0xff] }
 0x306   : > { %3632 = vst.msk [vmem:[#allocation2 + $0xc8] sm:$0xff] %vm3606_vm14, %v3561_v7  ;;  %3629 = vst.msk [vmem:[#allocation2 + $0xb0] sm:$0xff] %vm3606_vm14, %v3555_v32  ;;  %v14170_v7 = vld [vmem:[#allocation59_spill] sm:$0xff]  ;;  %v3876_v32 = vshll.u32 %v10706_v62, 16  ;;  %v3795_v22 = vor.u32 %v3794_v47, %v3791_v49 }
 0x307   : > { %3950 = vrot.lane.b32.xlu1 %v14100_v2, %s7623_s29  ;;  %3944 = vrot.lane.b32.xlu0 %v14170_v7, %s7623_s29  ;;  %v3837_v7 = vor.u32 %v3836_v44, %v3833_v37  ;;  %v10840_v44 = vld [vmem:[%s7735_s11 + $0x2b4] sm:$0x1]  ;;  %v3875_v37 = vrot.slane %v3873_v26, 4  ;;  %v3864_v20 = vrot.slane %v3862_v46, 5 }
 0x308   : > { %v3878_v56 = vrot.slane %v3876_v32, 5  ;;  %v3798_v32 = vshll.u32 %v10828_v24, 16  ;;  %v3882_v21 = vshll.u32 %v10840_v44, 16  ;;  %v3796_v23 = vrot.slane %v3795_v22, 4 }
 0x309   : > { %v3565_v2 = vpop.permute.xlu1 %3564  ;;  %v3559_v36 = vpop.permute.xlu0 %3558  ;;  %v3838_v26 = vrot.slane %v3837_v7, 4  ;;  %v3893_v7 = vor.u32 %v3892_v54, %v3889_v53  ;;  %v3814_v53 = vrot.slane %v3812_v0, 5  ;;  %v14172_v0 = vld [vmem:[#allocation95_spill] sm:$0xff] }
 0x30a   : > { %3634 = vst.msk [vmem:[#allocation2 + $0xd8] sm:$0xff] %vm3606_vm14, %v3565_v2  ;;  %3631 = vst.msk [vmem:[#allocation2 + $0xc0] sm:$0xff] %vm3606_vm14, %v3559_v36  ;;  %v3808_v2 = vrot.slane %v3806_v57, 5  ;;  %v3800_v47 = vrot.slane %v3798_v32, 5 }
 0x30b   : > { %3954 = vrot.lane.b32.xlu1 %v14101_v58, %s7623_s29  ;;  %3948 = vrot.lane.b32.xlu0 %v14094_v10, %s7623_s29  ;;  %v3845_v58 = vshrl.u32 %v10732_v8, 16  ;;  %v3824_v10 = vrot.slane %v3823_v40, 4  ;;  %v3879_v40 = vor.u32 %v3878_v56, %v3875_v37  ;;  %v10868_v37 = vld [vmem:[%s7735_s11 + $0x2ac] sm:$0x1]  ;;  %v3894_v54 = vrot.slane %v3893_v7, 4 }
 0x30c   : > { %v3809_v8 = vor.u32 %v3808_v2, %v3805_v28  ;;  %v10865_v2 = vld [vmem:[%s7735_s11 + $0x2a4] sm:$0x1] }
 0x30d   : > { %v3569_v36 = vpop.permute.xlu1 %3568  ;;  %v3563_v57 = vpop.permute.xlu0 %3562  ;;  %v3847_v62 = vrot.slane %v3845_v58, 4  ;;  %v10862_v28 = vsel %vm7748_vm2, %v3824_v10, %v3828_v3  ;;  %v10875_v58 = vsel %vm7748_vm2, %v3838_v26, %v3842_v27  ;;  %v3880_v10 = vrot.slane %v3879_v40, 4 }
 0x30e   : > { %3636 = vst.msk [vmem:[#allocation2 + $0xe8] sm:$0xff] %vm3606_vm14, %v3569_v36  ;;  %3633 = vst.msk [vmem:[#allocation2 + $0xd0] sm:$0xff] %vm3606_vm14, %v3563_v57  ;;  %v3896_v36 = vshll.u32 %v10843_v55, 16  ;;  %v3810_v56 = vrot.slane %v3809_v8, 4  ;;  %v3884_v3 = vrot.slane %v3882_v21, 5  ;;  %v10887_v8 = vcombine.low %v10862_v28, %v10875_v58 }
 0x30f   : > { %3958 = vrot.lane.b32.xlu1 %v14104_v41, %s7623_s29  ;;  %3952 = vrot.lane.b32.xlu0 %v14171_v11, %s7623_s29  ;;  %v3861_v41 = vrot.slane %v3859_v30, 4  ;;  %v3851_v32 = vor.u32 %v3850_v33, %v3847_v62  ;;  %v3868_v11 = vshll.u32 %v10868_v37, 16 }
 0x310   : > { %v3898_v30 = vrot.slane %v3896_v36, 5  ;;  %v10895_v62 = vsel %vm7748_vm2, %v3810_v56, %v3814_v53 }
 0x311   : > { %v3573_v57 = vpop.permute.xlu1 %3572  ;;  %v3567_v49 = vpop.permute.xlu0 %3566  ;;  %v3852_v27 = vrot.slane %v3851_v32, 4  ;;  %v3870_v21 = vrot.slane %v3868_v11, 5 }
 0x312   : > { %3638 = vst.msk [vmem:[#allocation2 + $0xf8] sm:$0xff] %vm3606_vm14, %v3573_v57  ;;  %3635 = vst.msk [vmem:[#allocation2 + $0xe0] sm:$0xff] %vm3606_vm14, %v3567_v49  ;;  %v3854_v57 = vshll.u32 %v10865_v2, 16  ;;  %v3865_v49 = vor.u32 %v3864_v20, %v3861_v41  ;;  %v3801_v41 = vsel %vm7748_vm2, %v3796_v23, %v3800_v47  ;;  %v10903_v33 = vsel %vm7748_vm2, %v3894_v54, %v3898_v30 }
 0x313   : > { %3962 = vrot.lane.b32.xlu1 %v14105_v4, %s7623_s29  ;;  %3956 = vrot.lane.b32.xlu0 %v14098_v9, %s7623_s29  ;;  %v10916_v20 = vcombine.low %v3801_v41, %v10895_v62 }
 0x314   : > { %v3856_v22 = vrot.slane %v3854_v57, 5  ;;  %v3866_v40 = vrot.slane %v3865_v49, 4 }
 0x315   : > { %v3662_v46 = vpop.permute.xlu1 %3661  ;;  %v3571_v4 = vpop.permute.xlu0 %3570  ;;  %14173 = vst [vmem:[#allocation99_spill] sm:$0xff] %v10916_v20 }
 0x316   : > { %3757 = vst.msk [vmem:[#allocation2 + $0x8] sm:$0xff] %vm3755_vm15, %v3662_v46  ;;  %v10920_v11 = vsel %vm7748_vm2, %v3852_v27, %v3856_v22  ;;  %v10924_v23 = vsel %vm7748_vm2, %v3866_v40, %v3870_v21  ;;  %v14174_v46 = vld [vmem:[#allocation127_spill] sm:$0xff] }
 0x317   : > { %3637 = vst.msk [vmem:[#allocation2 + $0xf0] sm:$0xff] %vm3606_vm14, %v3571_v4  ;;  %3966 = vrot.lane.b32.xlu1 %v14107_v48, %s7623_s29  ;;  %3960 = vrot.lane.b32.xlu0 %v14172_v0, %s7623_s29  ;;  %v10899_v4 = vsel %vm7748_vm2, %v3880_v10, %v3884_v3  ;;  %v10934_v53 = vcombine.low %v10920_v11, %v10924_v23  ;;  %v14323_v0 = vld [vmem:[#allocation23_spill] sm:$0xff]  ;;  %vm5890_vm14 = vcmask 753344  }
 0x318   : > { %v10911_v36 = vcombine.low %v10899_v4, %v10903_v33 }
 0x319   : > { %v3666_v26 = vpop.permute.xlu1 %3665  ;;  %v3660_v7 = vpop.permute.xlu0 %3659 }
 0x31a   : > { %3759 = vst.msk [vmem:[#allocation2 + $0x18] sm:$0xff] %vm3755_vm15, %v3666_v26  ;;  %3756 = vst.msk [vmem:[#allocation2] sm:$0xff] %vm3755_vm15, %v3660_v7  ;;  %v14175_v26 = vld [vmem:[#allocation147_spill] sm:$0xff] }
 0x31b   : > { %3970 = vrot.lane.b32.xlu1 %v10887_v8, %s7623_s29  ;;  %3964 = vrot.lane.b32.xlu0 %v14102_v61, %s7623_s29  ;;  %v14176_v7 = vld [vmem:[#allocation167_spill] sm:$0xff] }
 0x31d   : > { %v3670_v47 = vpop.permute.xlu1 %3669  ;;  %v3664_v56 = vpop.permute.xlu0 %3663 }
 0x31e   : > { %3761 = vst.msk [vmem:[#allocation2 + $0x28] sm:$0xff] %vm3755_vm15, %v3670_v47  ;;  %3758 = vst.msk [vmem:[#allocation2 + $0x10] sm:$0xff] %vm3755_vm15, %v3664_v56 }
 0x31f   : > { %3974 = vrot.lane.b32.xlu1 %v10911_v36, %s7623_s29  ;;  %3968 = vrot.lane.b32.xlu0 %v10916_v20, %s7623_s29 }
 0x321   : > { %v3674_v10 = vpop.permute.xlu1 %3673  ;;  %v3668_v3 = vpop.permute.xlu0 %3667 }
 0x322   : > { %3763 = vst.msk [vmem:[#allocation2 + $0x38] sm:$0xff] %vm3755_vm15, %v3674_v10  ;;  %3760 = vst.msk [vmem:[#allocation2 + $0x20] sm:$0xff] %vm3755_vm15, %v3668_v3 }
 0x323   : > { %4095 = vrot.lane.b32.xlu1 %v14112_v59, %s7624_s8  ;;  %3972 = vrot.lane.b32.xlu0 %v10934_v53, %s7623_s29  ;;  %s7636_s29 = smov 92  }
 0x325   : > { %v3678_v54 = vpop.permute.xlu1 %3677  ;;  %v3672_v30 = vpop.permute.xlu0 %3671 }
 0x326   : > { %3765 = vst.msk [vmem:[#allocation2 + $0x48] sm:$0xff] %vm3755_vm15, %v3678_v54  ;;  %3762 = vst.msk [vmem:[#allocation2 + $0x30] sm:$0xff] %vm3755_vm15, %v3672_v30  ;;  %v14177_v54 = vld [vmem:[#allocation186_spill] sm:$0xff] }
 0x327   : > { %4099 = vrot.lane.b32.xlu1 %v14115_v18, %s7624_s8  ;;  %4093 = vrot.lane.b32.xlu0 %v14174_v46, %s7624_s8 }
 0x329   : > { %v3682_v32 = vpop.permute.xlu1 %3681  ;;  %v3676_v57 = vpop.permute.xlu0 %3675 }
 0x32a   : > { %3767 = vst.msk [vmem:[#allocation2 + $0x58] sm:$0xff] %vm3755_vm15, %v3682_v32  ;;  %3764 = vst.msk [vmem:[#allocation2 + $0x40] sm:$0xff] %vm3755_vm15, %v3676_v57 }
 0x32b   : > { %4103 = vrot.lane.b32.xlu1 %v14116_v16, %s7624_s8  ;;  %4097 = vrot.lane.b32.xlu0 %v14109_v17, %s7624_s8 }
 0x32d   : > { %v3686_v49 = vpop.permute.xlu1 %3685  ;;  %v3680_v41 = vpop.permute.xlu0 %3679 }
 0x32e   : > { %3769 = vst.msk [vmem:[#allocation2 + $0x68] sm:$0xff] %vm3755_vm15, %v3686_v49  ;;  %3766 = vst.msk [vmem:[#allocation2 + $0x50] sm:$0xff] %vm3755_vm15, %v3680_v41  ;;  %v14178_v49 = vld [vmem:[#allocation200_spill] sm:$0xff] }
 0x32f   : > { %4107 = vrot.lane.b32.xlu1 %v14119_v51, %s7624_s8  ;;  %4101 = vrot.lane.b32.xlu0 %v14175_v26, %s7624_s8  ;;  %v14186_v26 = vld [vmem:[#allocation190_spill] sm:$0xff] }
 0x330   : > { %v7206_v20 = vrot.slane %v14186_v26, 9 }
 0x331   : > { %v3690_v27 = vpop.permute.xlu1 %3689  ;;  %v3684_v22 = vpop.permute.xlu0 %3683 }
 0x332   : > { %3771 = vst.msk [vmem:[#allocation2 + $0x78] sm:$0xff] %vm3755_vm15, %v3690_v27  ;;  %3768 = vst.msk [vmem:[#allocation2 + $0x60] sm:$0xff] %vm3755_vm15, %v3684_v22 }
 0x333   : > { %4111 = vrot.lane.b32.xlu1 %v14120_v15, %s7624_s8  ;;  %4105 = vrot.lane.b32.xlu0 %v14113_v29, %s7624_s8 }
 0x335   : > { %v3694_v40 = vpop.permute.xlu1 %3693  ;;  %v3688_v21 = vpop.permute.xlu0 %3687 }
 0x336   : > { %3773 = vst.msk [vmem:[#allocation2 + $0x88] sm:$0xff] %vm3755_vm15, %v3694_v40  ;;  %3770 = vst.msk [vmem:[#allocation2 + $0x70] sm:$0xff] %vm3755_vm15, %v3688_v21  ;;  %v7203_v21 = vrot.slane %v10690_v45, 9 }
 0x337   : > { %4115 = vrot.lane.b32.xlu1 %v14123_v25, %s7624_s8  ;;  %4109 = vrot.lane.b32.xlu0 %v14176_v7, %s7624_s8 }
 0x339   : > { %v3698_v47 = vpop.permute.xlu1 %3697  ;;  %v3692_v56 = vpop.permute.xlu0 %3691 }
 0x33a   : > { %3775 = vst.msk [vmem:[#allocation2 + $0x98] sm:$0xff] %vm3755_vm15, %v3698_v47  ;;  %3772 = vst.msk [vmem:[#allocation2 + $0x80] sm:$0xff] %vm3755_vm15, %v3692_v56  ;;  %v4059_v47 = vrot.slane %v10812_v50, 5  ;;  %v7204_v56 = vrot.slane %v10693_v52, 9 }
 0x33b   : > { %4119 = vrot.lane.b32.xlu1 %v14124_v60, %s7624_s8  ;;  %4113 = vrot.lane.b32.xlu0 %v14117_v14, %s7624_s8 }
 0x33c   : > { %v11020_v50 = vsel %vm8431_vm5, %v7203_v21, %v4059_v47  ;;  %v4079_v21 = vrot.slane %v10843_v55, 5 }
 0x33d   : > { %v3702_v10 = vpop.permute.xlu1 %3701  ;;  %v3696_v3 = vpop.permute.xlu0 %3695 }
 0x33e   : > { %3777 = vst.msk [vmem:[#allocation2 + $0xa8] sm:$0xff] %vm3755_vm15, %v3702_v10  ;;  %3774 = vst.msk [vmem:[#allocation2 + $0x90] sm:$0xff] %vm3755_vm15, %v3696_v3  ;;  %v4063_v10 = vrot.slane %v10819_v6, 5  ;;  %v14179_v3 = vld [vmem:[#allocation74_spill] sm:$0xff] }
 0x33f   : > { %4123 = vrot.lane.b32.xlu1 %v14127_v35, %s7624_s8  ;;  %4117 = vrot.lane.b32.xlu0 %v14177_v54, %s7624_s8  ;;  %v14185_v54 = vld [vmem:[#allocation185_spill] sm:$0xff] }
 0x340   : > { %v11024_v6 = vsel %vm8431_vm5, %v7204_v56, %v4063_v10  ;;  %v14183_v56 = vld [vmem:[#allocation119_spill] sm:$0xff]  ;;  %v14184_v10 = vld [vmem:[#allocation84_spill] sm:$0xff]  ;;  %v7205_v7 = vrot.slane %v14185_v54, 9 }
 0x341   : > { %v3706_v30 = vpop.permute.xlu1 %3705  ;;  %v3700_v46 = vpop.permute.xlu0 %3699 }
 0x342   : > { %3779 = vst.msk [vmem:[#allocation2 + $0xb8] sm:$0xff] %vm3755_vm15, %v3706_v30  ;;  %3776 = vst.msk [vmem:[#allocation2 + $0xa0] sm:$0xff] %vm3755_vm15, %v3700_v46 }
 0x343   : > { %4127 = vrot.lane.b32.xlu1 %v14128_v31, %s7624_s8  ;;  %4121 = vrot.lane.b32.xlu0 %v14121_v43, %s7624_s8 }
 0x345   : > { %v3710_v32 = vpop.permute.xlu1 %3709  ;;  %v3704_v57 = vpop.permute.xlu0 %3703 }
 0x346   : > { %3781 = vst.msk [vmem:[#allocation2 + $0xc8] sm:$0xff] %vm3755_vm15, %v3710_v32  ;;  %3778 = vst.msk [vmem:[#allocation2 + $0xb0] sm:$0xff] %vm3755_vm15, %v3704_v57  ;;  %v7201_v32 = vrot.slane %v10712_v19, 9  ;;  %v4051_v57 = vrot.slane %v10828_v24, 5  ;;  %v14180_v19 = vld [vmem:[#allocation142_spill] sm:$0xff] }
 0x347   : > { %4131 = vrot.lane.b32.xlu1 %v14131_v13, %s7624_s8  ;;  %4125 = vrot.lane.b32.xlu0 %v14178_v49, %s7624_s8  ;;  %v14181_v24 = vld [vmem:[#allocation178_spill] sm:$0xff] }
 0x349   : > { %v3714_v41 = vpop.permute.xlu1 %3713  ;;  %v3708_v27 = vpop.permute.xlu0 %3707 }
 0x34a   : > { %3783 = vst.msk [vmem:[#allocation2 + $0xd8] sm:$0xff] %vm3755_vm15, %v3714_v41  ;;  %3780 = vst.msk [vmem:[#allocation2 + $0xc0] sm:$0xff] %vm3755_vm15, %v3708_v27  ;;  %v7202_v41 = vrot.slane %v10715_v34, 9  ;;  %v4055_v27 = vrot.slane %v10835_v12, 5  ;;  %v11040_v12 = vcombine.low %v11020_v50, %v11024_v6 }
 0x34b   : > { %4135 = vrot.lane.b32.xlu1 %v14132_v1, %s7624_s8  ;;  %4129 = vrot.lane.b32.xlu0 %v14125_v5, %s7624_s8 }
 0x34c   : > { %v11048_v55 = vsel %vm8431_vm5, %v7202_v41, %v4055_v27  ;;  %v14188_v27 = vld [vmem:[#allocation123_spill] sm:$0xff] }
 0x34d   : > { %v3718_v22 = vpop.permute.xlu1 %3717  ;;  %v3712_v40 = vpop.permute.xlu0 %3711 }
 0x34e   : > { %3785 = vst.msk [vmem:[#allocation2 + $0xe8] sm:$0xff] %vm3755_vm15, %v3718_v22  ;;  %3782 = vst.msk [vmem:[#allocation2 + $0xd0] sm:$0xff] %vm3755_vm15, %v3712_v40  ;;  %v7207_v22 = vrot.slane %v14181_v24, 9  ;;  %v4075_v40 = vrot.slane %v10840_v44, 5  ;;  %v4052_v44 = vsel %vm8431_vm5, %v7201_v32, %v4051_v57  ;;  %v4071_v32 = vrot.slane %v10868_v37, 5 }
 0x34f   : > { %4139 = vrot.lane.b32.xlu1 %v14135_v38, %s7624_s8  ;;  %4133 = vrot.lane.b32.xlu0 %v14179_v3, %s7624_s8 }
 0x351   : > { %v3722_v30 = vpop.permute.xlu1 %3721  ;;  %v3716_v46 = vpop.permute.xlu0 %3715 }
 0x352   : > { %3787 = vst.msk [vmem:[#allocation2 + $0xf8] sm:$0xff] %vm3755_vm15, %v3722_v30  ;;  %3784 = vst.msk [vmem:[#allocation2 + $0xe0] sm:$0xff] %vm3755_vm15, %v3716_v46  ;;  %v14182_v30 = vld [vmem:[#allocation188_spill] sm:$0xff] }
 0x353   : > { %4143 = vrot.lane.b32.xlu1 %v14136_v63, %s7624_s8  ;;  %4137 = vrot.lane.b32.xlu0 %v14180_v19, %s7624_s8  ;;  %v7208_v46 = vrot.slane %v14182_v30, 9 }
 0x355   : > { %v3915_v47 = vpop.permute.xlu1 %3914  ;;  %v3720_v3 = vpop.permute.xlu0 %3719 }
 0x356   : > { %4010 = vst.msk [vmem:[#allocation2 + $0x8] sm:$0xff] %vm4008_vm0, %v3915_v47  ;;  %v11056_v47 = vsel %vm8431_vm5, %v7208_v46, %v4079_v21 }
 0x357   : > { %3786 = vst.msk [vmem:[#allocation2 + $0xf0] sm:$0xff] %vm3755_vm15, %v3720_v3  ;;  %4147 = vrot.lane.b32.xlu1 %v14183_v56, %s7624_s8  ;;  %4141 = vrot.lane.b32.xlu0 %v14184_v10, %s7624_s8  ;;  %v11052_v3 = vsel %vm8431_vm5, %v7207_v22, %v4075_v40  ;;  %v4067_v10 = vrot.slane %v10865_v2, 5  ;;  %v11073_v2 = vcombine.low %v4052_v44, %v11048_v55  ;;  %vm6029_vm15 = vcmask 786144  }
 0x358   : > { %v11068_v41 = vcombine.low %v11052_v3, %v11056_v47 }
 0x359   : > { %v3919_v49 = vpop.permute.xlu1 %3918  ;;  %v3913_v57 = vpop.permute.xlu0 %3912  ;;  %14189 = vst [vmem:[#allocation195_spill] sm:$0xff] %v11073_v2  ;;  %v11077_v37 = vsel %vm8431_vm5, %v7205_v7, %v4067_v10 }
 0x35a   : > { %4012 = vst.msk [vmem:[#allocation2 + $0x18] sm:$0xff] %vm4008_vm0, %v3919_v49  ;;  %4009 = vst.msk [vmem:[#allocation2] sm:$0xff] %vm4008_vm0, %v3913_v57  ;;  %v11081_v49 = vsel %vm8431_vm5, %v7206_v20, %v4071_v32  ;;  %v14191_v20 = vld [vmem:[#allocation161_spill] sm:$0xff]  ;;  %v14192_v32 = vld [vmem:[#allocation163_spill] sm:$0xff] }
 0x35b   : > { %4151 = vrot.lane.b32.xlu1 %v11040_v12, %s7624_s8  ;;  %14187 = vst [vmem:[#allocation201_spill] sm:$0xff] %v11068_v41  ;;  %4145 = vrot.lane.b32.xlu0 %v14188_v27, %s7624_s8  ;;  %v11091_v46 = vcombine.low %v11077_v37, %v11081_v49  ;;  %v14193_v57 = vld [vmem:[#allocation172_spill] sm:$0xff] }
 0x35d   : > { %v3923_v22 = vpop.permute.xlu1 %3922  ;;  %v3917_v40 = vpop.permute.xlu0 %3916  ;;  %14190 = vst [vmem:[#allocation199_spill] sm:$0xff] %v11091_v46 }
 0x35e   : > { %4014 = vst.msk [vmem:[#allocation2 + $0x28] sm:$0xff] %vm4008_vm0, %v3923_v22  ;;  %4011 = vst.msk [vmem:[#allocation2 + $0x10] sm:$0xff] %vm4008_vm0, %v3917_v40 }
 0x35f   : > { %4155 = vrot.lane.b32.xlu1 %v11068_v41, %s7624_s8  ;;  %4149 = vrot.lane.b32.xlu0 %v11073_v2, %s7624_s8  ;;  %v14209_v2 = vld [vmem:[#allocation216_spill] sm:$0xff] }
 0x361   : > { %v3927_v7 = vpop.permute.xlu1 %3926  ;;  %v3921_v21 = vpop.permute.xlu0 %3920 }
 0x362   : > { %4016 = vst.msk [vmem:[#allocation2 + $0x38] sm:$0xff] %vm4008_vm0, %v3927_v7  ;;  %4013 = vst.msk [vmem:[#allocation2 + $0x20] sm:$0xff] %vm4008_vm0, %v3921_v21  ;;  %v14194_v7 = vld [vmem:[#allocation170_spill] sm:$0xff]  ;;  %v14195_v21 = vld [vmem:[#allocation175_spill] sm:$0xff] }
 0x363   : > { %4230 = vrot.lane.b32.xlu1 %v14191_v20, %s7625_s9  ;;  %4153 = vrot.lane.b32.xlu0 %v11091_v46, %s7624_s8  ;;  %s7637_s8 = smov 96  }
 0x365   : > { %v3931_v10 = vpop.permute.xlu1 %3930  ;;  %v3925_v44 = vpop.permute.xlu0 %3924 }
 0x366   : > { %4018 = vst.msk [vmem:[#allocation2 + $0x48] sm:$0xff] %vm4008_vm0, %v3931_v10  ;;  %4015 = vst.msk [vmem:[#allocation2 + $0x30] sm:$0xff] %vm4008_vm0, %v3925_v44  ;;  %v14196_v44 = vld [vmem:[#allocation174_spill] sm:$0xff] }
 0x367   : > { %4234 = vrot.lane.b32.xlu1 %v14192_v32, %s7625_s9  ;;  %4228 = vrot.lane.b32.xlu0 %v14193_v57, %s7625_s9  ;;  %v14197_v32 = vld [vmem:[#allocation179_spill] sm:$0xff] }
 0x369   : > { %v3935_v22 = vpop.permute.xlu1 %3934  ;;  %v3929_v40 = vpop.permute.xlu0 %3928 }
 0x36a   : > { %4020 = vst.msk [vmem:[#allocation2 + $0x58] sm:$0xff] %vm4008_vm0, %v3935_v22  ;;  %4017 = vst.msk [vmem:[#allocation2 + $0x40] sm:$0xff] %vm4008_vm0, %v3929_v40  ;;  %v14198_v40 = vld [vmem:[#allocation184_spill] sm:$0xff] }
 0x36b   : > { %4238 = vrot.lane.b32.xlu1 %v14194_v7, %s7625_s9  ;;  %4232 = vrot.lane.b32.xlu0 %v14195_v21, %s7625_s9  ;;  %v14199_v21 = vld [vmem:[#allocation182_spill] sm:$0xff]  ;;  %v14201_v7 = vld [vmem:[#allocation208_spill] sm:$0xff] }
 0x36d   : > { %v3939_v20 = vpop.permute.xlu1 %3938  ;;  %v3933_v10 = vpop.permute.xlu0 %3932 }
 0x36e   : > { %4022 = vst.msk [vmem:[#allocation2 + $0x68] sm:$0xff] %vm4008_vm0, %v3939_v20  ;;  %4019 = vst.msk [vmem:[#allocation2 + $0x50] sm:$0xff] %vm4008_vm0, %v3933_v10 }
 0x36f   : > { %4242 = vrot.lane.b32.xlu1 %v14196_v44, %s7625_s9  ;;  %4236 = vrot.lane.b32.xlu0 %v14197_v32, %s7625_s9  ;;  %v14200_v44 = vld [vmem:[#allocation207_spill] sm:$0xff] }
 0x371   : > { %v3943_v57 = vpop.permute.xlu1 %3942  ;;  %v3937_v22 = vpop.permute.xlu0 %3936 }
 0x372   : > { %4024 = vst.msk [vmem:[#allocation2 + $0x78] sm:$0xff] %vm4008_vm0, %v3943_v57  ;;  %4021 = vst.msk [vmem:[#allocation2 + $0x60] sm:$0xff] %vm4008_vm0, %v3937_v22 }
 0x373   : > { %4246 = vrot.lane.b32.xlu1 %v14198_v40, %s7625_s9  ;;  %4240 = vrot.lane.b32.xlu0 %v14199_v21, %s7625_s9  ;;  %v14202_v40 = vld [vmem:[#allocation209_spill] sm:$0xff]  ;;  %v14203_v21 = vld [vmem:[#allocation210_spill] sm:$0xff] }
 0x375   : > { %v3947_v20 = vpop.permute.xlu1 %3946  ;;  %v3941_v10 = vpop.permute.xlu0 %3940 }
 0x376   : > { %4026 = vst.msk [vmem:[#allocation2 + $0x88] sm:$0xff] %vm4008_vm0, %v3947_v20  ;;  %4023 = vst.msk [vmem:[#allocation2 + $0x70] sm:$0xff] %vm4008_vm0, %v3941_v10 }
 0x377   : > { %4250 = vrot.lane.b32.xlu1 %v14200_v44, %s7625_s9  ;;  %4244 = vrot.lane.b32.xlu0 %v14201_v7, %s7625_s9  ;;  %v14204_v44 = vld [vmem:[#allocation211_spill] sm:$0xff]  ;;  %v14205_v7 = vld [vmem:[#allocation212_spill] sm:$0xff] }
 0x379   : > { %v3951_v57 = vpop.permute.xlu1 %3950  ;;  %v3945_v22 = vpop.permute.xlu0 %3944 }
 0x37a   : > { %4028 = vst.msk [vmem:[#allocation2 + $0x98] sm:$0xff] %vm4008_vm0, %v3951_v57  ;;  %4025 = vst.msk [vmem:[#allocation2 + $0x80] sm:$0xff] %vm4008_vm0, %v3945_v22 }
 0x37b   : > { %4254 = vrot.lane.b32.xlu1 %v14202_v40, %s7625_s9  ;;  %4248 = vrot.lane.b32.xlu0 %v14203_v21, %s7625_s9  ;;  %v14206_v21 = vld [vmem:[#allocation213_spill] sm:$0xff]  ;;  %v14207_v40 = vld [vmem:[#allocation214_spill] sm:$0xff] }
 0x37d   : > { %v3955_v20 = vpop.permute.xlu1 %3954  ;;  %v3949_v10 = vpop.permute.xlu0 %3948 }
 0x37e   : > { %4030 = vst.msk [vmem:[#allocation2 + $0xa8] sm:$0xff] %vm4008_vm0, %v3955_v20  ;;  %4027 = vst.msk [vmem:[#allocation2 + $0x90] sm:$0xff] %vm4008_vm0, %v3949_v10 }
 0x37f   : > { %4258 = vrot.lane.b32.xlu1 %v14204_v44, %s7625_s9  ;;  %4252 = vrot.lane.b32.xlu0 %v14205_v7, %s7625_s9  ;;  %v14208_v44 = vld [vmem:[#allocation215_spill] sm:$0xff] }
 0x381   : > { %v3959_v57 = vpop.permute.xlu1 %3958  ;;  %v3953_v22 = vpop.permute.xlu0 %3952 }
 0x382   : > { %4032 = vst.msk [vmem:[#allocation2 + $0xb8] sm:$0xff] %vm4008_vm0, %v3959_v57  ;;  %4029 = vst.msk [vmem:[#allocation2 + $0xa0] sm:$0xff] %vm4008_vm0, %v3953_v22 }
 0x383   : > { %4262 = vrot.lane.b32.xlu1 %v14206_v21, %s7625_s9  ;;  %4256 = vrot.lane.b32.xlu0 %v14207_v40, %s7625_s9  ;;  %v14210_v21 = vld [vmem:[#allocation217_spill] sm:$0xff]  ;;  %v14211_v40 = vld [vmem:[#allocation218_spill] sm:$0xff] }
 0x385   : > { %v3963_v20 = vpop.permute.xlu1 %3962  ;;  %v3957_v10 = vpop.permute.xlu0 %3956 }
 0x386   : > { %4034 = vst.msk [vmem:[#allocation2 + $0xc8] sm:$0xff] %vm4008_vm0, %v3963_v20  ;;  %4031 = vst.msk [vmem:[#allocation2 + $0xb0] sm:$0xff] %vm4008_vm0, %v3957_v10 }
 0x387   : > { %4266 = vrot.lane.b32.xlu1 %v14208_v44, %s7625_s9  ;;  %4260 = vrot.lane.b32.xlu0 %v14209_v2, %s7625_s9  ;;  %v14212_v44 = vld [vmem:[#allocation219_spill] sm:$0xff]  ;;  %v14213_v2 = vld [vmem:[#allocation220_spill] sm:$0xff] }
 0x389   : > { %v3967_v57 = vpop.permute.xlu1 %3966  ;;  %v3961_v22 = vpop.permute.xlu0 %3960 }
 0x38a   : > { %4036 = vst.msk [vmem:[#allocation2 + $0xd8] sm:$0xff] %vm4008_vm0, %v3967_v57  ;;  %4033 = vst.msk [vmem:[#allocation2 + $0xc0] sm:$0xff] %vm4008_vm0, %v3961_v22 }
 0x38b   : > { %4270 = vrot.lane.b32.xlu1 %v14210_v21, %s7625_s9  ;;  %4264 = vrot.lane.b32.xlu0 %v14211_v40, %s7625_s9  ;;  %v14214_v40 = vld [vmem:[#allocation221_spill] sm:$0xff] }
 0x38d   : > { %v3971_v20 = vpop.permute.xlu1 %3970  ;;  %v3965_v10 = vpop.permute.xlu0 %3964 }
 0x38e   : > { %4038 = vst.msk [vmem:[#allocation2 + $0xe8] sm:$0xff] %vm4008_vm0, %v3971_v20  ;;  %4035 = vst.msk [vmem:[#allocation2 + $0xd0] sm:$0xff] %vm4008_vm0, %v3965_v10  ;;  %v14215_v20 = vld [vmem:[#allocation222_spill] sm:$0xff] }
 0x38f   : > { %4274 = vrot.lane.b32.xlu1 %v14212_v44, %s7625_s9  ;;  %4268 = vrot.lane.b32.xlu0 %v14213_v2, %s7625_s9  ;;  %v14216_v44 = vld [vmem:[#allocation223_spill] sm:$0xff] }
 0x391   : > { %v3975_v57 = vpop.permute.xlu1 %3974  ;;  %v3969_v22 = vpop.permute.xlu0 %3968 }
 0x392   : > { %4040 = vst.msk [vmem:[#allocation2 + $0xf8] sm:$0xff] %vm4008_vm0, %v3975_v57  ;;  %4037 = vst.msk [vmem:[#allocation2 + $0xe0] sm:$0xff] %vm4008_vm0, %v3969_v22  ;;  %v11177_v57 = vcombine.low %v10693_v52, %v14185_v54  ;;  %v14218_v22 = vld [vmem:[#allocation224_spill] sm:$0xff]  ;;  %v14220_v52 = vld [vmem:[#allocation6_spill] sm:$0xff]  ;;  %v11196_v54 = vcombine.low %v10715_v34, %v10690_v45 }
 0x393   : > { %4278 = vrot.lane.b32.xlu1 %v14214_v40, %s7625_s9  ;;  %4272 = vrot.lane.b32.xlu0 %v14215_v20, %s7625_s9  ;;  %v11182_v40 = vld [vmem:[%s7735_s11 + $0x2c0] sm:$0xf]  ;;  %v14223_v45 = vld [vmem:[#allocation15_spill] sm:$0xff] }
 0x394   : > { %14217 = vst [vmem:[#allocation101_spill] sm:$0xff] %v11177_v57  ;;  %14221 = vst [vmem:[#allocation75_spill] sm:$0xff] %v11196_v54 }
 0x395   : > { %v4096_v10 = vpop.permute.xlu1 %4095  ;;  %v3973_v21 = vpop.permute.xlu0 %3972 }
 0x396   : > { %4191 = vst.msk [vmem:[#allocation2 + $0x8] sm:$0xff] %vm4189_vm1, %v4096_v10 }
 0x397   : > { %4039 = vst.msk [vmem:[#allocation2 + $0xf0] sm:$0xff] %vm4008_vm0, %v3973_v21  ;;  %4282 = vrot.lane.b32.xlu1 %v14216_v44, %s7625_s9  ;;  %4276 = vrot.lane.b32.xlu0 %v14218_v22, %s7625_s9  ;;  %v11190_v21 = vcombine.low %v14182_v30, %v11182_v40  ;;  %v11206_v30 = vcombine.low %v14186_v26, %v14181_v24  ;;  %v14224_v26 = vld [vmem:[#allocation11_spill] sm:$0xff]  ;;  %v14225_v24 = vld [vmem:[#allocation20_spill] sm:$0xff]  ;;  %v14232_v22 = vld [vmem:[#allocation22_spill] sm:$0xff]  ;;  %vm6161_vm0 = vcmask 818944  }
 0x399   : > { %v4100_v2 = vpop.permute.xlu1 %4099  ;;  %v4094_v20 = vpop.permute.xlu0 %4093  ;;  %14219 = vst [vmem:[#allocation88_spill] sm:$0xff] %v11190_v21  ;;  %14222 = vst [vmem:[#allocation206_spill] sm:$0xff] %v11206_v30 }
 0x39a   : > { %4193 = vst.msk [vmem:[#allocation2 + $0x18] sm:$0xff] %vm4189_vm1, %v4100_v2  ;;  %4190 = vst.msk [vmem:[#allocation2] sm:$0xff] %vm4189_vm1, %v4094_v20 }
 0x39b   : > { %4286 = vrot.lane.b32.xlu1 %v11177_v57, %s7625_s9  ;;  %4280 = vrot.lane.b32.xlu0 %v14220_v52, %s7625_s9  ;;  %v14231_v52 = vld [vmem:[#allocation12_spill] sm:$0xff] }
 0x39d   : > { %v4104_v10 = vpop.permute.xlu1 %4103  ;;  %v4098_v44 = vpop.permute.xlu0 %4097 }
 0x39e   : > { %4195 = vst.msk [vmem:[#allocation2 + $0x28] sm:$0xff] %vm4189_vm1, %v4104_v10  ;;  %4192 = vst.msk [vmem:[#allocation2 + $0x10] sm:$0xff] %vm4189_vm1, %v4098_v44 }
 0x39f   : > { %4290 = vrot.lane.b32.xlu1 %v11190_v21, %s7625_s9  ;;  %4284 = vrot.lane.b32.xlu0 %v11196_v54, %s7625_s9  ;;  %v14233_v21 = vld [vmem:[#allocation40_spill] sm:$0xff] }
 0x3a1   : > { %v4108_v2 = vpop.permute.xlu1 %4107  ;;  %v4102_v20 = vpop.permute.xlu0 %4101 }
 0x3a2   : > { %4197 = vst.msk [vmem:[#allocation2 + $0x38] sm:$0xff] %vm4189_vm1, %v4108_v2  ;;  %4194 = vst.msk [vmem:[#allocation2 + $0x20] sm:$0xff] %vm4189_vm1, %v4102_v20  ;;  %v14226_v20 = vld [vmem:[#allocation24_spill] sm:$0xff] }
 0x3a3   : > { %4378 = vrot.lane.b32.xlu1 %v14223_v45, %s7626_s10  ;;  %4288 = vrot.lane.b32.xlu0 %v11206_v30, %s7625_s9  ;;  %v14227_v45 = vld [vmem:[#allocation7_spill] sm:$0xff]  ;;  %v14239_v30 = vld [vmem:[#allocation25_spill] sm:$0xff]  ;;  %s7638_s9 = smov 100  }
 0x3a5   : > { %v4112_v34 = vpop.permute.xlu1 %4111  ;;  %v4106_v44 = vpop.permute.xlu0 %4105 }
 0x3a6   : > { %4199 = vst.msk [vmem:[#allocation2 + $0x48] sm:$0xff] %vm4189_vm1, %v4112_v34  ;;  %4196 = vst.msk [vmem:[#allocation2 + $0x30] sm:$0xff] %vm4189_vm1, %v4106_v44 }
 0x3a7   : > { %4382 = vrot.lane.b32.xlu1 %v14224_v26, %s7626_s10  ;;  %4376 = vrot.lane.b32.xlu0 %v14225_v24, %s7626_s10  ;;  %v14228_v26 = vld [vmem:[#allocation17_spill] sm:$0xff]  ;;  %v14229_v24 = vld [vmem:[#allocation30_spill] sm:$0xff] }
 0x3a9   : > { %v4116_v10 = vpop.permute.xlu1 %4115  ;;  %v4110_v2 = vpop.permute.xlu0 %4109 }
 0x3aa   : > { %4201 = vst.msk [vmem:[#allocation2 + $0x58] sm:$0xff] %vm4189_vm1, %v4116_v10  ;;  %4198 = vst.msk [vmem:[#allocation2 + $0x40] sm:$0xff] %vm4189_vm1, %v4110_v2 }
 0x3ab   : > { %4386 = vrot.lane.b32.xlu1 %v14226_v20, %s7626_s10  ;;  %4380 = vrot.lane.b32.xlu0 %v14227_v45, %s7626_s10  ;;  %v14230_v45 = vld [vmem:[#allocation13_spill] sm:$0xff] }
 0x3ad   : > { %v4120_v34 = vpop.permute.xlu1 %4119  ;;  %v4114_v44 = vpop.permute.xlu0 %4113 }
 0x3ae   : > { %4203 = vst.msk [vmem:[#allocation2 + $0x68] sm:$0xff] %vm4189_vm1, %v4120_v34  ;;  %4200 = vst.msk [vmem:[#allocation2 + $0x50] sm:$0xff] %vm4189_vm1, %v4114_v44 }
 0x3af   : > { %4390 = vrot.lane.b32.xlu1 %v14228_v26, %s7626_s10  ;;  %4384 = vrot.lane.b32.xlu0 %v14229_v24, %s7626_s10  ;;  %v14235_v26 = vld [vmem:[#allocation8_spill] sm:$0xff] }
 0x3b1   : > { %v4124_v10 = vpop.permute.xlu1 %4123  ;;  %v4118_v2 = vpop.permute.xlu0 %4117 }
 0x3b2   : > { %4205 = vst.msk [vmem:[#allocation2 + $0x78] sm:$0xff] %vm4189_vm1, %v4124_v10  ;;  %4202 = vst.msk [vmem:[#allocation2 + $0x60] sm:$0xff] %vm4189_vm1, %v4118_v2 }
 0x3b3   : > { %4394 = vrot.lane.b32.xlu1 %v14230_v45, %s7626_s10  ;;  %4388 = vrot.lane.b32.xlu0 %v14231_v52, %s7626_s10  ;;  %v14234_v45 = vld [vmem:[#allocation9_spill] sm:$0xff] }
 0x3b5   : > { %v4128_v34 = vpop.permute.xlu1 %4127  ;;  %v4122_v44 = vpop.permute.xlu0 %4121 }
 0x3b6   : > { %4207 = vst.msk [vmem:[#allocation2 + $0x88] sm:$0xff] %vm4189_vm1, %v4128_v34  ;;  %4204 = vst.msk [vmem:[#allocation2 + $0x70] sm:$0xff] %vm4189_vm1, %v4122_v44 }
 0x3b7   : > { %4398 = vrot.lane.b32.xlu1 %v14232_v22, %s7626_s10  ;;  %4392 = vrot.lane.b32.xlu0 %v14233_v21, %s7626_s10  ;;  %v14236_v22 = vld [vmem:[#allocation21_spill] sm:$0xff]  ;;  %v14237_v21 = vld [vmem:[#allocation50_spill] sm:$0xff] }
 0x3b9   : > { %v4132_v10 = vpop.permute.xlu1 %4131  ;;  %v4126_v2 = vpop.permute.xlu0 %4125 }
 0x3ba   : > { %4209 = vst.msk [vmem:[#allocation2 + $0x98] sm:$0xff] %vm4189_vm1, %v4132_v10  ;;  %4206 = vst.msk [vmem:[#allocation2 + $0x80] sm:$0xff] %vm4189_vm1, %v4126_v2 }
 0x3bb   : > { %4402 = vrot.lane.b32.xlu1 %v14234_v45, %s7626_s10  ;;  %4396 = vrot.lane.b32.xlu0 %v14235_v26, %s7626_s10  ;;  %v14238_v26 = vld [vmem:[#allocation34_spill] sm:$0xff] }
 0x3bd   : > { %v4136_v34 = vpop.permute.xlu1 %4135  ;;  %v4130_v44 = vpop.permute.xlu0 %4129 }
 0x3be   : > { %4211 = vst.msk [vmem:[#allocation2 + $0xa8] sm:$0xff] %vm4189_vm1, %v4136_v34  ;;  %4208 = vst.msk [vmem:[#allocation2 + $0x90] sm:$0xff] %vm4189_vm1, %v4130_v44 }
 0x3bf   : > { %4406 = vrot.lane.b32.xlu1 %v14236_v22, %s7626_s10  ;;  %4400 = vrot.lane.b32.xlu0 %v14237_v21, %s7626_s10  ;;  %v14240_v22 = vld [vmem:[#allocation27_spill] sm:$0xff] }
 0x3c1   : > { %v4140_v10 = vpop.permute.xlu1 %4139  ;;  %v4134_v2 = vpop.permute.xlu0 %4133 }
 0x3c2   : > { %4213 = vst.msk [vmem:[#allocation2 + $0xb8] sm:$0xff] %vm4189_vm1, %v4140_v10  ;;  %4210 = vst.msk [vmem:[#allocation2 + $0xa0] sm:$0xff] %vm4189_vm1, %v4134_v2  ;;  %v14241_v10 = vld [vmem:[#allocation60_spill] sm:$0xff]  ;;  %v4358_v2 = vshrl.u32 %v11182_v40, 16 }
 0x3c3   : > { %4410 = vrot.lane.b32.xlu1 %v14238_v26, %s7626_s10  ;;  %4404 = vrot.lane.b32.xlu0 %v14239_v30, %s7626_s10  ;;  %v4361_v26 = vshll.u32 %v11182_v40, 16 }
 0x3c5   : > { %v4144_v34 = vpop.permute.xlu1 %4143  ;;  %v4138_v44 = vpop.permute.xlu0 %4137  ;;  %v4363_v30 = vrot.slane %v4361_v26, 5  ;;  %v14246_v26 = vld [vmem:[#allocation44_spill] sm:$0xff] }
 0x3c6   : > { %4215 = vst.msk [vmem:[#allocation2 + $0xc8] sm:$0xff] %vm4189_vm1, %v4144_v34  ;;  %4212 = vst.msk [vmem:[#allocation2 + $0xb0] sm:$0xff] %vm4189_vm1, %v4138_v44  ;;  %v14242_v34 = vld [vmem:[#allocation32_spill] sm:$0xff]  ;;  %v14243_v44 = vld [vmem:[#allocation31_spill] sm:$0xff] }
 0x3c7   : > { %4414 = vrot.lane.b32.xlu1 %v14240_v22, %s7626_s10  ;;  %4408 = vrot.lane.b32.xlu0 %v14241_v10, %s7626_s10  ;;  %v4360_v22 = vrot.slane %v4358_v2, 4  ;;  %v11277_v10 = vld [vmem:[%s7735_s11 + $0x2c4] sm:$0x1] }
 0x3c8   : > { %v4367_v54 = vshll.u32 %v11277_v10, 16 }
 0x3c9   : > { %v4148_v52 = vpop.permute.xlu1 %4147  ;;  %v4142_v57 = vpop.permute.xlu0 %4141 }
 0x3ca   : > { %4217 = vst.msk [vmem:[#allocation2 + $0xd8] sm:$0xff] %vm4189_vm1, %v4148_v52  ;;  %4214 = vst.msk [vmem:[#allocation2 + $0xc0] sm:$0xff] %vm4189_vm1, %v4142_v57  ;;  %v14244_v52 = vld [vmem:[#allocation35_spill] sm:$0xff]  ;;  %v14245_v57 = vld [vmem:[#allocation72_spill] sm:$0xff] }
 0x3cb   : > { %4418 = vrot.lane.b32.xlu1 %v14242_v34, %s7626_s10  ;;  %4412 = vrot.lane.b32.xlu0 %v14243_v44, %s7626_s10  ;;  %v4364_v34 = vor.u32 %v4363_v30, %v4360_v22  ;;  %v14248_v22 = vld [vmem:[#allocation42_spill] sm:$0xff]  ;;  %v11298_v30 = vcombine.low %v10875_v58, %v10920_v11  ;;  %v14252_v11 = vld [vmem:[#allocation41_spill] sm:$0xff] }
 0x3cd   : > { %v4152_v45 = vpop.permute.xlu1 %4151  ;;  %v4146_v20 = vpop.permute.xlu0 %4145  ;;  %14249 = vst [vmem:[#allocation70_spill] sm:$0xff] %v11298_v30 }
 0x3ce   : > { %4219 = vst.msk [vmem:[#allocation2 + $0xe8] sm:$0xff] %vm4189_vm1, %v4152_v45  ;;  %4216 = vst.msk [vmem:[#allocation2 + $0xd0] sm:$0xff] %vm4189_vm1, %v4146_v20  ;;  %v14247_v20 = vld [vmem:[#allocation37_spill] sm:$0xff]  ;;  %v4365_v45 = vrot.slane %v4364_v34, 4 }
 0x3cf   : > { %4422 = vrot.lane.b32.xlu1 %v14244_v52, %s7626_s10  ;;  %4416 = vrot.lane.b32.xlu0 %v14245_v57, %s7626_s10  ;;  %v4369_v52 = vrot.slane %v4367_v54, 5 }
 0x3d1   : > { %v4156_v44 = vpop.permute.xlu1 %4155  ;;  %v4150_v2 = vpop.permute.xlu0 %4149  ;;  %v11304_v34 = vsel %vm7748_vm2, %v4365_v45, %v4369_v52 }
 0x3d2   : > { %4221 = vst.msk [vmem:[#allocation2 + $0xf8] sm:$0xff] %vm4189_vm1, %v4156_v44  ;;  %4218 = vst.msk [vmem:[#allocation2 + $0xe0] sm:$0xff] %vm4189_vm1, %v4150_v2  ;;  %v14250_v44 = vld [vmem:[#allocation96_spill] sm:$0xff]  ;;  %v11312_v58 = vcombine.low %v10903_v33, %v11304_v34  ;;  %v11328_v33 = vcombine.low %v10924_v23, %v10899_v4  ;;  %v14256_v4 = vld [vmem:[#allocation54_spill] sm:$0xff] }
 0x3d3   : > { %4426 = vrot.lane.b32.xlu1 %v14246_v26, %s7626_s10  ;;  %4420 = vrot.lane.b32.xlu0 %v14247_v20, %s7626_s10  ;;  %v14257_v23 = vld [vmem:[#allocation128_spill] sm:$0xff]  ;;  %v14266_v26 = vld [vmem:[#allocation62_spill] sm:$0xff] }
 0x3d4   : > { %14251 = vst [vmem:[#allocation117_spill] sm:$0xff] %v11312_v58  ;;  %14254 = vst [vmem:[#allocation150_spill] sm:$0xff] %v11328_v33 }
 0x3d5   : > { %v4231_v24 = vpop.permute.xlu1 %4230  ;;  %v4154_v57 = vpop.permute.xlu0 %4153 }
 0x3d6   : > { %4326 = vst.msk [vmem:[#allocation2 + $0x8] sm:$0xff] %vm4324_vm3, %v4231_v24  ;;  %v11318_v24 = vcombine.low %v10895_v62, %v10862_v28  ;;  %v14255_v28 = vld [vmem:[#allocation45_spill] sm:$0xff] }
 0x3d7   : > { %4220 = vst.msk [vmem:[#allocation2 + $0xf0] sm:$0xff] %vm4189_vm1, %v4154_v57  ;;  %4430 = vrot.lane.b32.xlu1 %v14248_v22, %s7626_s10  ;;  %4424 = vrot.lane.b32.xlu0 %v14250_v44, %s7626_s10  ;;  %v14264_v22 = vld [vmem:[#allocation57_spill] sm:$0xff]  ;;  %v14269_v44 = vld [vmem:[#allocation187_spill] sm:$0xff]  ;;  %vm6306_vm1 = vcmask 851744  }
 0x3d8   : > { %14253 = vst [vmem:[#allocation82_spill] sm:$0xff] %v11318_v24 }
 0x3d9   : > { %v4235_v54 = vpop.permute.xlu1 %4234  ;;  %v4229_v2 = vpop.permute.xlu0 %4228 }
 0x3da   : > { %4328 = vst.msk [vmem:[#allocation2 + $0x18] sm:$0xff] %vm4324_vm3, %v4235_v54  ;;  %4325 = vst.msk [vmem:[#allocation2] sm:$0xff] %vm4324_vm3, %v4229_v2 }
 0x3db   : > { %4434 = vrot.lane.b32.xlu1 %v11298_v30, %s7626_s10  ;;  %4428 = vrot.lane.b32.xlu0 %v14252_v11, %s7626_s10  ;;  %v14265_v11 = vld [vmem:[#allocation168_spill] sm:$0xff]  ;;  %v14307_v30 = vld [vmem:[#allocation166_spill] sm:$0xff] }
 0x3dd   : > { %v4239_v52 = vpop.permute.xlu1 %4238  ;;  %v4233_v57 = vpop.permute.xlu0 %4232 }
 0x3de   : > { %4330 = vst.msk [vmem:[#allocation2 + $0x28] sm:$0xff] %vm4324_vm3, %v4239_v52  ;;  %4327 = vst.msk [vmem:[#allocation2 + $0x10] sm:$0xff] %vm4324_vm3, %v4233_v57 }
 0x3df   : > { %4438 = vrot.lane.b32.xlu1 %v11312_v58, %s7626_s10  ;;  %4432 = vrot.lane.b32.xlu0 %v11318_v24, %s7626_s10  ;;  %v14272_v58 = vld [vmem:[#allocation78_spill] sm:$0xff] }
 0x3e1   : > { %v4243_v45 = vpop.permute.xlu1 %4242  ;;  %v4237_v54 = vpop.permute.xlu0 %4236 }
 0x3e2   : > { %4332 = vst.msk [vmem:[#allocation2 + $0x38] sm:$0xff] %vm4324_vm3, %v4243_v45  ;;  %4329 = vst.msk [vmem:[#allocation2 + $0x20] sm:$0xff] %vm4324_vm3, %v4237_v54  ;;  %v14258_v45 = vld [vmem:[#allocation47_spill] sm:$0xff]  ;;  %v14259_v54 = vld [vmem:[#allocation52_spill] sm:$0xff] }
 0x3e3   : > { %4517 = vrot.lane.b32.xlu1 %v14255_v28, %s7627_s12  ;;  %4436 = vrot.lane.b32.xlu0 %v11328_v33, %s7626_s10  ;;  %s7639_s10 = smov 104  }
 0x3e5   : > { %v4247_v62 = vpop.permute.xlu1 %4246  ;;  %v4241_v2 = vpop.permute.xlu0 %4240 }
 0x3e6   : > { %4334 = vst.msk [vmem:[#allocation2 + $0x48] sm:$0xff] %vm4324_vm3, %v4247_v62  ;;  %4331 = vst.msk [vmem:[#allocation2 + $0x30] sm:$0xff] %vm4324_vm3, %v4241_v2  ;;  %v14260_v2 = vld [vmem:[#allocation51_spill] sm:$0xff] }
 0x3e7   : > { %4521 = vrot.lane.b32.xlu1 %v14256_v4, %s7627_s12  ;;  %4515 = vrot.lane.b32.xlu0 %v14257_v23, %s7627_s12  ;;  %v14261_v4 = vld [vmem:[#allocation148_spill] sm:$0xff] }
 0x3e9   : > { %v4251_v52 = vpop.permute.xlu1 %4250  ;;  %v4245_v57 = vpop.permute.xlu0 %4244 }
 0x3ea   : > { %4336 = vst.msk [vmem:[#allocation2 + $0x58] sm:$0xff] %vm4324_vm3, %v4251_v52  ;;  %4333 = vst.msk [vmem:[#allocation2 + $0x40] sm:$0xff] %vm4324_vm3, %v4245_v57  ;;  %v14262_v57 = vld [vmem:[#allocation55_spill] sm:$0xff] }
 0x3eb   : > { %4525 = vrot.lane.b32.xlu1 %v14258_v45, %s7627_s12  ;;  %4519 = vrot.lane.b32.xlu0 %v14259_v54, %s7627_s12  ;;  %v14263_v54 = vld [vmem:[#allocation64_spill] sm:$0xff] }
 0x3ed   : > { %v4255_v28 = vpop.permute.xlu1 %4254  ;;  %v4249_v62 = vpop.permute.xlu0 %4248 }
 0x3ee   : > { %4338 = vst.msk [vmem:[#allocation2 + $0x68] sm:$0xff] %vm4324_vm3, %v4255_v28  ;;  %4335 = vst.msk [vmem:[#allocation2 + $0x50] sm:$0xff] %vm4324_vm3, %v4249_v62 }
 0x3ef   : > { %4529 = vrot.lane.b32.xlu1 %v14260_v2, %s7627_s12  ;;  %4523 = vrot.lane.b32.xlu0 %v14261_v4, %s7627_s12  ;;  %v14273_v2 = vld [vmem:[#allocation194_spill] sm:$0xff] }
 0x3f1   : > { %v4259_v23 = vpop.permute.xlu1 %4258  ;;  %v4253_v52 = vpop.permute.xlu0 %4252 }
 0x3f2   : > { %4340 = vst.msk [vmem:[#allocation2 + $0x78] sm:$0xff] %vm4324_vm3, %v4259_v23  ;;  %4337 = vst.msk [vmem:[#allocation2 + $0x60] sm:$0xff] %vm4324_vm3, %v4253_v52 }
 0x3f3   : > { %4533 = vrot.lane.b32.xlu1 %v14262_v57, %s7627_s12  ;;  %4527 = vrot.lane.b32.xlu0 %v14263_v54, %s7627_s12  ;;  %v14267_v57 = vld [vmem:[#allocation81_spill] sm:$0xff]  ;;  %v14303_v54 = vld [vmem:[#allocation136_spill] sm:$0xff] }
 0x3f5   : > { %v4263_v28 = vpop.permute.xlu1 %4262  ;;  %v4257_v62 = vpop.permute.xlu0 %4256 }
 0x3f6   : > { %4342 = vst.msk [vmem:[#allocation2 + $0x88] sm:$0xff] %vm4324_vm3, %v4263_v28  ;;  %4339 = vst.msk [vmem:[#allocation2 + $0x70] sm:$0xff] %vm4324_vm3, %v4257_v62 }
 0x3f7   : > { %4537 = vrot.lane.b32.xlu1 %v14264_v22, %s7627_s12  ;;  %4531 = vrot.lane.b32.xlu0 %v14265_v11, %s7627_s12  ;;  %v14268_v22 = vld [vmem:[#allocation67_spill] sm:$0xff]  ;;  %v14271_v11 = vld [vmem:[#allocation65_spill] sm:$0xff] }
 0x3f9   : > { %v4267_v23 = vpop.permute.xlu1 %4266  ;;  %v4261_v52 = vpop.permute.xlu0 %4260 }
 0x3fa   : > { %4344 = vst.msk [vmem:[#allocation2 + $0x98] sm:$0xff] %vm4324_vm3, %v4267_v23  ;;  %4341 = vst.msk [vmem:[#allocation2 + $0x80] sm:$0xff] %vm4324_vm3, %v4261_v52 }
 0x3fb   : > { %4541 = vrot.lane.b32.xlu1 %v14266_v26, %s7627_s12  ;;  %4535 = vrot.lane.b32.xlu0 %v14267_v57, %s7627_s12  ;;  %v14270_v57 = vld [vmem:[#allocation61_spill] sm:$0xff] }
 0x3fc   : > { %v14310_v26 = vld [vmem:[#allocation165_spill] sm:$0xff] }
 0x3fd   : > { %v4271_v28 = vpop.permute.xlu1 %4270  ;;  %v4265_v62 = vpop.permute.xlu0 %4264 }
 0x3fe   : > { %4346 = vst.msk [vmem:[#allocation2 + $0xa8] sm:$0xff] %vm4324_vm3, %v4271_v28  ;;  %4343 = vst.msk [vmem:[#allocation2 + $0x90] sm:$0xff] %vm4324_vm3, %v4265_v62 }
 0x3ff   : > { %4545 = vrot.lane.b32.xlu1 %v14268_v22, %s7627_s12  ;;  %4539 = vrot.lane.b32.xlu0 %v14269_v44, %s7627_s12  ;;  %v14275_v22 = vld [vmem:[#allocation90_spill] sm:$0xff]  ;;  %v14314_v44 = vld [vmem:[#allocation196_spill] sm:$0xff] }
 0x401   : > { %v4275_v23 = vpop.permute.xlu1 %4274  ;;  %v4269_v52 = vpop.permute.xlu0 %4268 }
 0x402   : > { %4348 = vst.msk [vmem:[#allocation2 + $0xb8] sm:$0xff] %vm4324_vm3, %v4275_v23  ;;  %4345 = vst.msk [vmem:[#allocation2 + $0xa0] sm:$0xff] %vm4324_vm3, %v4269_v52 }
 0x403   : > { %4549 = vrot.lane.b32.xlu1 %v14270_v57, %s7627_s12  ;;  %4543 = vrot.lane.b32.xlu0 %v14271_v11, %s7627_s12  ;;  %v14274_v57 = vld [vmem:[#allocation103_spill] sm:$0xff] }
 0x405   : > { %v4279_v28 = vpop.permute.xlu1 %4278  ;;  %v4273_v62 = vpop.permute.xlu0 %4272 }
 0x406   : > { %4350 = vst.msk [vmem:[#allocation2 + $0xc8] sm:$0xff] %vm4324_vm3, %v4279_v28  ;;  %4347 = vst.msk [vmem:[#allocation2 + $0xb0] sm:$0xff] %vm4324_vm3, %v4273_v62 }
 0x407   : > { %4553 = vrot.lane.b32.xlu1 %v14272_v58, %s7627_s12  ;;  %4547 = vrot.lane.b32.xlu0 %v14273_v2, %s7627_s12  ;;  %v14276_v58 = vld [vmem:[#allocation73_spill] sm:$0xff] }
 0x408   : > { %v14277_v2 = vld [vmem:[#allocation205_spill] sm:$0xff] }
 0x409   : > { %v4283_v23 = vpop.permute.xlu1 %4282  ;;  %v4277_v52 = vpop.permute.xlu0 %4276 }
 0x40a   : > { %4352 = vst.msk [vmem:[#allocation2 + $0xd8] sm:$0xff] %vm4324_vm3, %v4283_v23  ;;  %4349 = vst.msk [vmem:[#allocation2 + $0xc0] sm:$0xff] %vm4324_vm3, %v4277_v52 }
 0x40b   : > { %4557 = vrot.lane.b32.xlu1 %v14274_v57, %s7627_s12  ;;  %4551 = vrot.lane.b32.xlu0 %v14275_v22, %s7627_s12  ;;  %v14278_v22 = vld [vmem:[#allocation85_spill] sm:$0xff]  ;;  %v14305_v57 = vld [vmem:[#allocation139_spill] sm:$0xff] }
 0x40d   : > { %v4287_v28 = vpop.permute.xlu1 %4286  ;;  %v4281_v62 = vpop.permute.xlu0 %4280 }
 0x40e   : > { %4354 = vst.msk [vmem:[#allocation2 + $0xe8] sm:$0xff] %vm4324_vm3, %v4287_v28  ;;  %4351 = vst.msk [vmem:[#allocation2 + $0xd0] sm:$0xff] %vm4324_vm3, %v4281_v62  ;;  %v14279_v28 = vld [vmem:[#allocation100_spill] sm:$0xff]  ;;  %v7221_v62 = vrot.slane %v11182_v40, 9 }
 0x40f   : > { %4561 = vrot.lane.b32.xlu1 %v14276_v58, %s7627_s12  ;;  %4555 = vrot.lane.b32.xlu0 %v14277_v2, %s7627_s12  ;;  %v4508_v58 = vrot.slane %v11277_v10, 5 }
 0x411   : > { %v4291_v23 = vpop.permute.xlu1 %4290  ;;  %v4285_v52 = vpop.permute.xlu0 %4284 }
 0x412   : > { %4356 = vst.msk [vmem:[#allocation2 + $0xf8] sm:$0xff] %vm4324_vm3, %v4291_v23  ;;  %4353 = vst.msk [vmem:[#allocation2 + $0xe0] sm:$0xff] %vm4324_vm3, %v4285_v52  ;;  %v14280_v23 = vld [vmem:[#allocation97_spill] sm:$0xff]  ;;  %v11416_v52 = vcombine.low %v11024_v6, %v11077_v37 }
 0x413   : > { %4565 = vrot.lane.b32.xlu1 %v14278_v22, %s7627_s12  ;;  %4559 = vrot.lane.b32.xlu0 %v14279_v28, %s7627_s12  ;;  %v14282_v22 = vld [vmem:[#allocation79_spill] sm:$0xff]  ;;  %v11422_v28 = vsel %vm8431_vm5, %v7221_v62, %v4508_v58  ;;  %v14284_v37 = vld [vmem:[#allocation109_spill] sm:$0xff] }
 0x414   : > { %14281 = vst [vmem:[#allocation204_spill] sm:$0xff] %v11416_v52  ;;  %v11430_v6 = vcombine.low %v11056_v47, %v11422_v28  ;;  %v11446_v47 = vcombine.low %v11081_v49, %v11052_v3  ;;  %v14288_v3 = vld [vmem:[#allocation113_spill] sm:$0xff]  ;;  %v14289_v49 = vld [vmem:[#allocation134_spill] sm:$0xff] }
 0x415   : > { %v4379_v33 = vpop.permute.xlu1 %4378  ;;  %v4289_v20 = vpop.permute.xlu0 %4288 }
 0x416   : > { %4474 = vst.msk [vmem:[#allocation2 + $0x8] sm:$0xff] %vm4472_vm4, %v4379_v33  ;;  %14283 = vst [vmem:[#allocation107_spill] sm:$0xff] %v11430_v6 }
 0x417   : > { %4355 = vst.msk [vmem:[#allocation2 + $0xf0] sm:$0xff] %vm4324_vm3, %v4289_v20  ;;  %4569 = vrot.lane.b32.xlu1 %v14280_v23, %s7627_s12  ;;  %4563 = vrot.lane.b32.xlu0 %v14282_v22, %s7627_s12  ;;  %v11436_v20 = vcombine.low %v11048_v55, %v11020_v50  ;;  %14286 = vst [vmem:[#allocation10_spill] sm:$0xff] %v11446_v47  ;;  %v14287_v50 = vld [vmem:[#allocation122_spill] sm:$0xff]  ;;  %v14296_v23 = vld [vmem:[#allocation115_spill] sm:$0xff]  ;;  %vm6442_vm3 = vcmask 884544  }
 0x418   : > { %v14298_v22 = vld [vmem:[#allocation133_spill] sm:$0xff] }
 0x419   : > { %v4383_v10 = vpop.permute.xlu1 %4382  ;;  %v4377_v11 = vpop.permute.xlu0 %4376  ;;  %14285 = vst [vmem:[#allocation108_spill] sm:$0xff] %v11436_v20 }
 0x41a   : > { %4476 = vst.msk [vmem:[#allocation2 + $0x18] sm:$0xff] %vm4472_vm4, %v4383_v10  ;;  %4473 = vst.msk [vmem:[#allocation2] sm:$0xff] %vm4472_vm4, %v4377_v11 }
 0x41b   : > { %4573 = vrot.lane.b32.xlu1 %v11416_v52, %s7627_s12  ;;  %4567 = vrot.lane.b32.xlu0 %v14284_v37, %s7627_s12  ;;  %v14297_v37 = vld [vmem:[#allocation159_spill] sm:$0xff]  ;;  %v14306_v52 = vld [vmem:[#allocation146_spill] sm:$0xff] }
 0x41d   : > { %v4387_v58 = vpop.permute.xlu1 %4386  ;;  %v4381_v33 = vpop.permute.xlu0 %4380 }
 0x41e   : > { %4478 = vst.msk [vmem:[#allocation2 + $0x28] sm:$0xff] %vm4472_vm4, %v4387_v58  ;;  %4475 = vst.msk [vmem:[#allocation2 + $0x10] sm:$0xff] %vm4472_vm4, %v4381_v33 }
 0x41f   : > { %4577 = vrot.lane.b32.xlu1 %v11430_v6, %s7627_s12  ;;  %4571 = vrot.lane.b32.xlu0 %v11436_v20, %s7627_s12  ;;  %v14299_v6 = vld [vmem:[#allocation94_spill] sm:$0xff] }
 0x421   : > { %v4391_v11 = vpop.permute.xlu1 %4390  ;;  %v4385_v62 = vpop.permute.xlu0 %4384 }
 0x422   : > { %4480 = vst.msk [vmem:[#allocation2 + $0x38] sm:$0xff] %vm4472_vm4, %v4391_v11  ;;  %4477 = vst.msk [vmem:[#allocation2 + $0x20] sm:$0xff] %vm4472_vm4, %v4385_v62  ;;  %v14290_v11 = vld [vmem:[#allocation91_spill] sm:$0xff]  ;;  %v14291_v62 = vld [vmem:[#allocation116_spill] sm:$0xff] }
 0x423   : > { %4649 = vrot.lane.b32.xlu1 %v14287_v50, %s7628_s13  ;;  %4575 = vrot.lane.b32.xlu0 %v11446_v47, %s7627_s12  ;;  %v14302_v47 = vld [vmem:[#allocation176_spill] sm:$0xff] }
 0x425   : > { %v4395_v55 = vpop.permute.xlu1 %4394  ;;  %v4389_v10 = vpop.permute.xlu0 %4388 }
 0x426   : > { %4482 = vst.msk [vmem:[#allocation2 + $0x48] sm:$0xff] %vm4472_vm4, %v4395_v55  ;;  %4479 = vst.msk [vmem:[#allocation2 + $0x30] sm:$0xff] %vm4472_vm4, %v4389_v10  ;;  %v14292_v10 = vld [vmem:[#allocation105_spill] sm:$0xff] }
 0x427   : > { %4653 = vrot.lane.b32.xlu1 %v14288_v3, %s7628_s13  ;;  %4647 = vrot.lane.b32.xlu0 %v14289_v49, %s7628_s13  ;;  %v14293_v3 = vld [vmem:[#allocation83_spill] sm:$0xff] }
 0x429   : > { %v4399_v58 = vpop.permute.xlu1 %4398  ;;  %v4393_v33 = vpop.permute.xlu0 %4392 }
 0x42a   : > { %4484 = vst.msk [vmem:[#allocation2 + $0x58] sm:$0xff] %vm4472_vm4, %v4399_v58  ;;  %4481 = vst.msk [vmem:[#allocation2 + $0x40] sm:$0xff] %vm4472_vm4, %v4393_v33  ;;  %v14294_v33 = vld [vmem:[#allocation125_spill] sm:$0xff] }
 0x42b   : > { %4657 = vrot.lane.b32.xlu1 %v14290_v11, %s7628_s13  ;;  %4651 = vrot.lane.b32.xlu0 %v14291_v62, %s7628_s13  ;;  %v14295_v62 = vld [vmem:[#allocation89_spill] sm:$0xff] }
 0x42d   : > { %v4403_v50 = vpop.permute.xlu1 %4402  ;;  %v4397_v55 = vpop.permute.xlu0 %4396 }
 0x42e   : > { %4486 = vst.msk [vmem:[#allocation2 + $0x68] sm:$0xff] %vm4472_vm4, %v4403_v50  ;;  %4483 = vst.msk [vmem:[#allocation2 + $0x50] sm:$0xff] %vm4472_vm4, %v4397_v55 }
 0x42f   : > { %4661 = vrot.lane.b32.xlu1 %v14292_v10, %s7628_s13  ;;  %4655 = vrot.lane.b32.xlu0 %v14293_v3, %s7628_s13  ;;  %v14301_v10 = vld [vmem:[#allocation130_spill] sm:$0xff] }
 0x431   : > { %v4407_v49 = vpop.permute.xlu1 %4406  ;;  %v4401_v58 = vpop.permute.xlu0 %4400 }
 0x432   : > { %4488 = vst.msk [vmem:[#allocation2 + $0x78] sm:$0xff] %vm4472_vm4, %v4407_v49  ;;  %4485 = vst.msk [vmem:[#allocation2 + $0x60] sm:$0xff] %vm4472_vm4, %v4401_v58 }
 0x433   : > { %4665 = vrot.lane.b32.xlu1 %v14294_v33, %s7628_s13  ;;  %4659 = vrot.lane.b32.xlu0 %v14295_v62, %s7628_s13 }
 0x435   : > { %v4411_v50 = vpop.permute.xlu1 %4410  ;;  %v4405_v55 = vpop.permute.xlu0 %4404 }
 0x436   : > { %4490 = vst.msk [vmem:[#allocation2 + $0x88] sm:$0xff] %vm4472_vm4, %v4411_v50  ;;  %4487 = vst.msk [vmem:[#allocation2 + $0x70] sm:$0xff] %vm4472_vm4, %v4405_v55 }
 0x437   : > { %4669 = vrot.lane.b32.xlu1 %v14296_v23, %s7628_s13  ;;  %4663 = vrot.lane.b32.xlu0 %v14297_v37, %s7628_s13  ;;  %v14300_v23 = vld [vmem:[#allocation132_spill] sm:$0xff] }
 0x439   : > { %v4415_v49 = vpop.permute.xlu1 %4414  ;;  %v4409_v58 = vpop.permute.xlu0 %4408 }
 0x43a   : > { %4492 = vst.msk [vmem:[#allocation2 + $0x98] sm:$0xff] %vm4472_vm4, %v4415_v49  ;;  %4489 = vst.msk [vmem:[#allocation2 + $0x80] sm:$0xff] %vm4472_vm4, %v4409_v58 }
 0x43b   : > { %4673 = vrot.lane.b32.xlu1 %v14298_v22, %s7628_s13  ;;  %4667 = vrot.lane.b32.xlu0 %v14299_v6, %s7628_s13 }
 0x43d   : > { %v4419_v50 = vpop.permute.xlu1 %4418  ;;  %v4413_v55 = vpop.permute.xlu0 %4412 }
 0x43e   : > { %4494 = vst.msk [vmem:[#allocation2 + $0xa8] sm:$0xff] %vm4472_vm4, %v4419_v50  ;;  %4491 = vst.msk [vmem:[#allocation2 + $0x90] sm:$0xff] %vm4472_vm4, %v4413_v55 }
 0x43f   : > { %4677 = vrot.lane.b32.xlu1 %v14300_v23, %s7628_s13  ;;  %4671 = vrot.lane.b32.xlu0 %v14301_v10, %s7628_s13  ;;  %v14304_v23 = vld [vmem:[#allocation121_spill] sm:$0xff] }
 0x441   : > { %v4423_v49 = vpop.permute.xlu1 %4422  ;;  %v4417_v58 = vpop.permute.xlu0 %4416 }
 0x442   : > { %4496 = vst.msk [vmem:[#allocation2 + $0xb8] sm:$0xff] %vm4472_vm4, %v4423_v49  ;;  %4493 = vst.msk [vmem:[#allocation2 + $0xa0] sm:$0xff] %vm4472_vm4, %v4417_v58 }
 0x443   : > { %4681 = vrot.lane.b32.xlu1 %v14302_v47, %s7628_s13  ;;  %4675 = vrot.lane.b32.xlu0 %v14303_v54, %s7628_s13 }
 0x445   : > { %v4427_v50 = vpop.permute.xlu1 %4426  ;;  %v4421_v55 = vpop.permute.xlu0 %4420 }
 0x446   : > { %4498 = vst.msk [vmem:[#allocation2 + $0xc8] sm:$0xff] %vm4472_vm4, %v4427_v50  ;;  %4495 = vst.msk [vmem:[#allocation2 + $0xb0] sm:$0xff] %vm4472_vm4, %v4421_v55 }
 0x447   : > { %4685 = vrot.lane.b32.xlu1 %v14304_v23, %s7628_s13  ;;  %4679 = vrot.lane.b32.xlu0 %v14305_v57, %s7628_s13  ;;  %v14308_v23 = vld [vmem:[#allocation110_spill] sm:$0xff] }
 0x449   : > { %v4431_v49 = vpop.permute.xlu1 %4430  ;;  %v4425_v58 = vpop.permute.xlu0 %4424 }
 0x44a   : > { %4500 = vst.msk [vmem:[#allocation2 + $0xd8] sm:$0xff] %vm4472_vm4, %v4431_v49  ;;  %4497 = vst.msk [vmem:[#allocation2 + $0xc0] sm:$0xff] %vm4472_vm4, %v4425_v58  ;;  %v14309_v49 = vld [vmem:[#allocation145_spill] sm:$0xff] }
 0x44b   : > { %4689 = vrot.lane.b32.xlu1 %v14306_v52, %s7628_s13  ;;  %4683 = vrot.lane.b32.xlu0 %v14307_v30, %s7628_s13 }
 0x44d   : > { %v4435_v50 = vpop.permute.xlu1 %4434  ;;  %v4429_v55 = vpop.permute.xlu0 %4428 }
 0x44e   : > { %4502 = vst.msk [vmem:[#allocation2 + $0xe8] sm:$0xff] %vm4472_vm4, %v4435_v50  ;;  %4499 = vst.msk [vmem:[#allocation2 + $0xd0] sm:$0xff] %vm4472_vm4, %v4429_v55  ;;  %v14311_v50 = vld [vmem:[#allocation152_spill] sm:$0xff] }
 0x44f   : > { %4693 = vrot.lane.b32.xlu1 %v14308_v23, %s7628_s13  ;;  %4687 = vrot.lane.b32.xlu0 %v14309_v49, %s7628_s13  ;;  %v14312_v23 = vld [vmem:[#allocation104_spill] sm:$0xff] }
 0x451   : > { %v4439_v58 = vpop.permute.xlu1 %4438  ;;  %v4433_v45 = vpop.permute.xlu0 %4432 }
 0x452   : > { %4504 = vst.msk [vmem:[#allocation2 + $0xf8] sm:$0xff] %vm4472_vm4, %v4439_v58  ;;  %4501 = vst.msk [vmem:[#allocation2 + $0xe0] sm:$0xff] %vm4472_vm4, %v4433_v45  ;;  %v14313_v58 = vld [vmem:[#allocation156_spill] sm:$0xff]  ;;  %v11533_v45 = vld [vmem:[%s7735_s11 + $0x2c8] sm:$0xf] }
 0x453   : > { %4697 = vrot.lane.b32.xlu1 %v14310_v26, %s7628_s13  ;;  %4691 = vrot.lane.b32.xlu0 %v14311_v50, %s7628_s13 }
 0x455   : > { %v4518_v55 = vpop.permute.xlu1 %4517  ;;  %v4437_v20 = vpop.permute.xlu0 %4436 }
 0x456   : > { %4613 = vst.msk [vmem:[#allocation2 + $0x8] sm:$0xff] %vm4611_vm6, %v4518_v55  ;;  %v14316_v55 = vld [vmem:[#allocation158_spill] sm:$0xff] }
 0x457   : > { %4503 = vst.msk [vmem:[#allocation2 + $0xf0] sm:$0xff] %vm4472_vm4, %v4437_v20  ;;  %4701 = vrot.lane.b32.xlu1 %v14312_v23, %s7628_s13  ;;  %4695 = vrot.lane.b32.xlu0 %v14313_v58, %s7628_s13  ;;  %v11541_v20 = vcombine.low %v11182_v40, %v11533_v45  ;;  %v14318_v40 = vld [vmem:[#allocation26_spill] sm:$0xff]  ;;  %vm6514_vm4 = vcmask 883712  }
 0x459   : > { %v4522_v24 = vpop.permute.xlu1 %4521  ;;  %v4516_v2 = vpop.permute.xlu0 %4515  ;;  %14315 = vst [vmem:[#allocation14_spill] sm:$0xff] %v11541_v20 }
 0x45a   : > { %4615 = vst.msk [vmem:[#allocation2 + $0x18] sm:$0xff] %vm4611_vm6, %v4522_v24  ;;  %4612 = vst.msk [vmem:[#allocation2] sm:$0xff] %vm4611_vm6, %v4516_v2  ;;  %v14317_v24 = vld [vmem:[#allocation169_spill] sm:$0xff] }
 0x45b   : > { %4705 = vrot.lane.b32.xlu1 %v14314_v44, %s7628_s13  ;;  %4699 = vrot.lane.b32.xlu0 %v14316_v55, %s7628_s13 }
 0x45d   : > { %v4526_v23 = vpop.permute.xlu1 %4525  ;;  %v4520_v4 = vpop.permute.xlu0 %4519 }
 0x45e   : > { %4617 = vst.msk [vmem:[#allocation2 + $0x28] sm:$0xff] %vm4611_vm6, %v4526_v23  ;;  %4614 = vst.msk [vmem:[#allocation2 + $0x10] sm:$0xff] %vm4611_vm6, %v4520_v4  ;;  %v14319_v23 = vld [vmem:[#allocation198_spill] sm:$0xff] }
 0x45f   : > { %4709 = vrot.lane.b32.xlu1 %v11541_v20, %s7628_s13  ;;  %4703 = vrot.lane.b32.xlu0 %v14317_v24, %s7628_s13  ;;  %v14320_v20 = vld [vmem:[#allocation131_spill] sm:$0xff] }
 0x461   : > { %v4530_v2 = vpop.permute.xlu1 %4529  ;;  %v4524_v32 = vpop.permute.xlu0 %4523 }
 0x462   : > { %4619 = vst.msk [vmem:[#allocation2 + $0x38] sm:$0xff] %vm4611_vm6, %v4530_v2  ;;  %4616 = vst.msk [vmem:[#allocation2 + $0x20] sm:$0xff] %vm4611_vm6, %v4524_v32  ;;  %v14321_v2 = vld [vmem:[#allocation18_spill] sm:$0xff] }
 0x463   : > { %4794 = vrot.lane.b32.xlu1 %v14318_v40, %s7629_s14  ;;  %4707 = vrot.lane.b32.xlu0 %v14319_v23, %s7628_s13  ;;  %v14322_v40 = vld [vmem:[#allocation36_spill] sm:$0xff]  ;;  %v11620_v23 = vld [vmem:[%s7735_s11 + $0x2cc] sm:$0x1] }
 0x465   : > { %v4534_v4 = vpop.permute.xlu1 %4533  ;;  %v4528_v21 = vpop.permute.xlu0 %4527 }
 0x466   : > { %4621 = vst.msk [vmem:[#allocation2 + $0x48] sm:$0xff] %vm4611_vm6, %v4534_v4  ;;  %4618 = vst.msk [vmem:[#allocation2 + $0x30] sm:$0xff] %vm4611_vm6, %v4528_v21 }
 0x467   : > { %4798 = vrot.lane.b32.xlu1 %v14320_v20, %s7629_s14  ;;  %4792 = vrot.lane.b32.xlu0 %v14321_v2, %s7629_s14  ;;  %v14324_v20 = vld [vmem:[#allocation118_spill] sm:$0xff]  ;;  %v14325_v2 = vld [vmem:[#allocation28_spill] sm:$0xff] }
 0x469   : > { %v4538_v32 = vpop.permute.xlu1 %4537  ;;  %v4532_v7 = vpop.permute.xlu0 %4531 }
 0x46a   : > { %4623 = vst.msk [vmem:[#allocation2 + $0x58] sm:$0xff] %vm4611_vm6, %v4538_v32  ;;  %4620 = vst.msk [vmem:[#allocation2 + $0x40] sm:$0xff] %vm4611_vm6, %v4532_v7 }
 0x46b   : > { %4802 = vrot.lane.b32.xlu1 %v14322_v40, %s7629_s14  ;;  %4796 = vrot.lane.b32.xlu0 %v14323_v0, %s7629_s14  ;;  %v14326_v0 = vld [vmem:[#allocation46_spill] sm:$0xff]  ;;  %v14327_v40 = vld [vmem:[#allocation33_spill] sm:$0xff] }
 0x46d   : > { %v4542_v4 = vpop.permute.xlu1 %4541  ;;  %v4536_v21 = vpop.permute.xlu0 %4535 }
 0x46e   : > { %4625 = vst.msk [vmem:[#allocation2 + $0x68] sm:$0xff] %vm4611_vm6, %v4542_v4  ;;  %4622 = vst.msk [vmem:[#allocation2 + $0x50] sm:$0xff] %vm4611_vm6, %v4536_v21 }
 0x46f   : > { %4806 = vrot.lane.b32.xlu1 %v14324_v20, %s7629_s14  ;;  %4800 = vrot.lane.b32.xlu0 %v14325_v2, %s7629_s14  ;;  %v14328_v20 = vld [vmem:[#allocation112_spill] sm:$0xff]  ;;  %v14329_v2 = vld [vmem:[#allocation38_spill] sm:$0xff] }
 0x471   : > { %v4546_v32 = vpop.permute.xlu1 %4545  ;;  %v4540_v7 = vpop.permute.xlu0 %4539 }
 0x472   : > { %4627 = vst.msk [vmem:[#allocation2 + $0x78] sm:$0xff] %vm4611_vm6, %v4546_v32  ;;  %4624 = vst.msk [vmem:[#allocation2 + $0x60] sm:$0xff] %vm4611_vm6, %v4540_v7 }
 0x473   : > { %4810 = vrot.lane.b32.xlu1 %v14326_v0, %s7629_s14  ;;  %4804 = vrot.lane.b32.xlu0 %v14327_v40, %s7629_s14  ;;  %v14330_v0 = vld [vmem:[#allocation56_spill] sm:$0xff]  ;;  %v14331_v40 = vld [vmem:[#allocation43_spill] sm:$0xff] }
 0x475   : > { %v4550_v4 = vpop.permute.xlu1 %4549  ;;  %v4544_v21 = vpop.permute.xlu0 %4543 }
 0x476   : > { %4629 = vst.msk [vmem:[#allocation2 + $0x88] sm:$0xff] %vm4611_vm6, %v4550_v4  ;;  %4626 = vst.msk [vmem:[#allocation2 + $0x70] sm:$0xff] %vm4611_vm6, %v4544_v21 }
 0x477   : > { %4814 = vrot.lane.b32.xlu1 %v14328_v20, %s7629_s14  ;;  %4808 = vrot.lane.b32.xlu0 %v14329_v2, %s7629_s14  ;;  %v14332_v20 = vld [vmem:[#allocation155_spill] sm:$0xff]  ;;  %v14333_v2 = vld [vmem:[#allocation48_spill] sm:$0xff] }
 0x479   : > { %v4554_v32 = vpop.permute.xlu1 %4553  ;;  %v4548_v7 = vpop.permute.xlu0 %4547 }
 0x47a   : > { %4631 = vst.msk [vmem:[#allocation2 + $0x98] sm:$0xff] %vm4611_vm6, %v4554_v32  ;;  %4628 = vst.msk [vmem:[#allocation2 + $0x80] sm:$0xff] %vm4611_vm6, %v4548_v7 }
 0x47b   : > { %4818 = vrot.lane.b32.xlu1 %v14330_v0, %s7629_s14  ;;  %4812 = vrot.lane.b32.xlu0 %v14331_v40, %s7629_s14  ;;  %v14334_v0 = vld [vmem:[#allocation66_spill] sm:$0xff]  ;;  %v14335_v40 = vld [vmem:[#allocation53_spill] sm:$0xff] }
 0x47d   : > { %v4558_v4 = vpop.permute.xlu1 %4557  ;;  %v4552_v21 = vpop.permute.xlu0 %4551 }
 0x47e   : > { %4633 = vst.msk [vmem:[#allocation2 + $0xa8] sm:$0xff] %vm4611_vm6, %v4558_v4  ;;  %4630 = vst.msk [vmem:[#allocation2 + $0x90] sm:$0xff] %vm4611_vm6, %v4552_v21 }
 0x47f   : > { %4822 = vrot.lane.b32.xlu1 %v14332_v20, %s7629_s14  ;;  %4816 = vrot.lane.b32.xlu0 %v14333_v2, %s7629_s14  ;;  %v14336_v20 = vld [vmem:[#allocation141_spill] sm:$0xff]  ;;  %v14337_v2 = vld [vmem:[#allocation58_spill] sm:$0xff] }
 0x481   : > { %v4562_v32 = vpop.permute.xlu1 %4561  ;;  %v4556_v7 = vpop.permute.xlu0 %4555 }
 0x482   : > { %4635 = vst.msk [vmem:[#allocation2 + $0xb8] sm:$0xff] %vm4611_vm6, %v4562_v32  ;;  %4632 = vst.msk [vmem:[#allocation2 + $0xa0] sm:$0xff] %vm4611_vm6, %v4556_v7  ;;  %v4777_v32 = vshrl.u32 %v11533_v45, 16  ;;  %v4780_v7 = vshll.u32 %v11533_v45, 16 }
 0x483   : > { %4826 = vrot.lane.b32.xlu1 %v14334_v0, %s7629_s14  ;;  %4820 = vrot.lane.b32.xlu0 %v14335_v40, %s7629_s14 }
 0x485   : > { %v4566_v4 = vpop.permute.xlu1 %4565  ;;  %v4560_v21 = vpop.permute.xlu0 %4559 }
 0x486   : > { %4637 = vst.msk [vmem:[#allocation2 + $0xc8] sm:$0xff] %vm4611_vm6, %v4566_v4  ;;  %4634 = vst.msk [vmem:[#allocation2 + $0xb0] sm:$0xff] %vm4611_vm6, %v4560_v21  ;;  %v14338_v4 = vld [vmem:[#allocation63_spill] sm:$0xff]  ;;  %v4779_v21 = vrot.slane %v4777_v32, 4 }
 0x487   : > { %4830 = vrot.lane.b32.xlu1 %v14336_v20, %s7629_s14  ;;  %4824 = vrot.lane.b32.xlu0 %v14337_v2, %s7629_s14  ;;  %v4782_v20 = vrot.slane %v4780_v7, 5  ;;  %v4786_v2 = vshll.u32 %v11620_v23, 16 }
 0x489   : > { %v4570_v0 = vpop.permute.xlu1 %4569  ;;  %v4564_v44 = vpop.permute.xlu0 %4563  ;;  %v4788_v7 = vrot.slane %v4786_v2, 5 }
 0x48a   : > { %4639 = vst.msk [vmem:[#allocation2 + $0xd8] sm:$0xff] %vm4611_vm6, %v4570_v0  ;;  %4636 = vst.msk [vmem:[#allocation2 + $0xc0] sm:$0xff] %vm4611_vm6, %v4564_v44  ;;  %v14339_v0 = vld [vmem:[#allocation129_spill] sm:$0xff]  ;;  %v14340_v44 = vld [vmem:[#allocation68_spill] sm:$0xff] }
 0x48b   : > { %4834 = vrot.lane.b32.xlu1 %v14098_v9, %s7629_s14  ;;  %4828 = vrot.lane.b32.xlu0 %v14338_v4, %s7629_s14  ;;  %v4783_v9 = vor.u32 %v4782_v20, %v4779_v21  ;;  %v14342_v20 = vld [vmem:[#allocation137_spill] sm:$0xff] }
 0x48d   : > { %v4574_v40 = vpop.permute.xlu1 %4573  ;;  %v4568_v26 = vpop.permute.xlu0 %4567 }
 0x48e   : > { %4641 = vst.msk [vmem:[#allocation2 + $0xe8] sm:$0xff] %vm4611_vm6, %v4574_v40  ;;  %4638 = vst.msk [vmem:[#allocation2 + $0xd0] sm:$0xff] %vm4611_vm6, %v4568_v26  ;;  %v14341_v26 = vld [vmem:[#allocation80_spill] sm:$0xff]  ;;  %v4784_v40 = vrot.slane %v4783_v9, 4 }
 0x48f   : > { %4838 = vrot.lane.b32.xlu1 %v14339_v0, %s7629_s14  ;;  %4832 = vrot.lane.b32.xlu0 %v14340_v44, %s7629_s14 }
 0x490   : > { %v4789_v21 = vsel %vm7748_vm2, %v4784_v40, %v4788_v7  ;;  %v14345_v7 = vld [vmem:[#allocation151_spill] sm:$0xff] }
 0x491   : > { %v4578_v4 = vpop.permute.xlu1 %4577  ;;  %v4572_v32 = vpop.permute.xlu0 %4571  ;;  %v11648_v9 = vcombine.low %v11304_v34, %v4789_v21 }
 0x492   : > { %4643 = vst.msk [vmem:[#allocation2 + $0xf8] sm:$0xff] %vm4611_vm6, %v4578_v4  ;;  %4640 = vst.msk [vmem:[#allocation2 + $0xe0] sm:$0xff] %vm4611_vm6, %v4572_v32  ;;  %v14343_v4 = vld [vmem:[#allocation93_spill] sm:$0xff] }
 0x493   : > { %4842 = vrot.lane.b32.xlu1 %v14102_v61, %s7629_s14  ;;  %4836 = vrot.lane.b32.xlu0 %v14341_v26, %s7629_s14  ;;  %14344 = vst [vmem:[#allocation16_spill] sm:$0xff] %v11648_v9 }
 0x495   : > { %v4650_v0 = vpop.permute.xlu1 %4649  ;;  %v4576_v44 = vpop.permute.xlu0 %4575 }
 0x496   : > { %4745 = vst.msk [vmem:[#allocation2 + $0x8] sm:$0xff] %vm4743_vm7, %v4650_v0 }
 0x497   : > { %4642 = vst.msk [vmem:[#allocation2 + $0xf0] sm:$0xff] %vm4611_vm6, %v4576_v44  ;;  %4846 = vrot.lane.b32.xlu1 %v14342_v20, %s7629_s14  ;;  %4840 = vrot.lane.b32.xlu0 %v14343_v4, %s7629_s14 }
 0x499   : > { %v4654_v32 = vpop.permute.xlu1 %4653  ;;  %v4648_v61 = vpop.permute.xlu0 %4647 }
 0x49a   : > { %4747 = vst.msk [vmem:[#allocation2 + $0x18] sm:$0xff] %vm4743_vm7, %v4654_v32  ;;  %4744 = vst.msk [vmem:[#allocation2] sm:$0xff] %vm4743_vm7, %v4648_v61 }
 0x49b   : > { %4850 = vrot.lane.b32.xlu1 %v10934_v53, %s7629_s14  ;;  %4844 = vrot.lane.b32.xlu0 %v14107_v48, %s7629_s14 }
 0x49d   : > { %v4658_v2 = vpop.permute.xlu1 %4657  ;;  %v4652_v0 = vpop.permute.xlu0 %4651 }
 0x49e   : > { %4749 = vst.msk [vmem:[#allocation2 + $0x28] sm:$0xff] %vm4743_vm7, %v4658_v2  ;;  %4746 = vst.msk [vmem:[#allocation2 + $0x10] sm:$0xff] %vm4743_vm7, %v4652_v0 }
 0x49f   : > { %4854 = vrot.lane.b32.xlu1 %v11648_v9, %s7629_s14  ;;  %4848 = vrot.lane.b32.xlu0 %v10887_v8, %s7629_s14 }
 0x4a1   : > { %v4662_v61 = vpop.permute.xlu1 %4661  ;;  %v4656_v44 = vpop.permute.xlu0 %4655 }
 0x4a2   : > { %4751 = vst.msk [vmem:[#allocation2 + $0x38] sm:$0xff] %vm4743_vm7, %v4662_v61  ;;  %4748 = vst.msk [vmem:[#allocation2 + $0x20] sm:$0xff] %vm4743_vm7, %v4656_v44 }
 0x4a3   : > { %4930 = vrot.lane.b32.xlu1 %v14109_v17, %s7630_s15  ;;  %4852 = vrot.lane.b32.xlu0 %v10911_v36, %s7629_s14 }
 0x4a5   : > { %v4666_v34 = vpop.permute.xlu1 %4665  ;;  %v4660_v40 = vpop.permute.xlu0 %4659 }
 0x4a6   : > { %4753 = vst.msk [vmem:[#allocation2 + $0x48] sm:$0xff] %vm4743_vm7, %v4666_v34  ;;  %4750 = vst.msk [vmem:[#allocation2 + $0x30] sm:$0xff] %vm4743_vm7, %v4660_v40  ;;  %v14347_v34 = vld [vmem:[#allocation162_spill] sm:$0xff] }
 0x4a7   : > { %4934 = vrot.lane.b32.xlu1 %v14345_v7, %s7630_s15  ;;  %4928 = vrot.lane.b32.xlu0 %v14112_v59, %s7630_s15  ;;  %v14346_v59 = vld [vmem:[#allocation177_spill] sm:$0xff] }
 0x4a9   : > { %v4670_v21 = vpop.permute.xlu1 %4669  ;;  %v4664_v32 = vpop.permute.xlu0 %4663 }
 0x4aa   : > { %4755 = vst.msk [vmem:[#allocation2 + $0x58] sm:$0xff] %vm4743_vm7, %v4670_v21  ;;  %4752 = vst.msk [vmem:[#allocation2 + $0x40] sm:$0xff] %vm4743_vm7, %v4664_v32 }
 0x4ab   : > { %4938 = vrot.lane.b32.xlu1 %v14113_v29, %s7630_s15  ;;  %4932 = vrot.lane.b32.xlu0 %v14115_v18, %s7630_s15 }
 0x4ad   : > { %v4674_v17 = vpop.permute.xlu1 %4673  ;;  %v4668_v2 = vpop.permute.xlu0 %4667 }
 0x4ae   : > { %4757 = vst.msk [vmem:[#allocation2 + $0x68] sm:$0xff] %vm4743_vm7, %v4674_v17  ;;  %4754 = vst.msk [vmem:[#allocation2 + $0x50] sm:$0xff] %vm4743_vm7, %v4668_v2  ;;  %v14348_v17 = vld [vmem:[#allocation149_spill] sm:$0xff] }
 0x4af   : > { %4942 = vrot.lane.b32.xlu1 %v14346_v59, %s7630_s15  ;;  %4936 = vrot.lane.b32.xlu0 %v14116_v16, %s7630_s15 }
 0x4b1   : > { %v4678_v0 = vpop.permute.xlu1 %4677  ;;  %v4672_v61 = vpop.permute.xlu0 %4671 }
 0x4b2   : > { %4759 = vst.msk [vmem:[#allocation2 + $0x78] sm:$0xff] %vm4743_vm7, %v4678_v0  ;;  %4756 = vst.msk [vmem:[#allocation2 + $0x60] sm:$0xff] %vm4743_vm7, %v4672_v61 }
 0x4b3   : > { %4946 = vrot.lane.b32.xlu1 %v14117_v14, %s7630_s15  ;;  %4940 = vrot.lane.b32.xlu0 %v14119_v51, %s7630_s15 }
 0x4b5   : > { %v4682_v18 = vpop.permute.xlu1 %4681  ;;  %v4676_v44 = vpop.permute.xlu0 %4675 }
 0x4b6   : > { %4761 = vst.msk [vmem:[#allocation2 + $0x88] sm:$0xff] %vm4743_vm7, %v4682_v18  ;;  %4758 = vst.msk [vmem:[#allocation2 + $0x70] sm:$0xff] %vm4743_vm7, %v4676_v44  ;;  %v14349_v44 = vld [vmem:[#allocation157_spill] sm:$0xff] }
 0x4b7   : > { %4950 = vrot.lane.b32.xlu1 %v14347_v34, %s7630_s15  ;;  %4944 = vrot.lane.b32.xlu0 %v14120_v15, %s7630_s15 }
 0x4b9   : > { %v4686_v40 = vpop.permute.xlu1 %4685  ;;  %v4680_v7 = vpop.permute.xlu0 %4679 }
 0x4ba   : > { %4763 = vst.msk [vmem:[#allocation2 + $0x98] sm:$0xff] %vm4743_vm7, %v4686_v40  ;;  %4760 = vst.msk [vmem:[#allocation2 + $0x80] sm:$0xff] %vm4743_vm7, %v4680_v7 }
 0x4bb   : > { %4954 = vrot.lane.b32.xlu1 %v14121_v43, %s7630_s15  ;;  %4948 = vrot.lane.b32.xlu0 %v14123_v25, %s7630_s15 }
 0x4bd   : > { %v4690_v21 = vpop.permute.xlu1 %4689  ;;  %v4684_v32 = vpop.permute.xlu0 %4683 }
 0x4be   : > { %4765 = vst.msk [vmem:[#allocation2 + $0xa8] sm:$0xff] %vm4743_vm7, %v4690_v21  ;;  %4762 = vst.msk [vmem:[#allocation2 + $0x90] sm:$0xff] %vm4743_vm7, %v4684_v32 }
 0x4bf   : > { %4958 = vrot.lane.b32.xlu1 %v14348_v17, %s7630_s15  ;;  %4952 = vrot.lane.b32.xlu0 %v14124_v60, %s7630_s15 }
 0x4c1   : > { %v4694_v2 = vpop.permute.xlu1 %4693  ;;  %v4688_v0 = vpop.permute.xlu0 %4687 }
 0x4c2   : > { %4767 = vst.msk [vmem:[#allocation2 + $0xb8] sm:$0xff] %vm4743_vm7, %v4694_v2  ;;  %4764 = vst.msk [vmem:[#allocation2 + $0xa0] sm:$0xff] %vm4743_vm7, %v4688_v0  ;;  %v14350_v2 = vld [vmem:[#allocation171_spill] sm:$0xff] }
 0x4c3   : > { %4962 = vrot.lane.b32.xlu1 %v14125_v5, %s7630_s15  ;;  %4956 = vrot.lane.b32.xlu0 %v14127_v35, %s7630_s15 }
 0x4c5   : > { %v4698_v61 = vpop.permute.xlu1 %4697  ;;  %v4692_v18 = vpop.permute.xlu0 %4691 }
 0x4c6   : > { %4769 = vst.msk [vmem:[#allocation2 + $0xc8] sm:$0xff] %vm4743_vm7, %v4698_v61  ;;  %4766 = vst.msk [vmem:[#allocation2 + $0xb0] sm:$0xff] %vm4743_vm7, %v4692_v18  ;;  %v7228_v18 = vrot.slane %v11533_v45, 9 }
 0x4c7   : > { %4966 = vrot.lane.b32.xlu1 %v14349_v44, %s7630_s15  ;;  %4960 = vrot.lane.b32.xlu0 %v14128_v31, %s7630_s15 }
 0x4c9   : > { %v4702_v40 = vpop.permute.xlu1 %4701  ;;  %v4696_v7 = vpop.permute.xlu0 %4695 }
 0x4ca   : > { %4771 = vst.msk [vmem:[#allocation2 + $0xd8] sm:$0xff] %vm4743_vm7, %v4702_v40  ;;  %4768 = vst.msk [vmem:[#allocation2 + $0xc0] sm:$0xff] %vm4743_vm7, %v4696_v7  ;;  %v4924_v40 = vrot.slane %v11620_v23, 5 }
 0x4cb   : > { %4970 = vrot.lane.b32.xlu1 %v14180_v19, %s7630_s15  ;;  %4964 = vrot.lane.b32.xlu0 %v14131_v13, %s7630_s15 }
 0x4cd   : > { %v4706_v21 = vpop.permute.xlu1 %4705  ;;  %v4700_v32 = vpop.permute.xlu0 %4699 }
 0x4ce   : > { %4773 = vst.msk [vmem:[#allocation2 + $0xe8] sm:$0xff] %vm4743_vm7, %v4706_v21  ;;  %4770 = vst.msk [vmem:[#allocation2 + $0xd0] sm:$0xff] %vm4743_vm7, %v4700_v32  ;;  %v14351_v32 = vld [vmem:[#allocation181_spill] sm:$0xff] }
 0x4cf   : > { %4974 = vrot.lane.b32.xlu1 %v14350_v2, %s7630_s15  ;;  %4968 = vrot.lane.b32.xlu0 %v14132_v1, %s7630_s15 }
 0x4d1   : > { %v4710_v0 = vpop.permute.xlu1 %4709  ;;  %v4704_v61 = vpop.permute.xlu0 %4703 }
 0x4d2   : > { %4775 = vst.msk [vmem:[#allocation2 + $0xf8] sm:$0xff] %vm4743_vm7, %v4710_v0  ;;  %4772 = vst.msk [vmem:[#allocation2 + $0xe0] sm:$0xff] %vm4743_vm7, %v4704_v61  ;;  %v4925_v0 = vsel %vm8431_vm5, %v7228_v18, %v4924_v40 }
 0x4d3   : > { %4978 = vrot.lane.b32.xlu1 %v14188_v27, %s7630_s15  ;;  %4972 = vrot.lane.b32.xlu0 %v14135_v38, %s7630_s15  ;;  %v11751_v45 = vcombine.low %v11422_v28, %v4925_v0  ;;  %v11883_v27 = vld [vmem:[%s7735_s11 + $0x2f8] sm:$0xf] }
 0x4d5   : > { %v4795_v7 = vpop.permute.xlu1 %4794  ;;  %v4708_v21 = vpop.permute.xlu0 %4707  ;;  %14352 = vst [vmem:[#allocation120_spill] sm:$0xff] %v11751_v45 }
 0x4d6   : > { %4890 = vst.msk [vmem:[#allocation2 + $0x8] sm:$0xff] %vm4888_vm8, %v4795_v7 }
 0x4d7   : > { %4774 = vst.msk [vmem:[#allocation2 + $0xf0] sm:$0xff] %vm4743_vm7, %v4708_v21  ;;  %4982 = vrot.lane.b32.xlu1 %v14351_v32, %s7630_s15  ;;  %4976 = vrot.lane.b32.xlu0 %v14136_v63, %s7630_s15  ;;  %v14353_v21 = vld [vmem:[#allocation86_spill] sm:$0xff]  ;;  %v11859_v32 = vld [vmem:[%s7735_s11 + $0x308] sm:$0xf]  ;;  %v14370_v63 = vld [vmem:[#allocation36_spill] sm:$0xff] }
 0x4d9   : > { %v4799_v61 = vpop.permute.xlu1 %4798  ;;  %v4793_v20 = vpop.permute.xlu0 %4792 }
 0x4da   : > { %4892 = vst.msk [vmem:[#allocation2 + $0x18] sm:$0xff] %vm4888_vm8, %v4799_v61  ;;  %4889 = vst.msk [vmem:[#allocation2] sm:$0xff] %vm4888_vm8, %v4793_v20 }
 0x4db   : > { %4986 = vrot.lane.b32.xlu1 %v11091_v46, %s7630_s15  ;;  %4980 = vrot.lane.b32.xlu0 %v14183_v56, %s7630_s15  ;;  %v14364_v56 = vld [vmem:[#allocation196_spill] sm:$0xff]  ;;  %v475_v46 = vld [vmem:[%s7735_s11 + $0x30c] sm:$0x1] }
 0x4dd   : > { %v4803_v23 = vpop.permute.xlu1 %4802  ;;  %v4797_v7 = vpop.permute.xlu0 %4796 }
 0x4de   : > { %4894 = vst.msk [vmem:[#allocation2 + $0x28] sm:$0xff] %vm4888_vm8, %v4803_v23  ;;  %4891 = vst.msk [vmem:[#allocation2 + $0x10] sm:$0xff] %vm4888_vm8, %v4797_v7 }
 0x4df   : > { %4990 = vrot.lane.b32.xlu1 %v11751_v45, %s7630_s15  ;;  %4984 = vrot.lane.b32.xlu0 %v11040_v12, %s7630_s15 }
 0x4e1   : > { %v4807_v20 = vpop.permute.xlu1 %4806  ;;  %v4801_v18 = vpop.permute.xlu0 %4800 }
 0x4e2   : > { %4896 = vst.msk [vmem:[#allocation2 + $0x38] sm:$0xff] %vm4888_vm8, %v4807_v20  ;;  %4893 = vst.msk [vmem:[#allocation2 + $0x20] sm:$0xff] %vm4888_vm8, %v4801_v18  ;;  %v14354_v20 = vld [vmem:[#allocation92_spill] sm:$0xff] }
 0x4e3   : > { %5079 = vrot.lane.b32.xlu1 %v14293_v3, %s7631_s16  ;;  %4988 = vrot.lane.b32.xlu0 %v11068_v41, %s7630_s15  ;;  %s234_s15 = sand.u32 1, %s7596_s19  }
 0x4e5   : > { %v4811_v28 = vpop.permute.xlu1 %4810  ;;  %v4805_v40 = vpop.permute.xlu0 %4804 }
 0x4e6   : > { %4898 = vst.msk [vmem:[#allocation2 + $0x48] sm:$0xff] %vm4888_vm8, %v4811_v28  ;;  %4895 = vst.msk [vmem:[#allocation2 + $0x30] sm:$0xff] %vm4888_vm8, %v4805_v40 }
 0x4e7   : > { %5083 = vrot.lane.b32.xlu1 %v14295_v62, %s7631_s16  ;;  %5077 = vrot.lane.b32.xlu0 %v14353_v21, %s7631_s16 }
 0x4e9   : > { %v4815_v0 = vpop.permute.xlu1 %4814  ;;  %v4809_v61 = vpop.permute.xlu0 %4808 }
 0x4ea   : > { %4900 = vst.msk [vmem:[#allocation2 + $0x58] sm:$0xff] %vm4888_vm8, %v4815_v0  ;;  %4897 = vst.msk [vmem:[#allocation2 + $0x40] sm:$0xff] %vm4888_vm8, %v4809_v61  ;;  %v14355_v0 = vld [vmem:[#allocation126_spill] sm:$0xff] }
 0x4eb   : > { %5087 = vrot.lane.b32.xlu1 %v14297_v37, %s7631_s16  ;;  %5081 = vrot.lane.b32.xlu0 %v14290_v11, %s7631_s16  ;;  %v14378_v37 = vld [vmem:[#allocation56_spill] sm:$0xff] }
 0x4ed   : > { %v4819_v23 = vpop.permute.xlu1 %4818  ;;  %v4813_v7 = vpop.permute.xlu0 %4812 }
 0x4ee   : > { %4902 = vst.msk [vmem:[#allocation2 + $0x68] sm:$0xff] %vm4888_vm8, %v4819_v23  ;;  %4899 = vst.msk [vmem:[#allocation2 + $0x50] sm:$0xff] %vm4888_vm8, %v4813_v7 }
 0x4ef   : > { %5091 = vrot.lane.b32.xlu1 %v14299_v6, %s7631_s16  ;;  %5085 = vrot.lane.b32.xlu0 %v14354_v20, %s7631_s16 }
 0x4f1   : > { %v4823_v18 = vpop.permute.xlu1 %4822  ;;  %v4817_v28 = vpop.permute.xlu0 %4816 }
 0x4f2   : > { %4904 = vst.msk [vmem:[#allocation2 + $0x78] sm:$0xff] %vm4888_vm8, %v4823_v18  ;;  %4901 = vst.msk [vmem:[#allocation2 + $0x60] sm:$0xff] %vm4888_vm8, %v4817_v28  ;;  %v14356_v18 = vld [vmem:[#allocation138_spill] sm:$0xff] }
 0x4f3   : > { %5095 = vrot.lane.b32.xlu1 %v14301_v10, %s7631_s16  ;;  %5089 = vrot.lane.b32.xlu0 %v14294_v33, %s7631_s16 }
 0x4f5   : > { %v4827_v40 = vpop.permute.xlu1 %4826  ;;  %v4821_v21 = vpop.permute.xlu0 %4820 }
 0x4f6   : > { %4906 = vst.msk [vmem:[#allocation2 + $0x88] sm:$0xff] %vm4888_vm8, %v4827_v40  ;;  %4903 = vst.msk [vmem:[#allocation2 + $0x70] sm:$0xff] %vm4888_vm8, %v4821_v21 }
 0x4f7   : > { %5099 = vrot.lane.b32.xlu1 %v14303_v54, %s7631_s16  ;;  %5093 = vrot.lane.b32.xlu0 %v14355_v0, %s7631_s16  ;;  %v11976_v54 = vld [vmem:[%s7735_s11 + $0x2dc] sm:$0x1] }
 0x4f9   : > { %v4831_v61 = vpop.permute.xlu1 %4830  ;;  %v4825_v23 = vpop.permute.xlu0 %4824 }
 0x4fa   : > { %4908 = vst.msk [vmem:[#allocation2 + $0x98] sm:$0xff] %vm4888_vm8, %v4831_v61  ;;  %4905 = vst.msk [vmem:[#allocation2 + $0x80] sm:$0xff] %vm4888_vm8, %v4825_v23  ;;  %v14357_v61 = vld [vmem:[#allocation144_spill] sm:$0xff] }
 0x4fb   : > { %5103 = vrot.lane.b32.xlu1 %v14305_v57, %s7631_s16  ;;  %5097 = vrot.lane.b32.xlu0 %v14298_v22, %s7631_s16  ;;  %v14380_v57 = vld [vmem:[#allocation59_spill] sm:$0xff] }
 0x4fd   : > { %v4835_v7 = vpop.permute.xlu1 %4834  ;;  %v4829_v20 = vpop.permute.xlu0 %4828 }
 0x4fe   : > { %4910 = vst.msk [vmem:[#allocation2 + $0xa8] sm:$0xff] %vm4888_vm8, %v4835_v7  ;;  %4907 = vst.msk [vmem:[#allocation2 + $0x90] sm:$0xff] %vm4888_vm8, %v4829_v20 }
 0x4ff   : > { %5107 = vrot.lane.b32.xlu1 %v14307_v30, %s7631_s16  ;;  %5101 = vrot.lane.b32.xlu0 %v14356_v18, %s7631_s16  ;;  %v11880_v30 = vld [vmem:[%s7735_s11 + $0x2f0] sm:$0xf] }
 0x501   : > { %v4839_v28 = vpop.permute.xlu1 %4838  ;;  %v4833_v40 = vpop.permute.xlu0 %4832 }
 0x502   : > { %4912 = vst.msk [vmem:[#allocation2 + $0xb8] sm:$0xff] %vm4888_vm8, %v4839_v28  ;;  %4909 = vst.msk [vmem:[#allocation2 + $0xa0] sm:$0xff] %vm4888_vm8, %v4833_v40  ;;  %v14358_v28 = vld [vmem:[#allocation153_spill] sm:$0xff] }
 0x503   : > { %5111 = vrot.lane.b32.xlu1 %v14309_v49, %s7631_s16  ;;  %5105 = vrot.lane.b32.xlu0 %v14302_v47, %s7631_s16 }
 0x505   : > { %v4843_v21 = vpop.permute.xlu1 %4842  ;;  %v4837_v0 = vpop.permute.xlu0 %4836 }
 0x506   : > { %4914 = vst.msk [vmem:[#allocation2 + $0xc8] sm:$0xff] %vm4888_vm8, %v4843_v21  ;;  %4911 = vst.msk [vmem:[#allocation2 + $0xb0] sm:$0xff] %vm4888_vm8, %v4837_v0  ;;  %v14359_v0 = vld [vmem:[#allocation165_spill] sm:$0xff] }
 0x507   : > { %5115 = vrot.lane.b32.xlu1 %v14311_v50, %s7631_s16  ;;  %5109 = vrot.lane.b32.xlu0 %v14357_v61, %s7631_s16  ;;  %v11840_v61 = vld [vmem:[%s7735_s11 + $0x2e0] sm:$0xf] }
 0x508   : > { %v5238_v2 = vshll.u32 %v11840_v61, 16 }
 0x509   : > { %v4847_v23 = vpop.permute.xlu1 %4846  ;;  %v4841_v7 = vpop.permute.xlu0 %4840 }
 0x50a   : > { %4916 = vst.msk [vmem:[#allocation2 + $0xd8] sm:$0xff] %vm4888_vm8, %v4847_v23  ;;  %4913 = vst.msk [vmem:[#allocation2 + $0xc0] sm:$0xff] %vm4888_vm8, %v4841_v7  ;;  %v11843_v23 = vld [vmem:[%s7735_s11 + $0x2e8] sm:$0xf]  ;;  %v5240_v9 = vrot.slane %v5238_v2, 5 }
 0x50b   : > { %5119 = vrot.lane.b32.xlu1 %v14313_v58, %s7631_s16  ;;  %5113 = vrot.lane.b32.xlu0 %v14306_v52, %s7631_s16  ;;  %v14372_v58 = vld [vmem:[#allocation39_spill] sm:$0xff]  ;;  %v5249_v42 = vshrl.u32 %v11843_v23, 16 }
 0x50d   : > { %v4851_v20 = vpop.permute.xlu1 %4850  ;;  %v4845_v18 = vpop.permute.xlu0 %4844  ;;  %v5251_v59 = vrot.slane %v5249_v42, 4 }
 0x50e   : > { %4918 = vst.msk [vmem:[#allocation2 + $0xe8] sm:$0xff] %vm4888_vm8, %v4851_v20  ;;  %4915 = vst.msk [vmem:[#allocation2 + $0xd0] sm:$0xff] %vm4888_vm8, %v4845_v18  ;;  %v14360_v18 = vld [vmem:[#allocation198_spill] sm:$0xff] }
 0x50f   : > { %5123 = vrot.lane.b32.xlu1 %v14316_v55, %s7631_s16  ;;  %5117 = vrot.lane.b32.xlu0 %v14358_v28, %s7631_s16  ;;  %v11851_v28 = vcombine.low %v11840_v61, %v11843_v23 }
 0x511   : > { %v4855_v40 = vpop.permute.xlu1 %4854  ;;  %v4849_v21 = vpop.permute.xlu0 %4848  ;;  %14361 = vst [vmem:[#allocation106_spill] sm:$0xff] %v11851_v28 }
 0x512   : > { %4920 = vst.msk [vmem:[#allocation2 + $0xf8] sm:$0xff] %vm4888_vm8, %v4855_v40  ;;  %4917 = vst.msk [vmem:[#allocation2 + $0xe0] sm:$0xff] %vm4888_vm8, %v4849_v21  ;;  %v14362_v40 = vld [vmem:[#allocation191_spill] sm:$0xff]  ;;  %v11856_v21 = vld [vmem:[%s7735_s11 + $0x300] sm:$0xf] }
 0x513   : > { %5127 = vrot.lane.b32.xlu1 %v14317_v24, %s7631_s16  ;;  %5121 = vrot.lane.b32.xlu0 %v14359_v0, %s7631_s16  ;;  %v5291_v42 = vshrl.u32 %v11856_v21, 16  ;;  %v5294_v2 = vshll.u32 %v11856_v21, 16 }
 0x515   : > { %v4931_v7 = vpop.permute.xlu1 %4930  ;;  %v4853_v20 = vpop.permute.xlu0 %4852 }
 0x516   : > { %5026 = vst.msk [vmem:[#allocation2 + $0x8] sm:$0xff] %vm5024_vm9, %v4931_v7  ;;  %v11862_v7 = vld [vmem:[%s7735_s11 + $0x2d0] sm:$0xf] }
 0x517   : > { %4919 = vst.msk [vmem:[#allocation2 + $0xf0] sm:$0xff] %vm4888_vm8, %v4853_v20  ;;  %5131 = vrot.lane.b32.xlu1 %v14360_v18, %s7631_s16  ;;  %5125 = vrot.lane.b32.xlu0 %v14362_v40, %s7631_s16  ;;  %v11865_v20 = vld [vmem:[%s7735_s11 + $0x2d8] sm:$0xf]  ;;  %v11873_v40 = vcombine.low %v11856_v21, %v11859_v32  ;;  %v14383_v18 = vld [vmem:[#allocation71_spill] sm:$0xff] }
 0x518   : > { %v7230_v55 = vcombine.low %v11862_v7, %v11865_v20  ;;  %v5224_v41 = vshll.u32 %v11865_v20, 16 }
 0x519   : > { %v4935_v34 = vpop.permute.xlu1 %4934  ;;  %v4929_v44 = vpop.permute.xlu0 %4928  ;;  %14363 = vst [vmem:[#allocation140_spill] sm:$0xff] %v11873_v40 }
 0x51a   : > { %5028 = vst.msk [vmem:[#allocation2 + $0x18] sm:$0xff] %vm5024_vm9, %v4935_v34  ;;  %5025 = vst.msk [vmem:[#allocation2] sm:$0xff] %vm5024_vm9, %v4929_v44  ;;  %v11892_v44 = vcombine.low %v11880_v30, %v11883_v27  ;;  %v5226_v62 = vrot.slane %v5224_v41, 5 }
 0x51b   : > { %5135 = vrot.lane.b32.xlu1 %v11851_v28, %s7631_s16  ;;  %5129 = vrot.lane.b32.xlu0 %v14364_v56, %s7631_s16  ;;  %v14373_v28 = vld [vmem:[#allocation48_spill] sm:$0xff] }
 0x51c   : > { %14365 = vst [vmem:[#allocation114_spill] sm:$0xff] %v11892_v44 }
 0x51d   : > { %v4939_v6 = vpop.permute.xlu1 %4938  ;;  %v4933_v34 = vpop.permute.xlu0 %4932 }
 0x51e   : > { %5030 = vst.msk [vmem:[#allocation2 + $0x28] sm:$0xff] %vm5024_vm9, %v4939_v6  ;;  %5027 = vst.msk [vmem:[#allocation2 + $0x10] sm:$0xff] %vm5024_vm9, %v4933_v34  ;;  %v14366_v6 = vld [vmem:[#allocation28_spill] sm:$0xff] }
 0x51f   : > { %5139 = vrot.lane.b32.xlu1 %v11873_v40, %s7631_s16  ;;  %5133 = vrot.lane.b32.xlu0 %v7230_v55, %s7631_s16  ;;  %v14367_v55 = vld [vmem:[#allocation33_spill] sm:$0xff] }
 0x521   : > { %v4943_v0 = vpop.permute.xlu1 %4942  ;;  %v4937_v33 = vpop.permute.xlu0 %4936 }
 0x522   : > { %5032 = vst.msk [vmem:[#allocation2 + $0x38] sm:$0xff] %vm5024_vm9, %v4943_v0  ;;  %5029 = vst.msk [vmem:[#allocation2 + $0x20] sm:$0xff] %vm5024_vm9, %v4937_v33  ;;  %v14368_v0 = vld [vmem:[#allocation29_spill] sm:$0xff] }
 0x523   : > { %5332 = vrot.lane.b32.xlu1 %v14366_v6, %s7632_s17  ;;  %5137 = vrot.lane.b32.xlu0 %v11892_v44, %s7631_s16  ;;  %v14369_v44 = vld [vmem:[#allocation38_spill] sm:$0xff]  ;;  %s6893_s16 = sshll.u32 %s234_s15, 5 }
 0x525   : > { %v4947_v34 = vpop.permute.xlu1 %4946  ;;  %v4941_v40 = vpop.permute.xlu0 %4940 }
 0x526   : > { %5034 = vst.msk [vmem:[#allocation2 + $0x48] sm:$0xff] %vm5024_vm9, %v4947_v34  ;;  %5031 = vst.msk [vmem:[#allocation2 + $0x30] sm:$0xff] %vm5024_vm9, %v4941_v40 }
 0x527   : > { %5336 = vrot.lane.b32.xlu1 %v14367_v55, %s7632_s17  ;;  %5330 = vrot.lane.b32.xlu0 %v14368_v0, %s7632_s17  ;;  %v14371_v0 = vld [vmem:[#allocation43_spill] sm:$0xff] }
 0x529   : > { %v4951_v33 = vpop.permute.xlu1 %4950  ;;  %v4945_v47 = vpop.permute.xlu0 %4944 }
 0x52a   : > { %5036 = vst.msk [vmem:[#allocation2 + $0x58] sm:$0xff] %vm5024_vm9, %v4951_v33  ;;  %5033 = vst.msk [vmem:[#allocation2 + $0x40] sm:$0xff] %vm5024_vm9, %v4945_v47 }
 0x52b   : > { %5340 = vrot.lane.b32.xlu1 %v14369_v44, %s7632_s17  ;;  %5334 = vrot.lane.b32.xlu0 %v14370_v63, %s7632_s17  ;;  %v14374_v44 = vld [vmem:[#allocation46_spill] sm:$0xff] }
 0x52d   : > { %v4955_v34 = vpop.permute.xlu1 %4954  ;;  %v4949_v40 = vpop.permute.xlu0 %4948 }
 0x52e   : > { %5038 = vst.msk [vmem:[#allocation2 + $0x68] sm:$0xff] %vm5024_vm9, %v4955_v34  ;;  %5035 = vst.msk [vmem:[#allocation2 + $0x50] sm:$0xff] %vm5024_vm9, %v4949_v40 }
 0x52f   : > { %5344 = vrot.lane.b32.xlu1 %v14371_v0, %s7632_s17  ;;  %5338 = vrot.lane.b32.xlu0 %v14372_v58, %s7632_s17  ;;  %v14375_v58 = vld [vmem:[#allocation53_spill] sm:$0xff] }
 0x530   : > { %v14376_v0 = vld [vmem:[#allocation49_spill] sm:$0xff] }
 0x531   : > { %v4959_v33 = vpop.permute.xlu1 %4958  ;;  %v4953_v47 = vpop.permute.xlu0 %4952 }
 0x532   : > { %5040 = vst.msk [vmem:[#allocation2 + $0x78] sm:$0xff] %vm5024_vm9, %v4959_v33  ;;  %5037 = vst.msk [vmem:[#allocation2 + $0x60] sm:$0xff] %vm5024_vm9, %v4953_v47 }
 0x533   : > { %5348 = vrot.lane.b32.xlu1 %v14373_v28, %s7632_s17  ;;  %5342 = vrot.lane.b32.xlu0 %v14374_v44, %s7632_s17  ;;  %v14377_v44 = vld [vmem:[#allocation58_spill] sm:$0xff] }
 0x535   : > { %v4963_v34 = vpop.permute.xlu1 %4962  ;;  %v4957_v40 = vpop.permute.xlu0 %4956 }
 0x536   : > { %5042 = vst.msk [vmem:[#allocation2 + $0x88] sm:$0xff] %vm5024_vm9, %v4963_v34  ;;  %5039 = vst.msk [vmem:[#allocation2 + $0x70] sm:$0xff] %vm5024_vm9, %v4957_v40 }
 0x537   : > { %5352 = vrot.lane.b32.xlu1 %v14375_v58, %s7632_s17  ;;  %5346 = vrot.lane.b32.xlu0 %v14376_v0, %s7632_s17  ;;  %v14379_v0 = vld [vmem:[#allocation63_spill] sm:$0xff]  ;;  %v11970_v58 = vld [vmem:[%s7735_s11 + $0x2d4] sm:$0x1] }
 0x538   : > { %14384 = vst [vmem:[#allocation124_spill] sm:$0xff] %v11970_v58 }
 0x539   : > { %v4967_v33 = vpop.permute.xlu1 %4966  ;;  %v4961_v47 = vpop.permute.xlu0 %4960 }
 0x53a   : > { %5044 = vst.msk [vmem:[#allocation2 + $0x98] sm:$0xff] %vm5024_vm9, %v4967_v33  ;;  %5041 = vst.msk [vmem:[#allocation2 + $0x80] sm:$0xff] %vm5024_vm9, %v4961_v47 }
 0x53b   : > { %5356 = vrot.lane.b32.xlu1 %v14377_v44, %s7632_s17  ;;  %5350 = vrot.lane.b32.xlu0 %v14378_v37, %s7632_s17  ;;  %v5235_v44 = vshrl.u32 %v11840_v61, 16 }
 0x53d   : > { %v4971_v34 = vpop.permute.xlu1 %4970  ;;  %v4965_v40 = vpop.permute.xlu0 %4964  ;;  %v5237_v61 = vrot.slane %v5235_v44, 4  ;;  %v467_v44 = vld [vmem:[%s7735_s11 + $0x2ec] sm:$0x1] }
 0x53e   : > { %5046 = vst.msk [vmem:[#allocation2 + $0xa8] sm:$0xff] %vm5024_vm9, %v4971_v34  ;;  %5043 = vst.msk [vmem:[#allocation2 + $0x90] sm:$0xff] %vm5024_vm9, %v4965_v40  ;;  %v5252_v34 = vshll.u32 %v11843_v23, 16  ;;  %v14381_v40 = vld [vmem:[#allocation68_spill] sm:$0xff]  ;;  %v5210_v23 = vshll.u32 %v11862_v7, 16  ;;  %v5258_v21 = vshll.u32 %v467_v44, 16 }
 0x53f   : > { %5360 = vrot.lane.b32.xlu1 %v14379_v0, %s7632_s17  ;;  %5354 = vrot.lane.b32.xlu0 %v14380_v57, %s7632_s17  ;;  %v14382_v57 = vld [vmem:[#allocation66_spill] sm:$0xff]  ;;  %v5277_v44 = vshrl.u32 %v11883_v27, 16 }
 0x540   : > { %v5254_v17 = vrot.slane %v5252_v34, 5 }
 0x541   : > { %v4975_v33 = vpop.permute.xlu1 %4974  ;;  %v4969_v47 = vpop.permute.xlu0 %4968  ;;  %v5279_v63 = vrot.slane %v5277_v44, 4 }
 0x542   : > { %5048 = vst.msk [vmem:[#allocation2 + $0xb8] sm:$0xff] %vm5024_vm9, %v4975_v33  ;;  %5045 = vst.msk [vmem:[#allocation2 + $0xa0] sm:$0xff] %vm5024_vm9, %v4969_v47  ;;  %v5207_v33 = vshrl.u32 %v11862_v7, 16  ;;  %v465_v47 = vld [vmem:[%s7735_s11 + $0x2e4] sm:$0x1]  ;;  %v5308_v7 = vshll.u32 %v11859_v32, 16  ;;  %v5255_v50 = vor.u32 %v5254_v17, %v5251_v59 }
 0x543   : > { %5364 = vrot.lane.b32.xlu1 %v14381_v40, %s7632_s17  ;;  %5358 = vrot.lane.b32.xlu0 %v14382_v57, %s7632_s17  ;;  %v5221_v57 = vshrl.u32 %v11865_v20, 16  ;;  %v5244_v20 = vshll.u32 %v465_v47, 16  ;;  %v5293_v59 = vrot.slane %v5291_v42, 4  ;;  %v5296_v17 = vrot.slane %v5294_v2, 5 }
 0x544   : > { %v5310_v47 = vrot.slane %v5308_v7, 5  ;;  %v5256_v52 = vrot.slane %v5255_v50, 4  ;;  %v5216_v42 = vshll.u32 %v11970_v58, 16  ;;  %v5260_v2 = vrot.slane %v5258_v21, 5  ;;  %v471_v21 = vld [vmem:[%s7735_s11 + $0x2fc] sm:$0x1] }
 0x545   : > { %v4979_v0 = vpop.permute.xlu1 %4978  ;;  %v4973_v45 = vpop.permute.xlu0 %4972  ;;  %v5223_v55 = vrot.slane %v5221_v57, 4  ;;  %v5230_v7 = vshll.u32 %v11976_v54, 16 }
 0x546   : > { %5050 = vst.msk [vmem:[#allocation2 + $0xc8] sm:$0xff] %vm5024_vm9, %v4979_v0  ;;  %5047 = vst.msk [vmem:[#allocation2 + $0xb0] sm:$0xff] %vm5024_vm9, %v4973_v45  ;;  %v5305_v45 = vshrl.u32 %v11859_v32, 16  ;;  %v5212_v32 = vrot.slane %v5210_v23, 5  ;;  %v5280_v23 = vshll.u32 %v11883_v27, 16  ;;  %v14386_v27 = vld [vmem:[#allocation95_spill] sm:$0xff] }
 0x547   : > { %5368 = vrot.lane.b32.xlu1 %v14341_v26, %s7632_s17  ;;  %5362 = vrot.lane.b32.xlu0 %v14383_v18, %s7632_s17  ;;  %v5241_v26 = vor.u32 %v5240_v9, %v5237_v61  ;;  %v5209_v18 = vrot.slane %v5207_v33, 4  ;;  %v473_v9 = vld [vmem:[%s7735_s11 + $0x304] sm:$0x1] }
 0x548   : > { %v5307_v61 = vrot.slane %v5305_v45, 4  ;;  %v5282_v37 = vrot.slane %v5280_v23, 5  ;;  %v5286_v23 = vshll.u32 %v471_v21, 16 }
 0x549   : > { %v4983_v0 = vpop.permute.xlu1 %4982  ;;  %v4977_v34 = vpop.permute.xlu0 %4976  ;;  %v5242_v41 = vrot.slane %v5241_v26, 4  ;;  %v5213_v45 = vor.u32 %v5212_v32, %v5209_v18  ;;  %v5297_v26 = vor.u32 %v5296_v17, %v5293_v59  ;;  %v469_v18 = vld [vmem:[%s7735_s11 + $0x2f4] sm:$0x1] }
 0x54a   : > { %5052 = vst.msk [vmem:[#allocation2 + $0xd8] sm:$0xff] %vm5024_vm9, %v4983_v0  ;;  %5049 = vst.msk [vmem:[#allocation2 + $0xc0] sm:$0xff] %vm5024_vm9, %v4977_v34  ;;  %v14385_v0 = vld [vmem:[#allocation87_spill] sm:$0xff]  ;;  %v5263_v34 = vshrl.u32 %v11880_v30, 16  ;;  %v5311_v50 = vor.u32 %v5310_v47, %v5307_v61  ;;  %v5283_v44 = vor.u32 %v5282_v37, %v5279_v63 }
 0x54b   : > { %5372 = vrot.lane.b32.xlu1 %v14343_v4, %s7632_s17  ;;  %5366 = vrot.lane.b32.xlu0 %v14385_v0, %s7632_s17  ;;  %v5266_v4 = vshll.u32 %v11880_v30, 16  ;;  %v5246_v0 = vrot.slane %v5244_v20, 5  ;;  %v5227_v30 = vor.u32 %v5226_v62, %v5223_v55  ;;  %v5300_v20 = vshll.u32 %v473_v9, 16  ;;  %v14387_v9 = vld [vmem:[#allocation111_spill] sm:$0xff] }
 0x54c   : > { %v5265_v56 = vrot.slane %v5263_v34, 4  ;;  %v5218_v55 = vrot.slane %v5216_v42, 5  ;;  %v5312_v17 = vrot.slane %v5311_v50, 4  ;;  %v14388_v42 = vld [vmem:[#allocation99_spill] sm:$0xff] }
 0x54d   : > { %v4987_v33 = vpop.permute.xlu1 %4986  ;;  %v4981_v57 = vpop.permute.xlu0 %4980  ;;  %v11997_v62 = vsel %vm7748_vm2, %v5242_v41, %v5246_v0  ;;  %v5228_v32 = vrot.slane %v5227_v30, 4  ;;  %v5298_v0 = vrot.slane %v5297_v26, 4  ;;  %v5302_v59 = vrot.slane %v5300_v20, 5 }
 0x54e   : > { %5054 = vst.msk [vmem:[#allocation2 + $0xe8] sm:$0xff] %vm5024_vm9, %v4987_v33  ;;  %5051 = vst.msk [vmem:[#allocation2 + $0xd0] sm:$0xff] %vm5024_vm9, %v4981_v57  ;;  %v5314_v33 = vshll.u32 %v475_v46, 16  ;;  %v5268_v57 = vrot.slane %v5266_v4, 5  ;;  %v12006_v46 = vsel %vm7748_vm2, %v5256_v52, %v5260_v2  ;;  %v5214_v4 = vrot.slane %v5213_v45, 4 }
 0x54f   : > { %5376 = vrot.lane.b32.xlu1 %v14107_v48, %s7632_s17  ;;  %5370 = vrot.lane.b32.xlu0 %v14386_v27, %s7632_s17  ;;  %v12016_v52 = vcombine.low %v11997_v62, %v12006_v46  ;;  %v12028_v37 = vsel %vm7748_vm2, %v5298_v0, %v5302_v59  ;;  %v5284_v27 = vrot.slane %v5283_v44, 4  ;;  %v5288_v26 = vrot.slane %v5286_v23, 5  ;;  %v14390_v44 = vld [vmem:[#allocation167_spill] sm:$0xff] }
 0x550   : > { %v5316_v61 = vrot.slane %v5314_v33, 5  ;;  %v5269_v34 = vor.u32 %v5268_v57, %v5265_v56  ;;  %v5219_v56 = vsel %vm7748_vm2, %v5214_v4, %v5218_v55 }
 0x551   : > { %v4991_v58 = vpop.permute.xlu1 %4990  ;;  %v4985_v48 = vpop.permute.xlu0 %4984 }
 0x552   : > { %5056 = vst.msk [vmem:[#allocation2 + $0xf8] sm:$0xff] %vm5024_vm9, %v4991_v58  ;;  %5053 = vst.msk [vmem:[#allocation2 + $0xe0] sm:$0xff] %vm5024_vm9, %v4985_v48  ;;  %v5232_v58 = vrot.slane %v5230_v7, 5  ;;  %v5272_v48 = vshll.u32 %v469_v18, 16  ;;  %v12032_v2 = vsel %vm7748_vm2, %v5312_v17, %v5316_v61  ;;  %v5270_v30 = vrot.slane %v5269_v34, 4  ;;  %v14389_v17 = vld [vmem:[#allocation147_spill] sm:$0xff] }
 0x553   : > { %5380 = vrot.lane.b32.xlu1 %v10887_v8, %s7632_s17  ;;  %5374 = vrot.lane.b32.xlu0 %v14387_v9, %s7632_s17  ;;  %v12040_v50 = vcombine.low %v12028_v37, %v12032_v2  ;;  %v12051_v18 = vsel %vm7748_vm2, %v5284_v27, %v5288_v26 }
 0x554   : > { %v12024_v63 = vsel %vm7748_vm2, %v5228_v32, %v5232_v58  ;;  %v5274_v7 = vrot.slane %v5272_v48, 5 }
 0x555   : > { %v5080_v47 = vpop.permute.xlu1 %5079  ;;  %v4989_v41 = vpop.permute.xlu0 %4988  ;;  %v7234_v33 = vcombine.low %v5219_v56, %v12024_v63 }
 0x556   : > { %5175 = vst.msk [vmem:[#allocation2 + $0x8] sm:$0xff] %vm5173_vm10, %v5080_v47  ;;  %v12047_v55 = vsel %vm7748_vm2, %v5270_v30, %v5274_v7 }
 0x557   : > { %5055 = vst.msk [vmem:[#allocation2 + $0xf0] sm:$0xff] %vm5024_vm9, %v4989_v41  ;;  %5384 = vrot.lane.b32.xlu1 %v10911_v36, %s7632_s17  ;;  %5378 = vrot.lane.b32.xlu0 %v14388_v42, %s7632_s17  ;;  %v12060_v4 = vcombine.low %v12047_v55, %v12051_v18 }
 0x559   : > { %v5084_v45 = vpop.permute.xlu1 %5083  ;;  %v5078_v20 = vpop.permute.xlu0 %5077 }
 0x55a   : > { %5177 = vst.msk [vmem:[#allocation2 + $0x18] sm:$0xff] %vm5173_vm10, %v5084_v45  ;;  %5174 = vst.msk [vmem:[#allocation2] sm:$0xff] %vm5173_vm10, %v5078_v20  ;;  %v14391_v45 = vld [vmem:[#allocation186_spill] sm:$0xff]  ;;  %v14392_v20 = vld [vmem:[#allocation200_spill] sm:$0xff] }
 0x55b   : > { %5388 = vrot.lane.b32.xlu1 %v12016_v52, %s7632_s17  ;;  %5382 = vrot.lane.b32.xlu0 %v10934_v53, %s7632_s17 }
 0x55d   : > { %v5088_v57 = vpop.permute.xlu1 %5087  ;;  %v5082_v21 = vpop.permute.xlu0 %5081 }
 0x55e   : > { %5179 = vst.msk [vmem:[#allocation2 + $0x28] sm:$0xff] %vm5173_vm10, %v5088_v57  ;;  %5176 = vst.msk [vmem:[#allocation2 + $0x10] sm:$0xff] %vm5173_vm10, %v5082_v21 }
 0x55f   : > { %5392 = vrot.lane.b32.xlu1 %v12040_v50, %s7632_s17  ;;  %5386 = vrot.lane.b32.xlu0 %v7234_v33, %s7632_s17 }
 0x561   : > { %v5092_v32 = vpop.permute.xlu1 %5091  ;;  %v5086_v58 = vpop.permute.xlu0 %5085 }
 0x562   : > { %5181 = vst.msk [vmem:[#allocation2 + $0x38] sm:$0xff] %vm5173_vm10, %v5092_v32  ;;  %5178 = vst.msk [vmem:[#allocation2 + $0x20] sm:$0xff] %vm5173_vm10, %v5086_v58  ;;  %v14393_v58 = vld [vmem:[#allocation74_spill] sm:$0xff] }
 0x563   : > { %5513 = vrot.lane.b32.xlu1 %v14116_v16, %s7633_s24  ;;  %5390 = vrot.lane.b32.xlu0 %v12060_v4, %s7632_s17  ;;  %s236_s17 = scalar_lea.vmem [#allocation3], %s6893_s16 }
 0x565   : > { %v5096_v0 = vpop.permute.xlu1 %5095  ;;  %v5090_v59 = vpop.permute.xlu0 %5089 }
 0x566   : > { %5183 = vst.msk [vmem:[#allocation2 + $0x48] sm:$0xff] %vm5173_vm10, %v5096_v0  ;;  %5180 = vst.msk [vmem:[#allocation2 + $0x30] sm:$0xff] %vm5173_vm10, %v5090_v59 }
 0x567   : > { %5517 = vrot.lane.b32.xlu1 %v14119_v51, %s7633_s24  ;;  %5511 = vrot.lane.b32.xlu0 %v14389_v17, %s7633_s24  ;;  %v14394_v17 = vld [vmem:[#allocation212_spill] sm:$0xff] }
 0x569   : > { %v5100_v61 = vpop.permute.xlu1 %5099  ;;  %v5094_v47 = vpop.permute.xlu0 %5093 }
 0x56a   : > { %5185 = vst.msk [vmem:[#allocation2 + $0x58] sm:$0xff] %vm5173_vm10, %v5100_v61  ;;  %5182 = vst.msk [vmem:[#allocation2 + $0x40] sm:$0xff] %vm5173_vm10, %v5094_v47 }
 0x56b   : > { %5521 = vrot.lane.b32.xlu1 %v14120_v15, %s7633_s24  ;;  %5515 = vrot.lane.b32.xlu0 %v14113_v29, %s7633_s24 }
 0x56d   : > { %v5104_v34 = vpop.permute.xlu1 %5103  ;;  %v5098_v48 = vpop.permute.xlu0 %5097 }
 0x56e   : > { %5187 = vst.msk [vmem:[#allocation2 + $0x68] sm:$0xff] %vm5173_vm10, %v5104_v34  ;;  %5184 = vst.msk [vmem:[#allocation2 + $0x50] sm:$0xff] %vm5173_vm10, %v5098_v48  ;;  %v14395_v34 = vld [vmem:[#allocation50_spill] sm:$0xff]  ;;  %v14396_v48 = vld [vmem:[#allocation179_spill] sm:$0xff] }
 0x56f   : > { %5525 = vrot.lane.b32.xlu1 %v14123_v25, %s7633_s24  ;;  %5519 = vrot.lane.b32.xlu0 %v14390_v44, %s7633_s24 }
 0x571   : > { %v5108_v23 = vpop.permute.xlu1 %5107  ;;  %v5102_v41 = vpop.permute.xlu0 %5101 }
 0x572   : > { %5189 = vst.msk [vmem:[#allocation2 + $0x78] sm:$0xff] %vm5173_vm10, %v5108_v23  ;;  %5186 = vst.msk [vmem:[#allocation2 + $0x60] sm:$0xff] %vm5173_vm10, %v5102_v41  ;;  %v14397_v41 = vld [vmem:[#allocation148_spill] sm:$0xff] }
 0x573   : > { %5529 = vrot.lane.b32.xlu1 %v14124_v60, %s7633_s24  ;;  %5523 = vrot.lane.b32.xlu0 %v14117_v14, %s7633_s24 }
 0x575   : > { %v5112_v42 = vpop.permute.xlu1 %5111  ;;  %v5106_v56 = vpop.permute.xlu0 %5105 }
 0x576   : > { %5191 = vst.msk [vmem:[#allocation2 + $0x88] sm:$0xff] %vm5173_vm10, %v5112_v42  ;;  %5188 = vst.msk [vmem:[#allocation2 + $0x70] sm:$0xff] %vm5173_vm10, %v5106_v56  ;;  %v14398_v42 = vld [vmem:[#allocation30_spill] sm:$0xff] }
 0x577   : > { %5533 = vrot.lane.b32.xlu1 %v14127_v35, %s7633_s24  ;;  %5527 = vrot.lane.b32.xlu0 %v14391_v45, %s7633_s24 }
 0x579   : > { %v5116_v30 = vpop.permute.xlu1 %5115  ;;  %v5110_v7 = vpop.permute.xlu0 %5109 }
 0x57a   : > { %5193 = vst.msk [vmem:[#allocation2 + $0x98] sm:$0xff] %vm5173_vm10, %v5116_v30  ;;  %5190 = vst.msk [vmem:[#allocation2 + $0x80] sm:$0xff] %vm5173_vm10, %v5110_v7  ;;  %v14399_v30 = vld [vmem:[#allocation220_spill] sm:$0xff]  ;;  %v14400_v7 = vld [vmem:[#allocation195_spill] sm:$0xff] }
 0x57b   : > { %5537 = vrot.lane.b32.xlu1 %v14128_v31, %s7633_s24  ;;  %5531 = vrot.lane.b32.xlu0 %v14121_v43, %s7633_s24 }
 0x57d   : > { %v5120_v27 = vpop.permute.xlu1 %5119  ;;  %v5114_v26 = vpop.permute.xlu0 %5113 }
 0x57e   : > { %5195 = vst.msk [vmem:[#allocation2 + $0xa8] sm:$0xff] %vm5173_vm10, %v5120_v27  ;;  %5192 = vst.msk [vmem:[#allocation2 + $0x90] sm:$0xff] %vm5173_vm10, %v5114_v26 }
 0x57f   : > { %5541 = vrot.lane.b32.xlu1 %v14131_v13, %s7633_s24  ;;  %5535 = vrot.lane.b32.xlu0 %v14392_v20, %s7633_s24  ;;  %v14401_v20 = vld [vmem:[#allocation187_spill] sm:$0xff] }
 0x581   : > { %v5124_v33 = vpop.permute.xlu1 %5123  ;;  %v5118_v57 = vpop.permute.xlu0 %5117 }
 0x582   : > { %5197 = vst.msk [vmem:[#allocation2 + $0xb8] sm:$0xff] %vm5173_vm10, %v5124_v33  ;;  %5194 = vst.msk [vmem:[#allocation2 + $0xa0] sm:$0xff] %vm5173_vm10, %v5118_v57 }
 0x583   : > { %5545 = vrot.lane.b32.xlu1 %v14132_v1, %s7633_s24  ;;  %5539 = vrot.lane.b32.xlu0 %v14125_v5, %s7633_s24 }
 0x585   : > { %v5128_v21 = vpop.permute.xlu1 %5127  ;;  %v5122_v32 = vpop.permute.xlu0 %5121 }
 0x586   : > { %5199 = vst.msk [vmem:[#allocation2 + $0xc8] sm:$0xff] %vm5173_vm10, %v5128_v21  ;;  %5196 = vst.msk [vmem:[#allocation2 + $0xb0] sm:$0xff] %vm5173_vm10, %v5122_v32  ;;  %v14402_v21 = vld [vmem:[#allocation72_spill] sm:$0xff]  ;;  %v14403_v32 = vld [vmem:[#allocation75_spill] sm:$0xff] }
 0x587   : > { %5549 = vrot.lane.b32.xlu1 %v14135_v38, %s7633_s24  ;;  %5543 = vrot.lane.b32.xlu0 %v14393_v58, %s7633_s24 }
 0x589   : > { %v5132_v0 = vpop.permute.xlu1 %5131  ;;  %v5126_v59 = vpop.permute.xlu0 %5125 }
 0x58a   : > { %5201 = vst.msk [vmem:[#allocation2 + $0xd8] sm:$0xff] %vm5173_vm10, %v5132_v0  ;;  %5198 = vst.msk [vmem:[#allocation2 + $0xc0] sm:$0xff] %vm5173_vm10, %v5126_v59 }
 0x58b   : > { %5662 = vrot.lane.b32.xlu1 %v14394_v17, %s7634_s25  ;;  %5547 = vrot.lane.b32.xlu0 %v14180_v19, %s7633_s24  ;;  %v14404_v17 = vld [vmem:[#allocation205_spill] sm:$0xff] }
 0x58d   : > { %v5136_v61 = vpop.permute.xlu1 %5135  ;;  %v5130_v47 = vpop.permute.xlu0 %5129 }
 0x58e   : > { %5203 = vst.msk [vmem:[#allocation2 + $0xe8] sm:$0xff] %vm5173_vm10, %v5136_v61  ;;  %5200 = vst.msk [vmem:[#allocation2 + $0xd0] sm:$0xff] %vm5173_vm10, %v5130_v47  ;;  %v14405_v61 = vld [vmem:[#allocation82_spill] sm:$0xff] }
 0x58f   : > { %5810 = vrot.lane.b32.xlu1 %v14395_v34, %s7635_s27  ;;  %5646 = vrot.lane.b32.xlu0 %v14396_v48, %s7634_s25  ;;  %v14406_v48 = vld [vmem:[#allocation108_spill] sm:$0xff] }
 0x591   : > { %v5140_v44 = vpop.permute.xlu1 %5139  ;;  %v5134_v23 = vpop.permute.xlu0 %5133 }
 0x592   : > { %5205 = vst.msk [vmem:[#allocation2 + $0xf8] sm:$0xff] %vm5173_vm10, %v5140_v44  ;;  %5202 = vst.msk [vmem:[#allocation2 + $0xe0] sm:$0xff] %vm5173_vm10, %v5134_v23 }
 0x593   : > { %5933 = vrot.lane.b32.xlu1 %v14397_v41, %s7636_s29  ;;  %5794 = vrot.lane.b32.xlu0 %v14398_v42, %s7635_s27 }
 0x595   : > { %v5333_v56 = vpop.permute.xlu1 %5332  ;;  %v5138_v45 = vpop.permute.xlu0 %5137 }
 0x596   : > { %5428 = vst.msk [vmem:[#allocation2 + $0x8] sm:$0xff] %vm5426_vm11, %v5333_v56  ;;  %v14409_v56 = vld [vmem:[#allocation209_spill] sm:$0xff] }
 0x597   : > { %5204 = vst.msk [vmem:[#allocation2 + $0xf0] sm:$0xff] %vm5173_vm10, %v5138_v45  ;;  %5678 = vrot.lane.b32.xlu1 %v14399_v30, %s7634_s25  ;;  %5559 = vrot.lane.b32.xlu0 %v14400_v7, %s7633_s24  ;;  %v14410_v7 = vld [vmem:[#allocation62_spill] sm:$0xff] }
 0x599   : > { %v5337_v27 = vpop.permute.xlu1 %5336  ;;  %v5331_v26 = vpop.permute.xlu0 %5330 }
 0x59a   : > { %5430 = vst.msk [vmem:[#allocation2 + $0x18] sm:$0xff] %vm5426_vm11, %v5337_v27  ;;  %5427 = vst.msk [vmem:[#allocation2] sm:$0xff] %vm5426_vm11, %v5331_v26  ;;  %v14411_v27 = vld [vmem:[#allocation9_spill] sm:$0xff] }
 0x59b   : > { %6065 = vrot.lane.b32.xlu1 %v14293_v3, %s7637_s8  ;;  %5949 = vrot.lane.b32.xlu0 %v14401_v20, %s7636_s29 }
 0x59d   : > { %v5341_v33 = vpop.permute.xlu1 %5340  ;;  %v5335_v57 = vpop.permute.xlu0 %5334 }
 0x59e   : > { %5432 = vst.msk [vmem:[#allocation2 + $0x28] sm:$0xff] %vm5426_vm11, %v5341_v33  ;;  %5429 = vst.msk [vmem:[#allocation2 + $0x10] sm:$0xff] %vm5426_vm11, %v5335_v57  ;;  %v14413_v33 = vld [vmem:[#allocation47_spill] sm:$0xff] }
 0x59f   : > { %5826 = vrot.lane.b32.xlu1 %v14402_v21, %s7635_s27  ;;  %5694 = vrot.lane.b32.xlu0 %v14403_v32, %s7634_s25  ;;  %v14414_v32 = vld [vmem:[#allocation217_spill] sm:$0xff] }
 0x5a1   : > { %v5345_v58 = vpop.permute.xlu1 %5344  ;;  %v5339_v0 = vpop.permute.xlu0 %5338 }
 0x5a2   : > { %5434 = vst.msk [vmem:[#allocation2 + $0x38] sm:$0xff] %vm5426_vm11, %v5345_v58  ;;  %5431 = vst.msk [vmem:[#allocation2 + $0x20] sm:$0xff] %vm5426_vm11, %v5339_v0 }
 0x5a3   : > { %6210 = vrot.lane.b32.xlu1 %v14366_v6, %s7638_s9  ;;  %6081 = vrot.lane.b32.xlu0 %v14301_v10, %s7637_s8 }
 0x5a5   : > { %v5349_v3 = vpop.permute.xlu1 %5348  ;;  %v5343_v59 = vpop.permute.xlu0 %5342 }
 0x5a6   : > { %5436 = vst.msk [vmem:[#allocation2 + $0x48] sm:$0xff] %vm5426_vm11, %v5349_v3  ;;  %5433 = vst.msk [vmem:[#allocation2 + $0x30] sm:$0xff] %vm5426_vm11, %v5343_v59  ;;  %v14415_v3 = vld [vmem:[#allocation70_spill] sm:$0xff] }
 0x5a7   : > { %5965 = vrot.lane.b32.xlu1 %v14404_v17, %s7636_s29  ;;  %5842 = vrot.lane.b32.xlu0 %v14405_v61, %s7635_s27  ;;  %v14417_v61 = vld [vmem:[#allocation32_spill] sm:$0xff] }
 0x5a9   : > { %v5353_v47 = vpop.permute.xlu1 %5352  ;;  %v5347_v34 = vpop.permute.xlu0 %5346 }
 0x5aa   : > { %5438 = vst.msk [vmem:[#allocation2 + $0x58] sm:$0xff] %vm5426_vm11, %v5353_v47  ;;  %5435 = vst.msk [vmem:[#allocation2 + $0x40] sm:$0xff] %vm5426_vm11, %v5347_v34 }
 0x5ab   : > { %6346 = vrot.lane.b32.xlu1 %v14116_v16, %s7639_s10  ;;  %6226 = vrot.lane.b32.xlu0 %v14373_v28, %s7638_s9 }
 0x5ad   : > { %v5357_v10 = vpop.permute.xlu1 %5356  ;;  %v5351_v6 = vpop.permute.xlu0 %5350 }
 0x5ae   : > { %5440 = vst.msk [vmem:[#allocation2 + $0x68] sm:$0xff] %vm5426_vm11, %v5357_v10  ;;  %5437 = vst.msk [vmem:[#allocation2 + $0x50] sm:$0xff] %vm5426_vm11, %v5351_v6  ;;  %v14419_v10 = vld [vmem:[#allocation36_spill] sm:$0xff] }
 0x5af   : > { %6097 = vrot.lane.b32.xlu1 %v14309_v49, %s7637_s8  ;;  %5981 = vrot.lane.b32.xlu0 %v14406_v48, %s7636_s29  ;;  %v14407_v49 = vld [vmem:[#allocation170_spill] sm:$0xff] }
 0x5b1   : > { %v5361_v44 = vpop.permute.xlu1 %5360  ;;  %v5355_v23 = vpop.permute.xlu0 %5354 }
 0x5b2   : > { %5442 = vst.msk [vmem:[#allocation2 + $0x78] sm:$0xff] %vm5426_vm11, %v5361_v44  ;;  %5439 = vst.msk [vmem:[#allocation2 + $0x60] sm:$0xff] %vm5426_vm11, %v5355_v23  ;;  %v14420_v44 = vld [vmem:[#allocation103_spill] sm:$0xff] }
 0x5b3   : > { %6242 = vrot.lane.b32.xlu1 %v14381_v40, %s7638_s9  ;;  %6362 = vrot.lane.b32.xlu0 %v14124_v60, %s7639_s10 }
 0x5b5   : > { %v5365_v16 = vpop.permute.xlu1 %5364  ;;  %v5359_v28 = vpop.permute.xlu0 %5358 }
 0x5b6   : > { %5444 = vst.msk [vmem:[#allocation2 + $0x88] sm:$0xff] %vm5426_vm11, %v5365_v16  ;;  %5441 = vst.msk [vmem:[#allocation2 + $0x70] sm:$0xff] %vm5426_vm11, %v5359_v28  ;;  %v14421_v28 = vld [vmem:[#allocation196_spill] sm:$0xff] }
 0x5b7   : > { %5648 = vrot.lane.b32.xlu1 %v14407_v49, %s7634_s25  ;;  %6113 = vrot.lane.b32.xlu0 %v14317_v24, %s7637_s8  ;;  %v14408_v24 = vld [vmem:[#allocation24_spill] sm:$0xff] }
 0x5b9   : > { %v5369_v41 = vpop.permute.xlu1 %5368  ;;  %v5363_v42 = vpop.permute.xlu0 %5362 }
 0x5ba   : > { %5446 = vst.msk [vmem:[#allocation2 + $0x98] sm:$0xff] %vm5426_vm11, %v5369_v41  ;;  %5443 = vst.msk [vmem:[#allocation2 + $0x80] sm:$0xff] %vm5426_vm11, %v5363_v42 }
 0x5bb   : > { %6378 = vrot.lane.b32.xlu1 %v14132_v1, %s7639_s10  ;;  %6258 = vrot.lane.b32.xlu0 %v10887_v8, %s7638_s9 }
 0x5bd   : > { %v5373_v60 = vpop.permute.xlu1 %5372  ;;  %v5367_v40 = vpop.permute.xlu0 %5366 }
 0x5be   : > { %5448 = vst.msk [vmem:[#allocation2 + $0xa8] sm:$0xff] %vm5426_vm11, %v5373_v60  ;;  %5445 = vst.msk [vmem:[#allocation2 + $0x90] sm:$0xff] %vm5426_vm11, %v5367_v40  ;;  %v14424_v40 = vld [vmem:[#allocation87_spill] sm:$0xff] }
 0x5bf   : > { %5796 = vrot.lane.b32.xlu1 %v14408_v24, %s7635_s27  ;;  %5664 = vrot.lane.b32.xlu0 %v14409_v56, %s7634_s25 }
 0x5c1   : > { %v5377_v45 = vpop.permute.xlu1 %5376  ;;  %v5371_v30 = vpop.permute.xlu0 %5370 }
 0x5c2   : > { %5450 = vst.msk [vmem:[#allocation2 + $0xb8] sm:$0xff] %vm5426_vm11, %v5377_v45  ;;  %5447 = vst.msk [vmem:[#allocation2 + $0xa0] sm:$0xff] %vm5426_vm11, %v5371_v30  ;;  %v14426_v45 = vld [vmem:[#allocation182_spill] sm:$0xff] }
 0x5c3   : > { %5561 = vrot.lane.b32.xlu1 %v11040_v12, %s7633_s24  ;;  %6394 = vrot.lane.b32.xlu0 %v11040_v12, %s7639_s10  ;;  %v14412_v12 = vld [vmem:[#allocation101_spill] sm:$0xff] }
 0x5c5   : > { %v5381_v1 = vpop.permute.xlu1 %5380  ;;  %v5375_v8 = vpop.permute.xlu0 %5374 }
 0x5c6   : > { %5452 = vst.msk [vmem:[#allocation2 + $0xc8] sm:$0xff] %vm5426_vm11, %v5381_v1  ;;  %5449 = vst.msk [vmem:[#allocation2 + $0xb0] sm:$0xff] %vm5426_vm11, %v5375_v8  ;;  %v14427_v8 = vld [vmem:[#allocation25_spill] sm:$0xff] }
 0x5c7   : > { %5951 = vrot.lane.b32.xlu1 %v14410_v7, %s7636_s29  ;;  %5812 = vrot.lane.b32.xlu0 %v14411_v27, %s7635_s27 }
 0x5c9   : > { %v5385_v26 = vpop.permute.xlu1 %5384  ;;  %v5379_v20 = vpop.permute.xlu0 %5378 }
 0x5ca   : > { %5454 = vst.msk [vmem:[#allocation2 + $0xd8] sm:$0xff] %vm5426_vm11, %v5385_v26  ;;  %5451 = vst.msk [vmem:[#allocation2 + $0xc0] sm:$0xff] %vm5426_vm11, %v5379_v20  ;;  %v14428_v26 = vld [vmem:[#allocation64_spill] sm:$0xff] }
 0x5cb   : > { %5696 = vrot.lane.b32.xlu1 %v14412_v12, %s7634_s25  ;;  %5935 = vrot.lane.b32.xlu0 %v14413_v33, %s7636_s29  ;;  %v14429_v20 = vld [vmem:[#allocation12_spill] sm:$0xff] }
 0x5cd   : > { %v5389_v57 = vpop.permute.xlu1 %5388  ;;  %v5383_v21 = vpop.permute.xlu0 %5382 }
 0x5ce   : > { %5456 = vst.msk [vmem:[#allocation2 + $0xe8] sm:$0xff] %vm5426_vm11, %v5389_v57  ;;  %5453 = vst.msk [vmem:[#allocation2 + $0xd0] sm:$0xff] %vm5426_vm11, %v5383_v21 }
 0x5cf   : > { %6083 = vrot.lane.b32.xlu1 %v14298_v22, %s7637_s8  ;;  %5680 = vrot.lane.b32.xlu0 %v14414_v32, %s7634_s25  ;;  %v14416_v22 = vld [vmem:[#allocation56_spill] sm:$0xff]  ;;  %v14431_v32 = vld [vmem:[#allocation89_spill] sm:$0xff] }
 0x5d1   : > { %v5393_v58 = vpop.permute.xlu1 %5392  ;;  %v5387_v0 = vpop.permute.xlu0 %5386 }
 0x5d2   : > { %5458 = vst.msk [vmem:[#allocation2 + $0xf8] sm:$0xff] %vm5426_vm11, %v5393_v58  ;;  %5455 = vst.msk [vmem:[#allocation2 + $0xe0] sm:$0xff] %vm5426_vm11, %v5387_v0  ;;  %v14432_v58 = vld [vmem:[#allocation65_spill] sm:$0xff] }
 0x5d3   : > { %5844 = vrot.lane.b32.xlu1 %v14415_v3, %s7635_s27  ;;  %6067 = vrot.lane.b32.xlu0 %v14290_v11, %s7637_s8  ;;  %v14418_v11 = vld [vmem:[#allocation204_spill] sm:$0xff] }
 0x5d5   : > { %v5514_v59 = vpop.permute.xlu1 %5513  ;;  %v5391_v17 = vpop.permute.xlu0 %5390 }
 0x5d6   : > { %5609 = vst.msk [vmem:[#allocation2 + $0x8] sm:$0xff] %vm5607_vm12, %v5514_v59  ;;  %v14433_v59 = vld [vmem:[#allocation37_spill] sm:$0xff] }
 0x5d7   : > { %5457 = vst.msk [vmem:[#allocation2 + $0xf0] sm:$0xff] %vm5426_vm11, %v5391_v17  ;;  %6228 = vrot.lane.b32.xlu1 %v14416_v22, %s7638_s9  ;;  %5828 = vrot.lane.b32.xlu0 %v14417_v61, %s7635_s27  ;;  %v14434_v17 = vld [vmem:[#allocation206_spill] sm:$0xff] }
 0x5d9   : > { %v5518_v47 = vpop.permute.xlu1 %5517  ;;  %v5512_v34 = vpop.permute.xlu0 %5511 }
 0x5da   : > { %5611 = vst.msk [vmem:[#allocation2 + $0x18] sm:$0xff] %vm5607_vm12, %v5518_v47  ;;  %5608 = vst.msk [vmem:[#allocation2] sm:$0xff] %vm5607_vm12, %v5512_v34  ;;  %v14435_v47 = vld [vmem:[#allocation33_spill] sm:$0xff]  ;;  %v14436_v34 = vld [vmem:[#allocation136_spill] sm:$0xff] }
 0x5db   : > { %5983 = vrot.lane.b32.xlu1 %v14418_v11, %s7636_s29  ;;  %6212 = vrot.lane.b32.xlu0 %v14419_v10, %s7638_s9 }
 0x5dd   : > { %v5522_v6 = vpop.permute.xlu1 %5521  ;;  %v5516_v48 = vpop.permute.xlu0 %5515 }
 0x5de   : > { %5613 = vst.msk [vmem:[#allocation2 + $0x28] sm:$0xff] %vm5607_vm12, %v5522_v6  ;;  %5610 = vst.msk [vmem:[#allocation2 + $0x10] sm:$0xff] %vm5607_vm12, %v5516_v48  ;;  %v14437_v6 = vld [vmem:[#allocation100_spill] sm:$0xff]  ;;  %v14438_v48 = vld [vmem:[#allocation150_spill] sm:$0xff] }
 0x5df   : > { %6364 = vrot.lane.b32.xlu1 %v14121_v43, %s7639_s10  ;;  %5967 = vrot.lane.b32.xlu0 %v14420_v44, %s7636_s29  ;;  %v14422_v43 = vld [vmem:[#allocation146_spill] sm:$0xff] }
 0x5e1   : > { %v5526_v23 = vpop.permute.xlu1 %5525  ;;  %v5520_v16 = vpop.permute.xlu0 %5519 }
 0x5e2   : > { %5615 = vst.msk [vmem:[#allocation2 + $0x38] sm:$0xff] %vm5607_vm12, %v5526_v23  ;;  %5612 = vst.msk [vmem:[#allocation2 + $0x20] sm:$0xff] %vm5607_vm12, %v5520_v16  ;;  %v14439_v16 = vld [vmem:[#allocation53_spill] sm:$0xff] }
 0x5e3   : > { %6115 = vrot.lane.b32.xlu1 %v14421_v28, %s7637_s8  ;;  %6348 = vrot.lane.b32.xlu0 %v14113_v29, %s7639_s10  ;;  %v14423_v29 = vld [vmem:[#allocation214_spill] sm:$0xff] }
 0x5e5   : > { %v5530_v49 = vpop.permute.xlu1 %5529  ;;  %v5524_v41 = vpop.permute.xlu0 %5523 }
 0x5e6   : > { %5617 = vst.msk [vmem:[#allocation2 + $0x48] sm:$0xff] %vm5607_vm12, %v5530_v49  ;;  %5614 = vst.msk [vmem:[#allocation2 + $0x30] sm:$0xff] %vm5607_vm12, %v5524_v41  ;;  %v14440_v41 = vld [vmem:[#allocation152_spill] sm:$0xff] }
 0x5e7   : > { %6260 = vrot.lane.b32.xlu1 %v10934_v53, %s7638_s9  ;;  %6099 = vrot.lane.b32.xlu0 %v14422_v43, %s7637_s8  ;;  %v14425_v53 = vld [vmem:[#allocation199_spill] sm:$0xff]  ;;  %v14441_v43 = vld [vmem:[#allocation10_spill] sm:$0xff] }
 0x5e9   : > { %v5534_v42 = vpop.permute.xlu1 %5533  ;;  %v5528_v60 = vpop.permute.xlu0 %5527 }
 0x5ea   : > { %5619 = vst.msk [vmem:[#allocation2 + $0x58] sm:$0xff] %vm5607_vm12, %v5534_v42  ;;  %5616 = vst.msk [vmem:[#allocation2 + $0x40] sm:$0xff] %vm5607_vm12, %v5528_v60 }
 0x5eb   : > { %5666 = vrot.lane.b32.xlu1 %v14423_v29, %s7634_s25  ;;  %6244 = vrot.lane.b32.xlu0 %v14424_v40, %s7638_s9 }
 0x5ed   : > { %v5538_v24 = vpop.permute.xlu1 %5537  ;;  %v5532_v56 = vpop.permute.xlu0 %5531 }
 0x5ee   : > { %5621 = vst.msk [vmem:[#allocation2 + $0x68] sm:$0xff] %vm5607_vm12, %v5538_v24  ;;  %5618 = vst.msk [vmem:[#allocation2 + $0x50] sm:$0xff] %vm5607_vm12, %v5532_v56  ;;  %v14443_v24 = vld [vmem:[#allocation174_spill] sm:$0xff] }
 0x5ef   : > { %6396 = vrot.lane.b32.xlu1 %v14425_v53, %s7639_s10  ;;  %5650 = vrot.lane.b32.xlu0 %v14426_v45, %s7634_s25  ;;  %v14444_v56 = vld [vmem:[#allocation198_spill] sm:$0xff] }
 0x5f1   : > { %v5542_v30 = vpop.permute.xlu1 %5541  ;;  %v5536_v1 = vpop.permute.xlu0 %5535 }
 0x5f2   : > { %5623 = vst.msk [vmem:[#allocation2 + $0x78] sm:$0xff] %vm5607_vm12, %v5542_v30  ;;  %5620 = vst.msk [vmem:[#allocation2 + $0x60] sm:$0xff] %vm5607_vm12, %v5536_v1  ;;  %v14445_v1 = vld [vmem:[#allocation17_spill] sm:$0xff] }
 0x5f3   : > { %5814 = vrot.lane.b32.xlu1 %v14427_v8, %s7635_s27  ;;  %6380 = vrot.lane.b32.xlu0 %v14180_v19, %s7639_s10  ;;  %v14430_v19 = vld [vmem:[#allocation222_spill] sm:$0xff]  ;;  %v14446_v8 = vld [vmem:[#allocation211_spill] sm:$0xff] }
 0x5f5   : > { %v5546_v7 = vpop.permute.xlu1 %5545  ;;  %v5540_v27 = vpop.permute.xlu0 %5539 }
 0x5f6   : > { %5625 = vst.msk [vmem:[#allocation2 + $0x88] sm:$0xff] %vm5607_vm12, %v5546_v7  ;;  %5622 = vst.msk [vmem:[#allocation2 + $0x70] sm:$0xff] %vm5607_vm12, %v5540_v27 }
 0x5f7   : > { %5937 = vrot.lane.b32.xlu1 %v14428_v26, %s7636_s29  ;;  %5798 = vrot.lane.b32.xlu0 %v14429_v20, %s7635_s27  ;;  %v14448_v20 = vld [vmem:[#allocation67_spill] sm:$0xff] }
 0x5f9   : > { %v5550_v12 = vpop.permute.xlu1 %5549  ;;  %v5544_v33 = vpop.permute.xlu0 %5543 }
 0x5fa   : > { %5627 = vst.msk [vmem:[#allocation2 + $0x98] sm:$0xff] %vm5607_vm12, %v5550_v12  ;;  %5624 = vst.msk [vmem:[#allocation2 + $0x80] sm:$0xff] %vm5607_vm12, %v5544_v33  ;;  %v14449_v12 = vld [vmem:[#allocation21_spill] sm:$0xff] }
 0x5fb   : > { %5682 = vrot.lane.b32.xlu1 %v14430_v19, %s7634_s25  ;;  %5563 = vrot.lane.b32.xlu0 %v14425_v53, %s7633_s24 }
 0x5fd   : > { %v5663_v57 = vpop.permute.xlu1 %5662  ;;  %v5548_v21 = vpop.permute.xlu0 %5547 }
 0x5fe   : > { %5751 = vst.msk [vmem:[#allocation2 + $0x40] sm:$0xff] %vm5742_vm13, %v5663_v57 }
 0x5ff   : > { %5626 = vst.msk [vmem:[#allocation2 + $0x90] sm:$0xff] %vm5607_vm12, %v5548_v21  ;;  %6069 = vrot.lane.b32.xlu1 %v14431_v32, %s7637_s8  ;;  %5953 = vrot.lane.b32.xlu0 %v14432_v58, %s7636_s29  ;;  %v14450_v58 = vld [vmem:[#allocation88_spill] sm:$0xff] }
 0x601   : > { %v5811_v0 = vpop.permute.xlu1 %5810  ;;  %v5647_v3 = vpop.permute.xlu0 %5646 }
 0x602   : > { %5899 = vst.msk [vmem:[#allocation2 + $0x40] sm:$0xff] %vm5890_vm14, %v5811_v0  ;;  %v14451_v0 = vld [vmem:[#allocation51_spill] sm:$0xff] }
 0x603   : > { %5743 = vst.msk [vmem:[#allocation2] sm:$0xff] %vm5742_vm13, %v5647_v3  ;;  %5830 = vrot.lane.b32.xlu1 %v14433_v59, %s7635_s27  ;;  %5698 = vrot.lane.b32.xlu0 %v14434_v17, %s7634_s25  ;;  %v14452_v17 = vld [vmem:[#allocation132_spill] sm:$0xff] }
 0x605   : > { %v5934_v22 = vpop.permute.xlu1 %5933  ;;  %v5795_v61 = vpop.permute.xlu0 %5794 }
 0x606   : > { %5891 = vst.msk [vmem:[#allocation2] sm:$0xff] %vm5890_vm14, %v5795_v61 }
 0x607   : > { %6214 = vrot.lane.b32.xlu1 %v14435_v47, %s7638_s9  ;;  %6085 = vrot.lane.b32.xlu0 %v14436_v34, %s7637_s8  ;;  %6030 = vst.msk [vmem:[#allocation2] sm:$0xff] %vm6029_vm15, %v5934_v22  ;;  %v14453_v22 = vld [vmem:[#allocation219_spill] sm:$0xff]  ;;  %v14454_v34 = vld [vmem:[#allocation117_spill] sm:$0xff] }
 0x609   : > { %v5679_v11 = vpop.permute.xlu1 %5678  ;;  %v5560_v10 = vpop.permute.xlu0 %5559 }
 0x60a   : > { %5759 = vst.msk [vmem:[#allocation2 + $0x80] sm:$0xff] %vm5742_vm13, %v5679_v11  ;;  %v14455_v11 = vld [vmem:[#allocation105_spill] sm:$0xff] }
 0x60b   : > { %5632 = vst.msk [vmem:[#allocation2 + $0xc0] sm:$0xff] %vm5607_vm12, %v5560_v10  ;;  %5969 = vrot.lane.b32.xlu1 %v14437_v6, %s7636_s29  ;;  %5846 = vrot.lane.b32.xlu0 %v14438_v48, %s7635_s27  ;;  %v14456_v48 = vld [vmem:[#allocation155_spill] sm:$0xff] }
 0x60d   : > { %v6066_v44 = vpop.permute.xlu1 %6065  ;;  %v5950_v23 = vpop.permute.xlu0 %5949 }
 0x60e   : > { %6162 = vst.msk [vmem:[#allocation2] sm:$0xff] %vm6161_vm0, %v6066_v44  ;;  %v14457_v44 = vld [vmem:[#allocation35_spill] sm:$0xff] }
 0x60f   : > { %6038 = vst.msk [vmem:[#allocation2 + $0x40] sm:$0xff] %vm6029_vm15, %v5950_v23  ;;  %6350 = vrot.lane.b32.xlu1 %v14119_v51, %s7639_s10  ;;  %6230 = vrot.lane.b32.xlu0 %v14439_v16, %s7638_s9  ;;  %v14442_v51 = vld [vmem:[#allocation80_spill] sm:$0xff] }
 0x611   : > { %v5827_v28 = vpop.permute.xlu1 %5826  ;;  %v5695_v49 = vpop.permute.xlu0 %5694 }
 0x612   : > { %5907 = vst.msk [vmem:[#allocation2 + $0x80] sm:$0xff] %vm5890_vm14, %v5827_v28 }
 0x613   : > { %5767 = vst.msk [vmem:[#allocation2 + $0xc0] sm:$0xff] %vm5742_vm13, %v5695_v49  ;;  %6101 = vrot.lane.b32.xlu1 %v14440_v41, %s7637_s8  ;;  %5985 = vrot.lane.b32.xlu0 %v14441_v43, %s7636_s29  ;;  %v14458_v43 = vld [vmem:[#allocation107_spill] sm:$0xff] }
 0x615   : > { %v6211_v42 = vpop.permute.xlu1 %6210  ;;  %v6082_v60 = vpop.permute.xlu0 %6081 }
 0x616   : > { %6307 = vst.msk [vmem:[#allocation2] sm:$0xff] %vm6306_vm1, %v6211_v42  ;;  %v14459_v42 = vld [vmem:[#allocation118_spill] sm:$0xff] }
 0x617   : > { %6170 = vst.msk [vmem:[#allocation2 + $0x40] sm:$0xff] %vm6161_vm0, %v6082_v60  ;;  %6246 = vrot.lane.b32.xlu1 %v14442_v51, %s7638_s9  ;;  %6366 = vrot.lane.b32.xlu0 %v14127_v35, %s7639_s10 }
 0x619   : > { %v5966_v29 = vpop.permute.xlu1 %5965  ;;  %v5843_v40 = vpop.permute.xlu0 %5842 }
 0x61a   : > { %6046 = vst.msk [vmem:[#allocation2 + $0x80] sm:$0xff] %vm6029_vm15, %v5966_v29  ;;  %v14460_v29 = vld [vmem:[#allocation149_spill] sm:$0xff] }
 0x61b   : > { %5915 = vst.msk [vmem:[#allocation2 + $0xc0] sm:$0xff] %vm5890_vm14, %v5843_v40  ;;  %5652 = vrot.lane.b32.xlu1 %v14443_v24, %s7634_s25  ;;  %6117 = vrot.lane.b32.xlu0 %v14444_v56, %s7637_s8  ;;  %v14461_v40 = vld [vmem:[#allocation73_spill] sm:$0xff] }
 0x61d   : > { %v6347_v53 = vpop.permute.xlu1 %6346  ;;  %v6227_v45 = vpop.permute.xlu0 %6226 }
 0x61e   : > { %6443 = vst.msk [vmem:[#allocation2] sm:$0xff] %vm6442_vm3, %v6347_v53  ;;  %v14462_v53 = vld [vmem:[#allocation14_spill] sm:$0xff] }
 0x61f   : > { %6315 = vst.msk [vmem:[#allocation2 + $0x40] sm:$0xff] %vm6306_vm1, %v6227_v45  ;;  %6382 = vrot.lane.b32.xlu1 %v14135_v38, %s7639_s10  ;;  %6262 = vrot.lane.b32.xlu0 %v10911_v36, %s7638_s9  ;;  %v14447_v38 = vld [vmem:[#allocation201_spill] sm:$0xff] }
 0x620   : > { %v14463_v45 = vld [vmem:[#allocation177_spill] sm:$0xff] }
 0x621   : > { %v6098_v35 = vpop.permute.xlu1 %6097  ;;  %v5982_v30 = vpop.permute.xlu0 %5981 }
 0x622   : > { %6178 = vst.msk [vmem:[#allocation2 + $0x80] sm:$0xff] %vm6161_vm0, %v6098_v35 }
 0x623   : > { %6054 = vst.msk [vmem:[#allocation2 + $0xc0] sm:$0xff] %vm6029_vm15, %v5982_v30  ;;  %5800 = vrot.lane.b32.xlu1 %v14445_v1, %s7635_s27  ;;  %5668 = vrot.lane.b32.xlu0 %v14446_v8, %s7634_s25  ;;  %v14464_v1 = vld [vmem:[#allocation16_spill] sm:$0xff]  ;;  %v14465_v8 = vld [vmem:[#allocation110_spill] sm:$0xff] }
 0x625   : > { %v6243_v7 = vpop.permute.xlu1 %6242  ;;  %v6363_v27 = vpop.permute.xlu0 %6362  ;;  %v6476_v33 = vld [vmem:[#allocation2] sm:$0xff] }
 0x626   : > { %6323 = vst.msk [vmem:[#allocation2 + $0x80] sm:$0xff] %vm6306_vm1, %v6243_v7  ;;  %v6519_v32 = vsel %vm6514_vm4, %v6476_v33, 0 }
 0x627   : > { %6451 = vst.msk [vmem:[#allocation2 + $0x40] sm:$0xff] %vm6442_vm3, %v6363_v27  ;;  %5565 = vrot.lane.b32.xlu1 %v14447_v38, %s7633_s24  ;;  %6398 = vrot.lane.b32.xlu0 %v14447_v38, %s7639_s10  ;;  %v14466_v38 = vld [vmem:[#allocation216_spill] sm:$0xff] }
 0x629   : > { %v5649_v36 = vpop.permute.xlu1 %5648  ;;  %v6114_v26 = vpop.permute.xlu0 %6113 }
 0x62a   : > { %5744 = vst.msk [vmem:[#allocation2 + $0x8] sm:$0xff] %vm5742_vm13, %v5649_v36  ;;  %v14467_v36 = vld [vmem:[#allocation129_spill] sm:$0xff] }
 0x62b   : > { %6186 = vst.msk [vmem:[#allocation2 + $0xc0] sm:$0xff] %vm6161_vm0, %v6114_v26  ;;  %5955 = vrot.lane.b32.xlu1 %v14448_v20, %s7636_s29  ;;  %5816 = vrot.lane.b32.xlu0 %v14449_v12, %s7635_s27  ;;  %v7520_v26 = vld [vmem:[%s7735_s11 + $0x2d0] sm:$0xf] }
 0x62c   : > { %v7238_v20 = vrot.slane %v7520_v26, 9  ;;  %v14468_v12 = vld [vmem:[#allocation124_spill] sm:$0xff] }
 0x62d   : > { %v6379_v19 = vpop.permute.xlu1 %6378  ;;  %v6259_v57 = vpop.permute.xlu0 %6258  ;;  %v5469_v33 = vrot.slane %v14468_v12, 5 }
 0x62e   : > { %v6484_v21 = vld [vmem:[#allocation2 + $0x40] sm:$0xff]  ;;  %6459 = vst.msk [vmem:[#allocation2 + $0x80] sm:$0xff] %vm6442_vm3, %v6379_v19  ;;  %v7521_v19 = vld [vmem:[%s7735_s11 + $0x2d8] sm:$0xf] }
 0x62f   : > { %6331 = vst.msk [vmem:[#allocation2 + $0xc0] sm:$0xff] %vm6306_vm1, %v6259_v57  ;;  %7311 = vmatprep.subr.msk.bf16.mxu0 %vm6514_vm4, %v6484_v21  ;;  %5700 = vrot.lane.b32.xlu1 %v14450_v58, %s7634_s25  ;;  %v7239_v57 = vrot.slane %v7521_v19, 9  ;;  %v5473_v21 = vrot.slane %v11976_v54, 5 }
 0x630   : > { %5939 = vrot.lane.b32.xlu0 %v14451_v0, %s7636_s29  ;;  %7276 = vmatpush3.bf16.xpose.msra.mxu0 %v6519_v32  ;;  %v14469_v0 = vld [vmem:[#allocation120_spill] sm:$0xff] }
 0x631   : > { %v5797_v3 = vpop.permute.xlu1 %5796  ;;  %v5665_v59 = vpop.permute.xlu0 %5664 }
 0x632   : > { %5892 = vst.msk [vmem:[#allocation2 + $0x8] sm:$0xff] %vm5890_vm14, %v5797_v3  ;;  %v14470_v3 = vld [vmem:[#allocation208_spill] sm:$0xff] }
 0x633   : > { %5752 = vst.msk [vmem:[#allocation2 + $0x48] sm:$0xff] %vm5742_vm13, %v5665_v59  ;;  %6087 = vrot.lane.b32.xlu1 %v14452_v17, %s7637_s8  ;;  %v5470_v17 = vsel %vm8431_vm5, %v7238_v20, %v5469_v33  ;;  %v14481_v33 = vld [vmem:[#allocation58_spill] sm:$0xff]  ;;  %v14537_v59 = vld [vmem:[#allocation104_spill] sm:$0xff] }
 0x634   : > { %5684 = vrot.lane.b32.xlu0 %v14453_v22, %s7634_s25  ;;  %v12440_v22 = vsel %vm8431_vm5, %v7239_v57, %v5473_v21  ;;  %v14482_v57 = vld [vmem:[#allocation96_spill] sm:$0xff] }
 0x635   : > { %v5562_v61 = vpop.permute.xlu1 %5561  ;;  %v6395_v47 = vpop.permute.xlu0 %6394  ;;  %v6492_v23 = vld [vmem:[#allocation2 + $0x80] sm:$0xff] }
 0x636   : > { %5633 = vst.msk [vmem:[#allocation2 + $0xc8] sm:$0xff] %vm5607_vm12, %v5562_v61  ;;  %v6567_v41 = vsel %vm6514_vm4, %v6492_v23, 0 }
 0x637   : > { %6467 = vst.msk [vmem:[#allocation2 + $0xc0] sm:$0xff] %vm6442_vm3, %v6395_v47  ;;  %5848 = vrot.lane.b32.xlu1 %v14454_v34, %s7635_s27  ;;  %v14472_v47 = vld [vmem:[#allocation60_spill] sm:$0xff]  ;;  %v7246_v34 = vcombine.low %v5470_v17, %v12440_v22  ;;  %v14484_v17 = vld [vmem:[#allocation79_spill] sm:$0xff] }
 0x638   : > { %6071 = vrot.lane.b32.xlu0 %v14455_v11, %s7637_s8  ;;  %v14473_v11 = vld [vmem:[#allocation171_spill] sm:$0xff] }
 0x639   : > { %v5952_v10 = vpop.permute.xlu1 %5951  ;;  %v5813_v6 = vpop.permute.xlu0 %5812 }
 0x63a   : > { %5900 = vst.msk [vmem:[#allocation2 + $0x48] sm:$0xff] %vm5890_vm14, %v5813_v6 }
 0x63b   : > { %6232 = vrot.lane.b32.xlu1 %v14456_v48, %s7638_s9  ;;  %6039 = vst.msk [vmem:[#allocation2 + $0x48] sm:$0xff] %vm6029_vm15, %v5952_v10 }
 0x63c   : > { %5832 = vrot.lane.b32.xlu0 %v14457_v44, %s7635_s27  ;;  %v14474_v44 = vld [vmem:[#allocation40_spill] sm:$0xff] }
 0x63d   : > { %v5697_v16 = vpop.permute.xlu1 %5696  ;;  %v5936_v28 = vpop.permute.xlu0 %5935 }
 0x63e   : > { %v6500_v49 = vld [vmem:[#allocation2 + $0xc0] sm:$0xff]  ;;  %5768 = vst.msk [vmem:[#allocation2 + $0xc8] sm:$0xff] %vm5742_vm13, %v5697_v16 }
 0x63f   : > { %6031 = vst.msk [vmem:[#allocation2 + $0x8] sm:$0xff] %vm6029_vm15, %v5936_v28  ;;  %7319 = vmatprep.subr.msk.bf16.mxu1 %vm6514_vm4, %v6500_v49  ;;  %5987 = vrot.lane.b32.xlu1 %v14458_v43, %s7636_s29  ;;  %v7522_v43 = vld [vmem:[%s7735_s11 + $0x2e0] sm:$0xf] }
 0x640   : > { %6216 = vrot.lane.b32.xlu0 %v14459_v42, %s7638_s9  ;;  %7294 = vmatpush3.bf16.xpose.msra.mxu1 %v6567_v41  ;;  %v14475_v41 = vld [vmem:[#allocation194_spill] sm:$0xff]  ;;  %v7250_v42 = vcombine.low %v7521_v19, %v7522_v43 }
 0x641   : > { %v6084_v60 = vpop.permute.xlu1 %6083  ;;  %v5681_v51 = vpop.permute.xlu0 %5680 }
 0x642   : > { %6171 = vst.msk [vmem:[#allocation2 + $0x48] sm:$0xff] %vm6161_vm0, %v6084_v60  ;;  %v14476_v60 = vld [vmem:[#allocation84_spill] sm:$0xff] }
 0x643   : > { %5760 = vst.msk [vmem:[#allocation2 + $0x88] sm:$0xff] %vm5742_vm13, %v5681_v51  ;;  %6368 = vrot.lane.b32.xlu1 %v14460_v29, %s7639_s10 }
 0x644   : > { %5971 = vrot.lane.b32.xlu0 %v14461_v40, %s7636_s29  ;;  %v14477_v40 = vld [vmem:[#allocation168_spill] sm:$0xff] }
 0x645   : > { %v5845_v24 = vpop.permute.xlu1 %5844  ;;  %v6068_v56 = vpop.permute.xlu0 %6067 }
 0x646   : > { %5916 = vst.msk [vmem:[#allocation2 + $0xc8] sm:$0xff] %vm5890_vm14, %v5845_v24 }
 0x647   : > { %6163 = vst.msk [vmem:[#allocation2 + $0x8] sm:$0xff] %vm6161_vm0, %v6068_v56  ;;  %6119 = vrot.lane.b32.xlu1 %v14462_v53, %s7637_s8  ;;  %v14478_v53 = vld [vmem:[#allocation139_spill] sm:$0xff] }
 0x648   : > { %6352 = vrot.lane.b32.xlu0 %v14463_v45, %s7639_s10  ;;  %v7254_v45 = vcombine.low %v12024_v63, %v11997_v62 }
 0x649   : > { %v6229_v35 = vpop.permute.xlu1 %6228  ;;  %v5829_v30 = vpop.permute.xlu0 %5828 }
 0x64a   : > { %6316 = vst.msk [vmem:[#allocation2 + $0x48] sm:$0xff] %vm6306_vm1, %v6229_v35  ;;  %v14479_v35 = vld [vmem:[#allocation224_spill] sm:$0xff] }
 0x64b   : > { %5908 = vst.msk [vmem:[#allocation2 + $0x88] sm:$0xff] %vm5890_vm14, %v5829_v30  ;;  %6264 = vrot.lane.b32.xlu1 %v14464_v1, %s7638_s9  ;;  %v7240_v30 = vrot.slane %v7522_v43, 9  ;;  %v7523_v1 = vld [vmem:[%s7735_s11 + $0x2e4] sm:$0x1]  ;;  %v14489_v43 = vld [vmem:[#allocation184_spill] sm:$0xff] }
 0x64c   : > { %6103 = vrot.lane.b32.xlu0 %v14465_v8, %s7637_s8  ;;  %v5477_v8 = vrot.slane %v7523_v1, 5 }
 0x64d   : > { %v5984_v7 = vpop.permute.xlu1 %5983  ;;  %v6213_v27 = vpop.permute.xlu0 %6212 }
 0x64e   : > { %6055 = vst.msk [vmem:[#allocation2 + $0xc8] sm:$0xff] %vm6029_vm15, %v5984_v7  ;;  %v5478_v62 = vsel %vm8431_vm5, %v7240_v30, %v5477_v8  ;;  %v14493_v8 = vld [vmem:[#allocation61_spill] sm:$0xff] }
 0x64f   : > { %6308 = vst.msk [vmem:[#allocation2 + $0x8] sm:$0xff] %vm6306_vm1, %v6213_v27  ;;  %5670 = vrot.lane.b32.xlu1 %v14466_v38, %s7634_s25  ;;  %v7259_v19 = vcombine.low %v12440_v22, %v5478_v62 }
 0x650   : > { %6248 = vrot.lane.b32.xlu0 %v14467_v36, %s7638_s9  ;;  %v14480_v36 = vld [vmem:[#allocation159_spill] sm:$0xff] }
 0x651   : > { %v6365_v32 = vpop.permute.xlu1 %6364  ;;  %v5968_v58 = vpop.permute.xlu0 %5967 }
 0x652   : > { %6452 = vst.msk [vmem:[#allocation2 + $0x48] sm:$0xff] %vm6442_vm3, %v6365_v32 }
 0x653   : > { %6047 = vst.msk [vmem:[#allocation2 + $0x88] sm:$0xff] %vm6029_vm15, %v5968_v58  ;;  %6400 = vrot.lane.b32.xlu1 %v14469_v0, %s7639_s10  ;;  %v14483_v58 = vld [vmem:[#allocation38_spill] sm:$0xff] }
 0x654   : > { %5654 = vrot.lane.b32.xlu0 %v14470_v3, %s7634_s25 }
 0x655   : > { %v6116_v54 = vpop.permute.xlu1 %6115  ;;  %v6349_v61 = vpop.permute.xlu0 %6348 }
 0x656   : > { %6187 = vst.msk [vmem:[#allocation2 + $0xc8] sm:$0xff] %vm6161_vm0, %v6116_v54 }
 0x657   : > { %6444 = vst.msk [vmem:[#allocation2 + $0x8] sm:$0xff] %vm6442_vm3, %v6349_v61  ;;  %5818 = vrot.lane.b32.xlu1 %v14472_v47, %s7635_s27  ;;  %v14485_v61 = vld [vmem:[#allocation106_spill] sm:$0xff]  ;;  %v7524_v47 = vld [vmem:[%s7735_s11 + $0x2e8] sm:$0xf] }
 0x658   : > { %6384 = vrot.lane.b32.xlu0 %v14473_v11, %s7639_s10  ;;  %v7525_v11 = vld [vmem:[%s7735_s11 + $0x2ec] sm:$0x1] }
 0x659   : > { %v6261_v10 = vpop.permute.xlu1 %6260  ;;  %v6485_v6 = vld [vmem:[#allocation2 + $0x48] sm:$0xff]  ;;  %v6100_v48 = vpop.permute.xlu0 %6099 }
 0x65a   : > { %6332 = vst.msk [vmem:[#allocation2 + $0xc8] sm:$0xff] %vm6306_vm1, %v6261_v10  ;;  %7312 = vmatprep.subr.msk.bf16.mxu0 %vm6514_vm4, %v6485_v6  ;;  %v5481_v10 = vrot.slane %v7525_v11, 5 }
 0x65b   : > { %6179 = vst.msk [vmem:[#allocation2 + $0x88] sm:$0xff] %vm6161_vm0, %v6100_v48  ;;  %5567 = vrot.lane.b32.xlu1 %v7246_v34, %s7633_s24  ;;  %v7241_v34 = vrot.slane %v7524_v47, 9  ;;  %v14486_v48 = vld [vmem:[#allocation156_spill] sm:$0xff] }
 0x65c   : > { %5802 = vrot.lane.b32.xlu0 %v14474_v44, %s7635_s27 }
 0x65d   : > { %v5667_v23 = vpop.permute.xlu1 %5666  ;;  %v6245_v16 = vpop.permute.xlu0 %6244  ;;  %v12520_v44 = vsel %vm8431_vm5, %v7241_v34, %v5481_v10  ;;  %v14499_v34 = vld [vmem:[#allocation44_spill] sm:$0xff] }
 0x65e   : > { %v6477_v28 = vld [vmem:[#allocation2 + $0x8] sm:$0xff]  ;;  %5753 = vst.msk [vmem:[#allocation2 + $0x50] sm:$0xff] %vm5742_vm13, %v5667_v23 }
 0x65f   : > { %6324 = vst.msk [vmem:[#allocation2 + $0x88] sm:$0xff] %vm6306_vm1, %v6245_v16  ;;  %v6522_v49 = vsel %vm6514_vm4, %v6477_v28, 0  ;;  %5957 = vrot.lane.b32.xlu1 %v14475_v41, %s7636_s29  ;;  %v14487_v16 = vld [vmem:[#allocation213_spill] sm:$0xff]  ;;  %v7247_v28 = vcombine.low %v5478_v62, %v12520_v44  ;;  %v14494_v62 = vld [vmem:[#allocation55_spill] sm:$0xff] }
 0x660   : > { %5551 = vrot.lane.b32.xlu0 %v14476_v60, %s7633_s24  ;;  %7278 = vmatpush3.bf16.xpose.msra.mxu0 %v6522_v49 }
 0x661   : > { %v6397_v51 = vpop.permute.xlu1 %6396  ;;  %v5651_v29 = vpop.permute.xlu0 %5650 }
 0x662   : > { %6468 = vst.msk [vmem:[#allocation2 + $0xc8] sm:$0xff] %vm6442_vm3, %v6397_v51  ;;  %v14490_v51 = vld [vmem:[#allocation34_spill] sm:$0xff] }
 0x663   : > { %5745 = vst.msk [vmem:[#allocation2 + $0x10] sm:$0xff] %vm5742_vm13, %v5651_v29  ;;  %5702 = vrot.lane.b32.xlu1 %v7250_v42, %s7634_s25  ;;  %v14491_v29 = vld [vmem:[#allocation76_spill] sm:$0xff] }
 0x664   : > { %5941 = vrot.lane.b32.xlu0 %v14477_v40, %s7636_s29 }
 0x665   : > { %v5815_v24 = vpop.permute.xlu1 %5814  ;;  %v6381_v56 = vpop.permute.xlu0 %6380 }
 0x666   : > { %5901 = vst.msk [vmem:[#allocation2 + $0x50] sm:$0xff] %vm5890_vm14, %v5815_v24 }
 0x667   : > { %6460 = vst.msk [vmem:[#allocation2 + $0x88] sm:$0xff] %vm6442_vm3, %v6381_v56  ;;  %6089 = vrot.lane.b32.xlu1 %v14478_v53, %s7637_s8  ;;  %v14492_v56 = vld [vmem:[#allocation13_spill] sm:$0xff] }
 0x668   : > { %5686 = vrot.lane.b32.xlu0 %v14479_v35, %s7634_s25 }
 0x669   : > { %v5938_v7 = vpop.permute.xlu1 %5937  ;;  %v6501_v27 = vld [vmem:[#allocation2 + $0xc8] sm:$0xff]  ;;  %v5799_v38 = vpop.permute.xlu0 %5798 }
 0x66a   : > { %7320 = vmatprep.subr.msk.bf16.mxu1 %vm6514_vm4, %v6501_v27  ;;  %5893 = vst.msk [vmem:[#allocation2 + $0x10] sm:$0xff] %vm5890_vm14, %v5799_v38 }
 0x66b   : > { %5850 = vrot.lane.b32.xlu1 %v7254_v45, %s7635_s27  ;;  %6032 = vst.msk [vmem:[#allocation2 + $0x10] sm:$0xff] %vm6029_vm15, %v5938_v7  ;;  %v7526_v7 = vld [vmem:[%s7735_s11 + $0x2f0] sm:$0xf] }
 0x66c   : > { %6073 = vrot.lane.b32.xlu0 %v14480_v36, %s7637_s8  ;;  %v7251_v27 = vcombine.low %v7524_v47, %v7526_v7 }
 0x66d   : > { %v5683_v63 = vpop.permute.xlu1 %5682  ;;  %v5564_v26 = vpop.permute.xlu0 %5563 }
 0x66e   : > { %v6493_v20 = vld [vmem:[#allocation2 + $0x88] sm:$0xff]  ;;  %5761 = vst.msk [vmem:[#allocation2 + $0x90] sm:$0xff] %vm5742_vm13, %v5683_v63 }
 0x66f   : > { %5634 = vst.msk [vmem:[#allocation2 + $0xd0] sm:$0xff] %vm5607_vm12, %v5564_v26  ;;  %v6570_v12 = vsel %vm6514_vm4, %v6493_v20, 0  ;;  %6234 = vrot.lane.b32.xlu1 %v14481_v33, %s7638_s9  ;;  %v14495_v20 = vld [vmem:[#allocation176_spill] sm:$0xff]  ;;  %v14496_v33 = vld [vmem:[#allocation221_spill] sm:$0xff] }
 0x670   : > { %5834 = vrot.lane.b32.xlu0 %v14482_v57, %s7635_s27  ;;  %7296 = vmatpush3.bf16.xpose.msra.mxu1 %v6570_v12  ;;  %v7255_v12 = vcombine.low %v12006_v46, %v12047_v55  ;;  %v7527_v57 = vld [vmem:[%s7735_s11 + $0x2f4] sm:$0x1] }
 0x671   : > { %v6070_v21 = vpop.permute.xlu1 %6069  ;;  %v5954_v32 = vpop.permute.xlu0 %5953 }
 0x672   : > { %6164 = vst.msk [vmem:[#allocation2 + $0x10] sm:$0xff] %vm6161_vm0, %v6070_v21  ;;  %v5485_v21 = vrot.slane %v7527_v57, 5 }
 0x673   : > { %6040 = vst.msk [vmem:[#allocation2 + $0x50] sm:$0xff] %vm6029_vm15, %v5954_v32  ;;  %5989 = vrot.lane.b32.xlu1 %v7259_v19, %s7636_s29  ;;  %v7242_v19 = vrot.slane %v7526_v7, 9 }
 0x674   : > { %6218 = vrot.lane.b32.xlu0 %v14483_v58, %s7638_s9 }
 0x675   : > { %v5831_v0 = vpop.permute.xlu1 %5830  ;;  %v5699_v3 = vpop.permute.xlu0 %5698  ;;  %v5486_v46 = vsel %vm8431_vm5, %v7242_v19, %v5485_v21  ;;  %v14510_v19 = vld [vmem:[#allocation81_spill] sm:$0xff] }
 0x676   : > { %5909 = vst.msk [vmem:[#allocation2 + $0x90] sm:$0xff] %vm5890_vm14, %v5831_v0  ;;  %v14497_v0 = vld [vmem:[#allocation125_spill] sm:$0xff]  ;;  %v7260_v47 = vcombine.low %v12520_v44, %v5486_v46 }
 0x677   : > { %5769 = vst.msk [vmem:[#allocation2 + $0xd0] sm:$0xff] %vm5742_vm13, %v5699_v3  ;;  %6370 = vrot.lane.b32.xlu1 %v14128_v31, %s7639_s10  ;;  %v14501_v44 = vld [vmem:[#allocation85_spill] sm:$0xff] }
 0x678   : > { %5973 = vrot.lane.b32.xlu0 %v14484_v17, %s7636_s29 }
 0x679   : > { %v6215_v22 = vpop.permute.xlu1 %6214  ;;  %v6086_v54 = vpop.permute.xlu0 %6085 }
 0x67a   : > { %6309 = vst.msk [vmem:[#allocation2 + $0x10] sm:$0xff] %vm6306_vm1, %v6215_v22 }
 0x67b   : > { %6172 = vst.msk [vmem:[#allocation2 + $0x50] sm:$0xff] %vm6161_vm0, %v6086_v54  ;;  %6121 = vrot.lane.b32.xlu1 %v14485_v61, %s7637_s8  ;;  %v14498_v61 = vld [vmem:[#allocation66_spill] sm:$0xff] }
 0x67c   : > { %6354 = vrot.lane.b32.xlu0 %v14120_v15, %s7639_s10 }
 0x67d   : > { %v5970_v31 = vpop.permute.xlu1 %5969  ;;  %v5847_v6 = vpop.permute.xlu0 %5846 }
 0x67e   : > { %6048 = vst.msk [vmem:[#allocation2 + $0x90] sm:$0xff] %vm6029_vm15, %v5970_v31  ;;  %v14500_v31 = vld [vmem:[#allocation46_spill] sm:$0xff] }
 0x67f   : > { %5917 = vst.msk [vmem:[#allocation2 + $0xd0] sm:$0xff] %vm5890_vm14, %v5847_v6  ;;  %6266 = vrot.lane.b32.xlu1 %v12016_v52, %s7638_s9  ;;  %v14488_v52 = vld [vmem:[#allocation93_spill] sm:$0xff] }
 0x680   : > { %6105 = vrot.lane.b32.xlu0 %v14486_v48, %s7637_s8 }
 0x681   : > { %v6351_v15 = vpop.permute.xlu1 %6350  ;;  %v6231_v23 = vpop.permute.xlu0 %6230 }
 0x682   : > { %6445 = vst.msk [vmem:[#allocation2 + $0x10] sm:$0xff] %vm6442_vm3, %v6351_v15 }
 0x683   : > { %6317 = vst.msk [vmem:[#allocation2 + $0x50] sm:$0xff] %vm6306_vm1, %v6231_v23  ;;  %5672 = vrot.lane.b32.xlu1 %v14487_v16, %s7634_s25  ;;  %v14502_v16 = vld [vmem:[#allocation114_spill] sm:$0xff] }
 0x684   : > { %6250 = vrot.lane.b32.xlu0 %v14488_v52, %s7638_s9 }
 0x685   : > { %v6102_v49 = vpop.permute.xlu1 %6101  ;;  %v5986_v41 = vpop.permute.xlu0 %5985 }
 0x686   : > { %6180 = vst.msk [vmem:[#allocation2 + $0x90] sm:$0xff] %vm6161_vm0, %v6102_v49  ;;  %v7529_v49 = vld [vmem:[%s7735_s11 + $0x2fc] sm:$0x1] }
 0x687   : > { %6056 = vst.msk [vmem:[#allocation2 + $0xd0] sm:$0xff] %vm6029_vm15, %v5986_v41  ;;  %6402 = vrot.lane.b32.xlu1 %v7247_v28, %s7639_s10  ;;  %v5489_v41 = vrot.slane %v7529_v49, 5 }
 0x688   : > { %5656 = vrot.lane.b32.xlu0 %v14489_v43, %s7634_s25 }
 0x689   : > { %v6247_v42 = vpop.permute.xlu1 %6246  ;;  %v6367_v60 = vpop.permute.xlu0 %6366  ;;  %v6478_v53 = vld [vmem:[#allocation2 + $0x10] sm:$0xff] }
 0x68a   : > { %6325 = vst.msk [vmem:[#allocation2 + $0x90] sm:$0xff] %vm6306_vm1, %v6247_v42  ;;  %v6525_v1 = vsel %vm6514_vm4, %v6478_v53, 0  ;;  %v14503_v42 = vld [vmem:[#allocation165_spill] sm:$0xff] }
 0x68b   : > { %6453 = vst.msk [vmem:[#allocation2 + $0x50] sm:$0xff] %vm6442_vm3, %v6367_v60  ;;  %5820 = vrot.lane.b32.xlu1 %v14490_v51, %s7635_s27 }
 0x68c   : > { %6386 = vrot.lane.b32.xlu0 %v14491_v29, %s7639_s10 }
 0x68d   : > { %v5653_v40 = vpop.permute.xlu1 %5652  ;;  %v6118_v24 = vpop.permute.xlu0 %6117 }
 0x68e   : > { %5746 = vst.msk [vmem:[#allocation2 + $0x18] sm:$0xff] %vm5742_vm13, %v5653_v40 }
 0x68f   : > { %6188 = vst.msk [vmem:[#allocation2 + $0xd0] sm:$0xff] %vm6161_vm0, %v6118_v24  ;;  %5569 = vrot.lane.b32.xlu1 %v7247_v28, %s7633_s24  ;;  %v7528_v28 = vld [vmem:[%s7735_s11 + $0x2f8] sm:$0xf] }
 0x690   : > { %5804 = vrot.lane.b32.xlu0 %v14492_v56, %s7635_s27  ;;  %v7243_v52 = vrot.slane %v7528_v28, 9  ;;  %v14505_v56 = vld [vmem:[#allocation210_spill] sm:$0xff] }
 0x691   : > { %v6383_v45 = vpop.permute.xlu1 %6382  ;;  %v6263_v35 = vpop.permute.xlu0 %6262 }
 0x692   : > { %v6486_v30 = vld [vmem:[#allocation2 + $0x50] sm:$0xff]  ;;  %6461 = vst.msk [vmem:[#allocation2 + $0x90] sm:$0xff] %vm6442_vm3, %v6383_v45  ;;  %v12611_v60 = vsel %vm8431_vm5, %v7243_v52, %v5489_v41 }
 0x693   : > { %6333 = vst.msk [vmem:[#allocation2 + $0xd0] sm:$0xff] %vm6306_vm1, %v6263_v35  ;;  %7313 = vmatprep.subr.msk.bf16.mxu0 %vm6514_vm4, %v6486_v30  ;;  %5959 = vrot.lane.b32.xlu1 %v14493_v8, %s7636_s29  ;;  %v7248_v40 = vcombine.low %v5486_v46, %v12611_v60  ;;  %v14507_v30 = vld [vmem:[#allocation123_spill] sm:$0xff]  ;;  %v14518_v41 = vld [vmem:[#allocation140_spill] sm:$0xff] }
 0x694   : > { %5553 = vrot.lane.b32.xlu0 %v14491_v29, %s7633_s24  ;;  %7280 = vmatpush3.bf16.xpose.msra.mxu0 %v6525_v1  ;;  %v14504_v29 = vld [vmem:[#allocation218_spill] sm:$0xff] }
 0x695   : > { %v5801_v38 = vpop.permute.xlu1 %5800  ;;  %v5669_v36 = vpop.permute.xlu0 %5668 }
 0x696   : > { %5894 = vst.msk [vmem:[#allocation2 + $0x18] sm:$0xff] %vm5890_vm14, %v5801_v38  ;;  %v14508_v38 = vld [vmem:[#allocation8_spill] sm:$0xff] }
 0x697   : > { %5754 = vst.msk [vmem:[#allocation2 + $0x58] sm:$0xff] %vm5742_vm13, %v5669_v36  ;;  %5704 = vrot.lane.b32.xlu1 %v7251_v27, %s7634_s25 }
 0x698   : > { %5943 = vrot.lane.b32.xlu0 %v14494_v62, %s7636_s29 }
 0x699   : > { %v5566_v63 = vpop.permute.xlu1 %5565  ;;  %v6399_v26 = vpop.permute.xlu0 %6398  ;;  %v6494_v3 = vld [vmem:[#allocation2 + $0x90] sm:$0xff] }
 0x69a   : > { %5635 = vst.msk [vmem:[#allocation2 + $0xd8] sm:$0xff] %vm5607_vm12, %v5566_v63  ;;  %v6573_v54 = vsel %vm6514_vm4, %v6494_v3, 0  ;;  %v14509_v63 = vld [vmem:[#allocation90_spill] sm:$0xff] }
 0x69b   : > { %6469 = vst.msk [vmem:[#allocation2 + $0xd0] sm:$0xff] %vm6442_vm3, %v6399_v26  ;;  %6091 = vrot.lane.b32.xlu1 %v14495_v20, %s7637_s8  ;;  %v7530_v26 = vld [vmem:[%s7735_s11 + $0x300] sm:$0xf] }
 0x69c   : > { %5688 = vrot.lane.b32.xlu0 %v14496_v33, %s7634_s25  ;;  %v7252_v20 = vcombine.low %v7528_v28, %v7530_v26  ;;  %v14512_v3 = vld [vmem:[#allocation6_spill] sm:$0xff]  ;;  %v7244_v46 = vrot.slane %v7530_v26, 9  ;;  %v14517_v28 = vld [vmem:[#allocation109_spill] sm:$0xff]  ;;  %v477_v26 = vld [vmem:[%s7735_s11 + $0x314] sm:$0x1] }
 0x69d   : > { %v5956_v32 = vpop.permute.xlu1 %5955  ;;  %v5817_v58 = vpop.permute.xlu0 %5816 }
 0x69e   : > { %5902 = vst.msk [vmem:[#allocation2 + $0x58] sm:$0xff] %vm5890_vm14, %v5817_v58  ;;  %v14511_v58 = vld [vmem:[#allocation166_spill] sm:$0xff] }
 0x69f   : > { %5852 = vrot.lane.b32.xlu1 %v7255_v12, %s7635_s27  ;;  %6041 = vst.msk [vmem:[#allocation2 + $0x58] sm:$0xff] %vm6029_vm15, %v5956_v32 }
 0x6a0   : > { %6075 = vrot.lane.b32.xlu0 %v14497_v0, %s7637_s8  ;;  %v7256_v0 = vcombine.low %v12051_v18, %v12028_v37 }
 0x6a1   : > { %v5701_v55 = vpop.permute.xlu1 %5700 }
 0x6a2   : > { %v5940_v17 = vpop.permute.xlu0 %5939  ;;  %v6502_v22 = vld [vmem:[#allocation2 + $0xd0] sm:$0xff]  ;;  %5770 = vst.msk [vmem:[#allocation2 + $0xd8] sm:$0xff] %vm5742_vm13, %v5701_v55  ;;  %v7531_v55 = vld [vmem:[%s7735_s11 + $0x304] sm:$0x1] }
 0x6a3   : > { %6033 = vst.msk [vmem:[#allocation2 + $0x18] sm:$0xff] %vm6029_vm15, %v5940_v17  ;;  %7321 = vmatprep.subr.msk.bf16.mxu1 %vm6514_vm4, %v6502_v22  ;;  %6236 = vrot.lane.b32.xlu1 %v14498_v61, %s7638_s9  ;;  %v5493_v17 = vrot.slane %v7531_v55, 5 }
 0x6a4   : > { %5836 = vrot.lane.b32.xlu0 %v14499_v34, %s7635_s27  ;;  %7298 = vmatpush3.bf16.xpose.msra.mxu1 %v6573_v54  ;;  %v14513_v34 = vld [vmem:[#allocation94_spill] sm:$0xff] }
 0x6a5   : > { %v6088_v11 = vpop.permute.xlu1 %6087  ;;  %v5494_v37 = vsel %vm8431_vm5, %v7244_v46, %v5493_v17 }
 0x6a6   : > { %v5685_v10 = vpop.permute.xlu0 %5684  ;;  %6173 = vst.msk [vmem:[#allocation2 + $0x58] sm:$0xff] %vm6161_vm0, %v6088_v11 }
 0x6a7   : > { %5762 = vst.msk [vmem:[#allocation2 + $0x98] sm:$0xff] %vm5742_vm13, %v5685_v10  ;;  %5991 = vrot.lane.b32.xlu1 %v7260_v47, %s7636_s29  ;;  %v14514_v10 = vld [vmem:[#allocation63_spill] sm:$0xff] }
 0x6a8   : > { %6220 = vrot.lane.b32.xlu0 %v14500_v31, %s7638_s9  ;;  %v7261_v31 = vcombine.low %v12611_v60, %v5494_v37 }
 0x6a9   : > { %v5849_v6 = vpop.permute.xlu1 %5848 }
 0x6aa   : > { %v6072_v48 = vpop.permute.xlu0 %6071  ;;  %5918 = vst.msk [vmem:[#allocation2 + $0xd8] sm:$0xff] %vm5890_vm14, %v5849_v6  ;;  %v14515_v6 = vld [vmem:[#allocation41_spill] sm:$0xff] }
 0x6ab   : > { %6165 = vst.msk [vmem:[#allocation2 + $0x18] sm:$0xff] %vm6161_vm0, %v6072_v48  ;;  %6372 = vrot.lane.b32.xlu1 %v14125_v5, %s7639_s10 }
 0x6ac   : > { %5975 = vrot.lane.b32.xlu0 %v14501_v44, %s7636_s29 }
 0x6ad   : > { %v6233_v15 = vpop.permute.xlu1 %6232 }
 0x6ae   : > { %v5833_v23 = vpop.permute.xlu0 %5832  ;;  %6318 = vst.msk [vmem:[#allocation2 + $0x58] sm:$0xff] %vm6306_vm1, %v6233_v15  ;;  %v14516_v15 = vld [vmem:[#allocation43_spill] sm:$0xff] }
 0x6af   : > { %5910 = vst.msk [vmem:[#allocation2 + $0x98] sm:$0xff] %vm5890_vm14, %v5833_v23  ;;  %6123 = vrot.lane.b32.xlu1 %v14502_v16, %s7637_s8 }
 0x6b0   : > { %6356 = vrot.lane.b32.xlu0 %v14117_v14, %s7639_s10 }
 0x6b1   : > { %v5988_v5 = vpop.permute.xlu1 %5987 }
 0x6b2   : > { %v6217_v43 = vpop.permute.xlu0 %6216  ;;  %6057 = vst.msk [vmem:[#allocation2 + $0xd8] sm:$0xff] %vm6029_vm15, %v5988_v5  ;;  %v7532_v5 = vld [vmem:[%s7735_s11 + $0x308] sm:$0xf] }
 0x6b3   : > { %6310 = vst.msk [vmem:[#allocation2 + $0x18] sm:$0xff] %vm6306_vm1, %v6217_v43  ;;  %6268 = vrot.lane.b32.xlu1 %v12060_v4, %s7638_s9  ;;  %v7245_v43 = vrot.slane %v7532_v5, 9 }
 0x6b4   : > { %6107 = vrot.lane.b32.xlu0 %v14503_v42, %s7637_s8  ;;  %v7533_v42 = vld [vmem:[%s7735_s11 + $0x30c] sm:$0x1] }
 0x6b5   : > { %v6369_v14 = vpop.permute.xlu1 %6368  ;;  %v5497_v60 = vrot.slane %v7533_v42, 5  ;;  %v479_v42 = vld [vmem:[%s7735_s11 + $0x31c] sm:$0x1] }
 0x6b6   : > { %v5972_v51 = vpop.permute.xlu0 %5971  ;;  %6454 = vst.msk [vmem:[#allocation2 + $0x58] sm:$0xff] %vm6442_vm3, %v6369_v14 }
 0x6b7   : > { %6049 = vst.msk [vmem:[#allocation2 + $0x98] sm:$0xff] %vm6029_vm15, %v5972_v51  ;;  %5674 = vrot.lane.b32.xlu1 %v14504_v29, %s7634_s25  ;;  %v14519_v51 = vld [vmem:[#allocation158_spill] sm:$0xff] }
 0x6b8   : > { %6252 = vrot.lane.b32.xlu0 %v14387_v9, %s7638_s9  ;;  %v14506_v9 = vld [vmem:[#allocation31_spill] sm:$0xff] }
 0x6b9   : > { %v6120_v4 = vpop.permute.xlu1 %6119 }
 0x6ba   : > { %v6353_v24 = vpop.permute.xlu0 %6352  ;;  %6189 = vst.msk [vmem:[#allocation2 + $0xd8] sm:$0xff] %vm6161_vm0, %v6120_v4  ;;  %v14520_v4 = vld [vmem:[#allocation215_spill] sm:$0xff] }
 0x6bb   : > { %6446 = vst.msk [vmem:[#allocation2 + $0x18] sm:$0xff] %vm6442_vm3, %v6353_v24  ;;  %6404 = vrot.lane.b32.xlu1 %v7248_v40, %s7639_s10 }
 0x6bc   : > { %5658 = vrot.lane.b32.xlu0 %v14505_v56, %s7634_s25 }
 0x6bd   : > { %v6265_v53 = vpop.permute.xlu1 %6264  ;;  %v6487_v45 = vld [vmem:[#allocation2 + $0x58] sm:$0xff] }
 0x6be   : > { %v6104_v35 = vpop.permute.xlu0 %6103  ;;  %6334 = vst.msk [vmem:[#allocation2 + $0xd8] sm:$0xff] %vm6306_vm1, %v6265_v53  ;;  %7314 = vmatprep.subr.msk.bf16.mxu0 %vm6514_vm4, %v6487_v45  ;;  %v12712_v53 = vld [vmem:[%s7735_s11 + $0x310] sm:$0xf] }
 0x6bf   : > { %6181 = vst.msk [vmem:[#allocation2 + $0x98] sm:$0xff] %vm6161_vm0, %v6104_v35  ;;  %5822 = vrot.lane.b32.xlu1 %v14506_v9, %s7635_s27  ;;  %v14522_v35 = vld [vmem:[#allocation207_spill] sm:$0xff]  ;;  %v5776_v9 = vshrl.u32 %v12712_v53, 16 }
 0x6c0   : > { %6388 = vrot.lane.b32.xlu0 %v14507_v30, %s7639_s10 }
 0x6c1   : > { %v5671_v1 = vpop.permute.xlu1 %5670 }
 0x6c2   : > { %v6249_v8 = vpop.permute.xlu0 %6248  ;;  %v6479_v7 = vld [vmem:[#allocation2 + $0x18] sm:$0xff]  ;;  %5755 = vst.msk [vmem:[#allocation2 + $0x60] sm:$0xff] %vm5742_vm13, %v5671_v1 }
 0x6c3   : > { %6326 = vst.msk [vmem:[#allocation2 + $0x98] sm:$0xff] %vm6306_vm1, %v6249_v8  ;;  %v6528_v27 = vsel %vm6514_vm4, %v6479_v7, 0  ;;  %5571 = vrot.lane.b32.xlu1 %v7248_v40, %s7633_s24 }
 0x6c4   : > { %5806 = vrot.lane.b32.xlu0 %v14508_v38, %s7635_s27  ;;  %7282 = vmatpush3.bf16.xpose.msra.mxu0 %v6528_v27  ;;  %v14523_v27 = vld [vmem:[#allocation27_spill] sm:$0xff] }
 0x6c5   : > { %v6401_v36 = vpop.permute.xlu1 %6400  ;;  %v14524_v38 = vld [vmem:[#allocation119_spill] sm:$0xff] }
 0x6c6   : > { %v5655_v62 = vpop.permute.xlu0 %5654  ;;  %6470 = vst.msk [vmem:[#allocation2 + $0xd8] sm:$0xff] %vm6442_vm3, %v6401_v36  ;;  %v5778_v36 = vrot.slane %v5776_v9, 4  ;;  %v14534_v9 = vld [vmem:[#allocation157_spill] sm:$0xff] }
 0x6c7   : > { %5747 = vst.msk [vmem:[#allocation2 + $0x20] sm:$0xff] %vm5742_vm13, %v5655_v62  ;;  %5961 = vrot.lane.b32.xlu1 %v14509_v63, %s7636_s29 }
 0x6c8   : > { %5555 = vrot.lane.b32.xlu0 %v14507_v30, %s7633_s24  ;;  %v5779_v30 = vshll.u32 %v12712_v53, 16 }
 0x6c9   : > { %v5819_v12 = vpop.permute.xlu1 %5818 }
 0x6ca   : > { %v6385_v33 = vpop.permute.xlu0 %6384  ;;  %5903 = vst.msk [vmem:[#allocation2 + $0x60] sm:$0xff] %vm5890_vm14, %v5819_v12  ;;  %v5781_v62 = vrot.slane %v5779_v30, 5 }
 0x6cb   : > { %6462 = vst.msk [vmem:[#allocation2 + $0x98] sm:$0xff] %vm6442_vm3, %v6385_v33  ;;  %5706 = vrot.lane.b32.xlu1 %v7252_v20, %s7634_s25 }
 0x6cc   : > { %5945 = vrot.lane.b32.xlu0 %v14510_v19, %s7636_s29  ;;  %v14525_v19 = vld [vmem:[#allocation22_spill] sm:$0xff] }
 0x6cd   : > { %v5568_v57 = vpop.permute.xlu1 %5567  ;;  %v6503_v21 = vld [vmem:[#allocation2 + $0xd8] sm:$0xff] }
 0x6ce   : > { %v5803_v32 = vpop.permute.xlu0 %5802  ;;  %5636 = vst.msk [vmem:[#allocation2 + $0xe0] sm:$0xff] %vm5607_vm12, %v5568_v57  ;;  %7322 = vmatprep.subr.msk.bf16.mxu1 %vm6514_vm4, %v6503_v21  ;;  %v5782_v57 = vor.u32 %v5781_v62, %v5778_v36  ;;  %v5785_v21 = vshll.u32 %v477_v26, 16 }
 0x6cf   : > { %5895 = vst.msk [vmem:[#allocation2 + $0x20] sm:$0xff] %vm5890_vm14, %v5803_v32  ;;  %6093 = vrot.lane.b32.xlu1 %v14511_v58, %s7637_s8 }
 0x6d0   : > { %5690 = vrot.lane.b32.xlu0 %v14512_v3, %s7634_s25  ;;  %v7253_v3 = vcombine.low %v7532_v5, %v12712_v53  ;;  %v5783_v46 = vrot.slane %v5782_v57, 4  ;;  %v5787_v55 = vrot.slane %v5785_v21, 5  ;;  %v14538_v57 = vld [vmem:[#allocation137_spill] sm:$0xff] }
 0x6d1   : > { %v5958_v22 = vpop.permute.xlu1 %5957 }
 0x6d2   : > { %v5552_v54 = vpop.permute.xlu0 %5551  ;;  %v6495_v61 = vld [vmem:[#allocation2 + $0x98] sm:$0xff]  ;;  %6042 = vst.msk [vmem:[#allocation2 + $0x60] sm:$0xff] %vm6029_vm15, %v5958_v22 }
 0x6d3   : > { %5628 = vst.msk [vmem:[#allocation2 + $0xa0] sm:$0xff] %vm5607_vm12, %v5552_v54  ;;  %v6576_v47 = vsel %vm6514_vm4, %v6495_v61, 0  ;;  %5854 = vrot.lane.b32.xlu1 %v7256_v0, %s7635_s27  ;;  %v14526_v0 = vld [vmem:[#allocation78_spill] sm:$0xff]  ;;  %v14527_v54 = vld [vmem:[#allocation57_spill] sm:$0xff]  ;;  %v5788_v61 = vsel %vm7748_vm2, %v5783_v46, %v5787_v55 }
 0x6d4   : > { %6077 = vrot.lane.b32.xlu0 %v14513_v34, %s7637_s8  ;;  %7300 = vmatpush3.bf16.xpose.msra.mxu1 %v6576_v47  ;;  %v6508_v55 = vld [vmem:[%s12954_s2] sm:$0xff] }
 0x6d5   : > { %v5703_v18 = vpop.permute.xlu1 %5702 }
 0x6d6   : > { %v5942_v11 = vpop.permute.xlu0 %5941  ;;  %5771 = vst.msk [vmem:[#allocation2 + $0xe0] sm:$0xff] %vm5742_vm13, %v5703_v18 }
 0x6d7   : > { %6034 = vst.msk [vmem:[#allocation2 + $0x20] sm:$0xff] %vm6029_vm15, %v5942_v11  ;;  %6238 = vrot.lane.b32.xlu1 %v14514_v10, %s7638_s9  ;;  %v14528_v11 = vld [vmem:[#allocation121_spill] sm:$0xff]  ;;  %v7257_v10 = vcombine.low %v12032_v2, %v5788_v61  ;;  %v14530_v2 = vld [vmem:[#allocation115_spill] sm:$0xff] }
 0x6d8   : > { %5838 = vrot.lane.b32.xlu0 %v14515_v6, %s7635_s27  ;;  %v7258_v6 = vrot.slane %v12712_v53, 9 }
 0x6d9   : > { %v6090_v48 = vpop.permute.xlu1 %6089 }
 0x6da   : > { %v5687_v44 = vpop.permute.xlu0 %5686  ;;  %6174 = vst.msk [vmem:[#allocation2 + $0x60] sm:$0xff] %vm6161_vm0, %v6090_v48  ;;  %v5926_v48 = vrot.slane %v477_v26, 5 }
 0x6db   : > { %5763 = vst.msk [vmem:[#allocation2 + $0xa0] sm:$0xff] %vm5742_vm13, %v5687_v44  ;;  %5993 = vrot.lane.b32.xlu1 %v7261_v31, %s7636_s29  ;;  %v14529_v31 = vld [vmem:[#allocation223_spill] sm:$0xff] }
 0x6dc   : > { %6222 = vrot.lane.b32.xlu0 %v14516_v15, %s7638_s9 }
 0x6dd   : > { %v5851_v23 = vpop.permute.xlu1 %5850 }
 0x6de   : > { %v6074_v16 = vpop.permute.xlu0 %6073  ;;  %5919 = vst.msk [vmem:[#allocation2 + $0xe0] sm:$0xff] %vm5890_vm14, %v5851_v23 }
 0x6df   : > { %6166 = vst.msk [vmem:[#allocation2 + $0x20] sm:$0xff] %vm6161_vm0, %v6074_v16  ;;  %6374 = vrot.lane.b32.xlu1 %v14131_v13, %s7639_s10 }
 0x6e0   : > { %5977 = vrot.lane.b32.xlu0 %v14517_v28, %s7636_s29 }
 0x6e1   : > { %v6235_v52 = vpop.permute.xlu1 %6234 }
 0x6e2   : > { %v5835_v49 = vpop.permute.xlu0 %5834  ;;  %6319 = vst.msk [vmem:[#allocation2 + $0x60] sm:$0xff] %vm6306_vm1, %v6235_v52 }
 0x6e3   : > { %5911 = vst.msk [vmem:[#allocation2 + $0xa0] sm:$0xff] %vm5890_vm14, %v5835_v49  ;;  %6125 = vrot.lane.b32.xlu1 %v14518_v41, %s7637_s8  ;;  %v5927_v49 = vsel %vm8431_vm5, %v7258_v6, %v5926_v48 }
 0x6e4   : > { %6358 = vrot.lane.b32.xlu0 %v14123_v25, %s7639_s10  ;;  %v12702_v25 = vsel %vm8431_vm5, %v7245_v43, %v5497_v60 }
 0x6e5   : > { %v5990_v13 = vpop.permute.xlu1 %5989  ;;  %v7249_v24 = vcombine.low %v5494_v37, %v12702_v25  ;;  %v478_v37 = vld [vmem:[%s7735_s11 + $0x318] sm:$0xf]  ;;  %s7641_s11 = smov [#allocation3]  }
 0x6e6   : > { %v6219_v14 = vpop.permute.xlu0 %6218  ;;  %6058 = vst.msk [vmem:[#allocation2 + $0xe0] sm:$0xff] %vm6029_vm15, %v5990_v13  ;;  %v6195_v44 = vshrl.u32 %v478_v37, 16  ;;  %v6198_v15 = vshll.u32 %v478_v37, 16  ;;  %v14531_v13 = vld [vmem:[#allocation141_spill] sm:$0xff]  ;;  %v7263_v30 = vcombine.low %v12712_v53, %v478_v37  ;;  %s7538_s12 = sshll.u32 %s7641_s11, 4  ;;  %s7539_s12 = int_to_ptr.vmem [resolvable:$false] %s7538_s12 }
 0x6e7   : > { %6311 = vst.msk [vmem:[#allocation2 + $0x20] sm:$0xff] %vm6306_vm1, %v6219_v14  ;;  %6270 = vrot.lane.b32.xlu1 %v12040_v50, %s7638_s9  ;;  %v14521_v50 = vld [vmem:[#allocation102_spill] sm:$0xff]  ;;  %v7262_v14 = vcombine.low %v12702_v25, %v5927_v49  ;;  %s7540_s13 = scalar_lea.vmem %s7539_s12, 1024 }
 0x6e8   : > { %6109 = vrot.lane.b32.xlu0 %v14519_v51, %s7637_s8  ;;  %v6197_v41 = vrot.slane %v6195_v44, 4  ;;  %v6200_v5 = vrot.slane %v6198_v15, 5  ;;  %v14532_v51 = vld [vmem:[#allocation42_spill] sm:$0xff] }
 0x6e9   : > { %v6371_v29 = vpop.permute.xlu1 %6370 }
 0x6ea   : > { %v5974_v40 = vpop.permute.xlu0 %5973  ;;  %6455 = vst.msk [vmem:[#allocation2 + $0x60] sm:$0xff] %vm6442_vm3, %v6371_v29  ;;  %v6201_v29 = vor.u32 %v6200_v5, %v6197_v41 }
 0x6eb   : > { %6050 = vst.msk [vmem:[#allocation2 + $0xa0] sm:$0xff] %vm6029_vm15, %v5974_v40  ;;  %5676 = vrot.lane.b32.xlu1 %v14520_v4, %s7634_s25  ;;  %v6204_v40 = vshll.u32 %v479_v42, 16 }
 0x6ec   : > { %6254 = vrot.lane.b32.xlu0 %v14521_v50, %s7638_s9  ;;  %v14533_v50 = vld [vmem:[#allocation112_spill] sm:$0xff] }
 0x6ed   : > { %v6122_v56 = vpop.permute.xlu1 %6121 }
 0x6ee   : > { %v6355_v45 = vpop.permute.xlu0 %6354  ;;  %6190 = vst.msk [vmem:[#allocation2 + $0xe0] sm:$0xff] %vm6161_vm0, %v6122_v56  ;;  %v6202_v56 = vrot.slane %v6201_v29, 4 }
 0x6ef   : > { %6447 = vst.msk [vmem:[#allocation2 + $0x20] sm:$0xff] %vm6442_vm3, %v6355_v45  ;;  %6406 = vrot.lane.b32.xlu1 %v7249_v24, %s7639_s10  ;;  %v6206_v45 = vrot.slane %v6204_v40, 5 }
 0x6f0   : > { %5660 = vrot.lane.b32.xlu0 %v14522_v35, %s7634_s25 }
 0x6f1   : > { %v6267_v1 = vpop.permute.xlu1 %6266  ;;  %v6488_v8 = vld [vmem:[#allocation2 + $0x60] sm:$0xff] }
 0x6f2   : > { %v6106_v7 = vpop.permute.xlu0 %6105  ;;  %6335 = vst.msk [vmem:[#allocation2 + $0xe0] sm:$0xff] %vm6306_vm1, %v6267_v1  ;;  %7315 = vmatprep.subr.msk.bf16.mxu0 %vm6514_vm4, %v6488_v8  ;;  %v14535_v1 = vld [vmem:[#allocation97_spill] sm:$0xff]  ;;  %v6207_v8 = vsel %vm7748_vm2, %v6202_v56, %v6206_v45 }
 0x6f3   : > { %6182 = vst.msk [vmem:[#allocation2 + $0xa0] sm:$0xff] %vm6161_vm0, %v6106_v7  ;;  %5824 = vrot.lane.b32.xlu1 %v14523_v27, %s7635_s27  ;;  %v7265_v7 = vrot.slane %v478_v37, 9  ;;  %v6342_v27 = vrot.slane %v479_v42, 5  ;;  %v7264_v62 = vcombine.low %v5788_v61, %v6207_v8 }
 0x6f4   : > { %6390 = vrot.lane.b32.xlu0 %v14524_v38, %s7639_s10 }
 0x6f5   : > { %v5673_v63 = vpop.permute.xlu1 %5672  ;;  %v6343_v53 = vsel %vm8431_vm5, %v7265_v7, %v6342_v27 }
 0x6f6   : > { %v6251_v20 = vpop.permute.xlu0 %6250  ;;  %v6480_v12 = vld [vmem:[#allocation2 + $0x20] sm:$0xff]  ;;  %5756 = vst.msk [vmem:[#allocation2 + $0x68] sm:$0xff] %vm5742_vm13, %v5673_v63 }
 0x6f7   : > { %6327 = vst.msk [vmem:[#allocation2 + $0xa0] sm:$0xff] %vm6306_vm1, %v6251_v20  ;;  %v6531_v33 = vsel %vm6514_vm4, %v6480_v12, 0  ;;  %5573 = vrot.lane.b32.xlu1 %v7249_v24, %s7633_s24  ;;  %v14536_v63 = vld [vmem:[#allocation162_spill] sm:$0xff]  ;;  %v7266_v12 = vcombine.low %v5927_v49, %v6343_v53 }
 0x6f8   : > { %5808 = vrot.lane.b32.xlu0 %v14525_v19, %s7635_s27  ;;  %7284 = vmatpush3.bf16.xpose.msra.mxu0 %v6531_v33  ;;  %v12800_v20 = vld [vmem:[%s12953_s1] sm:$0xf] }
 0x6f9   : > { %v6403_v32 = vpop.permute.xlu1 %6402  ;;  %7291 = vmatprep.mubr.msk.bf16.mxu0 %vm6514_vm4, %v12800_v20  ;;  %7309 = vmatprep.mubr.msk.bf16.mxu1 %vm6514_vm4, %v12800_v20 }
 0x6fa   : > { %v5657_v58 = vpop.permute.xlu0 %5656  ;;  %6471 = vst.msk [vmem:[#allocation2 + $0xe0] sm:$0xff] %vm6442_vm3, %v6403_v32 }
 0x6fb   : > { %5748 = vst.msk [vmem:[#allocation2 + $0x28] sm:$0xff] %vm5742_vm13, %v5657_v58  ;;  %5963 = vrot.lane.b32.xlu1 %v14526_v0, %s7636_s29  ;;  %v14539_v58 = vld [vmem:[#allocation181_spill] sm:$0xff] }
 0x6fc   : > { %5557 = vrot.lane.b32.xlu0 %v14524_v38, %s7633_s24  ;;  %s7274_s24 = sshll.u32 %s7604_s21, 9 }
 0x6fd   : > { %v5821_v17 = vpop.permute.xlu1 %5820 }
 0x6fe   : > { %v6387_v22 = vpop.permute.xlu0 %6386  ;;  %5904 = vst.msk [vmem:[#allocation2 + $0x68] sm:$0xff] %vm5890_vm14, %v5821_v17  ;;  %v7640_v17 = vmov 0  }
 0x6ff   : > { %6463 = vst.msk [vmem:[#allocation2 + $0xa0] sm:$0xff] %vm6442_vm3, %v6387_v22  ;;  %5708 = vrot.lane.b32.xlu1 %v7253_v3, %s7634_s25  ;;  %7410 = vset.pattern.permute.xlu0 %v7640_v17 }
 0x700   : > { %5947 = vrot.lane.b32.xlu0 %v14527_v54, %s7636_s29 }
 0x701   : > { %v5570_v47 = vpop.permute.xlu1 %5569  ;;  %v6504_v34 = vld [vmem:[#allocation2 + $0xe0] sm:$0xff] }
 0x702   : > { %v5805_v18 = vpop.permute.xlu0 %5804  ;;  %5637 = vst.msk [vmem:[#allocation2 + $0xe8] sm:$0xff] %vm5607_vm12, %v5570_v47  ;;  %7323 = vmatprep.subr.msk.bf16.mxu1 %vm6514_vm4, %v6504_v34 }
 0x703   : > { %5896 = vst.msk [vmem:[#allocation2 + $0x28] sm:$0xff] %vm5890_vm14, %v5805_v18  ;;  %6095 = vrot.lane.b32.xlu1 %v14528_v11, %s7637_s8 }
 0x704   : > { %5692 = vrot.lane.b32.xlu0 %v14529_v31, %s7634_s25 }
 0x705   : > { %v5960_v23 = vpop.permute.xlu1 %5959 }
 0x706   : > { %v5554_v16 = vpop.permute.xlu0 %5553  ;;  %v6496_v28 = vld [vmem:[#allocation2 + $0xa0] sm:$0xff]  ;;  %6043 = vst.msk [vmem:[#allocation2 + $0x68] sm:$0xff] %vm6029_vm15, %v5960_v23 }
 0x707   : > { %5629 = vst.msk [vmem:[#allocation2 + $0xa8] sm:$0xff] %vm5607_vm12, %v5554_v16  ;;  %v6579_v52 = vsel %vm6514_vm4, %v6496_v28, 0  ;;  %5856 = vrot.lane.b32.xlu1 %v7257_v10, %s7635_s27 }
 0x708   : > { %6079 = vrot.lane.b32.xlu0 %v14530_v2, %s7637_s8  ;;  %7302 = vmatpush3.bf16.xpose.msra.mxu1 %v6579_v52 }
 0x709   : > { %v5705_v43 = vpop.permute.xlu1 %5704 }
 0x70a   : > { %v5944_v60 = vpop.permute.xlu0 %5943  ;;  %5772 = vst.msk [vmem:[#allocation2 + $0xe8] sm:$0xff] %vm5742_vm13, %v5705_v43 }
 0x70b   : > { %6035 = vst.msk [vmem:[#allocation2 + $0x28] sm:$0xff] %vm6029_vm15, %v5944_v60  ;;  %6240 = vrot.lane.b32.xlu1 %v14531_v13, %s7638_s9 }
 0x70c   : > { %5840 = vrot.lane.b32.xlu0 %v14532_v51, %s7635_s27 }
 0x70d   : > { %v6092_v4 = vpop.permute.xlu1 %6091 }
 0x70e   : > { %v5689_v24 = vpop.permute.xlu0 %5688  ;;  %6175 = vst.msk [vmem:[#allocation2 + $0x68] sm:$0xff] %vm6161_vm0, %v6092_v4 }
 0x70f   : > { %5764 = vst.msk [vmem:[#allocation2 + $0xa8] sm:$0xff] %vm5742_vm13, %v5689_v24  ;;  %5995 = vrot.lane.b32.xlu1 %v7262_v14, %s7636_s29 }
 0x710   : > { %6224 = vrot.lane.b32.xlu0 %v14533_v50, %s7638_s9 }
 0x711   : > { %v5853_v35 = vpop.permute.xlu1 %5852 }
 0x712   : > { %v6076_v25 = vpop.permute.xlu0 %6075  ;;  %5920 = vst.msk [vmem:[#allocation2 + $0xe8] sm:$0xff] %vm5890_vm14, %v5853_v35 }
 0x713   : > { %6167 = vst.msk [vmem:[#allocation2 + $0x28] sm:$0xff] %vm6161_vm0, %v6076_v25  ;;  %6376 = vrot.lane.b32.xlu1 %v14534_v9, %s7639_s10 }
 0x714   : > { %5979 = vrot.lane.b32.xlu0 %v14535_v1, %s7636_s29  ;;  %s12902_s29 = scalar_lea.hbm %s12955_s3, %s7274_s24 }
 0x715   : > { %v6237_v38 = vpop.permute.xlu1 %6236 }
 0x716   : > { %v5837_v36 = vpop.permute.xlu0 %5836  ;;  %6320 = vst.msk [vmem:[#allocation2 + $0x68] sm:$0xff] %vm6306_vm1, %v6237_v38 }
 0x717   : > { %5912 = vst.msk [vmem:[#allocation2 + $0xa8] sm:$0xff] %vm5890_vm14, %v5837_v36  ;;  %6127 = vrot.lane.b32.xlu1 %v7263_v30, %s7637_s8 }
 0x718   : > { %6360 = vrot.lane.b32.xlu0 %v14536_v63, %s7639_s10 }
 0x719   : > { %v5992_v26 = vpop.permute.xlu1 %5991 }
 0x71a   : > { %v6221_v39 = vpop.permute.xlu0 %6220  ;;  %6059 = vst.msk [vmem:[#allocation2 + $0xe8] sm:$0xff] %vm6029_vm15, %v5992_v26 }
 0x71b   : > { %6312 = vst.msk [vmem:[#allocation2 + $0x28] sm:$0xff] %vm6306_vm1, %v6221_v39  ;;  %6272 = vrot.lane.b32.xlu1 %v7264_v62, %s7638_s9 }
 0x71c   : > { %6111 = vrot.lane.b32.xlu0 %v14537_v59, %s7637_s8  ;;  %s6748_s8 = sshll.u32 %s236_s17, 4  ;;  %s6749_s8 = int_to_ptr.vmem [resolvable:$true] %s6748_s8 }
 0x71d   : > { %v6373_v33 = vpop.permute.xlu1 %6372  ;;  %p7541_p1 = scmp.lt.s32.totalorder %s6749_s8, %s7539_s12 }
 0x71e   : > { %v5976_v19 = vpop.permute.xlu0 %5975  ;;  %6456 = vst.msk [vmem:[#allocation2 + $0x68] sm:$0xff] %vm6442_vm3, %v6373_v33 }
 0x71f   : > { %6051 = vst.msk [vmem:[#allocation2 + $0xa8] sm:$0xff] %vm6029_vm15, %v5976_v19  ;;  %6408 = vrot.lane.b32.xlu1 %v7266_v12, %s7639_s10 }
 0x720   : > { %6256 = vrot.lane.b32.xlu0 %v14538_v57, %s7638_s9  ;;  %s6718_s9 = scalar_lea.sflag [#allocation4], %s234_s15 }
 0x721   : > { %v6124_v21 = vpop.permute.xlu1 %6123 }
 0x722   : > { %v6357_v32 = vpop.permute.xlu0 %6356  ;;  %6191 = vst.msk [vmem:[#allocation2 + $0xe8] sm:$0xff] %vm6161_vm0, %v6124_v21 }
 0x723   : > { %6448 = vst.msk [vmem:[#allocation2 + $0x28] sm:$0xff] %vm6442_vm3, %v6357_v32 }
 0x724   : > { %6392 = vrot.lane.b32.xlu0 %v14539_v58, %s7639_s10  ;;  %s7534_s10 = scalar_lea.vmem %s6749_s8, 512 }
 0x725   : > { %v6269_v0 = vpop.permute.xlu1 %6268  ;;  %v6489_v3 = vld [vmem:[#allocation2 + $0x68] sm:$0xff]  ;;  %p7535_p12 = scmp.ne.s32.totalorder %s6749_s8, %s7534_s10  ;;  %p7542_p2 = scmp.lt.s32.totalorder %s7540_s13, %s7534_s10 }
 0x726   : > { %v6108_v46 = vpop.permute.xlu0 %6107  ;;  %6336 = vst.msk [vmem:[#allocation2 + $0xe8] sm:$0xff] %vm6306_vm1, %v6269_v0  ;;  %7316 = vmatprep.subr.msk.bf16.mxu0 %vm6514_vm4, %v6489_v3 }
 0x727   : > { %6183 = vst.msk [vmem:[#allocation2 + $0xa8] sm:$0xff] %vm6161_vm0, %v6108_v46  ;;  %p7536_p13 = pnand %p7535_p12, %p7712_p4  ;;  %p7543_p3 = por %p7542_p2, %p7541_p1 }
 0x728   : > { %6511 = vperm.xlu0 %7410, %v6508_v55  }
 0x729   : > { %v5675_v22 = vpop.permute.xlu1 %5674  ;;  %p7537_p0 = pneg %p7536_p13 }
 0x72a   : > { %v6253_v54 = vpop.permute.xlu0 %6252  ;;  %v6481_v61 = vld [vmem:[#allocation2 + $0x28] sm:$0xff]  ;;  %5757 = vst.msk [vmem:[#allocation2 + $0x70] sm:$0xff] %vm5742_vm13, %v5675_v22 }
 0x72b   : > { %6328 = vst.msk [vmem:[#allocation2 + $0xa8] sm:$0xff] %vm6306_vm1, %v6253_v54  ;;  %v6534_v47 = vsel %vm6514_vm4, %v6481_v61, 0  ;;  %p7544_p5 = pnand %p7543_p3, %p7537_p0 }
 0x72c   : > { %7286 = vmatpush3.bf16.xpose.msra.mxu0 %v6534_v47 }
 0x72d   : > { %v6405_v34 = vpop.permute.xlu1 %6404 }
 0x72e   : > { %v5659_v37 = vpop.permute.xlu0 %5658  ;;  %6472 = vst.msk [vmem:[#allocation2 + $0xe8] sm:$0xff] %vm6442_vm3, %v6405_v34 }
 0x72f   : > { %5749 = vst.msk [vmem:[#allocation2 + $0x30] sm:$0xff] %vm5742_vm13, %v5659_v37 }
 0x731   : > { %v5823_v18 = vpop.permute.xlu1 %5822 }
 0x732   : > { %v6389_v11 = vpop.permute.xlu0 %6388  ;;  %5905 = vst.msk [vmem:[#allocation2 + $0x70] sm:$0xff] %vm5890_vm14, %v5823_v18 }
 0x733   : > { %6464 = vst.msk [vmem:[#allocation2 + $0xa8] sm:$0xff] %vm6442_vm3, %v6389_v11 }
 0x735   : > { %v5572_v10 = vpop.permute.xlu1 %5571  ;;  %v6505_v31 = vld [vmem:[#allocation2 + $0xe8] sm:$0xff] }
 0x736   : > { %v5807_v6 = vpop.permute.xlu0 %5806  ;;  %5638 = vst.msk [vmem:[#allocation2 + $0xf0] sm:$0xff] %vm5607_vm12, %v5572_v10  ;;  %7324 = vmatprep.subr.msk.bf16.mxu1 %vm6514_vm4, %v6505_v31 }
 0x737   : > { %5897 = vst.msk [vmem:[#allocation2 + $0x30] sm:$0xff] %vm5890_vm14, %v5807_v6 }
 0x739   : > { %v5962_v48 = vpop.permute.xlu1 %5961 }
 0x73a   : > { %v5556_v44 = vpop.permute.xlu0 %5555  ;;  %v6497_v15 = vld [vmem:[#allocation2 + $0xa8] sm:$0xff]  ;;  %6044 = vst.msk [vmem:[#allocation2 + $0x70] sm:$0xff] %vm6029_vm15, %v5962_v48 }
 0x73b   : > { %5630 = vst.msk [vmem:[#allocation2 + $0xb0] sm:$0xff] %vm5607_vm12, %v5556_v44  ;;  %v6582_v23 = vsel %vm6514_vm4, %v6497_v15, 0 }
 0x73c   : > { %7304 = vmatpush3.bf16.xpose.msra.mxu1 %v6582_v23 }
 0x73d   : > { %v5707_v16 = vpop.permute.xlu1 %5706 }
 0x73e   : > { %v5946_v28 = vpop.permute.xlu0 %5945  ;;  %5773 = vst.msk [vmem:[#allocation2 + $0xf0] sm:$0xff] %vm5742_vm13, %v5707_v16 }
 0x73f   : > { %6036 = vst.msk [vmem:[#allocation2 + $0x30] sm:$0xff] %vm6029_vm15, %v5946_v28 }
 0x741   : > { %v6094_v52 = vpop.permute.xlu1 %6093 }
 0x742   : > { %v5691_v2 = vpop.permute.xlu0 %5690  ;;  %6176 = vst.msk [vmem:[#allocation2 + $0x70] sm:$0xff] %vm6161_vm0, %v6094_v52 }
 0x743   : > { %5765 = vst.msk [vmem:[#allocation2 + $0xb0] sm:$0xff] %vm5742_vm13, %v5691_v2 }
 0x745   : > { %v5855_v49 = vpop.permute.xlu1 %5854 }
 0x746   : > { %v6078_v41 = vpop.permute.xlu0 %6077  ;;  %5921 = vst.msk [vmem:[#allocation2 + $0xf0] sm:$0xff] %vm5890_vm14, %v5855_v49 }
 0x747   : > { %6168 = vst.msk [vmem:[#allocation2 + $0x30] sm:$0xff] %vm6161_vm0, %v6078_v41 }
 0x749   : > { %v6239_v5 = vpop.permute.xlu1 %6238 }
 0x74a   : > { %v5839_v43 = vpop.permute.xlu0 %5838  ;;  %6321 = vst.msk [vmem:[#allocation2 + $0x70] sm:$0xff] %vm6306_vm1, %v6239_v5 }
 0x74b   : > { %5913 = vst.msk [vmem:[#allocation2 + $0xb0] sm:$0xff] %vm5890_vm14, %v5839_v43 }
 0x74d   : > { %v5994_v42 = vpop.permute.xlu1 %5993 }
 0x74e   : > { %v6223_v60 = vpop.permute.xlu0 %6222  ;;  %6060 = vst.msk [vmem:[#allocation2 + $0xf0] sm:$0xff] %vm6029_vm15, %v5994_v42 }
 0x74f   : > { %6313 = vst.msk [vmem:[#allocation2 + $0x30] sm:$0xff] %vm6306_vm1, %v6223_v60 }
 0x751   : > { %v6375_v13 = vpop.permute.xlu1 %6374 }
 0x752   : > { %v5978_v14 = vpop.permute.xlu0 %5977  ;;  %6457 = vst.msk [vmem:[#allocation2 + $0x70] sm:$0xff] %vm6442_vm3, %v6375_v13 }
 0x753   : > { %6052 = vst.msk [vmem:[#allocation2 + $0xb0] sm:$0xff] %vm6029_vm15, %v5978_v14 }
 0x755   : > { %v6126_v51 = vpop.permute.xlu1 %6125 }
 0x756   : > { %v6359_v29 = vpop.permute.xlu0 %6358  ;;  %6192 = vst.msk [vmem:[#allocation2 + $0xf0] sm:$0xff] %vm6161_vm0, %v6126_v51 }
 0x757   : > { %6449 = vst.msk [vmem:[#allocation2 + $0x30] sm:$0xff] %vm6442_vm3, %v6359_v29 }
 0x759   : > { %v6271_v40 = vpop.permute.xlu1 %6270  ;;  %v6490_v4 = vld [vmem:[#allocation2 + $0x70] sm:$0xff] }
 0x75a   : > { %v6110_v24 = vpop.permute.xlu0 %6109  ;;  %6337 = vst.msk [vmem:[#allocation2 + $0xf0] sm:$0xff] %vm6306_vm1, %v6271_v40  ;;  %7317 = vmatprep.subr.msk.bf16.mxu0 %vm6514_vm4, %v6490_v4 }
 0x75b   : > { %6184 = vst.msk [vmem:[#allocation2 + $0xb0] sm:$0xff] %vm6161_vm0, %v6110_v24 }
 0x75d   : > { %v5677_v50 = vpop.permute.xlu1 %5676 }
 0x75e   : > { %v6255_v56 = vpop.permute.xlu0 %6254  ;;  %v6482_v45 = vld [vmem:[#allocation2 + $0x30] sm:$0xff]  ;;  %5758 = vst.msk [vmem:[#allocation2 + $0x78] sm:$0xff] %vm5742_vm13, %v5677_v50 }
 0x75f   : > { %6329 = vst.msk [vmem:[#allocation2 + $0xb0] sm:$0xff] %vm6306_vm1, %v6255_v56  ;;  %v6537_v35 = vsel %vm6514_vm4, %v6482_v45, 0 }
 0x760   : > { %7288 = vmatpush3.bf16.xpose.msra.mxu0 %v6537_v35 }
 0x761   : > { %v6407_v25 = vpop.permute.xlu1 %6406 }
 0x762   : > { %v5661_v9 = vpop.permute.xlu0 %5660  ;;  %6473 = vst.msk [vmem:[#allocation2 + $0xf0] sm:$0xff] %vm6442_vm3, %v6407_v25 }
 0x763   : > { %5750 = vst.msk [vmem:[#allocation2 + $0x38] sm:$0xff] %vm5742_vm13, %v5661_v9 }
 0x765   : > { %v5825_v30 = vpop.permute.xlu1 %5824 }
 0x766   : > { %v6391_v1 = vpop.permute.xlu0 %6390  ;;  %5906 = vst.msk [vmem:[#allocation2 + $0x78] sm:$0xff] %vm5890_vm14, %v5825_v30 }
 0x767   : > { %6465 = vst.msk [vmem:[#allocation2 + $0xb0] sm:$0xff] %vm6442_vm3, %v6391_v1 }
 0x769   : > { %v5574_v8 = vpop.permute.xlu1 %5573  ;;  %v6506_v7 = vld [vmem:[#allocation2 + $0xf0] sm:$0xff] }
 0x76a   : > { %v5809_v27 = vpop.permute.xlu0 %5808  ;;  %5639 = vst.msk [vmem:[#allocation2 + $0xf8] sm:$0xff] %vm5607_vm12, %v5574_v8  ;;  %7325 = vmatprep.subr.msk.bf16.mxu1 %vm6514_vm4, %v6506_v7 }
 0x76b   : > { %5898 = vst.msk [vmem:[#allocation2 + $0x38] sm:$0xff] %vm5890_vm14, %v5809_v27 }
 0x76d   : > { %v5964_v38 = vpop.permute.xlu1 %5963 }
 0x76e   : > { %v5558_v36 = vpop.permute.xlu0 %5557  ;;  %v6498_v62 = vld [vmem:[#allocation2 + $0xb0] sm:$0xff]  ;;  %6045 = vst.msk [vmem:[#allocation2 + $0x78] sm:$0xff] %vm6029_vm15, %v5964_v38 }
 0x76f   : > { %5631 = vst.msk [vmem:[#allocation2 + $0xb8] sm:$0xff] %vm5607_vm12, %v5558_v36  ;;  %v6585_v63 = vsel %vm6514_vm4, %v6498_v62, 0 }
 0x770   : > { %7306 = vmatpush3.bf16.xpose.msra.mxu1 %v6585_v63 }
 0x771   : > { %v5709_v53 = vpop.permute.xlu1 %5708 }
 0x772   : > { %v5948_v26 = vpop.permute.xlu0 %5947  ;;  %5774 = vst.msk [vmem:[#allocation2 + $0xf8] sm:$0xff] %vm5742_vm13, %v5709_v53 }
 0x773   : > { %6037 = vst.msk [vmem:[#allocation2 + $0x38] sm:$0xff] %vm6029_vm15, %v5948_v26 }
 0x775   : > { %v6096_v39 = vpop.permute.xlu1 %6095 }
 0x776   : > { %v5693_v12 = vpop.permute.xlu0 %5692  ;;  %6177 = vst.msk [vmem:[#allocation2 + $0x78] sm:$0xff] %vm6161_vm0, %v6096_v39 }
 0x777   : > { %5766 = vst.msk [vmem:[#allocation2 + $0xb8] sm:$0xff] %vm5742_vm13, %v5693_v12 }
 0x779   : > { %v5857_v59 = vpop.permute.xlu1 %5856 }
 0x77a   : > { %v6080_v33 = vpop.permute.xlu0 %6079  ;;  %5922 = vst.msk [vmem:[#allocation2 + $0xf8] sm:$0xff] %vm5890_vm14, %v5857_v59 }
 0x77b   : > { %6169 = vst.msk [vmem:[#allocation2 + $0x38] sm:$0xff] %vm6161_vm0, %v6080_v33 }
 0x77d   : > { %v6241_v19 = vpop.permute.xlu1 %6240 }
 0x77e   : > { %v5841_v57 = vpop.permute.xlu0 %5840  ;;  %6322 = vst.msk [vmem:[#allocation2 + $0x78] sm:$0xff] %vm6306_vm1, %v6241_v19 }
 0x77f   : > { %5914 = vst.msk [vmem:[#allocation2 + $0xb8] sm:$0xff] %vm5890_vm14, %v5841_v57 }
 0x781   : > { %v5996_v21 = vpop.permute.xlu1 %5995 }
 0x782   : > { %v6225_v32 = vpop.permute.xlu0 %6224  ;;  %6061 = vst.msk [vmem:[#allocation2 + $0xf8] sm:$0xff] %vm6029_vm15, %v5996_v21 }
 0x783   : > { %6314 = vst.msk [vmem:[#allocation2 + $0x38] sm:$0xff] %vm6306_vm1, %v6225_v32 }
 0x785   : > { %v6377_v58 = vpop.permute.xlu1 %6376 }
 0x786   : > { %v5980_v0 = vpop.permute.xlu0 %5979  ;;  %6458 = vst.msk [vmem:[#allocation2 + $0x78] sm:$0xff] %vm6442_vm3, %v6377_v58 }
 0x787   : > { %6053 = vst.msk [vmem:[#allocation2 + $0xb8] sm:$0xff] %vm6029_vm15, %v5980_v0 }
 0x789   : > { %v6128_v3 = vpop.permute.xlu1 %6127 }
 0x78a   : > { %v6361_v46 = vpop.permute.xlu0 %6360  ;;  %6193 = vst.msk [vmem:[#allocation2 + $0xf8] sm:$0xff] %vm6161_vm0, %v6128_v3 }
 0x78b   : > { %6450 = vst.msk [vmem:[#allocation2 + $0x38] sm:$0xff] %vm6442_vm3, %v6361_v46 }
 0x78d   : > { %v6273_v55 = vpop.permute.xlu1 %6272  ;;  %v6491_v17 = vld [vmem:[#allocation2 + $0x78] sm:$0xff] }
 0x78e   : > { %v6112_v22 = vpop.permute.xlu0 %6111  ;;  %6338 = vst.msk [vmem:[#allocation2 + $0xf8] sm:$0xff] %vm6306_vm1, %v6273_v55  ;;  %7318 = vmatprep.subr.msk.bf16.mxu0 %vm6514_vm4, %v6491_v17 }
 0x78f   : > { %6185 = vst.msk [vmem:[#allocation2 + $0xb8] sm:$0xff] %vm6161_vm0, %v6112_v22 }
 0x791   : > { %v6409_v54 = vpop.permute.xlu1 %6408 }
 0x792   : > { %v6257_v61 = vpop.permute.xlu0 %6256  ;;  %v6483_v47 = vld [vmem:[#allocation2 + $0x38] sm:$0xff]  ;;  %6474 = vst.msk [vmem:[#allocation2 + $0xf8] sm:$0xff] %vm6442_vm3, %v6409_v54 }
 0x793   : > { %6330 = vst.msk [vmem:[#allocation2 + $0xb8] sm:$0xff] %vm6306_vm1, %v6257_v61  ;;  %v6540_v34 = vsel %vm6514_vm4, %v6483_v47, 0 }
 0x794   : > { %7290 = vmatpush3.bf16.xpose.msra.mxu0 %v6540_v34 }
 0x796   : > { %v6393_v37 = vpop.permute.xlu0 %6392 }
 0x797   : > { %6466 = vst.msk [vmem:[#allocation2 + $0xb8] sm:$0xff] %vm6442_vm3, %v6393_v37 }
 0x799   : > { %v6507_v18 = vld [vmem:[#allocation2 + $0xf8] sm:$0xff] }
 0x79a   : > { %7326 = vmatprep.subr.msk.bf16.mxu1 %vm6514_vm4, %v6507_v18 }
 0x79b   : > { %7292 = vmatmul.mubr.msk.bf16.vlgmr.msra.gmra.mrb[0].mxu0 %vm6514_vm4, %v12800_v20 }
 0x79e   : > { %v6499_v11 = vld [vmem:[#allocation2 + $0xb8] sm:$0xff] }
 0x79f   : > { %v6588_v10 = vsel %vm6514_vm4, %v6499_v11, 0 }
 0x7a0   : > { %7308 = vmatpush3.bf16.xpose.msra.mxu1 %v6588_v10 }
 0x7a7   : > { %7310 = vmatmul.mubr.msk.bf16.vlgmr.msra.gmra.mrb[0].mxu1 %vm6514_vm4, %v12800_v20  ;;  %v6512_v31 = vpop.permute.xlu0 %6511 }
 0x86e   : > { %v6648_v6 = vpop.f32.mrb[0].mxu0 }
 0x86f   : > { %v6650_v48 = vpop.f32.mrb[1].mxu0  ;;  %v6649_v44 = vadd.f32 %v6648_v6, %v6512_v31 }
 0x870   : > { %v6652_v15 = vpop.f32.mrb[2].mxu0  ;;  %v6651_v23 = vadd.f32 %v6650_v48, %v6512_v31 }
 0x871   : > { %6696 = vst [vmem:[%s236_s17] sm:$0xff] %v6649_v44  ;;  %v6653_v16 = vpop.f32.mrb[3].mxu0  ;;  %v6707_v28 = vmul.f32 %v6649_v44, %v6649_v44 }
 0x872   : > { %6697 = vst [vmem:[%s236_s17 + $0x8] sm:$0xff] %v6651_v23  ;;  %v6700_v52 = vadd.f32 %v6651_v23, %v6649_v44  ;;  %v6708_v2 = vmul.f32 %v6651_v23, %v6651_v23 }
 0x874   : > { %v6711_v49 = vadd.f32 %v6708_v2, %v6707_v28 }
 0x87a   : > { %v6689_v41 = vpop.f32.mrb[0].mxu1 }
 0x87b   : > { %v6690_v20 = vadd.f32 %v6689_v41, %v6512_v31  ;;  %v6691_v5 = vpop.f32.mrb[1].mxu1 }
 0x87c   : > { %v6692_v43 = vadd.f32 %v6691_v5, %v6512_v31  ;;  %v6693_v42 = vpop.f32.mrb[2].mxu1 }
 0x87d   : > { %6698 = vst [vmem:[%s236_s17 + $0x10] sm:$0xff] %v6690_v20  ;;  %v6701_v60 = vadd.f32 %v6700_v52, %v6690_v20  ;;  %v6709_v13 = vmul.f32 %v6690_v20, %v6690_v20  ;;  %v6694_v14 = vpop.f32.mrb[3].mxu1 }
 0x87e   : > { %6699 = vst [vmem:[%s236_s17 + $0x18] sm:$0xff] %v6692_v43  ;;  %v6710_v51 = vmul.f32 %v6692_v43, %v6692_v43 }
 0x87f   : > { %v6702_v29 = vadd.f32 %v6701_v60, %v6692_v43  ;;  %v6712_v40 = vadd.f32 %v6711_v49, %v6709_v13 }
 0x881   : > { %6703 = vadd.xlane.f32.xlu1 %v6702_v29  ;;  %v6713_v4 = vadd.f32 %v6712_v40, %v6710_v51 }
 0x883   : > { %6714 = vadd.xlane.f32.xlu0 %v6713_v4 }
 0x884   : > { %7547 = shalt.err (!%p7544_p5)
}
 0x885   : > { %s7548_s21 = scalar_lea.hbm %s12902_s29, 512  ;;  %s7552_s16 = scalar_lea.hbm %s12955_s3, 1024 }
 0x886   : > { %p7549_p6 = scmp.ne.s32.totalorder %s12902_s29, %s7548_s21  ;;  %p7553_p10 = scmp.lt.u32.totalorder %s12902_s29, %s12955_s3 }
 0x887   : > { %p7554_p11 = scmp.lt.u32.totalorder %s7552_s16, %s7548_s21  ;;  %p7556_p13 = scmp.lt.u32.totalorder %s7548_s21, %s12902_s29 }
 0x888   : > { %p7550_p7 = pnand %p7549_p6, %p7712_p4 }
 0x889   : > { %p7555_p12 = por %p7554_p11, %p7553_p10 }
 0x88a   : > { %p7551_p9 = pneg %p7550_p7 }
 0x88b   : > { %p7557_p0 = por %p7556_p13, %p7555_p12 }
 0x88d   : > { %p7558_p1 = pnand %p7557_p0, %p7551_p9 }
 0x88f   : > { %7561 = shalt.err (!%p7558_p1)
}
 0x890   : > { %7328 = dma.vmem_to_hbm [thread:$0]  (%p7712_p4), %s6749_s8, 512, %s12902_s29, %s6718_s9   ;;  %vm6705_vm2 = vcmask 7168  }
 0x891   : > { %s6895_s25 = sshll.u32 %s7729_s7, 3 }
 0x892   : > { %s267_s11 = scalar_lea.vmem %s12956_s4, %s6895_s25  ;;  %s274_s14 = scalar_lea.vmem %s12957_s5, %s6895_s25 }
 0x90e   : > { %v6704_v24 = vpop.xlane.xlu1 %6703 }
 0x90f   : > { %6706 = vst.msk [vmem:[%s267_s11] sm:$0xff] %vm6705_vm2, %v6704_v24 }
 0x910   : > { %v6715_v50 = vpop.xlane.xlu0 %6714 }
 0x911   : > { %6716 = vst.msk [vmem:[%s274_s14] sm:$0xff] %vm6705_vm2, %v6715_v50 }
 0x912 PF: > { %p7334_p2 = scmp.ge.s32.totalorder %s7612_s23, 2  ;;  %s6766_s28 = sand.u32 1, %s7592_s18  }
 0x913   : > { %s6767_s7 = scalar_lea.sflag [#allocation4], %s6766_s28 }
 0x914   : > { %p7331_p4 = pnand %p7334_p2, %p7719_p8 }
 0x916   : > { %7587 = dma.done.wait (!%p7331_p4), %s6767_s7, 512  }
 0x917   : > { %7589 = vsyncadd (!%p7331_p4), %s6767_s7, 4294966784  ;;  %s19_s23 = sadd.s32 1, %s7612_s23   ;;  %s14540_s18 = smov %s7596_s19 }
 0x918   : > { %p16_p3 = scmp.ge.s32.totalorder %s19_s23, 4   ;;  %s14541_s19 = smov %s7600_s20 }
 0x919   : > { %s14542_s20 = smov %s7725_s6  ;;  %s14543_s21 = smov %s7608_s22 }
 0x91a   : > { %s14544_s22 = smov %s14546_s26  ;;  %18 = sbr.rel (!%p16_p3) target bundleno = 4 (0x4), region = 92 }
 0x921   :  { %6792 = vsyncpa [#allocation4], 1 }
 0x922   :  { %6794 = vsyncpa [#allocation4 + $0x1], 1 }

</bundles_post_ra>
